<compile_context>
chip_gen: v7x
topology: tpu7x:2x2x1
jax: 0.10.0
libtpu: 0.0.40
codegen_flags: <defaults>
</compile_context>

<pallas_src>
import functools
import math

import jax
import jax.numpy as jnp
from jax.experimental import pallas as pl
from jax.experimental.pallas import tpu as pltpu


_VMEM_LIMIT = 64 * 1024 * 1024  # <= physical VMEM on v5e/v6e/v7x


# ----------------------------- helpers -----------------------------

def _round_up(x, m):
    return ((x + m - 1) // m) * m


def _tile_and_pad(dim, target, align):
    """Tile size (multiple of `align`, <= max(target, align-rounded dim)) and the
    padded dim it evenly divides. Never falls back to a huge whole-dimension block."""
    if dim < target:
        tile = _round_up(dim, align)
    else:
        tile = target
    return tile, _round_up(dim, tile)


def _pick_divisor(dim, target, align):
    """Largest multiple of `align` <= target dividing dim; falls back to dim.
    Only used for model dims (d_model / ffn), where the fallback is small & safe."""
    if dim <= target:
        return dim
    t = (target // align) * align
    while t >= align:
        if dim % t == 0:
            return t
        t -= align
    return dim


def _pad_dim(x, axis, to):
    pad = to - x.shape[axis]
    if pad == 0:
        return x
    cfg = [(0, 0)] * x.ndim
    cfg[axis] = (0, pad)
    return jnp.pad(x, cfg)


# ----------------------------- plain linear (fc1 / classifier) -----------------------------

def _linear_kernel(x_ref, w_ref, b_ref, o_ref, acc_ref, *, act):
    @pl.when(pl.program_id(2) == 0)
    def _():
        acc_ref[...] = jnp.zeros_like(acc_ref)

    acc_ref[...] += jnp.dot(
        x_ref[...].astype(jnp.bfloat16),
        w_ref[...].astype(jnp.bfloat16),
        preferred_element_type=jnp.float32,
    )

    @pl.when(pl.program_id(2) == pl.num_programs(2) - 1)
    def _():
        y = acc_ref[...] + b_ref[...].astype(jnp.float32)
        if act == "relu":
            y = jnp.maximum(y, 0.0)
        o_ref[...] = y.astype(o_ref.dtype)


def linear(x, w, b, act="none", out_dtype=jnp.bfloat16, tm=512, tn=1024, tk=512):
    """x: [M, K], w: [K, N], b: [1, N] -> [M, N].  Dims are zero-padded up to tile
    multiples (zero rows/cols are sliced off the result), so the vocab projection
    never falls back to a whole-dimension accumulator."""
    M, K = x.shape
    N = w.shape[1]
    tm, Mp = _tile_and_pad(M, tm, 16)   # bf16 rows pack 16/sublane-group
    tn, Np = _tile_and_pad(N, tn, 128)
    tk, Kp = _tile_and_pad(K, tk, 128)
    xp = _pad_dim(_pad_dim(x, 0, Mp), 1, Kp)
    wp = _pad_dim(_pad_dim(w, 0, Kp), 1, Np)
    bp = _pad_dim(b, 1, Np)
    out = pl.pallas_call(
        functools.partial(_linear_kernel, act=act),
        grid=(Mp // tm, Np // tn, Kp // tk),
        in_specs=[
            pl.BlockSpec((tm, tk), lambda i, j, k: (i, k)),
            pl.BlockSpec((tk, tn), lambda i, j, k: (k, j)),
            pl.BlockSpec((1, tn), lambda i, j, k: (0, j)),
        ],
        out_specs=pl.BlockSpec((tm, tn), lambda i, j, k: (i, j)),
        out_shape=jax.ShapeDtypeStruct((Mp, Np), out_dtype),
        scratch_shapes=[pltpu.VMEM((tm, tn), jnp.float32)],
        compiler_params=pltpu.CompilerParams(
            dimension_semantics=("parallel", "parallel", "arbitrary"),
            vmem_limit_bytes=_VMEM_LIMIT,
        ),
    )(xp, wp, bp)
    if Mp != M or Np != N:
        out = out[:M, :N]
    return out


# ----------------------------- linear + residual + LayerNorm (lin2 / fc2) -----------------------------

def _linear_add_ln_kernel(x_ref, w_ref, b_ref, r_ref, g_ref, beta_ref, o_ref,
                          acc_ref, *, eps):
    @pl.when(pl.program_id(1) == 0)
    def _():
        acc_ref[...] = jnp.zeros_like(acc_ref)

    acc_ref[...] += jnp.dot(
        x_ref[...].astype(jnp.bfloat16),
        w_ref[...].astype(jnp.bfloat16),
        preferred_element_type=jnp.float32,
    )

    @pl.when(pl.program_id(1) == pl.num_programs(1) - 1)
    def _():
        h = (acc_ref[...] + b_ref[...].astype(jnp.float32)
             + r_ref[...].astype(jnp.float32))
        mu = jnp.mean(h, axis=-1, keepdims=True)
        var = jnp.mean((h - mu) ** 2, axis=-1, keepdims=True)
        y = (h - mu) * jax.lax.rsqrt(var + eps)
        o_ref[...] = (y * g_ref[...] + beta_ref[...]).astype(o_ref.dtype)


def linear_add_ln(x, w, b, residual, gamma, beta, eps=1e-5,
                  out_dtype=jnp.bfloat16, tm=512, tk=512):
    """LayerNorm(residual + x @ w + b), fused into the matmul's K-finalize.
    x: [M, K], w: [K, D], residual: [M, D] -> [M, D].  D must be a lane multiple."""
    M, K = x.shape
    D = w.shape[1]
    assert D % 128 == 0, "d_model must be a multiple of 128 for the fused LN path"
    tm, Mp = _tile_and_pad(M, tm, 16)
    tk, Kp = _tile_and_pad(K, tk, 128)
    xp = _pad_dim(_pad_dim(x, 0, Mp), 1, Kp)
    rp = _pad_dim(residual, 0, Mp)
    wp = _pad_dim(w, 0, Kp)
    out = pl.pallas_call(
        functools.partial(_linear_add_ln_kernel, eps=eps),
        grid=(Mp // tm, Kp // tk),
        in_specs=[
            pl.BlockSpec((tm, tk), lambda i, k: (i, k)),
            pl.BlockSpec((tk, D), lambda i, k: (k, 0)),
            pl.BlockSpec((1, D), lambda i, k: (0, 0)),
            pl.BlockSpec((tm, D), lambda i, k: (i, 0)),
            pl.BlockSpec((1, D), lambda i, k: (0, 0)),
            pl.BlockSpec((1, D), lambda i, k: (0, 0)),
        ],
        out_specs=pl.BlockSpec((tm, D), lambda i, k: (i, 0)),
        out_shape=jax.ShapeDtypeStruct((Mp, D), out_dtype),
        scratch_shapes=[pltpu.VMEM((tm, D), jnp.float32)],
        compiler_params=pltpu.CompilerParams(
            dimension_semantics=("parallel", "arbitrary"),
            vmem_limit_bytes=_VMEM_LIMIT,
        ),
    )(xp, wp, b, rp, gamma, beta)
    return out[:M] if Mp != M else out


# ----------------------------- fused GLU-linear + lightweight conv -----------------------------

def _glu_conv_kernel(x_ref, w1_ref, b1_ref, wc_ref, o_ref, acc_ref, pad_ref,
                     *, S, K, pad_l):
    k_idx = pl.program_id(1)

    @pl.when(k_idx == 0)
    def _():
        acc_ref[...] = jnp.zeros_like(acc_ref)

    acc_ref[...] += jnp.dot(
        x_ref[0].astype(jnp.bfloat16),
        w1_ref[...].astype(jnp.bfloat16),
        preferred_element_type=jnp.float32,
    )

    @pl.when(k_idx == pl.num_programs(1) - 1)
    def _():
        y = acc_ref[...] + b1_ref[...].astype(jnp.float32)        # [S, 2D]
        n = y.shape[-1] // 2
        g = y[:, :n] * jax.nn.sigmoid(y[:, n:])                   # GLU -> [S, D] f32
        # depthwise lightconv along time: zero-padded slab lives in VMEM only
        pad_ref[...] = jnp.zeros_like(pad_ref)
        pad_ref[pad_l:pad_l + S, :] = g
        gp = pad_ref[...]
        wc = wc_ref[...].astype(jnp.float32)                      # [K, D]
        acc = gp[0:S, :] * wc[0:1, :]
        for k in range(1, K):                                     # K is small & static
            acc = acc + gp[k:k + S, :] * wc[k:k + 1, :]
        o_ref[0] = acc.astype(o_ref.dtype)


def glu_conv(x, w1, b1, conv_w, kernel_size, n_heads, causal, out_dtype=jnp.bfloat16):
    """Fused Linear(D -> 2D) + GLU + lightweight conv (softmax-normalized, per-head
    shared weights).  x: [B, S, D], w1: [D, 2D], conv_w: [H, K] -> [B, S, D]."""
    B, S, D = x.shape
    K = kernel_size
    w = jax.nn.softmax(conv_w.astype(jnp.float32), axis=-1)       # [H, K]
    w_kc = jnp.repeat(w.T, D // n_heads, axis=1)                   # [K, D]
    pad_l = (K - 1) if causal else (K // 2)
    Sp = _round_up(S + K - 1, 8)                                   # sublane-aligned slab
    tk = _pick_divisor(D, 512, 128)
    return pl.pallas_call(
        functools.partial(_glu_conv_kernel, S=S, K=K, pad_l=pad_l),
        grid=(B, D // tk),
        in_specs=[
            pl.BlockSpec((1, S, tk), lambda b, k: (b, 0, k)),
            pl.BlockSpec((tk, 2 * D), lambda b, k: (k, 0)),
            pl.BlockSpec((1, 2 * D), lambda b, k: (0, 0)),
            pl.BlockSpec((K, D), lambda b, k: (0, 0)),
        ],
        out_specs=pl.BlockSpec((1, S, D), lambda b, k: (b, 0, 0)),
        out_shape=jax.ShapeDtypeStruct((B, S, D), out_dtype),
        scratch_shapes=[pltpu.VMEM((S, 2 * D), jnp.float32),
                        pltpu.VMEM((Sp, D), jnp.float32)],
        compiler_params=pltpu.CompilerParams(
            dimension_semantics=("parallel", "arbitrary"),
            vmem_limit_bytes=_VMEM_LIMIT,
        ),
    )(x, w1, b1, w_kc)


# ----------------------------- fused cross-attention + residual + LayerNorm -----------------------------

def _xattn_kernel(q_ref, kv_ref, wq_ref, bq_ref, wk_ref, bk_ref, wv_ref, bv_ref,
                  wo_ref, bo_ref, g_ref, beta_ref, o_ref, ctx_ref,
                  *, n_heads, scale, eps):
    xq = q_ref[0].astype(jnp.bfloat16)        # [Tq, D]
    xkv = kv_ref[0].astype(jnp.bfloat16)      # [Tk, D]
    q = jnp.dot(xq, wq_ref[...].astype(jnp.bfloat16),
                preferred_element_type=jnp.float32) + bq_ref[...]
    k = jnp.dot(xkv, wk_ref[...].astype(jnp.bfloat16),
                preferred_element_type=jnp.float32) + bk_ref[...]
    v = jnp.dot(xkv, wv_ref[...].astype(jnp.bfloat16),
                preferred_element_type=jnp.float32) + bv_ref[...]

    Tq, D = q.shape
    dh = D // n_heads
    for h in range(n_heads):                  # per-head softmax attention
        lo = h * dh
        qh = q[:, lo:lo + dh].astype(jnp.bfloat16)
        kh = k[:, lo:lo + dh].astype(jnp.bfloat16)
        vh = v[:, lo:lo + dh].astype(jnp.bfloat16)
        s = jax.lax.dot_general(qh, kh, (((1,), (1,)), ((), ())),
                                preferred_element_type=jnp.float32) * scale
        s = s - jnp.max(s, axis=-1, keepdims=True)
        p = jnp.exp(s)
        p = p * pl.reciprocal(jnp.sum(p, axis=-1, keepdims=True), approx=True)
        ctx_ref[:, lo:lo + dh] = jnp.dot(p.astype(jnp.bfloat16), vh,
                                         preferred_element_type=jnp.float32)

    # single full-width output projection (K = D contraction -> full MXU occupancy)
    attn = jnp.dot(ctx_ref[...].astype(jnp.bfloat16),
                   wo_ref[...].astype(jnp.bfloat16),
                   preferred_element_type=jnp.float32) + bo_ref[...]
    h_sum = q_ref[0].astype(jnp.float32) + attn          # residual = attention input
    mu = jnp.mean(h_sum, axis=-1, keepdims=True)
    var = jnp.mean((h_sum - mu) ** 2, axis=-1, keepdims=True)
    y = (h_sum - mu) * jax.lax.rsqrt(var + eps)
    o_ref[0] = (y * g_ref[...] + beta_ref[...]).astype(o_ref.dtype)


def cross_attn_add_ln(q_x, kv_x, p, n_heads, eps=1e-5):
    """LayerNorm(q_x + MHA(q_x, kv_x)) fully fused per batch.
    q_x: [B, Tq, D], kv_x: [B, Tk, D] -> [B, Tq, D]."""
    B, Tq, D = q_x.shape
    Tk = kv_x.shape[1]
    dh = D // n_heads
    full_w = pl.BlockSpec((D, D), lambda b: (0, 0))
    full_b = pl.BlockSpec((1, D), lambda b: (0, 0))
    return pl.pallas_call(
        functools.partial(_xattn_kernel, n_heads=n_heads,
                          scale=1.0 / math.sqrt(dh), eps=eps),
        grid=(B,),
        in_specs=[
            pl.BlockSpec((1, Tq, D), lambda b: (b, 0, 0)),
            pl.BlockSpec((1, Tk, D), lambda b: (b, 0, 0)),
            full_w, full_b, full_w, full_b, full_w, full_b, full_w, full_b,
            full_b, full_b,
        ],
        out_specs=pl.BlockSpec((1, Tq, D), lambda b: (b, 0, 0)),
        out_shape=jax.ShapeDtypeStruct((B, Tq, D), jnp.bfloat16),
        scratch_shapes=[pltpu.VMEM((Tq, D), jnp.float32)],
        compiler_params=pltpu.CompilerParams(
            dimension_semantics=("parallel",),
            vmem_limit_bytes=_VMEM_LIMIT,
        ),
    )(q_x, kv_x, p["wq"], p["bq"], p["wk"], p["bk"],
      p["wv"], p["bv"], p["wo"], p["bo"], p["ln_g"], p["ln_b"])


# ----------------------------- model (glue) -----------------------------

def embed(emb_params, tokens):
    tok = jnp.take(emb_params["tok"], tokens, axis=0)            # [B, S, D]
    pos = emb_params["pos"][: tokens.shape[1]][None]             # [1, S, D]
    return (tok * emb_params["scale"] + pos).astype(jnp.bfloat16)


def conv_sublayer(x, p, kernel_size, n_heads, causal):
    B, S, D = x.shape
    h = glu_conv(x, p["lin1_w"], p["lin1_b"], p["conv_w"],
                 kernel_size, n_heads, causal=causal)             # [B, S, D] bf16
    out = linear_add_ln(h.reshape(B * S, D), p["lin2_w"], p["lin2_b"],
                        x.reshape(B * S, D), p["ln_g"], p["ln_b"])
    return out.reshape(B, S, D)


def ffn_sublayer(x, p):
    B, S, D = x.shape
    h = linear(x.reshape(B * S, D), p["fc1_w"], p["fc1_b"], act="relu")
    out = linear_add_ln(h, p["fc2_w"], p["fc2_b"],
                        x.reshape(B * S, D), p["ln_g"], p["ln_b"])
    return out.reshape(B, S, D)


def encoder_layer(x, p, kernel_size, n_heads):
    x = conv_sublayer(x, p["conv"], kernel_size, n_heads, causal=False)
    return ffn_sublayer(x, p["ffn"])


def decoder_layer(x, enc_out, p, kernel_size, n_heads):
    x = conv_sublayer(x, p["conv"], kernel_size, n_heads, causal=True)
    x = cross_attn_add_ln(x, enc_out, p["attn"], n_heads)
    return ffn_sublayer(x, p["ffn"])


def model_forward(params, src_tokens, tgt_tokens, n_heads, enc_kernels, dec_kernels):
    enc_x = embed(params["embed"], src_tokens)
    for lp, ks in zip(params["encoder"], enc_kernels):
        enc_x = encoder_layer(enc_x, lp, ks, n_heads)
    # path_to_dec_embed=None -> decoder shares the encoder embedding
    dec_x = embed(params["embed"], tgt_tokens)
    for lp, ks in zip(params["decoder"], dec_kernels):
        dec_x = decoder_layer(dec_x, enc_x, lp, ks, n_heads)
    B, S, D = dec_x.shape
    logits = linear(dec_x.reshape(B * S, D), params["cls_w"], params["cls_b"],
                    out_dtype=jnp.float32)
    return logits.reshape(B, S, -1)


# ----------------------------- parameter init -----------------------------

def init_params(key, *, vocab, max_pos, d_model, n_heads, ffn, enc_kernels, dec_kernels):
    keys = iter(jax.random.split(key, 4096))

    def nrm(shape, scale=0.02):
        return scale * jax.random.normal(next(keys), shape, jnp.float32)

    def dense(k_in, k_out):
        # bf16 master weights (MXU-native operands), f32 biases
        return nrm((k_in, k_out)).astype(jnp.bfloat16), jnp.zeros((1, k_out), jnp.float32)

    def ln(d):
        return jnp.ones((1, d), jnp.float32), jnp.zeros((1, d), jnp.float32)

    def conv_block(ks):
        w1, b1 = dense(d_model, 2 * d_model)
        cw = nrm((n_heads, ks))
        w2, b2 = dense(d_model, d_model)
        g, b = ln(d_model)
        return dict(lin1_w=w1, lin1_b=b1, conv_w=cw, lin2_w=w2, lin2_b=b2, ln_g=g, ln_b=b)

    def ffn_block():
        w1, b1 = dense(d_model, ffn)
        w2, b2 = dense(ffn, d_model)
        g, b = ln(d_model)
        return dict(fc1_w=w1, fc1_b=b1, fc2_w=w2, fc2_b=b2, ln_g=g, ln_b=b)

    params = {
        "embed": {
            "tok": nrm((vocab, d_model)),
            "pos": nrm((max_pos, d_model)),
            "scale": jnp.float32(math.sqrt(d_model)),
        },
        "encoder": [dict(conv=conv_block(ks), ffn=ffn_block()) for ks in enc_kernels],
    }

    dec_layers = []
    for ks in dec_kernels:
        wq, bq = dense(d_model, d_model)
        wk, bk = dense(d_model, d_model)
        wv, bv = dense(d_model, d_model)
        wo, bo = dense(d_model, d_model)
        g, b = ln(d_model)
        attn = dict(wq=wq, bq=bq, wk=wk, bk=bk, wv=wv, bv=bv, wo=wo, bo=bo, ln_g=g, ln_b=b)
        dec_layers.append(dict(conv=conv_block(ks), attn=attn, ffn=ffn_block()))
    params["decoder"] = dec_layers

    # NOTE: real checkpoints should pad cls_w/cls_b to the vocab tile multiple at
    # load time to avoid a per-forward jnp.pad copy (no-op here: vocab % 128 == 0).
    params["cls_w"], params["cls_b"] = dense(d_model, vocab)
    return params


# ----------------------------- main -----------------------------

if __name__ == "__main__":
    B, S_src, S_tgt = 2, 8, 8
    d_model, n_heads = 128, 8          # lane-dense D (multiple of 128)
    dim_feedforward = 2 * d_model
    vocab, max_pos = 512, 64           # lane-dense vocab
    enc_kernels = (3, 7)               # small config (constructor-configurable)
    dec_kernels = (3, 7)
    assert d_model % n_heads == 0

    params = init_params(
        jax.random.PRNGKey(0),
        vocab=vocab, max_pos=max_pos, d_model=d_model, n_heads=n_heads,
        ffn=dim_feedforward, enc_kernels=enc_kernels, dec_kernels=dec_kernels,
    )

    k1, k2 = jax.random.split(jax.random.PRNGKey(0))
    src_tokens = jax.random.randint(k1, (B, S_src), 0, vocab, dtype=jnp.int32)
    tgt_tokens = jax.random.randint(k2, (B, S_tgt), 0, vocab, dtype=jnp.int32)

    @jax.jit
    def fwd(p, s, t):
        return model_forward(p, s, t, n_heads, enc_kernels, dec_kernels)

    logits = fwd(params, src_tokens, tgt_tokens)
    jax.block_until_ready(logits)
    assert logits.shape == (B, S_tgt, vocab), logits.shape
    assert logits.dtype == jnp.float32
    print("KERNEL_OK")
</pallas_src>

<mosaic_0001>
module attributes {stable_mosaic.version = 11 : i64} {
  func.func @_linear_add_ln_kernel(%arg0: i32, %arg1: i32, %arg2: memref<16x128xbf16, #tpu.memory_space<vmem>>, %arg3: memref<128x128xbf16, #tpu.memory_space<vmem>>, %arg4: memref<1x128xf32, #tpu.memory_space<vmem>>, %arg5: memref<16x128xbf16, #tpu.memory_space<vmem>>, %arg6: memref<1x128xf32, #tpu.memory_space<vmem>>, %arg7: memref<1x128xf32, #tpu.memory_space<vmem>>, %arg8: memref<16x128xbf16, #tpu.memory_space<vmem>>, %arg9: memref<16x128xf32, #tpu.memory_space<vmem>>) attributes {dimension_semantics = [#tpu.dimension_semantics<parallel>, #tpu.dimension_semantics<arbitrary>], iteration_bounds = array<i64: 1, 1>, scalar_prefetch = 0 : i64, scratch_operands = 1 : i64, tpu.core_type = #tpu.core_type<tc>, window_params = [{transform_indices = @transform_0, window_bounds = array<i64: 16, 128>}, {transform_indices = @transform_1, window_bounds = array<i64: 128, 128>}, {pipeline_mode = #tpu.pipeline_mode<synchronous>, transform_indices = @transform_2, window_bounds = array<i64: 1, 128>}, {transform_indices = @transform_3, window_bounds = array<i64: 16, 128>}, {pipeline_mode = #tpu.pipeline_mode<synchronous>, transform_indices = @transform_4, window_bounds = array<i64: 1, 128>}, {pipeline_mode = #tpu.pipeline_mode<synchronous>, transform_indices = @transform_5, window_bounds = array<i64: 1, 128>}, {transform_indices = @transform_6, window_bounds = array<i64: 16, 128>}]} {
    %c0_i32 = arith.constant 0 : i32
    %0 = arith.cmpi eq, %arg1, %c0_i32 : i32
    %1 = arith.extui %0 : i1 to i32
    %c0_i32_0 = arith.constant 0 : i32
    %2 = arith.cmpi ne, %1, %c0_i32_0 : i32
    scf.if %2 {
      %cst_10 = arith.constant 0.000000e+00 : f32
      %12 = vector.broadcast %cst_10 : f32 to vector<16x128xf32>
      %c0_11 = arith.constant 0 : index
      %c0_12 = arith.constant 0 : index
      %13 = vector.load %arg9[%c0_11, %c0_12] : memref<16x128xf32, #tpu.memory_space<vmem>>, vector<16x128xf32>
      tpu.vector_store %arg9[%c0_11, %c0_12], %12 {strides = array<i32>} : memref<16x128xf32, #tpu.memory_space<vmem>>, vector<16x128xf32>,
    } else {
    }
    %c0 = arith.constant 0 : index
    %c0_1 = arith.constant 0 : index
    %3 = vector.load %arg9[%c0, %c0_1] : memref<16x128xf32, #tpu.memory_space<vmem>>, vector<16x128xf32>
    %c0_2 = arith.constant 0 : index
    %c0_3 = arith.constant 0 : index
    %4 = vector.load %arg2[%c0_2, %c0_3] : memref<16x128xbf16, #tpu.memory_space<vmem>>, vector<16x128xbf16>
    %c0_4 = arith.constant 0 : index
    %c0_5 = arith.constant 0 : index
    %5 = vector.load %arg3[%c0_4, %c0_5] : memref<128x128xbf16, #tpu.memory_space<vmem>>, vector<128x128xbf16>
    %cst = arith.constant dense<0.000000e+00> : vector<16x128xf32>
    %6 = tpu.matmul %4, %5, %cst {dimension_numbers = #tpu.dot_dimension_numbers<[1], [0], [0], [1], [0, 0, 1, 1], [], []>} : vector<16x128xbf16>, vector<128x128xbf16>, vector<16x128xf32> -> vector<16x128xf32>
    %7 = arith.addf %3, %6 : vector<16x128xf32>
    %c0_6 = arith.constant 0 : index
    %c0_7 = arith.constant 0 : index
    %8 = vector.load %arg9[%c0_6, %c0_7] : memref<16x128xf32, #tpu.memory_space<vmem>>, vector<16x128xf32>
    tpu.vector_store %arg9[%c0_6, %c0_7], %7 {strides = array<i32>} : memref<16x128xf32, #tpu.memory_space<vmem>>, vector<16x128xf32>,
    %c0_i32_8 = arith.constant 0 : i32
    %9 = arith.cmpi eq, %arg1, %c0_i32_8 : i32
    %10 = arith.extui %9 : i1 to i32
    %c0_i32_9 = arith.constant 0 : i32
    %11 = arith.cmpi ne, %10, %c0_i32_9 : i32
    scf.if %11 {
      %c0_10 = arith.constant 0 : index
      %c0_11 = arith.constant 0 : index
      %12 = vector.load %arg9[%c0_10, %c0_11] : memref<16x128xf32, #tpu.memory_space<vmem>>, vector<16x128xf32>
      %c0_12 = arith.constant 0 : index
      %c0_13 = arith.constant 0 : index
      %13 = vector.load %arg4[%c0_12, %c0_13] : memref<1x128xf32, #tpu.memory_space<vmem>>, vector<1x128xf32>
      %14 = vector.broadcast %13 : vector<1x128xf32> to vector<16x128xf32>
      %15 = arith.addf %12, %14 : vector<16x128xf32>
      %c0_14 = arith.constant 0 : index
      %c0_15 = arith.constant 0 : index
      %16 = vector.load %arg5[%c0_14, %c0_15] : memref<16x128xbf16, #tpu.memory_space<vmem>>, vector<16x128xbf16>
      %17 = arith.extf %16 : vector<16x128xbf16> to vector<16x128xf32>
      %18 = arith.addf %15, %17 : vector<16x128xf32>
      %cst_16 = arith.constant dense<0.000000e+00> : vector<16xf32>
      %19 = vector.multi_reduction <add>, %18, %cst_16 [1] : vector<16x128xf32> to vector<16xf32>
      %20 = vector.shape_cast %19 : vector<16xf32> to vector<16x1xf32>
      %cst_17 = arith.constant 1.280000e+02 : f32
      %21 = vector.broadcast %cst_17 : f32 to vector<16x1xf32>
      %22 = arith.divf %20, %21 : vector<16x1xf32>
      %23 = vector.broadcast %22 : vector<16x1xf32> to vector<16x128xf32>
      %24 = arith.subf %18, %23 : vector<16x128xf32>
      %25 = arith.mulf %24, %24 : vector<16x128xf32>
      %cst_18 = arith.constant dense<0.000000e+00> : vector<16xf32>
      %26 = vector.multi_reduction <add>, %25, %cst_18 [1] : vector<16x128xf32> to vector<16xf32>
      %27 = vector.shape_cast %26 : vector<16xf32> to vector<16x1xf32>
      %cst_19 = arith.constant 1.280000e+02 : f32
      %28 = vector.broadcast %cst_19 : f32 to vector<16x1xf32>
      %29 = arith.divf %27, %28 : vector<16x1xf32>
      %30 = vector.broadcast %22 : vector<16x1xf32> to vector<16x128xf32>
      %31 = arith.subf %18, %30 : vector<16x128xf32>
      %cst_20 = arith.constant 9.99999974E-6 : f32
      %32 = vector.broadcast %cst_20 : f32 to vector<16x1xf32>
      %33 = arith.addf %29, %32 : vector<16x1xf32>
      %34 = math.rsqrt %33 : vector<16x1xf32>
      %35 = vector.broadcast %34 : vector<16x1xf32> to vector<16x128xf32>
      %36 = arith.mulf %31, %35 : vector<16x128xf32>
      %c0_21 = arith.constant 0 : index
      %c0_22 = arith.constant 0 : index
      %37 = vector.load %arg6[%c0_21, %c0_22] : memref<1x128xf32, #tpu.memory_space<vmem>>, vector<1x128xf32>
      %38 = vector.broadcast %37 : vector<1x128xf32> to vector<16x128xf32>
      %39 = arith.mulf %36, %38 : vector<16x128xf32>
      %c0_23 = arith.constant 0 : index
      %c0_24 = arith.constant 0 : index
      %40 = vector.load %arg7[%c0_23, %c0_24] : memref<1x128xf32, #tpu.memory_space<vmem>>, vector<1x128xf32>
      %41 = vector.broadcast %40 : vector<1x128xf32> to vector<16x128xf32>
      %42 = arith.addf %39, %41 : vector<16x128xf32>
      %43 = arith.truncf %42 : vector<16x128xf32> to vector<16x128xbf16>
      %c0_25 = arith.constant 0 : index
      %c0_26 = arith.constant 0 : index
      %44 = vector.load %arg8[%c0_25, %c0_26] : memref<16x128xbf16, #tpu.memory_space<vmem>>, vector<16x128xbf16>
      tpu.vector_store %arg8[%c0_25, %c0_26], %43 {strides = array<i32>} : memref<16x128xbf16, #tpu.memory_space<vmem>>, vector<16x128xbf16>,
    } else {
    }
    return
  }
  func.func @transform_0(%arg0: i32, %arg1: i32) -> (i32, i32) {
    %c0_i32 = arith.constant 0 : i32
    return %arg0, %arg1 : i32, i32
  }
  func.func @transform_1(%arg0: i32, %arg1: i32) -> (i32, i32) {
    %c0_i32 = arith.constant 0 : i32
    %c0_i32_0 = arith.constant 0 : i32
    return %arg1, %c0_i32 : i32, i32
  }
  func.func @transform_2(%arg0: i32, %arg1: i32) -> (i32, i32) {
    %c0_i32 = arith.constant 0 : i32
    %c0_i32_0 = arith.constant 0 : i32
    %c0_i32_1 = arith.constant 0 : i32
    return %c0_i32, %c0_i32_0 : i32, i32
  }
  func.func @transform_3(%arg0: i32, %arg1: i32) -> (i32, i32) {
    %c0_i32 = arith.constant 0 : i32
    %c0_i32_0 = arith.constant 0 : i32
    return %arg0, %c0_i32 : i32, i32
  }
  func.func @transform_4(%arg0: i32, %arg1: i32) -> (i32, i32) {
    %c0_i32 = arith.constant 0 : i32
    %c0_i32_0 = arith.constant 0 : i32
    %c0_i32_1 = arith.constant 0 : i32
    return %c0_i32, %c0_i32_0 : i32, i32
  }
  func.func @transform_5(%arg0: i32, %arg1: i32) -> (i32, i32) {
    %c0_i32 = arith.constant 0 : i32
    %c0_i32_0 = arith.constant 0 : i32
    %c0_i32_1 = arith.constant 0 : i32
    return %c0_i32, %c0_i32_0 : i32, i32
  }
  func.func @transform_6(%arg0: i32, %arg1: i32) -> (i32, i32) {
    %c0_i32 = arith.constant 0 : i32
    %c0_i32_0 = arith.constant 0 : i32
    return %arg0, %c0_i32 : i32, i32
  }
}

module attributes {stable_mosaic.version = 11 : i64} {
  func.func @_glu_conv_kernel(%arg0: i32, %arg1: i32, %arg2: memref<1x8x128xbf16, #tpu.memory_space<vmem>>, %arg3: memref<128x256xbf16, #tpu.memory_space<vmem>>, %arg4: memref<1x256xf32, #tpu.memory_space<vmem>>, %arg5: memref<3x128xf32, #tpu.memory_space<vmem>>, %arg6: memref<1x8x128xbf16, #tpu.memory_space<vmem>>, %arg7: memref<8x256xf32, #tpu.memory_space<vmem>>, %arg8: memref<16x128xf32, #tpu.memory_space<vmem>>) attributes {dimension_semantics = [#tpu.dimension_semantics<parallel>, #tpu.dimension_semantics<arbitrary>], iteration_bounds = array<i64: 2, 1>, scalar_prefetch = 0 : i64, scratch_operands = 2 : i64, tpu.core_type = #tpu.core_type<tc>, window_params = [{transform_indices = @transform_0, window_bounds = array<i64: 1, 8, 128>}, {transform_indices = @transform_1, window_bounds = array<i64: 128, 256>}, {pipeline_mode = #tpu.pipeline_mode<synchronous>, transform_indices = @transform_2, window_bounds = array<i64: 1, 256>}, {pipeline_mode = #tpu.pipeline_mode<synchronous>, transform_indices = @transform_3, window_bounds = array<i64: 3, 128>}, {transform_indices = @transform_4, window_bounds = array<i64: 1, 8, 128>}]} {
    %c0_i32 = arith.constant 0 : i32
    %0 = arith.cmpi eq, %arg1, %c0_i32 : i32
    %1 = arith.extui %0 : i1 to i32
    %c0_i32_0 = arith.constant 0 : i32
    %2 = arith.cmpi ne, %1, %c0_i32_0 : i32
    scf.if %2 {
      %cst_11 = arith.constant 0.000000e+00 : f32
      %13 = vector.broadcast %cst_11 : f32 to vector<8x256xf32>
      %c0_12 = arith.constant 0 : index
      %c0_13 = arith.constant 0 : index
      %14 = vector.load %arg7[%c0_12, %c0_13] : memref<8x256xf32, #tpu.memory_space<vmem>>, vector<8x256xf32>
      tpu.vector_store %arg7[%c0_12, %c0_13], %13 {strides = array<i32>} : memref<8x256xf32, #tpu.memory_space<vmem>>, vector<8x256xf32>,
    } else {
    }
    %c0 = arith.constant 0 : index
    %c0_1 = arith.constant 0 : index
    %3 = vector.load %arg7[%c0, %c0_1] : memref<8x256xf32, #tpu.memory_space<vmem>>, vector<8x256xf32>
    %c0_2 = arith.constant 0 : index
    %c0_3 = arith.constant 0 : index
    %c0_4 = arith.constant 0 : index
    %4 = vector.load %arg2[%c0_2, %c0_3, %c0_4] : memref<1x8x128xbf16, #tpu.memory_space<vmem>>, vector<1x8x128xbf16>
    %5 = vector.shape_cast %4 : vector<1x8x128xbf16> to vector<8x128xbf16>
    %c0_5 = arith.constant 0 : index
    %c0_6 = arith.constant 0 : index
    %6 = vector.load %arg3[%c0_5, %c0_6] : memref<128x256xbf16, #tpu.memory_space<vmem>>, vector<128x256xbf16>
    %cst = arith.constant dense<0.000000e+00> : vector<8x256xf32>
    %7 = tpu.matmul %5, %6, %cst {dimension_numbers = #tpu.dot_dimension_numbers<[1], [0], [0], [1], [0, 0, 1, 1], [], []>} : vector<8x128xbf16>, vector<128x256xbf16>, vector<8x256xf32> -> vector<8x256xf32>
    %8 = arith.addf %3, %7 : vector<8x256xf32>
    %c0_7 = arith.constant 0 : index
    %c0_8 = arith.constant 0 : index
    %9 = vector.load %arg7[%c0_7, %c0_8] : memref<8x256xf32, #tpu.memory_space<vmem>>, vector<8x256xf32>
    tpu.vector_store %arg7[%c0_7, %c0_8], %8 {strides = array<i32>} : memref<8x256xf32, #tpu.memory_space<vmem>>, vector<8x256xf32>,
    %c0_i32_9 = arith.constant 0 : i32
    %10 = arith.cmpi eq, %arg1, %c0_i32_9 : i32
    %11 = arith.extui %10 : i1 to i32
    %c0_i32_10 = arith.constant 0 : i32
    %12 = arith.cmpi ne, %11, %c0_i32_10 : i32
    scf.if %12 {
      %c0_11 = arith.constant 0 : index
      %c0_12 = arith.constant 0 : index
      %13 = vector.load %arg7[%c0_11, %c0_12] : memref<8x256xf32, #tpu.memory_space<vmem>>, vector<8x256xf32>
      %c0_13 = arith.constant 0 : index
      %c0_14 = arith.constant 0 : index
      %14 = vector.load %arg4[%c0_13, %c0_14] : memref<1x256xf32, #tpu.memory_space<vmem>>, vector<1x256xf32>
      %15 = vector.broadcast %14 : vector<1x256xf32> to vector<8x256xf32>
      %16 = arith.addf %13, %15 : vector<8x256xf32>
      %17 = vector.extract_strided_slice %16 {offsets = [0, 0], sizes = [8, 128], strides = [1, 1]} : vector<8x256xf32> to vector<8x128xf32>
      %18 = vector.extract_strided_slice %16 {offsets = [0, 128], sizes = [8, 128], strides = [1, 1]} : vector<8x256xf32> to vector<8x128xf32>
      %19 = arith.negf %18 : vector<8x128xf32>
      %20 = math.exp %19 : vector<8x128xf32>
      %cst_15 = arith.constant 1.000000e+00 : f32
      %21 = vector.broadcast %cst_15 : f32 to vector<8x128xf32>
      %22 = arith.addf %21, %20 : vector<8x128xf32>
      %23 = arith.divf %21, %22 : vector<8x128xf32>
      %24 = arith.mulf %17, %23 : vector<8x128xf32>
      %cst_16 = arith.constant 0.000000e+00 : f32
      %25 = vector.broadcast %cst_16 : f32 to vector<16x128xf32>
      %c0_17 = arith.constant 0 : index
      %c0_18 = arith.constant 0 : index
      %26 = vector.load %arg8[%c0_17, %c0_18] : memref<16x128xf32, #tpu.memory_space<vmem>>, vector<16x128xf32>
      tpu.vector_store %arg8[%c0_17, %c0_18], %25 {strides = array<i32>} : memref<16x128xf32, #tpu.memory_space<vmem>>, vector<16x128xf32>,
      %c2 = arith.constant 2 : index
      %c0_19 = arith.constant 0 : index
      %27 = vector.load %arg8[%c2, %c0_19] : memref<16x128xf32, #tpu.memory_space<vmem>>, vector<8x128xf32>
      tpu.vector_store %arg8[%c2, %c0_19], %24 {strides = array<i32>} : memref<16x128xf32, #tpu.memory_space<vmem>>, vector<8x128xf32>,
      %c0_20 = arith.constant 0 : index
      %c0_21 = arith.constant 0 : index
      %28 = vector.load %arg8[%c0_20, %c0_21] : memref<16x128xf32, #tpu.memory_space<vmem>>, vector<16x128xf32>
      %c0_22 = arith.constant 0 : index
      %c0_23 = arith.constant 0 : index
      %29 = vector.load %arg5[%c0_22, %c0_23] : memref<3x128xf32, #tpu.memory_space<vmem>>, vector<3x128xf32>
      %30 = vector.extract_strided_slice %28 {offsets = [0, 0], sizes = [8, 128], strides = [1, 1]} : vector<16x128xf32> to vector<8x128xf32>
      %31 = vector.extract_strided_slice %29 {offsets = [0, 0], sizes = [1, 128], strides = [1, 1]} : vector<3x128xf32> to vector<1x128xf32>
      %32 = vector.broadcast %31 : vector<1x128xf32> to vector<8x128xf32>
      %33 = arith.mulf %30, %32 : vector<8x128xf32>
      %34 = vector.extract_strided_slice %28 {offsets = [1, 0], sizes = [8, 128], strides = [1, 1]} : vector<16x128xf32> to vector<8x128xf32>
      %35 = vector.extract_strided_slice %29 {offsets = [1, 0], sizes = [1, 128], strides = [1, 1]} : vector<3x128xf32> to vector<1x128xf32>
      %36 = vector.broadcast %35 : vector<1x128xf32> to vector<8x128xf32>
      %37 = arith.mulf %34, %36 : vector<8x128xf32>
      %38 = arith.addf %33, %37 : vector<8x128xf32>
      %39 = vector.extract_strided_slice %28 {offsets = [2, 0], sizes = [8, 128], strides = [1, 1]} : vector<16x128xf32> to vector<8x128xf32>
      %40 = vector.extract_strided_slice %29 {offsets = [2, 0], sizes = [1, 128], strides = [1, 1]} : vector<3x128xf32> to vector<1x128xf32>
      %41 = vector.broadcast %40 : vector<1x128xf32> to vector<8x128xf32>
      %42 = arith.mulf %39, %41 : vector<8x128xf32>
      %43 = arith.addf %38, %42 : vector<8x128xf32>
      %44 = arith.truncf %43 : vector<8x128xf32> to vector<8x128xbf16>
      %c0_24 = arith.constant 0 : index
      %c0_25 = arith.constant 0 : index
      %c0_26 = arith.constant 0 : index
      %45 = vector.load %arg6[%c0_24, %c0_25, %c0_26] : memref<1x8x128xbf16, #tpu.memory_space<vmem>>, vector<1x8x128xbf16>
      %46 = vector.shape_cast %45 : vector<1x8x128xbf16> to vector<8x128xbf16>
      %47 = vector.shape_cast %44 : vector<8x128xbf16> to vector<1x8x128xbf16>
      tpu.vector_store %arg6[%c0_24, %c0_25, %c0_26], %47 {strides = array<i32>} : memref<1x8x128xbf16, #tpu.memory_space<vmem>>, vector<1x8x128xbf16>,
    } else {
    }
    return
  }
  func.func @transform_0(%arg0: i32, %arg1: i32) -> (i32, i32, i32) {
    %c0_i32 = arith.constant 0 : i32
    %c0_i32_0 = arith.constant 0 : i32
    return %arg0, %c0_i32, %arg1 : i32, i32, i32
  }
  func.func @transform_1(%arg0: i32, %arg1: i32) -> (i32, i32) {
    %c0_i32 = arith.constant 0 : i32
    %c0_i32_0 = arith.constant 0 : i32
    return %arg1, %c0_i32 : i32, i32
  }
  func.func @transform_2(%arg0: i32, %arg1: i32) -> (i32, i32) {
    %c0_i32 = arith.constant 0 : i32
    %c0_i32_0 = arith.constant 0 : i32
    %c0_i32_1 = arith.constant 0 : i32
    return %c0_i32, %c0_i32_0 : i32, i32
  }
  func.func @transform_3(%arg0: i32, %arg1: i32) -> (i32, i32) {
    %c0_i32 = arith.constant 0 : i32
    %c0_i32_0 = arith.constant 0 : i32
    %c0_i32_1 = arith.constant 0 : i32
    return %c0_i32, %c0_i32_0 : i32, i32
  }
  func.func @transform_4(%arg0: i32, %arg1: i32) -> (i32, i32, i32) {
    %c0_i32 = arith.constant 0 : i32
    %c0_i32_0 = arith.constant 0 : i32
    %c0_i32_1 = arith.constant 0 : i32
    return %arg0, %c0_i32, %c0_i32_0 : i32, i32, i32
  }
}

module attributes {stable_mosaic.version = 11 : i64} {
  func.func @_linear_kernel(%arg0: i32, %arg1: i32, %arg2: i32, %arg3: memref<16x128xbf16, #tpu.memory_space<vmem>>, %arg4: memref<128x256xbf16, #tpu.memory_space<vmem>>, %arg5: memref<1x256xf32, #tpu.memory_space<vmem>>, %arg6: memref<16x256xbf16, #tpu.memory_space<vmem>>, %arg7: memref<16x256xf32, #tpu.memory_space<vmem>>) attributes {dimension_semantics = [#tpu.dimension_semantics<parallel>, #tpu.dimension_semantics<parallel>, #tpu.dimension_semantics<arbitrary>], iteration_bounds = array<i64: 1, 1, 1>, scalar_prefetch = 0 : i64, scratch_operands = 1 : i64, tpu.core_type = #tpu.core_type<tc>, window_params = [{transform_indices = @transform_0, window_bounds = array<i64: 16, 128>}, {transform_indices = @transform_1, window_bounds = array<i64: 128, 256>}, {transform_indices = @transform_2, window_bounds = array<i64: 1, 256>}, {transform_indices = @transform_3, window_bounds = array<i64: 16, 256>}]} {
    %c0_i32 = arith.constant 0 : i32
    %0 = arith.cmpi eq, %arg2, %c0_i32 : i32
    %1 = arith.extui %0 : i1 to i32
    %c0_i32_0 = arith.constant 0 : i32
    %2 = arith.cmpi ne, %1, %c0_i32_0 : i32
    scf.if %2 {
      %cst_10 = arith.constant 0.000000e+00 : f32
      %12 = vector.broadcast %cst_10 : f32 to vector<16x256xf32>
      %c0_11 = arith.constant 0 : index
      %c0_12 = arith.constant 0 : index
      %13 = vector.load %arg7[%c0_11, %c0_12] : memref<16x256xf32, #tpu.memory_space<vmem>>, vector<16x256xf32>
      tpu.vector_store %arg7[%c0_11, %c0_12], %12 {strides = array<i32>} : memref<16x256xf32, #tpu.memory_space<vmem>>, vector<16x256xf32>,
    } else {
    }
    %c0 = arith.constant 0 : index
    %c0_1 = arith.constant 0 : index
    %3 = vector.load %arg7[%c0, %c0_1] : memref<16x256xf32, #tpu.memory_space<vmem>>, vector<16x256xf32>
    %c0_2 = arith.constant 0 : index
    %c0_3 = arith.constant 0 : index
    %4 = vector.load %arg3[%c0_2, %c0_3] : memref<16x128xbf16, #tpu.memory_space<vmem>>, vector<16x128xbf16>
    %c0_4 = arith.constant 0 : index
    %c0_5 = arith.constant 0 : index
    %5 = vector.load %arg4[%c0_4, %c0_5] : memref<128x256xbf16, #tpu.memory_space<vmem>>, vector<128x256xbf16>
    %cst = arith.constant dense<0.000000e+00> : vector<16x256xf32>
    %6 = tpu.matmul %4, %5, %cst {dimension_numbers = #tpu.dot_dimension_numbers<[1], [0], [0], [1], [0, 0, 1, 1], [], []>} : vector<16x128xbf16>, vector<128x256xbf16>, vector<16x256xf32> -> vector<16x256xf32>
    %7 = arith.addf %3, %6 : vector<16x256xf32>
    %c0_6 = arith.constant 0 : index
    %c0_7 = arith.constant 0 : index
    %8 = vector.load %arg7[%c0_6, %c0_7] : memref<16x256xf32, #tpu.memory_space<vmem>>, vector<16x256xf32>
    tpu.vector_store %arg7[%c0_6, %c0_7], %7 {strides = array<i32>} : memref<16x256xf32, #tpu.memory_space<vmem>>, vector<16x256xf32>,
    %c0_i32_8 = arith.constant 0 : i32
    %9 = arith.cmpi eq, %arg2, %c0_i32_8 : i32
    %10 = arith.extui %9 : i1 to i32
    %c0_i32_9 = arith.constant 0 : i32
    %11 = arith.cmpi ne, %10, %c0_i32_9 : i32
    scf.if %11 {
      %c0_10 = arith.constant 0 : index
      %c0_11 = arith.constant 0 : index
      %12 = vector.load %arg7[%c0_10, %c0_11] : memref<16x256xf32, #tpu.memory_space<vmem>>, vector<16x256xf32>
      %c0_12 = arith.constant 0 : index
      %c0_13 = arith.constant 0 : index
      %13 = vector.load %arg5[%c0_12, %c0_13] : memref<1x256xf32, #tpu.memory_space<vmem>>, vector<1x256xf32>
      %14 = vector.broadcast %13 : vector<1x256xf32> to vector<16x256xf32>
      %15 = arith.addf %12, %14 : vector<16x256xf32>
      %cst_14 = arith.constant 0.000000e+00 : f32
      %16 = vector.broadcast %cst_14 : f32 to vector<16x256xf32>
      %17 = arith.maximumf %15, %16 : vector<16x256xf32>
      %18 = arith.truncf %17 : vector<16x256xf32> to vector<16x256xbf16>
      %c0_15 = arith.constant 0 : index
      %c0_16 = arith.constant 0 : index
      %19 = vector.load %arg6[%c0_15, %c0_16] : memref<16x256xbf16, #tpu.memory_space<vmem>>, vector<16x256xbf16>
      tpu.vector_store %arg6[%c0_15, %c0_16], %18 {strides = array<i32>} : memref<16x256xbf16, #tpu.memory_space<vmem>>, vector<16x256xbf16>,
    } else {
    }
    return
  }
  func.func @transform_0(%arg0: i32, %arg1: i32, %arg2: i32) -> (i32, i32) {
    %c0_i32 = arith.constant 0 : i32
    return %arg0, %arg2 : i32, i32
  }
  func.func @transform_1(%arg0: i32, %arg1: i32, %arg2: i32) -> (i32, i32) {
    %c0_i32 = arith.constant 0 : i32
    return %arg2, %arg1 : i32, i32
  }
  func.func @transform_2(%arg0: i32, %arg1: i32, %arg2: i32) -> (i32, i32) {
    %c0_i32 = arith.constant 0 : i32
    %c0_i32_0 = arith.constant 0 : i32
    return %c0_i32, %arg1 : i32, i32
  }
  func.func @transform_3(%arg0: i32, %arg1: i32, %arg2: i32) -> (i32, i32) {
    %c0_i32 = arith.constant 0 : i32
    return %arg0, %arg1 : i32, i32
  }
}

module attributes {stable_mosaic.version = 11 : i64} {
  func.func @_glu_conv_kernel(%arg0: i32, %arg1: i32, %arg2: memref<1x8x128xbf16, #tpu.memory_space<vmem>>, %arg3: memref<128x256xbf16, #tpu.memory_space<vmem>>, %arg4: memref<1x256xf32, #tpu.memory_space<vmem>>, %arg5: memref<3x128xf32, #tpu.memory_space<vmem>>, %arg6: memref<1x8x128xbf16, #tpu.memory_space<vmem>>, %arg7: memref<8x256xf32, #tpu.memory_space<vmem>>, %arg8: memref<16x128xf32, #tpu.memory_space<vmem>>) attributes {dimension_semantics = [#tpu.dimension_semantics<parallel>, #tpu.dimension_semantics<arbitrary>], iteration_bounds = array<i64: 2, 1>, scalar_prefetch = 0 : i64, scratch_operands = 2 : i64, tpu.core_type = #tpu.core_type<tc>, window_params = [{transform_indices = @transform_0, window_bounds = array<i64: 1, 8, 128>}, {transform_indices = @transform_1, window_bounds = array<i64: 128, 256>}, {pipeline_mode = #tpu.pipeline_mode<synchronous>, transform_indices = @transform_2, window_bounds = array<i64: 1, 256>}, {pipeline_mode = #tpu.pipeline_mode<synchronous>, transform_indices = @transform_3, window_bounds = array<i64: 3, 128>}, {transform_indices = @transform_4, window_bounds = array<i64: 1, 8, 128>}]} {
    %c0_i32 = arith.constant 0 : i32
    %0 = arith.cmpi eq, %arg1, %c0_i32 : i32
    %1 = arith.extui %0 : i1 to i32
    %c0_i32_0 = arith.constant 0 : i32
    %2 = arith.cmpi ne, %1, %c0_i32_0 : i32
    scf.if %2 {
      %cst_11 = arith.constant 0.000000e+00 : f32
      %13 = vector.broadcast %cst_11 : f32 to vector<8x256xf32>
      %c0_12 = arith.constant 0 : index
      %c0_13 = arith.constant 0 : index
      %14 = vector.load %arg7[%c0_12, %c0_13] : memref<8x256xf32, #tpu.memory_space<vmem>>, vector<8x256xf32>
      tpu.vector_store %arg7[%c0_12, %c0_13], %13 {strides = array<i32>} : memref<8x256xf32, #tpu.memory_space<vmem>>, vector<8x256xf32>,
    } else {
    }
    %c0 = arith.constant 0 : index
    %c0_1 = arith.constant 0 : index
    %3 = vector.load %arg7[%c0, %c0_1] : memref<8x256xf32, #tpu.memory_space<vmem>>, vector<8x256xf32>
    %c0_2 = arith.constant 0 : index
    %c0_3 = arith.constant 0 : index
    %c0_4 = arith.constant 0 : index
    %4 = vector.load %arg2[%c0_2, %c0_3, %c0_4] : memref<1x8x128xbf16, #tpu.memory_space<vmem>>, vector<1x8x128xbf16>
    %5 = vector.shape_cast %4 : vector<1x8x128xbf16> to vector<8x128xbf16>
    %c0_5 = arith.constant 0 : index
    %c0_6 = arith.constant 0 : index
    %6 = vector.load %arg3[%c0_5, %c0_6] : memref<128x256xbf16, #tpu.memory_space<vmem>>, vector<128x256xbf16>
    %cst = arith.constant dense<0.000000e+00> : vector<8x256xf32>
    %7 = tpu.matmul %5, %6, %cst {dimension_numbers = #tpu.dot_dimension_numbers<[1], [0], [0], [1], [0, 0, 1, 1], [], []>} : vector<8x128xbf16>, vector<128x256xbf16>, vector<8x256xf32> -> vector<8x256xf32>
    %8 = arith.addf %3, %7 : vector<8x256xf32>
    %c0_7 = arith.constant 0 : index
    %c0_8 = arith.constant 0 : index
    %9 = vector.load %arg7[%c0_7, %c0_8] : memref<8x256xf32, #tpu.memory_space<vmem>>, vector<8x256xf32>
    tpu.vector_store %arg7[%c0_7, %c0_8], %8 {strides = array<i32>} : memref<8x256xf32, #tpu.memory_space<vmem>>, vector<8x256xf32>,
    %c0_i32_9 = arith.constant 0 : i32
    %10 = arith.cmpi eq, %arg1, %c0_i32_9 : i32
    %11 = arith.extui %10 : i1 to i32
    %c0_i32_10 = arith.constant 0 : i32
    %12 = arith.cmpi ne, %11, %c0_i32_10 : i32
    scf.if %12 {
      %c0_11 = arith.constant 0 : index
      %c0_12 = arith.constant 0 : index
      %13 = vector.load %arg7[%c0_11, %c0_12] : memref<8x256xf32, #tpu.memory_space<vmem>>, vector<8x256xf32>
      %c0_13 = arith.constant 0 : index
      %c0_14 = arith.constant 0 : index
      %14 = vector.load %arg4[%c0_13, %c0_14] : memref<1x256xf32, #tpu.memory_space<vmem>>, vector<1x256xf32>
      %15 = vector.broadcast %14 : vector<1x256xf32> to vector<8x256xf32>
      %16 = arith.addf %13, %15 : vector<8x256xf32>
      %17 = vector.extract_strided_slice %16 {offsets = [0, 0], sizes = [8, 128], strides = [1, 1]} : vector<8x256xf32> to vector<8x128xf32>
      %18 = vector.extract_strided_slice %16 {offsets = [0, 128], sizes = [8, 128], strides = [1, 1]} : vector<8x256xf32> to vector<8x128xf32>
      %19 = arith.negf %18 : vector<8x128xf32>
      %20 = math.exp %19 : vector<8x128xf32>
      %cst_15 = arith.constant 1.000000e+00 : f32
      %21 = vector.broadcast %cst_15 : f32 to vector<8x128xf32>
      %22 = arith.addf %21, %20 : vector<8x128xf32>
      %23 = arith.divf %21, %22 : vector<8x128xf32>
      %24 = arith.mulf %17, %23 : vector<8x128xf32>
      %cst_16 = arith.constant 0.000000e+00 : f32
      %25 = vector.broadcast %cst_16 : f32 to vector<16x128xf32>
      %c0_17 = arith.constant 0 : index
      %c0_18 = arith.constant 0 : index
      %26 = vector.load %arg8[%c0_17, %c0_18] : memref<16x128xf32, #tpu.memory_space<vmem>>, vector<16x128xf32>
      tpu.vector_store %arg8[%c0_17, %c0_18], %25 {strides = array<i32>} : memref<16x128xf32, #tpu.memory_space<vmem>>, vector<16x128xf32>,
      %c1 = arith.constant 1 : index
      %c0_19 = arith.constant 0 : index
      %27 = vector.load %arg8[%c1, %c0_19] : memref<16x128xf32, #tpu.memory_space<vmem>>, vector<8x128xf32>
      tpu.vector_store %arg8[%c1, %c0_19], %24 {strides = array<i32>} : memref<16x128xf32, #tpu.memory_space<vmem>>, vector<8x128xf32>,
      %c0_20 = arith.constant 0 : index
      %c0_21 = arith.constant 0 : index
      %28 = vector.load %arg8[%c0_20, %c0_21] : memref<16x128xf32, #tpu.memory_space<vmem>>, vector<16x128xf32>
      %c0_22 = arith.constant 0 : index
      %c0_23 = arith.constant 0 : index
      %29 = vector.load %arg5[%c0_22, %c0_23] : memref<3x128xf32, #tpu.memory_space<vmem>>, vector<3x128xf32>
      %30 = vector.extract_strided_slice %28 {offsets = [0, 0], sizes = [8, 128], strides = [1, 1]} : vector<16x128xf32> to vector<8x128xf32>
      %31 = vector.extract_strided_slice %29 {offsets = [0, 0], sizes = [1, 128], strides = [1, 1]} : vector<3x128xf32> to vector<1x128xf32>
      %32 = vector.broadcast %31 : vector<1x128xf32> to vector<8x128xf32>
      %33 = arith.mulf %30, %32 : vector<8x128xf32>
      %34 = vector.extract_strided_slice %28 {offsets = [1, 0], sizes = [8, 128], strides = [1, 1]} : vector<16x128xf32> to vector<8x128xf32>
      %35 = vector.extract_strided_slice %29 {offsets = [1, 0], sizes = [1, 128], strides = [1, 1]} : vector<3x128xf32> to vector<1x128xf32>
      %36 = vector.broadcast %35 : vector<1x128xf32> to vector<8x128xf32>
      %37 = arith.mulf %34, %36 : vector<8x128xf32>
      %38 = arith.addf %33, %37 : vector<8x128xf32>
      %39 = vector.extract_strided_slice %28 {offsets = [2, 0], sizes = [8, 128], strides = [1, 1]} : vector<16x128xf32> to vector<8x128xf32>
      %40 = vector.extract_strided_slice %29 {offsets = [2, 0], sizes = [1, 128], strides = [1, 1]} : vector<3x128xf32> to vector<1x128xf32>
      %41 = vector.broadcast %40 : vector<1x128xf32> to vector<8x128xf32>
      %42 = arith.mulf %39, %41 : vector<8x128xf32>
      %43 = arith.addf %38, %42 : vector<8x128xf32>
      %44 = arith.truncf %43 : vector<8x128xf32> to vector<8x128xbf16>
      %c0_24 = arith.constant 0 : index
      %c0_25 = arith.constant 0 : index
      %c0_26 = arith.constant 0 : index
      %45 = vector.load %arg6[%c0_24, %c0_25, %c0_26] : memref<1x8x128xbf16, #tpu.memory_space<vmem>>, vector<1x8x128xbf16>
      %46 = vector.shape_cast %45 : vector<1x8x128xbf16> to vector<8x128xbf16>
      %47 = vector.shape_cast %44 : vector<8x128xbf16> to vector<1x8x128xbf16>
      tpu.vector_store %arg6[%c0_24, %c0_25, %c0_26], %47 {strides = array<i32>} : memref<1x8x128xbf16, #tpu.memory_space<vmem>>, vector<1x8x128xbf16>,
    } else {
    }
    return
  }
  func.func @transform_0(%arg0: i32, %arg1: i32) -> (i32, i32, i32) {
    %c0_i32 = arith.constant 0 : i32
    %c0_i32_0 = arith.constant 0 : i32
    return %arg0, %c0_i32, %arg1 : i32, i32, i32
  }
  func.func @transform_1(%arg0: i32, %arg1: i32) -> (i32, i32) {
    %c0_i32 = arith.constant 0 : i32
    %c0_i32_0 = arith.constant 0 : i32
    return %arg1, %c0_i32 : i32, i32
  }
  func.func @transform_2(%arg0: i32, %arg1: i32) -> (i32, i32) {
    %c0_i32 = arith.constant 0 : i32
    %c0_i32_0 = arith.constant 0 : i32
    %c0_i32_1 = arith.constant 0 : i32
    return %c0_i32, %c0_i32_0 : i32, i32
  }
  func.func @transform_3(%arg0: i32, %arg1: i32) -> (i32, i32) {
    %c0_i32 = arith.constant 0 : i32
    %c0_i32_0 = arith.constant 0 : i32
    %c0_i32_1 = arith.constant 0 : i32
    return %c0_i32, %c0_i32_0 : i32, i32
  }
  func.func @transform_4(%arg0: i32, %arg1: i32) -> (i32, i32, i32) {
    %c0_i32 = arith.constant 0 : i32
    %c0_i32_0 = arith.constant 0 : i32
    %c0_i32_1 = arith.constant 0 : i32
    return %arg0, %c0_i32, %c0_i32_0 : i32, i32, i32
  }
}

module attributes {stable_mosaic.version = 11 : i64} {
  func.func @_linear_add_ln_kernel(%arg0: i32, %arg1: i32, %arg2: memref<16x256xbf16, #tpu.memory_space<vmem>>, %arg3: memref<256x128xbf16, #tpu.memory_space<vmem>>, %arg4: memref<1x128xf32, #tpu.memory_space<vmem>>, %arg5: memref<16x128xbf16, #tpu.memory_space<vmem>>, %arg6: memref<1x128xf32, #tpu.memory_space<vmem>>, %arg7: memref<1x128xf32, #tpu.memory_space<vmem>>, %arg8: memref<16x128xbf16, #tpu.memory_space<vmem>>, %arg9: memref<16x128xf32, #tpu.memory_space<vmem>>) attributes {dimension_semantics = [#tpu.dimension_semantics<parallel>, #tpu.dimension_semantics<arbitrary>], iteration_bounds = array<i64: 1, 1>, scalar_prefetch = 0 : i64, scratch_operands = 1 : i64, tpu.core_type = #tpu.core_type<tc>, window_params = [{transform_indices = @transform_0, window_bounds = array<i64: 16, 256>}, {transform_indices = @transform_1, window_bounds = array<i64: 256, 128>}, {pipeline_mode = #tpu.pipeline_mode<synchronous>, transform_indices = @transform_2, window_bounds = array<i64: 1, 128>}, {transform_indices = @transform_3, window_bounds = array<i64: 16, 128>}, {pipeline_mode = #tpu.pipeline_mode<synchronous>, transform_indices = @transform_4, window_bounds = array<i64: 1, 128>}, {pipeline_mode = #tpu.pipeline_mode<synchronous>, transform_indices = @transform_5, window_bounds = array<i64: 1, 128>}, {transform_indices = @transform_6, window_bounds = array<i64: 16, 128>}]} {
    %c0_i32 = arith.constant 0 : i32
    %0 = arith.cmpi eq, %arg1, %c0_i32 : i32
    %1 = arith.extui %0 : i1 to i32
    %c0_i32_0 = arith.constant 0 : i32
    %2 = arith.cmpi ne, %1, %c0_i32_0 : i32
    scf.if %2 {
      %cst_10 = arith.constant 0.000000e+00 : f32
      %12 = vector.broadcast %cst_10 : f32 to vector<16x128xf32>
      %c0_11 = arith.constant 0 : index
      %c0_12 = arith.constant 0 : index
      %13 = vector.load %arg9[%c0_11, %c0_12] : memref<16x128xf32, #tpu.memory_space<vmem>>, vector<16x128xf32>
      tpu.vector_store %arg9[%c0_11, %c0_12], %12 {strides = array<i32>} : memref<16x128xf32, #tpu.memory_space<vmem>>, vector<16x128xf32>,
    } else {
    }
    %c0 = arith.constant 0 : index
    %c0_1 = arith.constant 0 : index
    %3 = vector.load %arg9[%c0, %c0_1] : memref<16x128xf32, #tpu.memory_space<vmem>>, vector<16x128xf32>
    %c0_2 = arith.constant 0 : index
    %c0_3 = arith.constant 0 : index
    %4 = vector.load %arg2[%c0_2, %c0_3] : memref<16x256xbf16, #tpu.memory_space<vmem>>, vector<16x256xbf16>
    %c0_4 = arith.constant 0 : index
    %c0_5 = arith.constant 0 : index
    %5 = vector.load %arg3[%c0_4, %c0_5] : memref<256x128xbf16, #tpu.memory_space<vmem>>, vector<256x128xbf16>
    %cst = arith.constant dense<0.000000e+00> : vector<16x128xf32>
    %6 = tpu.matmul %4, %5, %cst {dimension_numbers = #tpu.dot_dimension_numbers<[1], [0], [0], [1], [0, 0, 1, 1], [], []>} : vector<16x256xbf16>, vector<256x128xbf16>, vector<16x128xf32> -> vector<16x128xf32>
    %7 = arith.addf %3, %6 : vector<16x128xf32>
    %c0_6 = arith.constant 0 : index
    %c0_7 = arith.constant 0 : index
    %8 = vector.load %arg9[%c0_6, %c0_7] : memref<16x128xf32, #tpu.memory_space<vmem>>, vector<16x128xf32>
    tpu.vector_store %arg9[%c0_6, %c0_7], %7 {strides = array<i32>} : memref<16x128xf32, #tpu.memory_space<vmem>>, vector<16x128xf32>,
    %c0_i32_8 = arith.constant 0 : i32
    %9 = arith.cmpi eq, %arg1, %c0_i32_8 : i32
    %10 = arith.extui %9 : i1 to i32
    %c0_i32_9 = arith.constant 0 : i32
    %11 = arith.cmpi ne, %10, %c0_i32_9 : i32
    scf.if %11 {
      %c0_10 = arith.constant 0 : index
      %c0_11 = arith.constant 0 : index
      %12 = vector.load %arg9[%c0_10, %c0_11] : memref<16x128xf32, #tpu.memory_space<vmem>>, vector<16x128xf32>
      %c0_12 = arith.constant 0 : index
      %c0_13 = arith.constant 0 : index
      %13 = vector.load %arg4[%c0_12, %c0_13] : memref<1x128xf32, #tpu.memory_space<vmem>>, vector<1x128xf32>
      %14 = vector.broadcast %13 : vector<1x128xf32> to vector<16x128xf32>
      %15 = arith.addf %12, %14 : vector<16x128xf32>
      %c0_14 = arith.constant 0 : index
      %c0_15 = arith.constant 0 : index
      %16 = vector.load %arg5[%c0_14, %c0_15] : memref<16x128xbf16, #tpu.memory_space<vmem>>, vector<16x128xbf16>
      %17 = arith.extf %16 : vector<16x128xbf16> to vector<16x128xf32>
      %18 = arith.addf %15, %17 : vector<16x128xf32>
      %cst_16 = arith.constant dense<0.000000e+00> : vector<16xf32>
      %19 = vector.multi_reduction <add>, %18, %cst_16 [1] : vector<16x128xf32> to vector<16xf32>
      %20 = vector.shape_cast %19 : vector<16xf32> to vector<16x1xf32>
      %cst_17 = arith.constant 1.280000e+02 : f32
      %21 = vector.broadcast %cst_17 : f32 to vector<16x1xf32>
      %22 = arith.divf %20, %21 : vector<16x1xf32>
      %23 = vector.broadcast %22 : vector<16x1xf32> to vector<16x128xf32>
      %24 = arith.subf %18, %23 : vector<16x128xf32>
      %25 = arith.mulf %24, %24 : vector<16x128xf32>
      %cst_18 = arith.constant dense<0.000000e+00> : vector<16xf32>
      %26 = vector.multi_reduction <add>, %25, %cst_18 [1] : vector<16x128xf32> to vector<16xf32>
      %27 = vector.shape_cast %26 : vector<16xf32> to vector<16x1xf32>
      %cst_19 = arith.constant 1.280000e+02 : f32
      %28 = vector.broadcast %cst_19 : f32 to vector<16x1xf32>
      %29 = arith.divf %27, %28 : vector<16x1xf32>
      %30 = vector.broadcast %22 : vector<16x1xf32> to vector<16x128xf32>
      %31 = arith.subf %18, %30 : vector<16x128xf32>
      %cst_20 = arith.constant 9.99999974E-6 : f32
      %32 = vector.broadcast %cst_20 : f32 to vector<16x1xf32>
      %33 = arith.addf %29, %32 : vector<16x1xf32>
      %34 = math.rsqrt %33 : vector<16x1xf32>
      %35 = vector.broadcast %34 : vector<16x1xf32> to vector<16x128xf32>
      %36 = arith.mulf %31, %35 : vector<16x128xf32>
      %c0_21 = arith.constant 0 : index
      %c0_22 = arith.constant 0 : index
      %37 = vector.load %arg6[%c0_21, %c0_22] : memref<1x128xf32, #tpu.memory_space<vmem>>, vector<1x128xf32>
      %38 = vector.broadcast %37 : vector<1x128xf32> to vector<16x128xf32>
      %39 = arith.mulf %36, %38 : vector<16x128xf32>
      %c0_23 = arith.constant 0 : index
      %c0_24 = arith.constant 0 : index
      %40 = vector.load %arg7[%c0_23, %c0_24] : memref<1x128xf32, #tpu.memory_space<vmem>>, vector<1x128xf32>
      %41 = vector.broadcast %40 : vector<1x128xf32> to vector<16x128xf32>
      %42 = arith.addf %39, %41 : vector<16x128xf32>
      %43 = arith.truncf %42 : vector<16x128xf32> to vector<16x128xbf16>
      %c0_25 = arith.constant 0 : index
      %c0_26 = arith.constant 0 : index
      %44 = vector.load %arg8[%c0_25, %c0_26] : memref<16x128xbf16, #tpu.memory_space<vmem>>, vector<16x128xbf16>
      tpu.vector_store %arg8[%c0_25, %c0_26], %43 {strides = array<i32>} : memref<16x128xbf16, #tpu.memory_space<vmem>>, vector<16x128xbf16>,
    } else {
    }
    return
  }
  func.func @transform_0(%arg0: i32, %arg1: i32) -> (i32, i32) {
    %c0_i32 = arith.constant 0 : i32
    return %arg0, %arg1 : i32, i32
  }
  func.func @transform_1(%arg0: i32, %arg1: i32) -> (i32, i32) {
    %c0_i32 = arith.constant 0 : i32
    %c0_i32_0 = arith.constant 0 : i32
    return %arg1, %c0_i32 : i32, i32
  }
  func.func @transform_2(%arg0: i32, %arg1: i32) -> (i32, i32) {
    %c0_i32 = arith.constant 0 : i32
    %c0_i32_0 = arith.constant 0 : i32
    %c0_i32_1 = arith.constant 0 : i32
    return %c0_i32, %c0_i32_0 : i32, i32
  }
  func.func @transform_3(%arg0: i32, %arg1: i32) -> (i32, i32) {
    %c0_i32 = arith.constant 0 : i32
    %c0_i32_0 = arith.constant 0 : i32
    return %arg0, %c0_i32 : i32, i32
  }
  func.func @transform_4(%arg0: i32, %arg1: i32) -> (i32, i32) {
    %c0_i32 = arith.constant 0 : i32
    %c0_i32_0 = arith.constant 0 : i32
    %c0_i32_1 = arith.constant 0 : i32
    return %c0_i32, %c0_i32_0 : i32, i32
  }
  func.func @transform_5(%arg0: i32, %arg1: i32) -> (i32, i32) {
    %c0_i32 = arith.constant 0 : i32
    %c0_i32_0 = arith.constant 0 : i32
    %c0_i32_1 = arith.constant 0 : i32
    return %c0_i32, %c0_i32_0 : i32, i32
  }
  func.func @transform_6(%arg0: i32, %arg1: i32) -> (i32, i32) {
    %c0_i32 = arith.constant 0 : i32
    %c0_i32_0 = arith.constant 0 : i32
    return %arg0, %c0_i32 : i32, i32
  }
}

module attributes {stable_mosaic.version = 11 : i64} {
  func.func @_glu_conv_kernel(%arg0: i32, %arg1: i32, %arg2: memref<1x8x128xbf16, #tpu.memory_space<vmem>>, %arg3: memref<128x256xbf16, #tpu.memory_space<vmem>>, %arg4: memref<1x256xf32, #tpu.memory_space<vmem>>, %arg5: memref<7x128xf32, #tpu.memory_space<vmem>>, %arg6: memref<1x8x128xbf16, #tpu.memory_space<vmem>>, %arg7: memref<8x256xf32, #tpu.memory_space<vmem>>, %arg8: memref<16x128xf32, #tpu.memory_space<vmem>>) attributes {dimension_semantics = [#tpu.dimension_semantics<parallel>, #tpu.dimension_semantics<arbitrary>], iteration_bounds = array<i64: 2, 1>, scalar_prefetch = 0 : i64, scratch_operands = 2 : i64, tpu.core_type = #tpu.core_type<tc>, window_params = [{transform_indices = @transform_0, window_bounds = array<i64: 1, 8, 128>}, {transform_indices = @transform_1, window_bounds = array<i64: 128, 256>}, {pipeline_mode = #tpu.pipeline_mode<synchronous>, transform_indices = @transform_2, window_bounds = array<i64: 1, 256>}, {pipeline_mode = #tpu.pipeline_mode<synchronous>, transform_indices = @transform_3, window_bounds = array<i64: 7, 128>}, {transform_indices = @transform_4, window_bounds = array<i64: 1, 8, 128>}]} {
    %c0_i32 = arith.constant 0 : i32
    %0 = arith.cmpi eq, %arg1, %c0_i32 : i32
    %1 = arith.extui %0 : i1 to i32
    %c0_i32_0 = arith.constant 0 : i32
    %2 = arith.cmpi ne, %1, %c0_i32_0 : i32
    scf.if %2 {
      %cst_11 = arith.constant 0.000000e+00 : f32
      %13 = vector.broadcast %cst_11 : f32 to vector<8x256xf32>
      %c0_12 = arith.constant 0 : index
      %c0_13 = arith.constant 0 : index
      %14 = vector.load %arg7[%c0_12, %c0_13] : memref<8x256xf32, #tpu.memory_space<vmem>>, vector<8x256xf32>
      tpu.vector_store %arg7[%c0_12, %c0_13], %13 {strides = array<i32>} : memref<8x256xf32, #tpu.memory_space<vmem>>, vector<8x256xf32>,
    } else {
    }
    %c0 = arith.constant 0 : index
    %c0_1 = arith.constant 0 : index
    %3 = vector.load %arg7[%c0, %c0_1] : memref<8x256xf32, #tpu.memory_space<vmem>>, vector<8x256xf32>
    %c0_2 = arith.constant 0 : index
    %c0_3 = arith.constant 0 : index
    %c0_4 = arith.constant 0 : index
    %4 = vector.load %arg2[%c0_2, %c0_3, %c0_4] : memref<1x8x128xbf16, #tpu.memory_space<vmem>>, vector<1x8x128xbf16>
    %5 = vector.shape_cast %4 : vector<1x8x128xbf16> to vector<8x128xbf16>
    %c0_5 = arith.constant 0 : index
    %c0_6 = arith.constant 0 : index
    %6 = vector.load %arg3[%c0_5, %c0_6] : memref<128x256xbf16, #tpu.memory_space<vmem>>, vector<128x256xbf16>
    %cst = arith.constant dense<0.000000e+00> : vector<8x256xf32>
    %7 = tpu.matmul %5, %6, %cst {dimension_numbers = #tpu.dot_dimension_numbers<[1], [0], [0], [1], [0, 0, 1, 1], [], []>} : vector<8x128xbf16>, vector<128x256xbf16>, vector<8x256xf32> -> vector<8x256xf32>
    %8 = arith.addf %3, %7 : vector<8x256xf32>
    %c0_7 = arith.constant 0 : index
    %c0_8 = arith.constant 0 : index
    %9 = vector.load %arg7[%c0_7, %c0_8] : memref<8x256xf32, #tpu.memory_space<vmem>>, vector<8x256xf32>
    tpu.vector_store %arg7[%c0_7, %c0_8], %8 {strides = array<i32>} : memref<8x256xf32, #tpu.memory_space<vmem>>, vector<8x256xf32>,
    %c0_i32_9 = arith.constant 0 : i32
    %10 = arith.cmpi eq, %arg1, %c0_i32_9 : i32
    %11 = arith.extui %10 : i1 to i32
    %c0_i32_10 = arith.constant 0 : i32
    %12 = arith.cmpi ne, %11, %c0_i32_10 : i32
    scf.if %12 {
      %c0_11 = arith.constant 0 : index
      %c0_12 = arith.constant 0 : index
      %13 = vector.load %arg7[%c0_11, %c0_12] : memref<8x256xf32, #tpu.memory_space<vmem>>, vector<8x256xf32>
      %c0_13 = arith.constant 0 : index
      %c0_14 = arith.constant 0 : index
      %14 = vector.load %arg4[%c0_13, %c0_14] : memref<1x256xf32, #tpu.memory_space<vmem>>, vector<1x256xf32>
      %15 = vector.broadcast %14 : vector<1x256xf32> to vector<8x256xf32>
      %16 = arith.addf %13, %15 : vector<8x256xf32>
      %17 = vector.extract_strided_slice %16 {offsets = [0, 0], sizes = [8, 128], strides = [1, 1]} : vector<8x256xf32> to vector<8x128xf32>
      %18 = vector.extract_strided_slice %16 {offsets = [0, 128], sizes = [8, 128], strides = [1, 1]} : vector<8x256xf32> to vector<8x128xf32>
      %19 = arith.negf %18 : vector<8x128xf32>
      %20 = math.exp %19 : vector<8x128xf32>
      %cst_15 = arith.constant 1.000000e+00 : f32
      %21 = vector.broadcast %cst_15 : f32 to vector<8x128xf32>
      %22 = arith.addf %21, %20 : vector<8x128xf32>
      %23 = arith.divf %21, %22 : vector<8x128xf32>
      %24 = arith.mulf %17, %23 : vector<8x128xf32>
      %cst_16 = arith.constant 0.000000e+00 : f32
      %25 = vector.broadcast %cst_16 : f32 to vector<16x128xf32>
      %c0_17 = arith.constant 0 : index
      %c0_18 = arith.constant 0 : index
      %26 = vector.load %arg8[%c0_17, %c0_18] : memref<16x128xf32, #tpu.memory_space<vmem>>, vector<16x128xf32>
      tpu.vector_store %arg8[%c0_17, %c0_18], %25 {strides = array<i32>} : memref<16x128xf32, #tpu.memory_space<vmem>>, vector<16x128xf32>,
      %c3 = arith.constant 3 : index
      %c0_19 = arith.constant 0 : index
      %27 = vector.load %arg8[%c3, %c0_19] : memref<16x128xf32, #tpu.memory_space<vmem>>, vector<8x128xf32>
      tpu.vector_store %arg8[%c3, %c0_19], %24 {strides = array<i32>} : memref<16x128xf32, #tpu.memory_space<vmem>>, vector<8x128xf32>,
      %c0_20 = arith.constant 0 : index
      %c0_21 = arith.constant 0 : index
      %28 = vector.load %arg8[%c0_20, %c0_21] : memref<16x128xf32, #tpu.memory_space<vmem>>, vector<16x128xf32>
      %c0_22 = arith.constant 0 : index
      %c0_23 = arith.constant 0 : index
      %29 = vector.load %arg5[%c0_22, %c0_23] : memref<7x128xf32, #tpu.memory_space<vmem>>, vector<7x128xf32>
      %30 = vector.extract_strided_slice %28 {offsets = [0, 0], sizes = [8, 128], strides = [1, 1]} : vector<16x128xf32> to vector<8x128xf32>
      %31 = vector.extract_strided_slice %29 {offsets = [0, 0], sizes = [1, 128], strides = [1, 1]} : vector<7x128xf32> to vector<1x128xf32>
      %32 = vector.broadcast %31 : vector<1x128xf32> to vector<8x128xf32>
      %33 = arith.mulf %30, %32 : vector<8x128xf32>
      %34 = vector.extract_strided_slice %28 {offsets = [1, 0], sizes = [8, 128], strides = [1, 1]} : vector<16x128xf32> to vector<8x128xf32>
      %35 = vector.extract_strided_slice %29 {offsets = [1, 0], sizes = [1, 128], strides = [1, 1]} : vector<7x128xf32> to vector<1x128xf32>
      %36 = vector.broadcast %35 : vector<1x128xf32> to vector<8x128xf32>
      %37 = arith.mulf %34, %36 : vector<8x128xf32>
      %38 = arith.addf %33, %37 : vector<8x128xf32>
      %39 = vector.extract_strided_slice %28 {offsets = [2, 0], sizes = [8, 128], strides = [1, 1]} : vector<16x128xf32> to vector<8x128xf32>
      %40 = vector.extract_strided_slice %29 {offsets = [2, 0], sizes = [1, 128], strides = [1, 1]} : vector<7x128xf32> to vector<1x128xf32>
      %41 = vector.broadcast %40 : vector<1x128xf32> to vector<8x128xf32>
      %42 = arith.mulf %39, %41 : vector<8x128xf32>
      %43 = arith.addf %38, %42 : vector<8x128xf32>
      %44 = vector.extract_strided_slice %28 {offsets = [3, 0], sizes = [8, 128], strides = [1, 1]} : vector<16x128xf32> to vector<8x128xf32>
      %45 = vector.extract_strided_slice %29 {offsets = [3, 0], sizes = [1, 128], strides = [1, 1]} : vector<7x128xf32> to vector<1x128xf32>
      %46 = vector.broadcast %45 : vector<1x128xf32> to vector<8x128xf32>
      %47 = arith.mulf %44, %46 : vector<8x128xf32>
      %48 = arith.addf %43, %47 : vector<8x128xf32>
      %49 = vector.extract_strided_slice %28 {offsets = [4, 0], sizes = [8, 128], strides = [1, 1]} : vector<16x128xf32> to vector<8x128xf32>
      %50 = vector.extract_strided_slice %29 {offsets = [4, 0], sizes = [1, 128], strides = [1, 1]} : vector<7x128xf32> to vector<1x128xf32>
      %51 = vector.broadcast %50 : vector<1x128xf32> to vector<8x128xf32>
      %52 = arith.mulf %49, %51 : vector<8x128xf32>
      %53 = arith.addf %48, %52 : vector<8x128xf32>
      %54 = vector.extract_strided_slice %28 {offsets = [5, 0], sizes = [8, 128], strides = [1, 1]} : vector<16x128xf32> to vector<8x128xf32>
      %55 = vector.extract_strided_slice %29 {offsets = [5, 0], sizes = [1, 128], strides = [1, 1]} : vector<7x128xf32> to vector<1x128xf32>
      %56 = vector.broadcast %55 : vector<1x128xf32> to vector<8x128xf32>
      %57 = arith.mulf %54, %56 : vector<8x128xf32>
      %58 = arith.addf %53, %57 : vector<8x128xf32>
      %59 = vector.extract_strided_slice %28 {offsets = [6, 0], sizes = [8, 128], strides = [1, 1]} : vector<16x128xf32> to vector<8x128xf32>
      %60 = vector.extract_strided_slice %29 {offsets = [6, 0], sizes = [1, 128], strides = [1, 1]} : vector<7x128xf32> to vector<1x128xf32>
      %61 = vector.broadcast %60 : vector<1x128xf32> to vector<8x128xf32>
      %62 = arith.mulf %59, %61 : vector<8x128xf32>
      %63 = arith.addf %58, %62 : vector<8x128xf32>
      %64 = arith.truncf %63 : vector<8x128xf32> to vector<8x128xbf16>
      %c0_24 = arith.constant 0 : index
      %c0_25 = arith.constant 0 : index
      %c0_26 = arith.constant 0 : index
      %65 = vector.load %arg6[%c0_24, %c0_25, %c0_26] : memref<1x8x128xbf16, #tpu.memory_space<vmem>>, vector<1x8x128xbf16>
      %66 = vector.shape_cast %65 : vector<1x8x128xbf16> to vector<8x128xbf16>
      %67 = vector.shape_cast %64 : vector<8x128xbf16> to vector<1x8x128xbf16>
      tpu.vector_store %arg6[%c0_24, %c0_25, %c0_26], %67 {strides = array<i32>} : memref<1x8x128xbf16, #tpu.memory_space<vmem>>, vector<1x8x128xbf16>,
    } else {
    }
    return
  }
  func.func @transform_0(%arg0: i32, %arg1: i32) -> (i32, i32, i32) {
    %c0_i32 = arith.constant 0 : i32
    %c0_i32_0 = arith.constant 0 : i32
    return %arg0, %c0_i32, %arg1 : i32, i32, i32
  }
  func.func @transform_1(%arg0: i32, %arg1: i32) -> (i32, i32) {
    %c0_i32 = arith.constant 0 : i32
    %c0_i32_0 = arith.constant 0 : i32
    return %arg1, %c0_i32 : i32, i32
  }
  func.func @transform_2(%arg0: i32, %arg1: i32) -> (i32, i32) {
    %c0_i32 = arith.constant 0 : i32
    %c0_i32_0 = arith.constant 0 : i32
    %c0_i32_1 = arith.constant 0 : i32
    return %c0_i32, %c0_i32_0 : i32, i32
  }
  func.func @transform_3(%arg0: i32, %arg1: i32) -> (i32, i32) {
    %c0_i32 = arith.constant 0 : i32
    %c0_i32_0 = arith.constant 0 : i32
    %c0_i32_1 = arith.constant 0 : i32
    return %c0_i32, %c0_i32_0 : i32, i32
  }
  func.func @transform_4(%arg0: i32, %arg1: i32) -> (i32, i32, i32) {
    %c0_i32 = arith.constant 0 : i32
    %c0_i32_0 = arith.constant 0 : i32
    %c0_i32_1 = arith.constant 0 : i32
    return %arg0, %c0_i32, %c0_i32_0 : i32, i32, i32
  }
}

module attributes {stable_mosaic.version = 11 : i64} {
  func.func @_xattn_kernel(%arg0: i32, %arg1: memref<1x8x128xbf16, #tpu.memory_space<vmem>>, %arg2: memref<1x8x128xbf16, #tpu.memory_space<vmem>>, %arg3: memref<128x128xbf16, #tpu.memory_space<vmem>>, %arg4: memref<1x128xf32, #tpu.memory_space<vmem>>, %arg5: memref<128x128xbf16, #tpu.memory_space<vmem>>, %arg6: memref<1x128xf32, #tpu.memory_space<vmem>>, %arg7: memref<128x128xbf16, #tpu.memory_space<vmem>>, %arg8: memref<1x128xf32, #tpu.memory_space<vmem>>, %arg9: memref<128x128xbf16, #tpu.memory_space<vmem>>, %arg10: memref<1x128xf32, #tpu.memory_space<vmem>>, %arg11: memref<1x128xf32, #tpu.memory_space<vmem>>, %arg12: memref<1x128xf32, #tpu.memory_space<vmem>>, %arg13: memref<1x8x128xbf16, #tpu.memory_space<vmem>>, %arg14: memref<8x128xf32, #tpu.memory_space<vmem>>) attributes {dimension_semantics = [#tpu.dimension_semantics<parallel>], iteration_bounds = array<i64: 2>, scalar_prefetch = 0 : i64, scratch_operands = 1 : i64, tpu.core_type = #tpu.core_type<tc>, window_params = [{transform_indices = @transform_0, window_bounds = array<i64: 1, 8, 128>}, {transform_indices = @transform_1, window_bounds = array<i64: 1, 8, 128>}, {pipeline_mode = #tpu.pipeline_mode<synchronous>, transform_indices = @transform_2, window_bounds = array<i64: 128, 128>}, {pipeline_mode = #tpu.pipeline_mode<synchronous>, transform_indices = @transform_3, window_bounds = array<i64: 1, 128>}, {pipeline_mode = #tpu.pipeline_mode<synchronous>, transform_indices = @transform_4, window_bounds = array<i64: 128, 128>}, {pipeline_mode = #tpu.pipeline_mode<synchronous>, transform_indices = @transform_5, window_bounds = array<i64: 1, 128>}, {pipeline_mode = #tpu.pipeline_mode<synchronous>, transform_indices = @transform_6, window_bounds = array<i64: 128, 128>}, {pipeline_mode = #tpu.pipeline_mode<synchronous>, transform_indices = @transform_7, window_bounds = array<i64: 1, 128>}, {pipeline_mode = #tpu.pipeline_mode<synchronous>, transform_indices = @transform_8, window_bounds = array<i64: 128, 128>}, {pipeline_mode = #tpu.pipeline_mode<synchronous>, transform_indices = @transform_9, window_bounds = array<i64: 1, 128>}, {pipeline_mode = #tpu.pipeline_mode<synchronous>, transform_indices = @transform_10, window_bounds = array<i64: 1, 128>}, {pipeline_mode = #tpu.pipeline_mode<synchronous>, transform_indices = @transform_11, window_bounds = array<i64: 1, 128>}, {transform_indices = @transform_12, window_bounds = array<i64: 1, 8, 128>}]} {
    %c0 = arith.constant 0 : index
    %c0_0 = arith.constant 0 : index
    %c0_1 = arith.constant 0 : index
    %0 = vector.load %arg1[%c0, %c0_0, %c0_1] : memref<1x8x128xbf16, #tpu.memory_space<vmem>>, vector<1x8x128xbf16>
    %1 = vector.shape_cast %0 : vector<1x8x128xbf16> to vector<8x128xbf16>
    %c0_2 = arith.constant 0 : index
    %c0_3 = arith.constant 0 : index
    %c0_4 = arith.constant 0 : index
    %2 = vector.load %arg2[%c0_2, %c0_3, %c0_4] : memref<1x8x128xbf16, #tpu.memory_space<vmem>>, vector<1x8x128xbf16>
    %3 = vector.shape_cast %2 : vector<1x8x128xbf16> to vector<8x128xbf16>
    %c0_5 = arith.constant 0 : index
    %c0_6 = arith.constant 0 : index
    %4 = vector.load %arg3[%c0_5, %c0_6] : memref<128x128xbf16, #tpu.memory_space<vmem>>, vector<128x128xbf16>
    %cst = arith.constant dense<0.000000e+00> : vector<8x128xf32>
    %5 = tpu.matmul %1, %4, %cst {dimension_numbers = #tpu.dot_dimension_numbers<[1], [0], [0], [1], [0, 0, 1, 1], [], []>} : vector<8x128xbf16>, vector<128x128xbf16>, vector<8x128xf32> -> vector<8x128xf32>
    %c0_7 = arith.constant 0 : index
    %c0_8 = arith.constant 0 : index
    %6 = vector.load %arg4[%c0_7, %c0_8] : memref<1x128xf32, #tpu.memory_space<vmem>>, vector<1x128xf32>
    %7 = vector.broadcast %6 : vector<1x128xf32> to vector<8x128xf32>
    %8 = arith.addf %5, %7 : vector<8x128xf32>
    %c0_9 = arith.constant 0 : index
    %c0_10 = arith.constant 0 : index
    %9 = vector.load %arg5[%c0_9, %c0_10] : memref<128x128xbf16, #tpu.memory_space<vmem>>, vector<128x128xbf16>
    %cst_11 = arith.constant dense<0.000000e+00> : vector<8x128xf32>
    %10 = tpu.matmul %3, %9, %cst_11 {dimension_numbers = #tpu.dot_dimension_numbers<[1], [0], [0], [1], [0, 0, 1, 1], [], []>} : vector<8x128xbf16>, vector<128x128xbf16>, vector<8x128xf32> -> vector<8x128xf32>
    %c0_12 = arith.constant 0 : index
    %c0_13 = arith.constant 0 : index
    %11 = vector.load %arg6[%c0_12, %c0_13] : memref<1x128xf32, #tpu.memory_space<vmem>>, vector<1x128xf32>
    %12 = vector.broadcast %11 : vector<1x128xf32> to vector<8x128xf32>
    %13 = arith.addf %10, %12 : vector<8x128xf32>
    %c0_14 = arith.constant 0 : index
    %c0_15 = arith.constant 0 : index
    %14 = vector.load %arg7[%c0_14, %c0_15] : memref<128x128xbf16, #tpu.memory_space<vmem>>, vector<128x128xbf16>
    %cst_16 = arith.constant dense<0.000000e+00> : vector<8x128xf32>
    %15 = tpu.matmul %3, %14, %cst_16 {dimension_numbers = #tpu.dot_dimension_numbers<[1], [0], [0], [1], [0, 0, 1, 1], [], []>} : vector<8x128xbf16>, vector<128x128xbf16>, vector<8x128xf32> -> vector<8x128xf32>
    %c0_17 = arith.constant 0 : index
    %c0_18 = arith.constant 0 : index
    %16 = vector.load %arg8[%c0_17, %c0_18] : memref<1x128xf32, #tpu.memory_space<vmem>>, vector<1x128xf32>
    %17 = vector.broadcast %16 : vector<1x128xf32> to vector<8x128xf32>
    %18 = arith.addf %15, %17 : vector<8x128xf32>
    %19 = vector.extract_strided_slice %8 {offsets = [0, 0], sizes = [8, 16], strides = [1, 1]} : vector<8x128xf32> to vector<8x16xf32>
    %20 = arith.truncf %19 : vector<8x16xf32> to vector<8x16xbf16>
    %21 = vector.extract_strided_slice %13 {offsets = [0, 0], sizes = [8, 16], strides = [1, 1]} : vector<8x128xf32> to vector<8x16xf32>
    %22 = arith.truncf %21 : vector<8x16xf32> to vector<8x16xbf16>
    %23 = vector.extract_strided_slice %18 {offsets = [0, 0], sizes = [8, 16], strides = [1, 1]} : vector<8x128xf32> to vector<8x16xf32>
    %24 = arith.truncf %23 : vector<8x16xf32> to vector<8x16xbf16>
    %cst_19 = arith.constant dense<0.000000e+00> : vector<8x8xf32>
    %25 = tpu.matmul %20, %22, %cst_19 {dimension_numbers = #tpu.dot_dimension_numbers<[1], [1], [0], [0], [0, 0, 1, 0], [], []>} : vector<8x16xbf16>, vector<8x16xbf16>, vector<8x8xf32> -> vector<8x8xf32>
    %cst_20 = arith.constant 2.500000e-01 : f32
    %26 = vector.broadcast %cst_20 : f32 to vector<8x8xf32>
    %27 = arith.mulf %25, %26 : vector<8x8xf32>
    %cst_21 = arith.constant dense<0xFF800000> : vector<8xf32>
    %28 = vector.multi_reduction <maximumf>, %27, %cst_21 [1] : vector<8x8xf32> to vector<8xf32>
    %29 = vector.shape_cast %28 : vector<8xf32> to vector<8x1xf32>
    %30 = vector.broadcast %29 : vector<8x1xf32> to vector<8x8xf32>
    %31 = arith.subf %27, %30 : vector<8x8xf32>
    %32 = math.exp %31 : vector<8x8xf32>
    %cst_22 = arith.constant dense<0.000000e+00> : vector<8xf32>
    %33 = vector.multi_reduction <add>, %32, %cst_22 [1] : vector<8x8xf32> to vector<8xf32>
    %34 = vector.shape_cast %33 : vector<8xf32> to vector<8x1xf32>
    %35 = tpu.reciprocal %34 {approx = true} : vector<8x1xf32> -> vector<8x1xf32>
    %36 = vector.broadcast %35 : vector<8x1xf32> to vector<8x8xf32>
    %37 = arith.mulf %32, %36 : vector<8x8xf32>
    %38 = arith.truncf %37 : vector<8x8xf32> to vector<8x8xbf16>
    %cst_23 = arith.constant dense<0.000000e+00> : vector<8x16xf32>
    %39 = tpu.matmul %38, %24, %cst_23 {dimension_numbers = #tpu.dot_dimension_numbers<[1], [0], [0], [1], [0, 0, 1, 1], [], []>} : vector<8x8xbf16>, vector<8x16xbf16>, vector<8x16xf32> -> vector<8x16xf32>
    %c0_24 = arith.constant 0 : index
    %c0_25 = arith.constant 0 : index
    %40 = vector.load %arg14[%c0_24, %c0_25] : memref<8x128xf32, #tpu.memory_space<vmem>>, vector<8x16xf32>
    tpu.vector_store %arg14[%c0_24, %c0_25], %39 {strides = array<i32>} : memref<8x128xf32, #tpu.memory_space<vmem>>, vector<8x16xf32>,
    %41 = vector.extract_strided_slice %8 {offsets = [0, 16], sizes = [8, 16], strides = [1, 1]} : vector<8x128xf32> to vector<8x16xf32>
    %42 = arith.truncf %41 : vector<8x16xf32> to vector<8x16xbf16>
    %43 = vector.extract_strided_slice %13 {offsets = [0, 16], sizes = [8, 16], strides = [1, 1]} : vector<8x128xf32> to vector<8x16xf32>
    %44 = arith.truncf %43 : vector<8x16xf32> to vector<8x16xbf16>
    %45 = vector.extract_strided_slice %18 {offsets = [0, 16], sizes = [8, 16], strides = [1, 1]} : vector<8x128xf32> to vector<8x16xf32>
    %46 = arith.truncf %45 : vector<8x16xf32> to vector<8x16xbf16>
    %cst_26 = arith.constant dense<0.000000e+00> : vector<8x8xf32>
    %47 = tpu.matmul %42, %44, %cst_26 {dimension_numbers = #tpu.dot_dimension_numbers<[1], [1], [0], [0], [0, 0, 1, 0], [], []>} : vector<8x16xbf16>, vector<8x16xbf16>, vector<8x8xf32> -> vector<8x8xf32>
    %cst_27 = arith.constant 2.500000e-01 : f32
    %48 = vector.broadcast %cst_27 : f32 to vector<8x8xf32>
    %49 = arith.mulf %47, %48 : vector<8x8xf32>
    %cst_28 = arith.constant dense<0xFF800000> : vector<8xf32>
    %50 = vector.multi_reduction <maximumf>, %49, %cst_28 [1] : vector<8x8xf32> to vector<8xf32>
    %51 = vector.shape_cast %50 : vector<8xf32> to vector<8x1xf32>
    %52 = vector.broadcast %51 : vector<8x1xf32> to vector<8x8xf32>
    %53 = arith.subf %49, %52 : vector<8x8xf32>
    %54 = math.exp %53 : vector<8x8xf32>
    %cst_29 = arith.constant dense<0.000000e+00> : vector<8xf32>
    %55 = vector.multi_reduction <add>, %54, %cst_29 [1] : vector<8x8xf32> to vector<8xf32>
    %56 = vector.shape_cast %55 : vector<8xf32> to vector<8x1xf32>
    %57 = tpu.reciprocal %56 {approx = true} : vector<8x1xf32> -> vector<8x1xf32>
    %58 = vector.broadcast %57 : vector<8x1xf32> to vector<8x8xf32>
    %59 = arith.mulf %54, %58 : vector<8x8xf32>
    %60 = arith.truncf %59 : vector<8x8xf32> to vector<8x8xbf16>
    %cst_30 = arith.constant dense<0.000000e+00> : vector<8x16xf32>
    %61 = tpu.matmul %60, %46, %cst_30 {dimension_numbers = #tpu.dot_dimension_numbers<[1], [0], [0], [1], [0, 0, 1, 1], [], []>} : vector<8x8xbf16>, vector<8x16xbf16>, vector<8x16xf32> -> vector<8x16xf32>
    %c0_31 = arith.constant 0 : index
    %c16 = arith.constant 16 : index
    %62 = vector.load %arg14[%c0_31, %c16] : memref<8x128xf32, #tpu.memory_space<vmem>>, vector<8x16xf32>
    tpu.vector_store %arg14[%c0_31, %c16], %61 {strides = array<i32>} : memref<8x128xf32, #tpu.memory_space<vmem>>, vector<8x16xf32>,
    %63 = vector.extract_strided_slice %8 {offsets = [0, 32], sizes = [8, 16], strides = [1, 1]} : vector<8x128xf32> to vector<8x16xf32>
    %64 = arith.truncf %63 : vector<8x16xf32> to vector<8x16xbf16>
    %65 = vector.extract_strided_slice %13 {offsets = [0, 32], sizes = [8, 16], strides = [1, 1]} : vector<8x128xf32> to vector<8x16xf32>
    %66 = arith.truncf %65 : vector<8x16xf32> to vector<8x16xbf16>
    %67 = vector.extract_strided_slice %18 {offsets = [0, 32], sizes = [8, 16], strides = [1, 1]} : vector<8x128xf32> to vector<8x16xf32>
    %68 = arith.truncf %67 : vector<8x16xf32> to vector<8x16xbf16>
    %cst_32 = arith.constant dense<0.000000e+00> : vector<8x8xf32>
    %69 = tpu.matmul %64, %66, %cst_32 {dimension_numbers = #tpu.dot_dimension_numbers<[1], [1], [0], [0], [0, 0, 1, 0], [], []>} : vector<8x16xbf16>, vector<8x16xbf16>, vector<8x8xf32> -> vector<8x8xf32>
    %cst_33 = arith.constant 2.500000e-01 : f32
    %70 = vector.broadcast %cst_33 : f32 to vector<8x8xf32>
    %71 = arith.mulf %69, %70 : vector<8x8xf32>
    %cst_34 = arith.constant dense<0xFF800000> : vector<8xf32>
    %72 = vector.multi_reduction <maximumf>, %71, %cst_34 [1] : vector<8x8xf32> to vector<8xf32>
    %73 = vector.shape_cast %72 : vector<8xf32> to vector<8x1xf32>
    %74 = vector.broadcast %73 : vector<8x1xf32> to vector<8x8xf32>
    %75 = arith.subf %71, %74 : vector<8x8xf32>
    %76 = math.exp %75 : vector<8x8xf32>
    %cst_35 = arith.constant dense<0.000000e+00> : vector<8xf32>
    %77 = vector.multi_reduction <add>, %76, %cst_35 [1] : vector<8x8xf32> to vector<8xf32>
    %78 = vector.shape_cast %77 : vector<8xf32> to vector<8x1xf32>
    %79 = tpu.reciprocal %78 {approx = true} : vector<8x1xf32> -> vector<8x1xf32>
    %80 = vector.broadcast %79 : vector<8x1xf32> to vector<8x8xf32>
    %81 = arith.mulf %76, %80 : vector<8x8xf32>
    %82 = arith.truncf %81 : vector<8x8xf32> to vector<8x8xbf16>
    %cst_36 = arith.constant dense<0.000000e+00> : vector<8x16xf32>
    %83 = tpu.matmul %82, %68, %cst_36 {dimension_numbers = #tpu.dot_dimension_numbers<[1], [0], [0], [1], [0, 0, 1, 1], [], []>} : vector<8x8xbf16>, vector<8x16xbf16>, vector<8x16xf32> -> vector<8x16xf32>
    %c0_37 = arith.constant 0 : index
    %c32 = arith.constant 32 : index
    %84 = vector.load %arg14[%c0_37, %c32] : memref<8x128xf32, #tpu.memory_space<vmem>>, vector<8x16xf32>
    tpu.vector_store %arg14[%c0_37, %c32], %83 {strides = array<i32>} : memref<8x128xf32, #tpu.memory_space<vmem>>, vector<8x16xf32>,
    %85 = vector.extract_strided_slice %8 {offsets = [0, 48], sizes = [8, 16], strides = [1, 1]} : vector<8x128xf32> to vector<8x16xf32>
    %86 = arith.truncf %85 : vector<8x16xf32> to vector<8x16xbf16>
    %87 = vector.extract_strided_slice %13 {offsets = [0, 48], sizes = [8, 16], strides = [1, 1]} : vector<8x128xf32> to vector<8x16xf32>
    %88 = arith.truncf %87 : vector<8x16xf32> to vector<8x16xbf16>
    %89 = vector.extract_strided_slice %18 {offsets = [0, 48], sizes = [8, 16], strides = [1, 1]} : vector<8x128xf32> to vector<8x16xf32>
    %90 = arith.truncf %89 : vector<8x16xf32> to vector<8x16xbf16>
    %cst_38 = arith.constant dense<0.000000e+00> : vector<8x8xf32>
    %91 = tpu.matmul %86, %88, %cst_38 {dimension_numbers = #tpu.dot_dimension_numbers<[1], [1], [0], [0], [0, 0, 1, 0], [], []>} : vector<8x16xbf16>, vector<8x16xbf16>, vector<8x8xf32> -> vector<8x8xf32>
    %cst_39 = arith.constant 2.500000e-01 : f32
    %92 = vector.broadcast %cst_39 : f32 to vector<8x8xf32>
    %93 = arith.mulf %91, %92 : vector<8x8xf32>
    %cst_40 = arith.constant dense<0xFF800000> : vector<8xf32>
    %94 = vector.multi_reduction <maximumf>, %93, %cst_40 [1] : vector<8x8xf32> to vector<8xf32>
    %95 = vector.shape_cast %94 : vector<8xf32> to vector<8x1xf32>
    %96 = vector.broadcast %95 : vector<8x1xf32> to vector<8x8xf32>
    %97 = arith.subf %93, %96 : vector<8x8xf32>
    %98 = math.exp %97 : vector<8x8xf32>
    %cst_41 = arith.constant dense<0.000000e+00> : vector<8xf32>
    %99 = vector.multi_reduction <add>, %98, %cst_41 [1] : vector<8x8xf32> to vector<8xf32>
    %100 = vector.shape_cast %99 : vector<8xf32> to vector<8x1xf32>
    %101 = tpu.reciprocal %100 {approx = true} : vector<8x1xf32> -> vector<8x1xf32>
    %102 = vector.broadcast %101 : vector<8x1xf32> to vector<8x8xf32>
    %103 = arith.mulf %98, %102 : vector<8x8xf32>
    %104 = arith.truncf %103 : vector<8x8xf32> to vector<8x8xbf16>
    %cst_42 = arith.constant dense<0.000000e+00> : vector<8x16xf32>
    %105 = tpu.matmul %104, %90, %cst_42 {dimension_numbers = #tpu.dot_dimension_numbers<[1], [0], [0], [1], [0, 0, 1, 1], [], []>} : vector<8x8xbf16>, vector<8x16xbf16>, vector<8x16xf32> -> vector<8x16xf32>
    %c0_43 = arith.constant 0 : index
    %c48 = arith.constant 48 : index
    %106 = vector.load %arg14[%c0_43, %c48] : memref<8x128xf32, #tpu.memory_space<vmem>>, vector<8x16xf32>
    tpu.vector_store %arg14[%c0_43, %c48], %105 {strides = array<i32>} : memref<8x128xf32, #tpu.memory_space<vmem>>, vector<8x16xf32>,
    %107 = vector.extract_strided_slice %8 {offsets = [0, 64], sizes = [8, 16], strides = [1, 1]} : vector<8x128xf32> to vector<8x16xf32>
    %108 = arith.truncf %107 : vector<8x16xf32> to vector<8x16xbf16>
    %109 = vector.extract_strided_slice %13 {offsets = [0, 64], sizes = [8, 16], strides = [1, 1]} : vector<8x128xf32> to vector<8x16xf32>
    %110 = arith.truncf %109 : vector<8x16xf32> to vector<8x16xbf16>
    %111 = vector.extract_strided_slice %18 {offsets = [0, 64], sizes = [8, 16], strides = [1, 1]} : vector<8x128xf32> to vector<8x16xf32>
    %112 = arith.truncf %111 : vector<8x16xf32> to vector<8x16xbf16>
    %cst_44 = arith.constant dense<0.000000e+00> : vector<8x8xf32>
    %113 = tpu.matmul %108, %110, %cst_44 {dimension_numbers = #tpu.dot_dimension_numbers<[1], [1], [0], [0], [0, 0, 1, 0], [], []>} : vector<8x16xbf16>, vector<8x16xbf16>, vector<8x8xf32> -> vector<8x8xf32>
    %cst_45 = arith.constant 2.500000e-01 : f32
    %114 = vector.broadcast %cst_45 : f32 to vector<8x8xf32>
    %115 = arith.mulf %113, %114 : vector<8x8xf32>
    %cst_46 = arith.constant dense<0xFF800000> : vector<8xf32>
    %116 = vector.multi_reduction <maximumf>, %115, %cst_46 [1] : vector<8x8xf32> to vector<8xf32>
    %117 = vector.shape_cast %116 : vector<8xf32> to vector<8x1xf32>
    %118 = vector.broadcast %117 : vector<8x1xf32> to vector<8x8xf32>
    %119 = arith.subf %115, %118 : vector<8x8xf32>
    %120 = math.exp %119 : vector<8x8xf32>
    %cst_47 = arith.constant dense<0.000000e+00> : vector<8xf32>
    %121 = vector.multi_reduction <add>, %120, %cst_47 [1] : vector<8x8xf32> to vector<8xf32>
    %122 = vector.shape_cast %121 : vector<8xf32> to vector<8x1xf32>
    %123 = tpu.reciprocal %122 {approx = true} : vector<8x1xf32> -> vector<8x1xf32>
    %124 = vector.broadcast %123 : vector<8x1xf32> to vector<8x8xf32>
    %125 = arith.mulf %120, %124 : vector<8x8xf32>
    %126 = arith.truncf %125 : vector<8x8xf32> to vector<8x8xbf16>
    %cst_48 = arith.constant dense<0.000000e+00> : vector<8x16xf32>
    %127 = tpu.matmul %126, %112, %cst_48 {dimension_numbers = #tpu.dot_dimension_numbers<[1], [0], [0], [1], [0, 0, 1, 1], [], []>} : vector<8x8xbf16>, vector<8x16xbf16>, vector<8x16xf32> -> vector<8x16xf32>
    %c0_49 = arith.constant 0 : index
    %c64 = arith.constant 64 : index
    %128 = vector.load %arg14[%c0_49, %c64] : memref<8x128xf32, #tpu.memory_space<vmem>>, vector<8x16xf32>
    tpu.vector_store %arg14[%c0_49, %c64], %127 {strides = array<i32>} : memref<8x128xf32, #tpu.memory_space<vmem>>, vector<8x16xf32>,
    %129 = vector.extract_strided_slice %8 {offsets = [0, 80], sizes = [8, 16], strides = [1, 1]} : vector<8x128xf32> to vector<8x16xf32>
    %130 = arith.truncf %129 : vector<8x16xf32> to vector<8x16xbf16>
    %131 = vector.extract_strided_slice %13 {offsets = [0, 80], sizes = [8, 16], strides = [1, 1]} : vector<8x128xf32> to vector<8x16xf32>
    %132 = arith.truncf %131 : vector<8x16xf32> to vector<8x16xbf16>
    %133 = vector.extract_strided_slice %18 {offsets = [0, 80], sizes = [8, 16], strides = [1, 1]} : vector<8x128xf32> to vector<8x16xf32>
    %134 = arith.truncf %133 : vector<8x16xf32> to vector<8x16xbf16>
    %cst_50 = arith.constant dense<0.000000e+00> : vector<8x8xf32>
    %135 = tpu.matmul %130, %132, %cst_50 {dimension_numbers = #tpu.dot_dimension_numbers<[1], [1], [0], [0], [0, 0, 1, 0], [], []>} : vector<8x16xbf16>, vector<8x16xbf16>, vector<8x8xf32> -> vector<8x8xf32>
    %cst_51 = arith.constant 2.500000e-01 : f32
    %136 = vector.broadcast %cst_51 : f32 to vector<8x8xf32>
    %137 = arith.mulf %135, %136 : vector<8x8xf32>
    %cst_52 = arith.constant dense<0xFF800000> : vector<8xf32>
    %138 = vector.multi_reduction <maximumf>, %137, %cst_52 [1] : vector<8x8xf32> to vector<8xf32>
    %139 = vector.shape_cast %138 : vector<8xf32> to vector<8x1xf32>
    %140 = vector.broadcast %139 : vector<8x1xf32> to vector<8x8xf32>
    %141 = arith.subf %137, %140 : vector<8x8xf32>
    %142 = math.exp %141 : vector<8x8xf32>
    %cst_53 = arith.constant dense<0.000000e+00> : vector<8xf32>
    %143 = vector.multi_reduction <add>, %142, %cst_53 [1] : vector<8x8xf32> to vector<8xf32>
    %144 = vector.shape_cast %143 : vector<8xf32> to vector<8x1xf32>
    %145 = tpu.reciprocal %144 {approx = true} : vector<8x1xf32> -> vector<8x1xf32>
    %146 = vector.broadcast %145 : vector<8x1xf32> to vector<8x8xf32>
    %147 = arith.mulf %142, %146 : vector<8x8xf32>
    %148 = arith.truncf %147 : vector<8x8xf32> to vector<8x8xbf16>
    %cst_54 = arith.constant dense<0.000000e+00> : vector<8x16xf32>
    %149 = tpu.matmul %148, %134, %cst_54 {dimension_numbers = #tpu.dot_dimension_numbers<[1], [0], [0], [1], [0, 0, 1, 1], [], []>} : vector<8x8xbf16>, vector<8x16xbf16>, vector<8x16xf32> -> vector<8x16xf32>
    %c0_55 = arith.constant 0 : index
    %c80 = arith.constant 80 : index
    %150 = vector.load %arg14[%c0_55, %c80] : memref<8x128xf32, #tpu.memory_space<vmem>>, vector<8x16xf32>
    tpu.vector_store %arg14[%c0_55, %c80], %149 {strides = array<i32>} : memref<8x128xf32, #tpu.memory_space<vmem>>, vector<8x16xf32>,
    %151 = vector.extract_strided_slice %8 {offsets = [0, 96], sizes = [8, 16], strides = [1, 1]} : vector<8x128xf32> to vector<8x16xf32>
    %152 = arith.truncf %151 : vector<8x16xf32> to vector<8x16xbf16>
    %153 = vector.extract_strided_slice %13 {offsets = [0, 96], sizes = [8, 16], strides = [1, 1]} : vector<8x128xf32> to vector<8x16xf32>
    %154 = arith.truncf %153 : vector<8x16xf32> to vector<8x16xbf16>
    %155 = vector.extract_strided_slice %18 {offsets = [0, 96], sizes = [8, 16], strides = [1, 1]} : vector<8x128xf32> to vector<8x16xf32>
    %156 = arith.truncf %155 : vector<8x16xf32> to vector<8x16xbf16>
    %cst_56 = arith.constant dense<0.000000e+00> : vector<8x8xf32>
    %157 = tpu.matmul %152, %154, %cst_56 {dimension_numbers = #tpu.dot_dimension_numbers<[1], [1], [0], [0], [0, 0, 1, 0], [], []>} : vector<8x16xbf16>, vector<8x16xbf16>, vector<8x8xf32> -> vector<8x8xf32>
    %cst_57 = arith.constant 2.500000e-01 : f32
    %158 = vector.broadcast %cst_57 : f32 to vector<8x8xf32>
    %159 = arith.mulf %157, %158 : vector<8x8xf32>
    %cst_58 = arith.constant dense<0xFF800000> : vector<8xf32>
    %160 = vector.multi_reduction <maximumf>, %159, %cst_58 [1] : vector<8x8xf32> to vector<8xf32>
    %161 = vector.shape_cast %160 : vector<8xf32> to vector<8x1xf32>
    %162 = vector.broadcast %161 : vector<8x1xf32> to vector<8x8xf32>
    %163 = arith.subf %159, %162 : vector<8x8xf32>
    %164 = math.exp %163 : vector<8x8xf32>
    %cst_59 = arith.constant dense<0.000000e+00> : vector<8xf32>
    %165 = vector.multi_reduction <add>, %164, %cst_59 [1] : vector<8x8xf32> to vector<8xf32>
    %166 = vector.shape_cast %165 : vector<8xf32> to vector<8x1xf32>
    %167 = tpu.reciprocal %166 {approx = true} : vector<8x1xf32> -> vector<8x1xf32>
    %168 = vector.broadcast %167 : vector<8x1xf32> to vector<8x8xf32>
    %169 = arith.mulf %164, %168 : vector<8x8xf32>
    %170 = arith.truncf %169 : vector<8x8xf32> to vector<8x8xbf16>
    %cst_60 = arith.constant dense<0.000000e+00> : vector<8x16xf32>
    %171 = tpu.matmul %170, %156, %cst_60 {dimension_numbers = #tpu.dot_dimension_numbers<[1], [0], [0], [1], [0, 0, 1, 1], [], []>} : vector<8x8xbf16>, vector<8x16xbf16>, vector<8x16xf32> -> vector<8x16xf32>
    %c0_61 = arith.constant 0 : index
    %c96 = arith.constant 96 : index
    %172 = vector.load %arg14[%c0_61, %c96] : memref<8x128xf32, #tpu.memory_space<vmem>>, vector<8x16xf32>
    tpu.vector_store %arg14[%c0_61, %c96], %171 {strides = array<i32>} : memref<8x128xf32, #tpu.memory_space<vmem>>, vector<8x16xf32>,
    %173 = vector.extract_strided_slice %8 {offsets = [0, 112], sizes = [8, 16], strides = [1, 1]} : vector<8x128xf32> to vector<8x16xf32>
    %174 = arith.truncf %173 : vector<8x16xf32> to vector<8x16xbf16>
    %175 = vector.extract_strided_slice %13 {offsets = [0, 112], sizes = [8, 16], strides = [1, 1]} : vector<8x128xf32> to vector<8x16xf32>
    %176 = arith.truncf %175 : vector<8x16xf32> to vector<8x16xbf16>
    %177 = vector.extract_strided_slice %18 {offsets = [0, 112], sizes = [8, 16], strides = [1, 1]} : vector<8x128xf32> to vector<8x16xf32>
    %178 = arith.truncf %177 : vector<8x16xf32> to vector<8x16xbf16>
    %cst_62 = arith.constant dense<0.000000e+00> : vector<8x8xf32>
    %179 = tpu.matmul %174, %176, %cst_62 {dimension_numbers = #tpu.dot_dimension_numbers<[1], [1], [0], [0], [0, 0, 1, 0], [], []>} : vector<8x16xbf16>, vector<8x16xbf16>, vector<8x8xf32> -> vector<8x8xf32>
    %cst_63 = arith.constant 2.500000e-01 : f32
    %180 = vector.broadcast %cst_63 : f32 to vector<8x8xf32>
    %181 = arith.mulf %179, %180 : vector<8x8xf32>
    %cst_64 = arith.constant dense<0xFF800000> : vector<8xf32>
    %182 = vector.multi_reduction <maximumf>, %181, %cst_64 [1] : vector<8x8xf32> to vector<8xf32>
    %183 = vector.shape_cast %182 : vector<8xf32> to vector<8x1xf32>
    %184 = vector.broadcast %183 : vector<8x1xf32> to vector<8x8xf32>
    %185 = arith.subf %181, %184 : vector<8x8xf32>
    %186 = math.exp %185 : vector<8x8xf32>
    %cst_65 = arith.constant dense<0.000000e+00> : vector<8xf32>
    %187 = vector.multi_reduction <add>, %186, %cst_65 [1] : vector<8x8xf32> to vector<8xf32>
    %188 = vector.shape_cast %187 : vector<8xf32> to vector<8x1xf32>
    %189 = tpu.reciprocal %188 {approx = true} : vector<8x1xf32> -> vector<8x1xf32>
    %190 = vector.broadcast %189 : vector<8x1xf32> to vector<8x8xf32>
    %191 = arith.mulf %186, %190 : vector<8x8xf32>
    %192 = arith.truncf %191 : vector<8x8xf32> to vector<8x8xbf16>
    %cst_66 = arith.constant dense<0.000000e+00> : vector<8x16xf32>
    %193 = tpu.matmul %192, %178, %cst_66 {dimension_numbers = #tpu.dot_dimension_numbers<[1], [0], [0], [1], [0, 0, 1, 1], [], []>} : vector<8x8xbf16>, vector<8x16xbf16>, vector<8x16xf32> -> vector<8x16xf32>
    %c0_67 = arith.constant 0 : index
    %c112 = arith.constant 112 : index
    %194 = vector.load %arg14[%c0_67, %c112] : memref<8x128xf32, #tpu.memory_space<vmem>>, vector<8x16xf32>
    tpu.vector_store %arg14[%c0_67, %c112], %193 {strides = array<i32>} : memref<8x128xf32, #tpu.memory_space<vmem>>, vector<8x16xf32>,
    %c0_68 = arith.constant 0 : index
    %c0_69 = arith.constant 0 : index
    %195 = vector.load %arg14[%c0_68, %c0_69] : memref<8x128xf32, #tpu.memory_space<vmem>>, vector<8x128xf32>
    %196 = arith.truncf %195 : vector<8x128xf32> to vector<8x128xbf16>
    %c0_70 = arith.constant 0 : index
    %c0_71 = arith.constant 0 : index
    %197 = vector.load %arg9[%c0_70, %c0_71] : memref<128x128xbf16, #tpu.memory_space<vmem>>, vector<128x128xbf16>
    %cst_72 = arith.constant dense<0.000000e+00> : vector<8x128xf32>
    %198 = tpu.matmul %196, %197, %cst_72 {dimension_numbers = #tpu.dot_dimension_numbers<[1], [0], [0], [1], [0, 0, 1, 1], [], []>} : vector<8x128xbf16>, vector<128x128xbf16>, vector<8x128xf32> -> vector<8x128xf32>
    %c0_73 = arith.constant 0 : index
    %c0_74 = arith.constant 0 : index
    %199 = vector.load %arg10[%c0_73, %c0_74] : memref<1x128xf32, #tpu.memory_space<vmem>>, vector<1x128xf32>
    %200 = vector.broadcast %199 : vector<1x128xf32> to vector<8x128xf32>
    %201 = arith.addf %198, %200 : vector<8x128xf32>
    %c0_75 = arith.constant 0 : index
    %c0_76 = arith.constant 0 : index
    %c0_77 = arith.constant 0 : index
    %202 = vector.load %arg1[%c0_75, %c0_76, %c0_77] : memref<1x8x128xbf16, #tpu.memory_space<vmem>>, vector<1x8x128xbf16>
    %203 = vector.shape_cast %202 : vector<1x8x128xbf16> to vector<8x128xbf16>
    %204 = arith.extf %203 : vector<8x128xbf16> to vector<8x128xf32>
    %205 = arith.addf %204, %201 : vector<8x128xf32>
    %cst_78 = arith.constant dense<0.000000e+00> : vector<8xf32>
    %206 = vector.multi_reduction <add>, %205, %cst_78 [1] : vector<8x128xf32> to vector<8xf32>
    %207 = vector.shape_cast %206 : vector<8xf32> to vector<8x1xf32>
    %cst_79 = arith.constant 1.280000e+02 : f32
    %208 = vector.broadcast %cst_79 : f32 to vector<8x1xf32>
    %209 = arith.divf %207, %208 : vector<8x1xf32>
    %210 = vector.broadcast %209 : vector<8x1xf32> to vector<8x128xf32>
    %211 = arith.subf %205, %210 : vector<8x128xf32>
    %212 = arith.mulf %211, %211 : vector<8x128xf32>
    %cst_80 = arith.constant dense<0.000000e+00> : vector<8xf32>
    %213 = vector.multi_reduction <add>, %212, %cst_80 [1] : vector<8x128xf32> to vector<8xf32>
    %214 = vector.shape_cast %213 : vector<8xf32> to vector<8x1xf32>
    %cst_81 = arith.constant 1.280000e+02 : f32
    %215 = vector.broadcast %cst_81 : f32 to vector<8x1xf32>
    %216 = arith.divf %214, %215 : vector<8x1xf32>
    %217 = vector.broadcast %209 : vector<8x1xf32> to vector<8x128xf32>
    %218 = arith.subf %205, %217 : vector<8x128xf32>
    %cst_82 = arith.constant 9.99999974E-6 : f32
    %219 = vector.broadcast %cst_82 : f32 to vector<8x1xf32>
    %220 = arith.addf %216, %219 : vector<8x1xf32>
    %221 = math.rsqrt %220 : vector<8x1xf32>
    %222 = vector.broadcast %221 : vector<8x1xf32> to vector<8x128xf32>
    %223 = arith.mulf %218, %222 : vector<8x128xf32>
    %c0_83 = arith.constant 0 : index
    %c0_84 = arith.constant 0 : index
    %224 = vector.load %arg11[%c0_83, %c0_84] : memref<1x128xf32, #tpu.memory_space<vmem>>, vector<1x128xf32>
    %225 = vector.broadcast %224 : vector<1x128xf32> to vector<8x128xf32>
    %226 = arith.mulf %223, %225 : vector<8x128xf32>
    %c0_85 = arith.constant 0 : index
    %c0_86 = arith.constant 0 : index
    %227 = vector.load %arg12[%c0_85, %c0_86] : memref<1x128xf32, #tpu.memory_space<vmem>>, vector<1x128xf32>
    %228 = vector.broadcast %227 : vector<1x128xf32> to vector<8x128xf32>
    %229 = arith.addf %226, %228 : vector<8x128xf32>
    %230 = arith.truncf %229 : vector<8x128xf32> to vector<8x128xbf16>
    %c0_87 = arith.constant 0 : index
    %c0_88 = arith.constant 0 : index
    %c0_89 = arith.constant 0 : index
    %231 = vector.load %arg13[%c0_87, %c0_88, %c0_89] : memref<1x8x128xbf16, #tpu.memory_space<vmem>>, vector<1x8x128xbf16>
    %232 = vector.shape_cast %231 : vector<1x8x128xbf16> to vector<8x128xbf16>
    %233 = vector.shape_cast %230 : vector<8x128xbf16> to vector<1x8x128xbf16>
    tpu.vector_store %arg13[%c0_87, %c0_88, %c0_89], %233 {strides = array<i32>} : memref<1x8x128xbf16, #tpu.memory_space<vmem>>, vector<1x8x128xbf16>,
    return
  }
  func.func @transform_0(%arg0: i32) -> (i32, i32, i32) {
    %c0_i32 = arith.constant 0 : i32
    %c0_i32_0 = arith.constant 0 : i32
    %c0_i32_1 = arith.constant 0 : i32
    return %arg0, %c0_i32, %c0_i32_0 : i32, i32, i32
  }
  func.func @transform_1(%arg0: i32) -> (i32, i32, i32) {
    %c0_i32 = arith.constant 0 : i32
    %c0_i32_0 = arith.constant 0 : i32
    %c0_i32_1 = arith.constant 0 : i32
    return %arg0, %c0_i32, %c0_i32_0 : i32, i32, i32
  }
  func.func @transform_2(%arg0: i32) -> (i32, i32) {
    %c0_i32 = arith.constant 0 : i32
    %c0_i32_0 = arith.constant 0 : i32
    %c0_i32_1 = arith.constant 0 : i32
    return %c0_i32, %c0_i32_0 : i32, i32
  }
  func.func @transform_3(%arg0: i32) -> (i32, i32) {
    %c0_i32 = arith.constant 0 : i32
    %c0_i32_0 = arith.constant 0 : i32
    %c0_i32_1 = arith.constant 0 : i32
    return %c0_i32, %c0_i32_0 : i32, i32
  }
  func.func @transform_4(%arg0: i32) -> (i32, i32) {
    %c0_i32 = arith.constant 0 : i32
    %c0_i32_0 = arith.constant 0 : i32
    %c0_i32_1 = arith.constant 0 : i32
    return %c0_i32, %c0_i32_0 : i32, i32
  }
  func.func @transform_5(%arg0: i32) -> (i32, i32) {
    %c0_i32 = arith.constant 0 : i32
    %c0_i32_0 = arith.constant 0 : i32
    %c0_i32_1 = arith.constant 0 : i32
    return %c0_i32, %c0_i32_0 : i32, i32
  }
  func.func @transform_6(%arg0: i32) -> (i32, i32) {
    %c0_i32 = arith.constant 0 : i32
    %c0_i32_0 = arith.constant 0 : i32
    %c0_i32_1 = arith.constant 0 : i32
    return %c0_i32, %c0_i32_0 : i32, i32
  }
  func.func @transform_7(%arg0: i32) -> (i32, i32) {
    %c0_i32 = arith.constant 0 : i32
    %c0_i32_0 = arith.constant 0 : i32
    %c0_i32_1 = arith.constant 0 : i32
    return %c0_i32, %c0_i32_0 : i32, i32
  }
  func.func @transform_8(%arg0: i32) -> (i32, i32) {
    %c0_i32 = arith.constant 0 : i32
    %c0_i32_0 = arith.constant 0 : i32
    %c0_i32_1 = arith.constant 0 : i32
    return %c0_i32, %c0_i32_0 : i32, i32
  }
  func.func @transform_9(%arg0: i32) -> (i32, i32) {
    %c0_i32 = arith.constant 0 : i32
    %c0_i32_0 = arith.constant 0 : i32
    %c0_i32_1 = arith.constant 0 : i32
    return %c0_i32, %c0_i32_0 : i32, i32
  }
  func.func @transform_10(%arg0: i32) -> (i32, i32) {
    %c0_i32 = arith.constant 0 : i32
    %c0_i32_0 = arith.constant 0 : i32
    %c0_i32_1 = arith.constant 0 : i32
    return %c0_i32, %c0_i32_0 : i32, i32
  }
  func.func @transform_11(%arg0: i32) -> (i32, i32) {
    %c0_i32 = arith.constant 0 : i32
    %c0_i32_0 = arith.constant 0 : i32
    %c0_i32_1 = arith.constant 0 : i32
    return %c0_i32, %c0_i32_0 : i32, i32
  }
  func.func @transform_12(%arg0: i32) -> (i32, i32, i32) {
    %c0_i32 = arith.constant 0 : i32
    %c0_i32_0 = arith.constant 0 : i32
    %c0_i32_1 = arith.constant 0 : i32
    return %arg0, %c0_i32, %c0_i32_0 : i32, i32, i32
  }
}

module attributes {stable_mosaic.version = 11 : i64} {
  func.func @_glu_conv_kernel(%arg0: i32, %arg1: i32, %arg2: memref<1x8x128xbf16, #tpu.memory_space<vmem>>, %arg3: memref<128x256xbf16, #tpu.memory_space<vmem>>, %arg4: memref<1x256xf32, #tpu.memory_space<vmem>>, %arg5: memref<7x128xf32, #tpu.memory_space<vmem>>, %arg6: memref<1x8x128xbf16, #tpu.memory_space<vmem>>, %arg7: memref<8x256xf32, #tpu.memory_space<vmem>>, %arg8: memref<16x128xf32, #tpu.memory_space<vmem>>) attributes {dimension_semantics = [#tpu.dimension_semantics<parallel>, #tpu.dimension_semantics<arbitrary>], iteration_bounds = array<i64: 2, 1>, scalar_prefetch = 0 : i64, scratch_operands = 2 : i64, tpu.core_type = #tpu.core_type<tc>, window_params = [{transform_indices = @transform_0, window_bounds = array<i64: 1, 8, 128>}, {transform_indices = @transform_1, window_bounds = array<i64: 128, 256>}, {pipeline_mode = #tpu.pipeline_mode<synchronous>, transform_indices = @transform_2, window_bounds = array<i64: 1, 256>}, {pipeline_mode = #tpu.pipeline_mode<synchronous>, transform_indices = @transform_3, window_bounds = array<i64: 7, 128>}, {transform_indices = @transform_4, window_bounds = array<i64: 1, 8, 128>}]} {
    %c0_i32 = arith.constant 0 : i32
    %0 = arith.cmpi eq, %arg1, %c0_i32 : i32
    %1 = arith.extui %0 : i1 to i32
    %c0_i32_0 = arith.constant 0 : i32
    %2 = arith.cmpi ne, %1, %c0_i32_0 : i32
    scf.if %2 {
      %cst_11 = arith.constant 0.000000e+00 : f32
      %13 = vector.broadcast %cst_11 : f32 to vector<8x256xf32>
      %c0_12 = arith.constant 0 : index
      %c0_13 = arith.constant 0 : index
      %14 = vector.load %arg7[%c0_12, %c0_13] : memref<8x256xf32, #tpu.memory_space<vmem>>, vector<8x256xf32>
      tpu.vector_store %arg7[%c0_12, %c0_13], %13 {strides = array<i32>} : memref<8x256xf32, #tpu.memory_space<vmem>>, vector<8x256xf32>,
    } else {
    }
    %c0 = arith.constant 0 : index
    %c0_1 = arith.constant 0 : index
    %3 = vector.load %arg7[%c0, %c0_1] : memref<8x256xf32, #tpu.memory_space<vmem>>, vector<8x256xf32>
    %c0_2 = arith.constant 0 : index
    %c0_3 = arith.constant 0 : index
    %c0_4 = arith.constant 0 : index
    %4 = vector.load %arg2[%c0_2, %c0_3, %c0_4] : memref<1x8x128xbf16, #tpu.memory_space<vmem>>, vector<1x8x128xbf16>
    %5 = vector.shape_cast %4 : vector<1x8x128xbf16> to vector<8x128xbf16>
    %c0_5 = arith.constant 0 : index
    %c0_6 = arith.constant 0 : index
    %6 = vector.load %arg3[%c0_5, %c0_6] : memref<128x256xbf16, #tpu.memory_space<vmem>>, vector<128x256xbf16>
    %cst = arith.constant dense<0.000000e+00> : vector<8x256xf32>
    %7 = tpu.matmul %5, %6, %cst {dimension_numbers = #tpu.dot_dimension_numbers<[1], [0], [0], [1], [0, 0, 1, 1], [], []>} : vector<8x128xbf16>, vector<128x256xbf16>, vector<8x256xf32> -> vector<8x256xf32>
    %8 = arith.addf %3, %7 : vector<8x256xf32>
    %c0_7 = arith.constant 0 : index
    %c0_8 = arith.constant 0 : index
    %9 = vector.load %arg7[%c0_7, %c0_8] : memref<8x256xf32, #tpu.memory_space<vmem>>, vector<8x256xf32>
    tpu.vector_store %arg7[%c0_7, %c0_8], %8 {strides = array<i32>} : memref<8x256xf32, #tpu.memory_space<vmem>>, vector<8x256xf32>,
    %c0_i32_9 = arith.constant 0 : i32
    %10 = arith.cmpi eq, %arg1, %c0_i32_9 : i32
    %11 = arith.extui %10 : i1 to i32
    %c0_i32_10 = arith.constant 0 : i32
    %12 = arith.cmpi ne, %11, %c0_i32_10 : i32
    scf.if %12 {
      %c0_11 = arith.constant 0 : index
      %c0_12 = arith.constant 0 : index
      %13 = vector.load %arg7[%c0_11, %c0_12] : memref<8x256xf32, #tpu.memory_space<vmem>>, vector<8x256xf32>
      %c0_13 = arith.constant 0 : index
      %c0_14 = arith.constant 0 : index
      %14 = vector.load %arg4[%c0_13, %c0_14] : memref<1x256xf32, #tpu.memory_space<vmem>>, vector<1x256xf32>
      %15 = vector.broadcast %14 : vector<1x256xf32> to vector<8x256xf32>
      %16 = arith.addf %13, %15 : vector<8x256xf32>
      %17 = vector.extract_strided_slice %16 {offsets = [0, 0], sizes = [8, 128], strides = [1, 1]} : vector<8x256xf32> to vector<8x128xf32>
      %18 = vector.extract_strided_slice %16 {offsets = [0, 128], sizes = [8, 128], strides = [1, 1]} : vector<8x256xf32> to vector<8x128xf32>
      %19 = arith.negf %18 : vector<8x128xf32>
      %20 = math.exp %19 : vector<8x128xf32>
      %cst_15 = arith.constant 1.000000e+00 : f32
      %21 = vector.broadcast %cst_15 : f32 to vector<8x128xf32>
      %22 = arith.addf %21, %20 : vector<8x128xf32>
      %23 = arith.divf %21, %22 : vector<8x128xf32>
      %24 = arith.mulf %17, %23 : vector<8x128xf32>
      %cst_16 = arith.constant 0.000000e+00 : f32
      %25 = vector.broadcast %cst_16 : f32 to vector<16x128xf32>
      %c0_17 = arith.constant 0 : index
      %c0_18 = arith.constant 0 : index
      %26 = vector.load %arg8[%c0_17, %c0_18] : memref<16x128xf32, #tpu.memory_space<vmem>>, vector<16x128xf32>
      tpu.vector_store %arg8[%c0_17, %c0_18], %25 {strides = array<i32>} : memref<16x128xf32, #tpu.memory_space<vmem>>, vector<16x128xf32>,
      %c6 = arith.constant 6 : index
      %c0_19 = arith.constant 0 : index
      %27 = vector.load %arg8[%c6, %c0_19] : memref<16x128xf32, #tpu.memory_space<vmem>>, vector<8x128xf32>
      tpu.vector_store %arg8[%c6, %c0_19], %24 {strides = array<i32>} : memref<16x128xf32, #tpu.memory_space<vmem>>, vector<8x128xf32>,
      %c0_20 = arith.constant 0 : index
      %c0_21 = arith.constant 0 : index
      %28 = vector.load %arg8[%c0_20, %c0_21] : memref<16x128xf32, #tpu.memory_space<vmem>>, vector<16x128xf32>
      %c0_22 = arith.constant 0 : index
      %c0_23 = arith.constant 0 : index
      %29 = vector.load %arg5[%c0_22, %c0_23] : memref<7x128xf32, #tpu.memory_space<vmem>>, vector<7x128xf32>
      %30 = vector.extract_strided_slice %28 {offsets = [0, 0], sizes = [8, 128], strides = [1, 1]} : vector<16x128xf32> to vector<8x128xf32>
      %31 = vector.extract_strided_slice %29 {offsets = [0, 0], sizes = [1, 128], strides = [1, 1]} : vector<7x128xf32> to vector<1x128xf32>
      %32 = vector.broadcast %31 : vector<1x128xf32> to vector<8x128xf32>
      %33 = arith.mulf %30, %32 : vector<8x128xf32>
      %34 = vector.extract_strided_slice %28 {offsets = [1, 0], sizes = [8, 128], strides = [1, 1]} : vector<16x128xf32> to vector<8x128xf32>
      %35 = vector.extract_strided_slice %29 {offsets = [1, 0], sizes = [1, 128], strides = [1, 1]} : vector<7x128xf32> to vector<1x128xf32>
      %36 = vector.broadcast %35 : vector<1x128xf32> to vector<8x128xf32>
      %37 = arith.mulf %34, %36 : vector<8x128xf32>
      %38 = arith.addf %33, %37 : vector<8x128xf32>
      %39 = vector.extract_strided_slice %28 {offsets = [2, 0], sizes = [8, 128], strides = [1, 1]} : vector<16x128xf32> to vector<8x128xf32>
      %40 = vector.extract_strided_slice %29 {offsets = [2, 0], sizes = [1, 128], strides = [1, 1]} : vector<7x128xf32> to vector<1x128xf32>
      %41 = vector.broadcast %40 : vector<1x128xf32> to vector<8x128xf32>
      %42 = arith.mulf %39, %41 : vector<8x128xf32>
      %43 = arith.addf %38, %42 : vector<8x128xf32>
      %44 = vector.extract_strided_slice %28 {offsets = [3, 0], sizes = [8, 128], strides = [1, 1]} : vector<16x128xf32> to vector<8x128xf32>
      %45 = vector.extract_strided_slice %29 {offsets = [3, 0], sizes = [1, 128], strides = [1, 1]} : vector<7x128xf32> to vector<1x128xf32>
      %46 = vector.broadcast %45 : vector<1x128xf32> to vector<8x128xf32>
      %47 = arith.mulf %44, %46 : vector<8x128xf32>
      %48 = arith.addf %43, %47 : vector<8x128xf32>
      %49 = vector.extract_strided_slice %28 {offsets = [4, 0], sizes = [8, 128], strides = [1, 1]} : vector<16x128xf32> to vector<8x128xf32>
      %50 = vector.extract_strided_slice %29 {offsets = [4, 0], sizes = [1, 128], strides = [1, 1]} : vector<7x128xf32> to vector<1x128xf32>
      %51 = vector.broadcast %50 : vector<1x128xf32> to vector<8x128xf32>
      %52 = arith.mulf %49, %51 : vector<8x128xf32>
      %53 = arith.addf %48, %52 : vector<8x128xf32>
      %54 = vector.extract_strided_slice %28 {offsets = [5, 0], sizes = [8, 128], strides = [1, 1]} : vector<16x128xf32> to vector<8x128xf32>
      %55 = vector.extract_strided_slice %29 {offsets = [5, 0], sizes = [1, 128], strides = [1, 1]} : vector<7x128xf32> to vector<1x128xf32>
      %56 = vector.broadcast %55 : vector<1x128xf32> to vector<8x128xf32>
      %57 = arith.mulf %54, %56 : vector<8x128xf32>
      %58 = arith.addf %53, %57 : vector<8x128xf32>
      %59 = vector.extract_strided_slice %28 {offsets = [6, 0], sizes = [8, 128], strides = [1, 1]} : vector<16x128xf32> to vector<8x128xf32>
      %60 = vector.extract_strided_slice %29 {offsets = [6, 0], sizes = [1, 128], strides = [1, 1]} : vector<7x128xf32> to vector<1x128xf32>
      %61 = vector.broadcast %60 : vector<1x128xf32> to vector<8x128xf32>
      %62 = arith.mulf %59, %61 : vector<8x128xf32>
      %63 = arith.addf %58, %62 : vector<8x128xf32>
      %64 = arith.truncf %63 : vector<8x128xf32> to vector<8x128xbf16>
      %c0_24 = arith.constant 0 : index
      %c0_25 = arith.constant 0 : index
      %c0_26 = arith.constant 0 : index
      %65 = vector.load %arg6[%c0_24, %c0_25, %c0_26] : memref<1x8x128xbf16, #tpu.memory_space<vmem>>, vector<1x8x128xbf16>
      %66 = vector.shape_cast %65 : vector<1x8x128xbf16> to vector<8x128xbf16>
      %67 = vector.shape_cast %64 : vector<8x128xbf16> to vector<1x8x128xbf16>
      tpu.vector_store %arg6[%c0_24, %c0_25, %c0_26], %67 {strides = array<i32>} : memref<1x8x128xbf16, #tpu.memory_space<vmem>>, vector<1x8x128xbf16>,
    } else {
    }
    return
  }
  func.func @transform_0(%arg0: i32, %arg1: i32) -> (i32, i32, i32) {
    %c0_i32 = arith.constant 0 : i32
    %c0_i32_0 = arith.constant 0 : i32
    return %arg0, %c0_i32, %arg1 : i32, i32, i32
  }
  func.func @transform_1(%arg0: i32, %arg1: i32) -> (i32, i32) {
    %c0_i32 = arith.constant 0 : i32
    %c0_i32_0 = arith.constant 0 : i32
    return %arg1, %c0_i32 : i32, i32
  }
  func.func @transform_2(%arg0: i32, %arg1: i32) -> (i32, i32) {
    %c0_i32 = arith.constant 0 : i32
    %c0_i32_0 = arith.constant 0 : i32
    %c0_i32_1 = arith.constant 0 : i32
    return %c0_i32, %c0_i32_0 : i32, i32
  }
  func.func @transform_3(%arg0: i32, %arg1: i32) -> (i32, i32) {
    %c0_i32 = arith.constant 0 : i32
    %c0_i32_0 = arith.constant 0 : i32
    %c0_i32_1 = arith.constant 0 : i32
    return %c0_i32, %c0_i32_0 : i32, i32
  }
  func.func @transform_4(%arg0: i32, %arg1: i32) -> (i32, i32, i32) {
    %c0_i32 = arith.constant 0 : i32
    %c0_i32_0 = arith.constant 0 : i32
    %c0_i32_1 = arith.constant 0 : i32
    return %arg0, %c0_i32, %c0_i32_0 : i32, i32, i32
  }
}

module attributes {stable_mosaic.version = 11 : i64} {
  func.func @_linear_kernel(%arg0: i32, %arg1: i32, %arg2: i32, %arg3: memref<16x128xbf16, #tpu.memory_space<vmem>>, %arg4: memref<128x512xbf16, #tpu.memory_space<vmem>>, %arg5: memref<1x512xf32, #tpu.memory_space<vmem>>, %arg6: memref<16x512xf32, #tpu.memory_space<vmem>>, %arg7: memref<16x512xf32, #tpu.memory_space<vmem>>) attributes {dimension_semantics = [#tpu.dimension_semantics<parallel>, #tpu.dimension_semantics<parallel>, #tpu.dimension_semantics<arbitrary>], iteration_bounds = array<i64: 1, 1, 1>, scalar_prefetch = 0 : i64, scratch_operands = 1 : i64, tpu.core_type = #tpu.core_type<tc>, window_params = [{transform_indices = @transform_0, window_bounds = array<i64: 16, 128>}, {transform_indices = @transform_1, window_bounds = array<i64: 128, 512>}, {transform_indices = @transform_2, window_bounds = array<i64: 1, 512>}, {transform_indices = @transform_3, window_bounds = array<i64: 16, 512>}]} {
    %c0_i32 = arith.constant 0 : i32
    %0 = arith.cmpi eq, %arg2, %c0_i32 : i32
    %1 = arith.extui %0 : i1 to i32
    %c0_i32_0 = arith.constant 0 : i32
    %2 = arith.cmpi ne, %1, %c0_i32_0 : i32
    scf.if %2 {
      %cst_10 = arith.constant 0.000000e+00 : f32
      %12 = vector.broadcast %cst_10 : f32 to vector<16x512xf32>
      %c0_11 = arith.constant 0 : index
      %c0_12 = arith.constant 0 : index
      %13 = vector.load %arg7[%c0_11, %c0_12] : memref<16x512xf32, #tpu.memory_space<vmem>>, vector<16x512xf32>
      tpu.vector_store %arg7[%c0_11, %c0_12], %12 {strides = array<i32>} : memref<16x512xf32, #tpu.memory_space<vmem>>, vector<16x512xf32>,
    } else {
    }
    %c0 = arith.constant 0 : index
    %c0_1 = arith.constant 0 : index
    %3 = vector.load %arg7[%c0, %c0_1] : memref<16x512xf32, #tpu.memory_space<vmem>>, vector<16x512xf32>
    %c0_2 = arith.constant 0 : index
    %c0_3 = arith.constant 0 : index
    %4 = vector.load %arg3[%c0_2, %c0_3] : memref<16x128xbf16, #tpu.memory_space<vmem>>, vector<16x128xbf16>
    %c0_4 = arith.constant 0 : index
    %c0_5 = arith.constant 0 : index
    %5 = vector.load %arg4[%c0_4, %c0_5] : memref<128x512xbf16, #tpu.memory_space<vmem>>, vector<128x512xbf16>
    %cst = arith.constant dense<0.000000e+00> : vector<16x512xf32>
    %6 = tpu.matmul %4, %5, %cst {dimension_numbers = #tpu.dot_dimension_numbers<[1], [0], [0], [1], [0, 0, 1, 1], [], []>} : vector<16x128xbf16>, vector<128x512xbf16>, vector<16x512xf32> -> vector<16x512xf32>
    %7 = arith.addf %3, %6 : vector<16x512xf32>
    %c0_6 = arith.constant 0 : index
    %c0_7 = arith.constant 0 : index
    %8 = vector.load %arg7[%c0_6, %c0_7] : memref<16x512xf32, #tpu.memory_space<vmem>>, vector<16x512xf32>
    tpu.vector_store %arg7[%c0_6, %c0_7], %7 {strides = array<i32>} : memref<16x512xf32, #tpu.memory_space<vmem>>, vector<16x512xf32>,
    %c0_i32_8 = arith.constant 0 : i32
    %9 = arith.cmpi eq, %arg2, %c0_i32_8 : i32
    %10 = arith.extui %9 : i1 to i32
    %c0_i32_9 = arith.constant 0 : i32
    %11 = arith.cmpi ne, %10, %c0_i32_9 : i32
    scf.if %11 {
      %c0_10 = arith.constant 0 : index
      %c0_11 = arith.constant 0 : index
      %12 = vector.load %arg7[%c0_10, %c0_11] : memref<16x512xf32, #tpu.memory_space<vmem>>, vector<16x512xf32>
      %c0_12 = arith.constant 0 : index
      %c0_13 = arith.constant 0 : index
      %13 = vector.load %arg5[%c0_12, %c0_13] : memref<1x512xf32, #tpu.memory_space<vmem>>, vector<1x512xf32>
      %14 = vector.broadcast %13 : vector<1x512xf32> to vector<16x512xf32>
      %15 = arith.addf %12, %14 : vector<16x512xf32>
      %c0_14 = arith.constant 0 : index
      %c0_15 = arith.constant 0 : index
      %16 = vector.load %arg6[%c0_14, %c0_15] : memref<16x512xf32, #tpu.memory_space<vmem>>, vector<16x512xf32>
      tpu.vector_store %arg6[%c0_14, %c0_15], %15 {strides = array<i32>} : memref<16x512xf32, #tpu.memory_space<vmem>>, vector<16x512xf32>,
    } else {
    }
    return
  }
  func.func @transform_0(%arg0: i32, %arg1: i32, %arg2: i32) -> (i32, i32) {
    %c0_i32 = arith.constant 0 : i32
    return %arg0, %arg2 : i32, i32
  }
  func.func @transform_1(%arg0: i32, %arg1: i32, %arg2: i32) -> (i32, i32) {
    %c0_i32 = arith.constant 0 : i32
    return %arg2, %arg1 : i32, i32
  }
  func.func @transform_2(%arg0: i32, %arg1: i32, %arg2: i32) -> (i32, i32) {
    %c0_i32 = arith.constant 0 : i32
    %c0_i32_0 = arith.constant 0 : i32
    return %c0_i32, %arg1 : i32, i32
  }
  func.func @transform_3(%arg0: i32, %arg1: i32, %arg2: i32) -> (i32, i32) {
    %c0_i32 = arith.constant 0 : i32
    return %arg0, %arg1 : i32, i32
  }
}

</mosaic_0001>

<bundles_post_ra>
// kernel: fwd.19
= control target key start
LH: loop header
LB: loop body
LE: loop exit
PB: predicated region body
PF: predicated region fallthrough
CT: control target
= control target key end

     0   :  { %9 = vsyncpa [#allocation5], 0  ;;  %s1303_s0 = inlined_call_operand.hbm [shape: bf16[2,8,128], index: 0, kind: input, shape index: {}]   ;;  %s1304_s1 = inlined_call_operand.hbm [shape: bf16[128,256], index: 1, kind: input, shape index: {}]   ;;  %s1305_s2 = inlined_call_operand.hbm [shape: f32[1,256], index: 2, kind: input, shape index: {}]   ;;  %s1306_s3 = inlined_call_operand.hbm [shape: f32[3,128], index: 3, kind: input, shape index: {}]   ;;  %s1307_s4 = inlined_call_operand.hbm [shape: bf16[2,8,128], index: 4, kind: output, shape index: {}]  }
   0x1   :  { %11 = vsyncpa [#allocation5 + $0x1], 0 }
   0x2   :  { %12 = vsyncpa [#allocation8], 0 }
   0x3   :  { %13 = vsyncpa [#allocation11], 0 }
   0x4   :  { %14 = vsyncpa [#allocation6], 0 }
   0x5   :  { %16 = vsyncpa [#allocation6 + $0x1], 0  ;;  %s1021_s15 = smov 0   ;;  %s1023_s16 = smov 0  }
   0x6   :  { %s1025_s17 = smov 0   ;;  %s1027_s18 = smov 0  }
   0x7   :  { %s1029_s19 = smov 0   ;;  %s1031_s20 = smov 0  }
   0x8 LB: > { %s620_s21 = sadd.s32 4294967295, %s985_s20   ;;  %s621_s22 = sadd.s32 4294967294, %s985_s20   ;;  %s985_s20 = sphi %s1031_s20, %s22_s20   ;;  %s981_s19 = sphi %s1029_s19, %s1334_s19   ;;  %s977_s18 = sphi %s1027_s18, %s1333_s18   ;;  %s973_s17 = sphi %s1025_s17, %s1332_s17   ;;  %s969_s16 = sphi %s1023_s16, %s1331_s16   ;;  %s965_s15 = sphi %s1021_s15, %s1330_s15  }
   0x9   : > { %p56_p0 = scmp.ne.s32.totalorder %s969_s16, %s965_s15  ;;  %p1055_p1 = scmp.eq.s32.totalorder %s620_s21, 0 }
   0xa   : > { %p1059_p2 = scmp.eq.s32.totalorder %s620_s21, 1  ;;  %p154_p3 = scmp.eq.s32.totalorder %s621_s22, 1 }
   0xb   : > { %s1313_s23 = scalar_select %p1055_p1, 1, 0 }
   0xc   : > { %s1314_s24 = scalar_select %p1059_p2, 1, 0 }
   0xd   : > { %p1065_p4 = por %p1055_p1, %p56_p0  ;;  %p622_p5 = scmp.ge.s32.totalorder %s985_s20, 1 }
   0xe   : > { %p1070_p6 = por %p154_p3, %p56_p0  ;;  %p161_p7 = scmp.lt.s32.totalorder %s985_s20, 3 }
   0xf   : > { %s1315_s25 = scalar_select %p1065_p4, 1, 0 }
  0x10   : > { %s1316_s26 = scalar_select %p1070_p6, 1, 0 }
  0x11   : > { %p1075_p8 = pnand %p622_p5, %p161_p7  ;;  %s987_s28 = smov [#allocation7]  }
  0x12   : > { %1317 = sst [smem:[#allocation17_spill]] %s1316_s26  ;;  %s177_s29 = sshll.u32 %s987_s28, 4  ;;  %s1079_s29 = int_to_ptr.vmem [resolvable:$true] %s177_s29 }
  0x13   : > { %s1318_s27 = scalar_select %p1075_p8, 1, 0 }
  0x14   : > { %p672_p9 = pneg %p1075_p8  ;;  %s988_s5 = smov [#allocation9]  }
  0x15   : > { %s191_s6 = sshll.u32 %s988_s5, 4  ;;  %s989_s7 = smov [#allocation10]   ;;  %s1090_s6 = int_to_ptr.vmem [resolvable:$true] %s191_s6 }
  0x16   : > { %p1086_p11 = pnand %p672_p9, %p1055_p1  ;;  %s1092_s8 = sshll.u32 %s989_s7, 4  ;;  %s203_s8 = int_to_ptr.vmem [resolvable:$true] %s1092_s8 }
  0x17   : > { %s781_s11 = scalar_lea.hbm %s1304_s1, 2048 }
  0x18   : > { %p782_p12 = scmp.ne.s32.totalorder %s1304_s1, %s781_s11  ;;  %p1102_p13 = pneg %p1086_p11 }
  0x19   : > { %p788_p5 = scmp.lt.u32.totalorder %s781_s11, %s1304_s1 }
  0x1a   : > { %p784_p0 = pnand %p1102_p13, %p782_p12 }
  0x1c   : > { %p785_p3 = pneg %p784_p0 }
  0x1e   : > { %p790_p7 = pnand %p788_p5, %p785_p3 }
  0x20   : > { %793 = shalt.err (!%p790_p7)
}
  0x21   : > { %s794_s28 = scalar_lea.vmem %s1079_s29, 2048  ;;  %p802_p1 = scmp.lt.s32.totalorder %s1079_s29, %s1079_s29 }
  0x22   : > { %p795_p9 = scmp.ne.s32.totalorder %s1079_s29, %s794_s28  ;;  %p803_p4 = scmp.lt.s32.totalorder %s794_s28, %s794_s28 }
  0x24   : > { %p797_p10 = pnand %p795_p9, %p1102_p13  ;;  %p804_p12 = por %p803_p4, %p802_p1 }
  0x26   : > { %p798_p6 = pneg %p797_p10 }
  0x28   : > { %p805_p0 = pnand %p804_p12, %p798_p6 }
  0x2a   : > { %808 = shalt.err (!%p805_p0)
}
  0x2b   : > { %s990_s5 = smov 128   ;;  %s991_s7 = smov 8  }
  0x2c   : > { %675 = dma.hbm_to_vmem [thread:$0]  (!%p1086_p11), %s1304_s1, 2048, %s1079_s29, [#allocation8], %s990_s5, %s990_s5, %s991_s7  }
  0x2d   : > { %s809_s13 = scalar_lea.hbm %s1305_s2, 32 }
  0x2e   : > { %p810_p1 = scmp.ne.s32.totalorder %s1305_s2, %s809_s13  ;;  %p816_p10 = scmp.lt.u32.totalorder %s809_s13, %s1305_s2 }
  0x30   : > { %p812_p4 = pnand %p810_p1, %p1102_p13 }
  0x32   : > { %p813_p6 = pneg %p812_p4 }
  0x34   : > { %p818_p3 = pnand %p816_p10, %p813_p6 }
  0x36   : > { %821 = shalt.err (!%p818_p3)
}
  0x37   : > { %s822_s29 = scalar_lea.vmem %s1090_s6, 32  ;;  %p830_p12 = scmp.lt.s32.totalorder %s1090_s6, %s1090_s6 }
  0x38   : > { %p823_p5 = scmp.ne.s32.totalorder %s1090_s6, %s822_s29  ;;  %p831_p0 = scmp.lt.s32.totalorder %s822_s29, %s822_s29 }
  0x3a   : > { %p825_p7 = pnand %p823_p5, %p1102_p13  ;;  %p832_p1 = por %p831_p0, %p830_p12 }
  0x3c   : > { %p826_p9 = pneg %p825_p7 }
  0x3e   : > { %p833_p4 = pnand %p832_p1, %p826_p9 }
  0x40   : > { %836 = shalt.err (!%p833_p4)
}
  0x41   : > { %678 = dma.hbm_to_vmem [thread:$0]  (!%p1086_p11), %s1305_s2, 32, %s1090_s6, [#allocation8]  }
  0x42   : > { %s837_s10 = scalar_lea.hbm %s1306_s3, 64 }
  0x43   : > { %p838_p6 = scmp.ne.s32.totalorder %s1306_s3, %s837_s10  ;;  %p844_p5 = scmp.lt.u32.totalorder %s837_s10, %s1306_s3 }
  0x45   : > { %p840_p10 = pnand %p838_p6, %p1102_p13 }
  0x47   : > { %p841_p3 = pneg %p840_p10 }
  0x49   : > { %p846_p7 = pnand %p844_p5, %p841_p3 }
  0x4b   : > { %849 = shalt.err (!%p846_p7)
}
  0x4c   : > { %s850_s22 = scalar_lea.vmem %s203_s8, 64  ;;  %p858_p1 = scmp.lt.s32.totalorder %s203_s8, %s203_s8 }
  0x4d   : > { %p851_p9 = scmp.ne.s32.totalorder %s203_s8, %s850_s22  ;;  %p859_p4 = scmp.lt.s32.totalorder %s850_s22, %s850_s22 }
  0x4f   : > { %p853_p12 = pnand %p851_p9, %p1102_p13  ;;  %p860_p8 = por %p859_p4, %p858_p1 }
  0x51   : > { %p854_p0 = pneg %p853_p12 }
  0x53   : > { %p861_p2 = pnand %p860_p8, %p854_p0 }
  0x55   : > { %864 = shalt.err (!%p861_p2)
}
  0x56   : > { %681 = dma.hbm_to_vmem [thread:$0]  (!%p1086_p11), %s1306_s3, 64, %s203_s8, [#allocation11]  }
  0x57   : > { %s43_s14 = sadd.s32 1, %s973_s17  ;;  %s34_s29 = sadd.s32 1, %s981_s19 }
  0x58   : > { %p50_p2 = scmp.ne.s32.totalorder %s973_s17, %s969_s16  ;;  %p36_p8 = scmp.ge.s32.totalorder %s34_s29, 2 }
  0x59   : > { %p51_p13 = scmp.eq.s32.totalorder %s985_s20, 0  ;;  %p1321_p6 = scmp.ne.s32.totalorder %s1314_s24, 0 }
  0x5a   : > { %p693_p3 = scmp.lt.s32.totalorder %s985_s20, 2  ;;  %s1336_s29 = smov (%p36_p8, %s34_s29), 0 }
  0x5b   : > { %p1172_p10 = por %p1321_p6, %p50_p2  ;;  %p52_p5 = por %p51_p13, %p50_p2 }
  0x5c   : > { %s213_s26 = sand.u32 1, %s973_s17   ;;  %s38_s5 = ssub.s32 %s981_s19, %s1336_s29 }
  0x5d   : > { %p41_p7 = scmp.eq.s32.totalorder %s38_s5, 0  ;;  %s627_s8 = sshll.u32 %s213_s26, 2 }
  0x5e   : > { %s628_s7 = sshll.u32 %s981_s19, 6  ;;  %s217_s12 = scalar_lea.vmem [#allocation4], %s627_s8 }
  0x5f   : > { %s1184_s9 = scalar_select %p41_p7, %s973_s17, %s43_s14  }
  0x60   : > { %s1189_s24 = scalar_lea.hbm %s1303_s0, %s628_s7  ;;  %s225_s13 = sshll.u32 %s217_s12, 4  ;;  %s1191_s13 = int_to_ptr.vmem [resolvable:$true] %s225_s13 }
  0x61   : > { %p1195_p11 = pnand %p693_p3, %p52_p5  ;;  %s214_s22 = scalar_lea.sflag [#allocation5], %s213_s26 }
  0x62   : > { %s865_s6 = scalar_lea.hbm %s1189_s24, 64  ;;  %s870_s5 = scalar_lea.hbm %s1303_s0, 128 }
  0x63   : > { %p866_p9 = scmp.ne.s32.totalorder %s1189_s24, %s865_s6  ;;  %p867_p12 = pneg %p1195_p11 }
  0x64   : > { %p871_p4 = scmp.lt.u32.totalorder %s1189_s24, %s1303_s0  ;;  %p872_p2 = scmp.lt.u32.totalorder %s870_s5, %s865_s6 }
  0x65   : > { %p868_p0 = pnand %p867_p12, %p866_p9  ;;  %p874_p13 = scmp.lt.u32.totalorder %s865_s6, %s1189_s24 }
  0x66   : > { %p873_p8 = por %p872_p2, %p871_p4 }
  0x67   : > { %p869_p1 = pneg %p868_p0 }
  0x68   : > { %p875_p6 = por %p874_p13, %p873_p8 }
  0x6a   : > { %p876_p3 = pnand %p875_p6, %p869_p1 }
  0x6c   : > { %879 = shalt.err (!%p876_p3)
}
  0x6d   : > { %s880_s26 = scalar_lea.vmem %s1191_s13, 64  ;;  %s992_s10 = smov [#allocation4]  }
  0x6e   : > { %p881_p5 = scmp.ne.s32.totalorder %s1191_s13, %s880_s26  ;;  %s885_s11 = sshll.u32 %s992_s10, 4  ;;  %s886_s11 = int_to_ptr.vmem [resolvable:$false] %s885_s11 }
  0x6f   : > { %s887_s12 = scalar_lea.vmem %s886_s11, 128  ;;  %p888_p0 = scmp.lt.s32.totalorder %s1191_s13, %s886_s11 }
  0x70   : > { %p883_p7 = pnand %p881_p5, %p867_p12  ;;  %p889_p4 = scmp.lt.s32.totalorder %s887_s12, %s880_s26 }
  0x72   : > { %p884_p9 = pneg %p883_p7  ;;  %p890_p2 = por %p889_p4, %p888_p0 }
  0x74   : > { %p891_p8 = pnand %p890_p2, %p884_p9 }
  0x76   : > { %894 = shalt.err (!%p891_p8)
}
  0x77   : > { %685 = dma.hbm_to_vmem [thread:$0]  (!%p1195_p11), %s1189_s24, 64, %s1191_s13, %s214_s22  }
  0x78   : > { %p1324_p1 = scmp.ne.s32.totalorder %s1318_s27, 0 }
  0x79   : > { %s1227_s6 = sand.u32 (!%p1324_p1), 1, %s969_s16   ;;  %p1325_p12 = scmp.ne.s32.totalorder (!%p1324_p1), %s1315_s25, 0 }
  0x7a   : > { %234 = sbr.rel (%p1324_p1) target bundleno = 444 (0x1bc), region = 36  ;;  %s630_s28 = sshll.u32 (!%p1324_p1), %s1227_s6, 2 }
  0x7b   : > { %s237_s14 = scalar_lea.sflag (!%p1324_p1), [#allocation5], %s1227_s6  ;;  %s1233_s5 = scalar_lea.vmem (!%p1324_p1), [#allocation4], %s630_s28 }
  0x81   : > { %948 = dma.done.wait (%p1325_p12), %s237_s14, 64  }
  0x82   : > { %950 = vsyncadd (%p1325_p12), %s237_s14, 4294967232  ;;  %p1326_p11 = scmp.ne.s32.totalorder %s1313_s23, 0 }
  0x84   : > { %952 = dma.done.wait (%p1326_p11), [#allocation8], 2080  }
  0x85   : > { %954 = vsyncadd (%p1326_p11), [#allocation8], 4294965216 }
  0x86   : > { %956 = dma.done.wait (%p1326_p11), [#allocation11], 64  }
  0x87   : > { %958 = vsyncadd (%p1326_p11), [#allocation11], 4294967232  ;;  %v993_v0 = vmov 0   ;;  %v753_v1 = vld [vmem:[#allocation7 + $0x4] ss:$8 sps:$4 sm:$0xff]   ;;  %v994_v18 = vmov 0.0   ;;  %v436_v19 = vlaneseq }
  0x88   : > { %416 = vmatprep.mubr.bf16.mxu0 %v993_v0  ;;  %v755_v2 = vld [vmem:[#allocation7] ss:$8 sps:$4 sm:$0xff]   ;;  %384 = vmatprep.subr.bf16.mxu0 %v753_v1  ;;  %v756_v3 = vld [vmem:[#allocation7 + $0x14] ss:$8 sps:$4 sm:$0xff]   ;;  %v758_v4 = vld [vmem:[#allocation7 + $0x10] ss:$8 sps:$4 sm:$0xff]  }
  0x89   : > { %385 = vmatpush1.bf16.msra.mxu0 %v755_v2  ;;  %v759_v5 = vld [vmem:[#allocation7 + $0x24] ss:$8 sps:$4 sm:$0xff]   ;;  %v761_v6 = vld [vmem:[#allocation7 + $0x20] ss:$8 sps:$4 sm:$0xff]   ;;  %v762_v7 = vld [vmem:[#allocation7 + $0x34] ss:$8 sps:$4 sm:$0xff]  }
  0x8a   : > { %386 = vmatprep.subr.bf16.mxu0 %v756_v3  ;;  %v764_v8 = vld [vmem:[#allocation7 + $0x30] ss:$8 sps:$4 sm:$0xff]   ;;  %v765_v9 = vld [vmem:[#allocation7 + $0x44] ss:$8 sps:$4 sm:$0xff]   ;;  %v767_v10 = vld [vmem:[#allocation7 + $0x40] ss:$8 sps:$4 sm:$0xff]  }
  0x8b   : > { %v768_v11 = vld [vmem:[#allocation7 + $0x54] ss:$8 sps:$4 sm:$0xff]   ;;  %v770_v12 = vld [vmem:[#allocation7 + $0x50] ss:$8 sps:$4 sm:$0xff]   ;;  %v771_v13 = vld [vmem:[#allocation7 + $0x64] ss:$8 sps:$4 sm:$0xff]  }
  0x8c   : > { %v773_v14 = vld [vmem:[#allocation7 + $0x60] ss:$8 sps:$4 sm:$0xff]   ;;  %v774_v15 = vld [vmem:[#allocation7 + $0x74] ss:$8 sps:$4 sm:$0xff]   ;;  %v776_v16 = vld [vmem:[#allocation7 + $0x70] ss:$8 sps:$4 sm:$0xff]  }
  0x8d   : > { %387 = vmatpush1.bf16.msra.mxu0 %v758_v4  ;;  %v287_v17 = vld [vmem:[%s1233_s5] sm:$0xf]  ;;  %455 = vst [vmem:[#allocation3] sm:$0xff] %v994_v18  ;;  %456 = vst [vmem:[#allocation3 + $0x8] sm:$0xff] %v994_v18  ;;  %v437_v20 = vshrl.u32 %v436_v19, 7  ;;  %vm474_vm0 = vcmask 1046528  }
  0x8e   : > { %388 = vmatprep.subr.bf16.mxu0 %v759_v5  ;;  %v434_v22 = vld [vmem:[#allocation9] sm:$0x3]  ;;  %v460_v38 = vld [vmem:[#allocation10] sm:$0x7]  ;;  %vm488_vm1 = vcmask 1045504   ;;  %s653_s23 = sshll.u32 %s977_s18, 6 }
  0x8f   : > { %v442_v21 = vsub.s32 1, %v437_v20  ;;  %v438_v32 = vsub.s32 0, %v437_v20  ;;  %v482_v37 = vsub.s32 2, %v437_v20  ;;  %s276_s25 = scalar_lea.vmem [#allocation12], %s630_s28  ;;  %s1254_s21 = scalar_lea.hbm %s1307_s4, %s653_s23 }
  0x90   : > { %s510_s27 = sshll.u32 %s276_s25, 4  ;;  %s497_s22 = scalar_lea.sflag [#allocation6], %s1227_s6  ;;  %s1256_s27 = int_to_ptr.vmem [resolvable:$true] %s510_s27 }
  0x91   : > { %389 = vmatpush1.bf16.msra.mxu0 %v761_v6  ;;  %v443_v23 = vrot.slane %v434_v22, %v442_v21  ;;  %v439_v33 = vrot.slane %v434_v22, %v438_v32  ;;  %v483_v39 = vrot.slane %v460_v38, %v482_v37  ;;  %v469_v40 = vrot.slane %v460_v38, %v442_v21  ;;  %s895_s8 = scalar_lea.vmem %s1256_s27, 64  ;;  %s995_s18 = smov [#allocation12]  }
  0x92   : > { %390 = vmatprep.subr.bf16.mxu0 %v762_v7  ;;  %v464_v41 = vrot.slane %v460_v38, %v438_v32  ;;  %p896_p13 = scmp.ne.s32.totalorder %s1256_s27, %s895_s8  ;;  %s899_s7 = sshll.u32 %s995_s18, 4  ;;  %s900_s7 = int_to_ptr.vmem [resolvable:$false] %s899_s7 }
  0x93   : > { %s901_s26 = scalar_lea.vmem %s900_s7, 128  ;;  %p902_p5 = scmp.lt.s32.totalorder %s1256_s27, %s900_s7 }
  0x94   : > { %p897_p6 = pnand %p896_p13, %p1172_p10  ;;  %p903_p7 = scmp.lt.s32.totalorder %s901_s26, %s895_s8 }
  0x95   : > { %391 = vmatpush1.bf16.msra.mxu0 %v764_v8 }
  0x96   : > { %392 = vmatprep.subr.bf16.mxu0 %v765_v9  ;;  %p898_p3 = pneg %p897_p6  ;;  %p904_p9 = por %p903_p7, %p902_p5 }
  0x98   : > { %p905_p0 = pnand %p904_p9, %p898_p3 }
  0x99   : > { %393 = vmatpush1.bf16.msra.mxu0 %v767_v10 }
  0x9a   : > { %394 = vmatprep.subr.bf16.mxu0 %v768_v11 }
  0x9d   : > { %395 = vmatpush1.bf16.msra.mxu0 %v770_v12 }
  0x9e   : > { %396 = vmatprep.subr.bf16.mxu0 %v771_v13 }
  0xa1   : > { %397 = vmatpush1.bf16.msra.mxu0 %v773_v14 }
  0xa2   : > { %398 = vmatprep.subr.bf16.mxu0 %v774_v15 }
  0xa5   : > { %399 = vmatpush1.bf16.msra.mxu0 %v776_v16 }
  0xa8   : > { %417 = vmatmul.mubr.bf16.vlgmr.msra.gmra.mrb[0].mxu0 %v287_v17 }
 0x17b   : > { %v418_v24 = vpop.f32.mrb[0].mxu0 }
 0x17c   : > { %v420_v25 = vpop.f32.mrb[1].mxu0  ;;  %v446_v34 = vadd.f32 %v439_v33, %v418_v24 }
 0x17d   : > { %v447_v26 = vadd.f32 %v443_v23, %v420_v25  ;;  %v422_v27 = vpop.f32.mrb[2].mxu0 }
 0x17e   : > { %v423_v28 = vpop.f32.mrb[3].mxu0 }
 0x17f   : > { %v651_v29 = vmul.f32 -1.442695, %v447_v26 }
 0x181   : > { %777 = vpow2.f32 %v651_v29 }
 0x18b   : > { %v778_v30 = vpop.eup %777 }
 0x18c   : > { %v451_v31 = vadd.f32 1.0, %v778_v30 }
 0x18e   : > { %779 = vrcp.f32 %v451_v31 }
 0x198   : > { %v780_v35 = vpop.eup %779 }
 0x199   : > { %v454_v36 = vmul.f32 %v780_v35, %v446_v34 }
 0x19b   : > { %457 = vst [vmem:[#allocation3 + $0x1] sm:$0xff] %v454_v36 }
 0x1a2   : > { %v458_v42 = vld [vmem:[#allocation3] sm:$0xff]  ;;  %v459_v43 = vld [vmem:[#allocation3 + $0x8] sm:$0xff] }
 0x1a3   : > { %v470_v44 = vmul.f32 %v469_v40, %v458_v42  ;;  %v471_v45 = vmul.f32 %v469_v40, %v459_v43  ;;  %v484_v46 = vmul.f32 %v483_v39, %v458_v42  ;;  %v485_v47 = vmul.f32 %v483_v39, %v459_v43 }
 0x1a4   : > { %v465_v51 = vmul.f32 %v464_v41, %v458_v42 }
 0x1a5   : > { %v475_v48 = vrot.slane %v470_v44, 1  ;;  %v476_v49 = vrot.slane %v471_v45, 1  ;;  %v489_v50 = vrot.slane %v484_v46, 2  ;;  %v490_v52 = vrot.slane %v485_v47, 2 }
 0x1a7   : > { %v477_v53 = vsel %vm474_vm0, %v475_v48, %v476_v49  ;;  %v491_v55 = vsel %vm488_vm1, %v489_v50, %v490_v52 }
 0x1a8   : > { %v479_v54 = vadd.f32 %v477_v53, %v465_v51 }
 0x1aa   : > { %v493_v56 = vadd.f32 %v491_v55, %v479_v54 }
 0x1ac   : > { %v494_v57 = vpack.c.bf16 %v493_v56, %v493_v56 }
 0x1ae   : > { %495 = vst [vmem:[%s276_s25] sm:$0xf] %v494_v57 }
 0x1af   : > { %908 = shalt.err (!%p905_p0)
}
 0x1b0   : > { %s909_s10 = scalar_lea.hbm %s1254_s21, 64  ;;  %s913_s6 = scalar_lea.hbm %s1307_s4, 128 }
 0x1b1   : > { %p910_p4 = scmp.ne.s32.totalorder %s1254_s21, %s909_s10  ;;  %p914_p1 = scmp.lt.u32.totalorder %s1254_s21, %s1307_s4 }
 0x1b2   : > { %p915_p12 = scmp.lt.u32.totalorder %s913_s6, %s909_s10  ;;  %p917_p13 = scmp.lt.u32.totalorder %s909_s10, %s1254_s21 }
 0x1b3   : > { %p911_p2 = pnand %p910_p4, %p1172_p10 }
 0x1b4   : > { %p916_p11 = por %p915_p12, %p914_p1 }
 0x1b5   : > { %p912_p8 = pneg %p911_p2 }
 0x1b6   : > { %p918_p6 = por %p917_p13, %p916_p11 }
 0x1b8   : > { %p919_p3 = pnand %p918_p6, %p912_p8 }
 0x1ba   : > { %922 = shalt.err (!%p919_p3)
}
 0x1bb   : > { %670 = dma.vmem_to_hbm [thread:$0]  (%p1172_p10), %s1256_s27, 64, %s1254_s21, %s497_s22  }
 0x1bc PF: > { %s1327_s5 = sld [smem:[#allocation17_spill]]  ;;  %s522_s23 = sand.u32 1, %s965_s15  }
 0x1bd   : > { %p1329_p7 = scmp.ge.s32.totalorder %s985_s20, 2  ;;  %s523_s25 = scalar_lea.sflag [#allocation6], %s522_s23 }
 0x1c2   : > { %p1328_p5 = scmp.ne.s32.totalorder %s1327_s5, 0 }
 0x1c4   : > { %p687_p9 = pnand %p1329_p7, %p1328_p5 }
 0x1c6   : > { %960 = dma.done.wait (!%p687_p9), %s523_s25, 64  }
 0x1c7   : > { %962 = vsyncadd (!%p687_p9), %s523_s25, 4294967232  ;;  %s22_s20 = sadd.s32 1, %s985_s20   ;;  %s1330_s15 = smov %s969_s16 }
 0x1c8   : > { %p19_p0 = scmp.ge.s32.totalorder %s22_s20, 4   ;;  %s1331_s16 = smov %s973_s17 }
 0x1c9   : > { %s1332_s17 = smov %s1184_s9  ;;  %s1333_s18 = smov %s981_s19 }
 0x1ca   : > { %s1334_s19 = smov %s1336_s29  ;;  %21 = sbr.rel (!%p19_p0) target bundleno = 8 (0x8), region = 102 }
 0x1d1   :  { %528 = vsyncpa [#allocation5], 1 }
 0x1d2   :  { %530 = vsyncpa [#allocation5 + $0x1], 1 }
 0x1d3   :  { %531 = vsyncpa [#allocation8], 1 }
 0x1d4   :  { %532 = vsyncpa [#allocation11], 1 }
 0x1d5   :  { %533 = vsyncpa [#allocation6], 1 }
 0x1d6   :  { %535 = vsyncpa [#allocation6 + $0x1], 1 }

// kernel: fwd.27
= control target key start
LH: loop header
LB: loop body
LE: loop exit
PB: predicated region body
PF: predicated region fallthrough
CT: control target
= control target key end

     0   :  { %9 = vsyncpa [#allocation5], 0  ;;  %s1303_s0 = inlined_call_operand.hbm [shape: bf16[2,8,128], index: 0, kind: input, shape index: {}]   ;;  %s1304_s1 = inlined_call_operand.hbm [shape: bf16[128,256], index: 1, kind: input, shape index: {}]   ;;  %s1305_s2 = inlined_call_operand.hbm [shape: f32[1,256], index: 2, kind: input, shape index: {}]   ;;  %s1306_s3 = inlined_call_operand.hbm [shape: f32[3,128], index: 3, kind: input, shape index: {}]   ;;  %s1307_s4 = inlined_call_operand.hbm [shape: bf16[2,8,128], index: 4, kind: output, shape index: {}]  }
   0x1   :  { %11 = vsyncpa [#allocation5 + $0x1], 0 }
   0x2   :  { %12 = vsyncpa [#allocation8], 0 }
   0x3   :  { %13 = vsyncpa [#allocation11], 0 }
   0x4   :  { %14 = vsyncpa [#allocation6], 0 }
   0x5   :  { %16 = vsyncpa [#allocation6 + $0x1], 0  ;;  %s1021_s15 = smov 0   ;;  %s1023_s16 = smov 0  }
   0x6   :  { %s1025_s17 = smov 0   ;;  %s1027_s18 = smov 0  }
   0x7   :  { %s1029_s19 = smov 0   ;;  %s1031_s20 = smov 0  }
   0x8 LB: > { %s620_s21 = sadd.s32 4294967295, %s985_s20   ;;  %s621_s22 = sadd.s32 4294967294, %s985_s20   ;;  %s985_s20 = sphi %s1031_s20, %s22_s20   ;;  %s981_s19 = sphi %s1029_s19, %s1334_s19   ;;  %s977_s18 = sphi %s1027_s18, %s1333_s18   ;;  %s973_s17 = sphi %s1025_s17, %s1332_s17   ;;  %s969_s16 = sphi %s1023_s16, %s1331_s16   ;;  %s965_s15 = sphi %s1021_s15, %s1330_s15  }
   0x9   : > { %p56_p0 = scmp.ne.s32.totalorder %s969_s16, %s965_s15  ;;  %p1055_p1 = scmp.eq.s32.totalorder %s620_s21, 0 }
   0xa   : > { %p1059_p2 = scmp.eq.s32.totalorder %s620_s21, 1  ;;  %p154_p3 = scmp.eq.s32.totalorder %s621_s22, 1 }
   0xb   : > { %s1313_s23 = scalar_select %p1055_p1, 1, 0 }
   0xc   : > { %s1314_s24 = scalar_select %p1059_p2, 1, 0 }
   0xd   : > { %p1065_p4 = por %p1055_p1, %p56_p0  ;;  %p622_p5 = scmp.ge.s32.totalorder %s985_s20, 1 }
   0xe   : > { %p1070_p6 = por %p154_p3, %p56_p0  ;;  %p161_p7 = scmp.lt.s32.totalorder %s985_s20, 3 }
   0xf   : > { %s1315_s25 = scalar_select %p1065_p4, 1, 0 }
  0x10   : > { %s1316_s26 = scalar_select %p1070_p6, 1, 0 }
  0x11   : > { %p1075_p8 = pnand %p622_p5, %p161_p7  ;;  %s987_s28 = smov [#allocation7]  }
  0x12   : > { %1317 = sst [smem:[#allocation17_spill]] %s1316_s26  ;;  %s177_s29 = sshll.u32 %s987_s28, 4  ;;  %s1079_s29 = int_to_ptr.vmem [resolvable:$true] %s177_s29 }
  0x13   : > { %s1318_s27 = scalar_select %p1075_p8, 1, 0 }
  0x14   : > { %p672_p9 = pneg %p1075_p8  ;;  %s988_s5 = smov [#allocation9]  }
  0x15   : > { %s191_s6 = sshll.u32 %s988_s5, 4  ;;  %s989_s7 = smov [#allocation10]   ;;  %s1090_s6 = int_to_ptr.vmem [resolvable:$true] %s191_s6 }
  0x16   : > { %p1086_p11 = pnand %p672_p9, %p1055_p1  ;;  %s1092_s8 = sshll.u32 %s989_s7, 4  ;;  %s203_s8 = int_to_ptr.vmem [resolvable:$true] %s1092_s8 }
  0x17   : > { %s781_s11 = scalar_lea.hbm %s1304_s1, 2048 }
  0x18   : > { %p782_p12 = scmp.ne.s32.totalorder %s1304_s1, %s781_s11  ;;  %p1102_p13 = pneg %p1086_p11 }
  0x19   : > { %p788_p5 = scmp.lt.u32.totalorder %s781_s11, %s1304_s1 }
  0x1a   : > { %p784_p0 = pnand %p1102_p13, %p782_p12 }
  0x1c   : > { %p785_p3 = pneg %p784_p0 }
  0x1e   : > { %p790_p7 = pnand %p788_p5, %p785_p3 }
  0x20   : > { %793 = shalt.err (!%p790_p7)
}
  0x21   : > { %s794_s28 = scalar_lea.vmem %s1079_s29, 2048  ;;  %p802_p1 = scmp.lt.s32.totalorder %s1079_s29, %s1079_s29 }
  0x22   : > { %p795_p9 = scmp.ne.s32.totalorder %s1079_s29, %s794_s28  ;;  %p803_p4 = scmp.lt.s32.totalorder %s794_s28, %s794_s28 }
  0x24   : > { %p797_p10 = pnand %p795_p9, %p1102_p13  ;;  %p804_p12 = por %p803_p4, %p802_p1 }
  0x26   : > { %p798_p6 = pneg %p797_p10 }
  0x28   : > { %p805_p0 = pnand %p804_p12, %p798_p6 }
  0x2a   : > { %808 = shalt.err (!%p805_p0)
}
  0x2b   : > { %s990_s5 = smov 128   ;;  %s991_s7 = smov 8  }
  0x2c   : > { %675 = dma.hbm_to_vmem [thread:$0]  (!%p1086_p11), %s1304_s1, 2048, %s1079_s29, [#allocation8], %s990_s5, %s990_s5, %s991_s7  }
  0x2d   : > { %s809_s13 = scalar_lea.hbm %s1305_s2, 32 }
  0x2e   : > { %p810_p1 = scmp.ne.s32.totalorder %s1305_s2, %s809_s13  ;;  %p816_p10 = scmp.lt.u32.totalorder %s809_s13, %s1305_s2 }
  0x30   : > { %p812_p4 = pnand %p810_p1, %p1102_p13 }
  0x32   : > { %p813_p6 = pneg %p812_p4 }
  0x34   : > { %p818_p3 = pnand %p816_p10, %p813_p6 }
  0x36   : > { %821 = shalt.err (!%p818_p3)
}
  0x37   : > { %s822_s29 = scalar_lea.vmem %s1090_s6, 32  ;;  %p830_p12 = scmp.lt.s32.totalorder %s1090_s6, %s1090_s6 }
  0x38   : > { %p823_p5 = scmp.ne.s32.totalorder %s1090_s6, %s822_s29  ;;  %p831_p0 = scmp.lt.s32.totalorder %s822_s29, %s822_s29 }
  0x3a   : > { %p825_p7 = pnand %p823_p5, %p1102_p13  ;;  %p832_p1 = por %p831_p0, %p830_p12 }
  0x3c   : > { %p826_p9 = pneg %p825_p7 }
  0x3e   : > { %p833_p4 = pnand %p832_p1, %p826_p9 }
  0x40   : > { %836 = shalt.err (!%p833_p4)
}
  0x41   : > { %678 = dma.hbm_to_vmem [thread:$0]  (!%p1086_p11), %s1305_s2, 32, %s1090_s6, [#allocation8]  }
  0x42   : > { %s837_s10 = scalar_lea.hbm %s1306_s3, 64 }
  0x43   : > { %p838_p6 = scmp.ne.s32.totalorder %s1306_s3, %s837_s10  ;;  %p844_p5 = scmp.lt.u32.totalorder %s837_s10, %s1306_s3 }
  0x45   : > { %p840_p10 = pnand %p838_p6, %p1102_p13 }
  0x47   : > { %p841_p3 = pneg %p840_p10 }
  0x49   : > { %p846_p7 = pnand %p844_p5, %p841_p3 }
  0x4b   : > { %849 = shalt.err (!%p846_p7)
}
  0x4c   : > { %s850_s22 = scalar_lea.vmem %s203_s8, 64  ;;  %p858_p1 = scmp.lt.s32.totalorder %s203_s8, %s203_s8 }
  0x4d   : > { %p851_p9 = scmp.ne.s32.totalorder %s203_s8, %s850_s22  ;;  %p859_p4 = scmp.lt.s32.totalorder %s850_s22, %s850_s22 }
  0x4f   : > { %p853_p12 = pnand %p851_p9, %p1102_p13  ;;  %p860_p8 = por %p859_p4, %p858_p1 }
  0x51   : > { %p854_p0 = pneg %p853_p12 }
  0x53   : > { %p861_p2 = pnand %p860_p8, %p854_p0 }
  0x55   : > { %864 = shalt.err (!%p861_p2)
}
  0x56   : > { %681 = dma.hbm_to_vmem [thread:$0]  (!%p1086_p11), %s1306_s3, 64, %s203_s8, [#allocation11]  }
  0x57   : > { %s43_s14 = sadd.s32 1, %s973_s17  ;;  %s34_s29 = sadd.s32 1, %s981_s19 }
  0x58   : > { %p50_p2 = scmp.ne.s32.totalorder %s973_s17, %s969_s16  ;;  %p36_p8 = scmp.ge.s32.totalorder %s34_s29, 2 }
  0x59   : > { %p51_p13 = scmp.eq.s32.totalorder %s985_s20, 0  ;;  %p1321_p6 = scmp.ne.s32.totalorder %s1314_s24, 0 }
  0x5a   : > { %p693_p3 = scmp.lt.s32.totalorder %s985_s20, 2  ;;  %s1336_s29 = smov (%p36_p8, %s34_s29), 0 }
  0x5b   : > { %p1172_p10 = por %p1321_p6, %p50_p2  ;;  %p52_p5 = por %p51_p13, %p50_p2 }
  0x5c   : > { %s213_s26 = sand.u32 1, %s973_s17   ;;  %s38_s5 = ssub.s32 %s981_s19, %s1336_s29 }
  0x5d   : > { %p41_p7 = scmp.eq.s32.totalorder %s38_s5, 0  ;;  %s627_s8 = sshll.u32 %s213_s26, 2 }
  0x5e   : > { %s628_s7 = sshll.u32 %s981_s19, 6  ;;  %s217_s12 = scalar_lea.vmem [#allocation4], %s627_s8 }
  0x5f   : > { %s1184_s9 = scalar_select %p41_p7, %s973_s17, %s43_s14  }
  0x60   : > { %s1189_s24 = scalar_lea.hbm %s1303_s0, %s628_s7  ;;  %s225_s13 = sshll.u32 %s217_s12, 4  ;;  %s1191_s13 = int_to_ptr.vmem [resolvable:$true] %s225_s13 }
  0x61   : > { %p1195_p11 = pnand %p693_p3, %p52_p5  ;;  %s214_s22 = scalar_lea.sflag [#allocation5], %s213_s26 }
  0x62   : > { %s865_s6 = scalar_lea.hbm %s1189_s24, 64  ;;  %s870_s5 = scalar_lea.hbm %s1303_s0, 128 }
  0x63   : > { %p866_p9 = scmp.ne.s32.totalorder %s1189_s24, %s865_s6  ;;  %p867_p12 = pneg %p1195_p11 }
  0x64   : > { %p871_p4 = scmp.lt.u32.totalorder %s1189_s24, %s1303_s0  ;;  %p872_p2 = scmp.lt.u32.totalorder %s870_s5, %s865_s6 }
  0x65   : > { %p868_p0 = pnand %p867_p12, %p866_p9  ;;  %p874_p13 = scmp.lt.u32.totalorder %s865_s6, %s1189_s24 }
  0x66   : > { %p873_p8 = por %p872_p2, %p871_p4 }
  0x67   : > { %p869_p1 = pneg %p868_p0 }
  0x68   : > { %p875_p6 = por %p874_p13, %p873_p8 }
  0x6a   : > { %p876_p3 = pnand %p875_p6, %p869_p1 }
  0x6c   : > { %879 = shalt.err (!%p876_p3)
}
  0x6d   : > { %s880_s26 = scalar_lea.vmem %s1191_s13, 64  ;;  %s992_s10 = smov [#allocation4]  }
  0x6e   : > { %p881_p5 = scmp.ne.s32.totalorder %s1191_s13, %s880_s26  ;;  %s885_s11 = sshll.u32 %s992_s10, 4  ;;  %s886_s11 = int_to_ptr.vmem [resolvable:$false] %s885_s11 }
  0x6f   : > { %s887_s12 = scalar_lea.vmem %s886_s11, 128  ;;  %p888_p0 = scmp.lt.s32.totalorder %s1191_s13, %s886_s11 }
  0x70   : > { %p883_p7 = pnand %p881_p5, %p867_p12  ;;  %p889_p4 = scmp.lt.s32.totalorder %s887_s12, %s880_s26 }
  0x72   : > { %p884_p9 = pneg %p883_p7  ;;  %p890_p2 = por %p889_p4, %p888_p0 }
  0x74   : > { %p891_p8 = pnand %p890_p2, %p884_p9 }
  0x76   : > { %894 = shalt.err (!%p891_p8)
}
  0x77   : > { %685 = dma.hbm_to_vmem [thread:$0]  (!%p1195_p11), %s1189_s24, 64, %s1191_s13, %s214_s22  }
  0x78   : > { %p1324_p1 = scmp.ne.s32.totalorder %s1318_s27, 0 }
  0x79   : > { %s1227_s6 = sand.u32 (!%p1324_p1), 1, %s969_s16   ;;  %p1325_p12 = scmp.ne.s32.totalorder (!%p1324_p1), %s1315_s25, 0 }
  0x7a   : > { %234 = sbr.rel (%p1324_p1) target bundleno = 444 (0x1bc), region = 36  ;;  %s630_s28 = sshll.u32 (!%p1324_p1), %s1227_s6, 2 }
  0x7b   : > { %s237_s14 = scalar_lea.sflag (!%p1324_p1), [#allocation5], %s1227_s6  ;;  %s1233_s5 = scalar_lea.vmem (!%p1324_p1), [#allocation4], %s630_s28 }
  0x81   : > { %948 = dma.done.wait (%p1325_p12), %s237_s14, 64  }
  0x82   : > { %950 = vsyncadd (%p1325_p12), %s237_s14, 4294967232  ;;  %p1326_p11 = scmp.ne.s32.totalorder %s1313_s23, 0 }
  0x84   : > { %952 = dma.done.wait (%p1326_p11), [#allocation8], 2080  }
  0x85   : > { %954 = vsyncadd (%p1326_p11), [#allocation8], 4294965216 }
  0x86   : > { %956 = dma.done.wait (%p1326_p11), [#allocation11], 64  }
  0x87   : > { %958 = vsyncadd (%p1326_p11), [#allocation11], 4294967232  ;;  %v993_v0 = vmov 0   ;;  %v753_v1 = vld [vmem:[#allocation7 + $0x4] ss:$8 sps:$4 sm:$0xff]   ;;  %v994_v18 = vmov 0.0   ;;  %v436_v19 = vlaneseq }
  0x88   : > { %416 = vmatprep.mubr.bf16.mxu0 %v993_v0  ;;  %v755_v2 = vld [vmem:[#allocation7] ss:$8 sps:$4 sm:$0xff]   ;;  %384 = vmatprep.subr.bf16.mxu0 %v753_v1  ;;  %v756_v3 = vld [vmem:[#allocation7 + $0x14] ss:$8 sps:$4 sm:$0xff]   ;;  %v758_v4 = vld [vmem:[#allocation7 + $0x10] ss:$8 sps:$4 sm:$0xff]  }
  0x89   : > { %385 = vmatpush1.bf16.msra.mxu0 %v755_v2  ;;  %v759_v5 = vld [vmem:[#allocation7 + $0x24] ss:$8 sps:$4 sm:$0xff]   ;;  %v761_v6 = vld [vmem:[#allocation7 + $0x20] ss:$8 sps:$4 sm:$0xff]   ;;  %v762_v7 = vld [vmem:[#allocation7 + $0x34] ss:$8 sps:$4 sm:$0xff]  }
  0x8a   : > { %386 = vmatprep.subr.bf16.mxu0 %v756_v3  ;;  %v764_v8 = vld [vmem:[#allocation7 + $0x30] ss:$8 sps:$4 sm:$0xff]   ;;  %v765_v9 = vld [vmem:[#allocation7 + $0x44] ss:$8 sps:$4 sm:$0xff]   ;;  %v767_v10 = vld [vmem:[#allocation7 + $0x40] ss:$8 sps:$4 sm:$0xff]  }
  0x8b   : > { %v768_v11 = vld [vmem:[#allocation7 + $0x54] ss:$8 sps:$4 sm:$0xff]   ;;  %v770_v12 = vld [vmem:[#allocation7 + $0x50] ss:$8 sps:$4 sm:$0xff]   ;;  %v771_v13 = vld [vmem:[#allocation7 + $0x64] ss:$8 sps:$4 sm:$0xff]  }
  0x8c   : > { %v773_v14 = vld [vmem:[#allocation7 + $0x60] ss:$8 sps:$4 sm:$0xff]   ;;  %v774_v15 = vld [vmem:[#allocation7 + $0x74] ss:$8 sps:$4 sm:$0xff]   ;;  %v776_v16 = vld [vmem:[#allocation7 + $0x70] ss:$8 sps:$4 sm:$0xff]  }
  0x8d   : > { %387 = vmatpush1.bf16.msra.mxu0 %v758_v4  ;;  %v287_v17 = vld [vmem:[%s1233_s5] sm:$0xf]  ;;  %455 = vst [vmem:[#allocation3] sm:$0xff] %v994_v18  ;;  %456 = vst [vmem:[#allocation3 + $0x8] sm:$0xff] %v994_v18  ;;  %v437_v20 = vshrl.u32 %v436_v19, 7  ;;  %vm474_vm0 = vcmask 1046528  }
  0x8e   : > { %388 = vmatprep.subr.bf16.mxu0 %v759_v5  ;;  %v434_v22 = vld [vmem:[#allocation9] sm:$0x3]  ;;  %v460_v38 = vld [vmem:[#allocation10] sm:$0x7]  ;;  %vm488_vm1 = vcmask 1045504   ;;  %s653_s23 = sshll.u32 %s977_s18, 6 }
  0x8f   : > { %v442_v21 = vsub.s32 1, %v437_v20  ;;  %v438_v32 = vsub.s32 0, %v437_v20  ;;  %v482_v37 = vsub.s32 2, %v437_v20  ;;  %s276_s25 = scalar_lea.vmem [#allocation12], %s630_s28  ;;  %s1254_s21 = scalar_lea.hbm %s1307_s4, %s653_s23 }
  0x90   : > { %s510_s27 = sshll.u32 %s276_s25, 4  ;;  %s497_s22 = scalar_lea.sflag [#allocation6], %s1227_s6  ;;  %s1256_s27 = int_to_ptr.vmem [resolvable:$true] %s510_s27 }
  0x91   : > { %389 = vmatpush1.bf16.msra.mxu0 %v761_v6  ;;  %v443_v23 = vrot.slane %v434_v22, %v442_v21  ;;  %v439_v33 = vrot.slane %v434_v22, %v438_v32  ;;  %v483_v39 = vrot.slane %v460_v38, %v482_v37  ;;  %v469_v40 = vrot.slane %v460_v38, %v442_v21  ;;  %s895_s8 = scalar_lea.vmem %s1256_s27, 64  ;;  %s995_s18 = smov [#allocation12]  }
  0x92   : > { %390 = vmatprep.subr.bf16.mxu0 %v762_v7  ;;  %v464_v41 = vrot.slane %v460_v38, %v438_v32  ;;  %p896_p13 = scmp.ne.s32.totalorder %s1256_s27, %s895_s8  ;;  %s899_s7 = sshll.u32 %s995_s18, 4  ;;  %s900_s7 = int_to_ptr.vmem [resolvable:$false] %s899_s7 }
  0x93   : > { %s901_s26 = scalar_lea.vmem %s900_s7, 128  ;;  %p902_p5 = scmp.lt.s32.totalorder %s1256_s27, %s900_s7 }
  0x94   : > { %p897_p6 = pnand %p896_p13, %p1172_p10  ;;  %p903_p7 = scmp.lt.s32.totalorder %s901_s26, %s895_s8 }
  0x95   : > { %391 = vmatpush1.bf16.msra.mxu0 %v764_v8 }
  0x96   : > { %392 = vmatprep.subr.bf16.mxu0 %v765_v9  ;;  %p898_p3 = pneg %p897_p6  ;;  %p904_p9 = por %p903_p7, %p902_p5 }
  0x98   : > { %p905_p0 = pnand %p904_p9, %p898_p3 }
  0x99   : > { %393 = vmatpush1.bf16.msra.mxu0 %v767_v10 }
  0x9a   : > { %394 = vmatprep.subr.bf16.mxu0 %v768_v11 }
  0x9d   : > { %395 = vmatpush1.bf16.msra.mxu0 %v770_v12 }
  0x9e   : > { %396 = vmatprep.subr.bf16.mxu0 %v771_v13 }
  0xa1   : > { %397 = vmatpush1.bf16.msra.mxu0 %v773_v14 }
  0xa2   : > { %398 = vmatprep.subr.bf16.mxu0 %v774_v15 }
  0xa5   : > { %399 = vmatpush1.bf16.msra.mxu0 %v776_v16 }
  0xa8   : > { %417 = vmatmul.mubr.bf16.vlgmr.msra.gmra.mrb[0].mxu0 %v287_v17 }
 0x17b   : > { %v418_v24 = vpop.f32.mrb[0].mxu0 }
 0x17c   : > { %v420_v25 = vpop.f32.mrb[1].mxu0  ;;  %v446_v34 = vadd.f32 %v439_v33, %v418_v24 }
 0x17d   : > { %v447_v26 = vadd.f32 %v443_v23, %v420_v25  ;;  %v422_v27 = vpop.f32.mrb[2].mxu0 }
 0x17e   : > { %v423_v28 = vpop.f32.mrb[3].mxu0 }
 0x17f   : > { %v651_v29 = vmul.f32 -1.442695, %v447_v26 }
 0x181   : > { %777 = vpow2.f32 %v651_v29 }
 0x18b   : > { %v778_v30 = vpop.eup %777 }
 0x18c   : > { %v451_v31 = vadd.f32 1.0, %v778_v30 }
 0x18e   : > { %779 = vrcp.f32 %v451_v31 }
 0x198   : > { %v780_v35 = vpop.eup %779 }
 0x199   : > { %v454_v36 = vmul.f32 %v780_v35, %v446_v34 }
 0x19b   : > { %457 = vst [vmem:[#allocation3 + $0x2] sm:$0xff] %v454_v36 }
 0x1a2   : > { %v458_v42 = vld [vmem:[#allocation3] sm:$0xff]  ;;  %v459_v43 = vld [vmem:[#allocation3 + $0x8] sm:$0xff] }
 0x1a3   : > { %v470_v44 = vmul.f32 %v469_v40, %v458_v42  ;;  %v471_v45 = vmul.f32 %v469_v40, %v459_v43  ;;  %v484_v46 = vmul.f32 %v483_v39, %v458_v42  ;;  %v485_v47 = vmul.f32 %v483_v39, %v459_v43 }
 0x1a4   : > { %v465_v51 = vmul.f32 %v464_v41, %v458_v42 }
 0x1a5   : > { %v475_v48 = vrot.slane %v470_v44, 1  ;;  %v476_v49 = vrot.slane %v471_v45, 1  ;;  %v489_v50 = vrot.slane %v484_v46, 2  ;;  %v490_v52 = vrot.slane %v485_v47, 2 }
 0x1a7   : > { %v477_v53 = vsel %vm474_vm0, %v475_v48, %v476_v49  ;;  %v491_v55 = vsel %vm488_vm1, %v489_v50, %v490_v52 }
 0x1a8   : > { %v479_v54 = vadd.f32 %v477_v53, %v465_v51 }
 0x1aa   : > { %v493_v56 = vadd.f32 %v491_v55, %v479_v54 }
 0x1ac   : > { %v494_v57 = vpack.c.bf16 %v493_v56, %v493_v56 }
 0x1ae   : > { %495 = vst [vmem:[%s276_s25] sm:$0xf] %v494_v57 }
 0x1af   : > { %908 = shalt.err (!%p905_p0)
}
 0x1b0   : > { %s909_s10 = scalar_lea.hbm %s1254_s21, 64  ;;  %s913_s6 = scalar_lea.hbm %s1307_s4, 128 }
 0x1b1   : > { %p910_p4 = scmp.ne.s32.totalorder %s1254_s21, %s909_s10  ;;  %p914_p1 = scmp.lt.u32.totalorder %s1254_s21, %s1307_s4 }
 0x1b2   : > { %p915_p12 = scmp.lt.u32.totalorder %s913_s6, %s909_s10  ;;  %p917_p13 = scmp.lt.u32.totalorder %s909_s10, %s1254_s21 }
 0x1b3   : > { %p911_p2 = pnand %p910_p4, %p1172_p10 }
 0x1b4   : > { %p916_p11 = por %p915_p12, %p914_p1 }
 0x1b5   : > { %p912_p8 = pneg %p911_p2 }
 0x1b6   : > { %p918_p6 = por %p917_p13, %p916_p11 }
 0x1b8   : > { %p919_p3 = pnand %p918_p6, %p912_p8 }
 0x1ba   : > { %922 = shalt.err (!%p919_p3)
}
 0x1bb   : > { %670 = dma.vmem_to_hbm [thread:$0]  (%p1172_p10), %s1256_s27, 64, %s1254_s21, %s497_s22  }
 0x1bc PF: > { %s1327_s5 = sld [smem:[#allocation17_spill]]  ;;  %s522_s23 = sand.u32 1, %s965_s15  }
 0x1bd   : > { %p1329_p7 = scmp.ge.s32.totalorder %s985_s20, 2  ;;  %s523_s25 = scalar_lea.sflag [#allocation6], %s522_s23 }
 0x1c2   : > { %p1328_p5 = scmp.ne.s32.totalorder %s1327_s5, 0 }
 0x1c4   : > { %p687_p9 = pnand %p1329_p7, %p1328_p5 }
 0x1c6   : > { %960 = dma.done.wait (!%p687_p9), %s523_s25, 64  }
 0x1c7   : > { %962 = vsyncadd (!%p687_p9), %s523_s25, 4294967232  ;;  %s22_s20 = sadd.s32 1, %s985_s20   ;;  %s1330_s15 = smov %s969_s16 }
 0x1c8   : > { %p19_p0 = scmp.ge.s32.totalorder %s22_s20, 4   ;;  %s1331_s16 = smov %s973_s17 }
 0x1c9   : > { %s1332_s17 = smov %s1184_s9  ;;  %s1333_s18 = smov %s981_s19 }
 0x1ca   : > { %s1334_s19 = smov %s1336_s29  ;;  %21 = sbr.rel (!%p19_p0) target bundleno = 8 (0x8), region = 102 }
 0x1d1   :  { %528 = vsyncpa [#allocation5], 1 }
 0x1d2   :  { %530 = vsyncpa [#allocation5 + $0x1], 1 }
 0x1d3   :  { %531 = vsyncpa [#allocation8], 1 }
 0x1d4   :  { %532 = vsyncpa [#allocation11], 1 }
 0x1d5   :  { %533 = vsyncpa [#allocation6], 1 }
 0x1d6   :  { %535 = vsyncpa [#allocation6 + $0x1], 1 }

// kernel: fwd.21
= control target key start
LH: loop header
LB: loop body
LE: loop exit
PB: predicated region body
PF: predicated region fallthrough
CT: control target
= control target key end

     0   :  { %8 = vsyncpa [#allocation4], 0  ;;  %s513_s0 = inlined_call_operand.hbm [shape: bf16[16,128], index: 0, kind: input, shape index: {}]   ;;  %s514_s1 = inlined_call_operand.hbm [shape: bf16[128,256], index: 1, kind: input, shape index: {}]   ;;  %s515_s2 = inlined_call_operand.hbm [shape: f32[1,256], index: 2, kind: input, shape index: {}]   ;;  %s516_s3 = inlined_call_operand.hbm [shape: bf16[16,256], index: 3, kind: output, shape index: {}]  }
   0x1   :  { %9 = vsyncpa [#allocation7], 0 }
   0x2   :  { %10 = vsyncpa [#allocation5], 0  ;;  %s430_s12 = smov [#allocation6]   ;;  %s336_s16 = scalar_lea.hbm %s514_s1, 2048 }
   0x3   :  { %s28_s13 = sshll.u32 %s430_s12, 4  ;;  %p337_p0 = scmp.ne.s32.totalorder %s514_s1, %s336_s16  ;;  %s29_s13 = int_to_ptr.vmem [resolvable:$true] %s28_s13 }
   0x4   :  { %p340_p1 = scmp.lt.u32.totalorder %s336_s16, %s514_s1 }
   0x6   :  { %p342_p2 = pnand %p340_p1, %p337_p0 }
   0x8   :  { %345 = shalt.err (!%p342_p2)
}
   0x9   :  { %s346_s21 = scalar_lea.vmem %s29_s13, 2048  ;;  %p351_p4 = scmp.lt.s32.totalorder %s29_s13, %s29_s13 }
   0xa   :  { %p347_p3 = scmp.ne.s32.totalorder %s29_s13, %s346_s21  ;;  %p352_p5 = scmp.lt.s32.totalorder %s346_s21, %s346_s21 }
   0xc   :  { %p353_p6 = por %p352_p5, %p351_p4 }
   0xe   :  { %p354_p7 = pnand %p353_p6, %p347_p3 }
  0x10   :  { %357 = shalt.err (!%p354_p7)
}
  0x11   :  { %s431_s22 = smov 128   ;;  %s432_s23 = smov 8  }
  0x12   :  { %34 = dma.hbm_to_vmem [thread:$0]  %s514_s1, 2048, %s29_s13, [#allocation7], %s431_s22, %s431_s22, %s432_s23  }
  0x13   :  { %s433_s26 = smov [#allocation3]   ;;  %s358_s30 = scalar_lea.hbm %s513_s0, 128 }
  0x14   :  { %s16_s27 = sshll.u32 %s433_s26, 4  ;;  %p359_p8 = scmp.ne.s32.totalorder %s513_s0, %s358_s30  ;;  %s17_s27 = int_to_ptr.vmem [resolvable:$true] %s16_s27 }
  0x15   :  { %p362_p9 = scmp.lt.u32.totalorder %s358_s30, %s513_s0 }
  0x17   :  { %p364_p10 = pnand %p362_p9, %p359_p8 }
  0x19   :  { %367 = shalt.err (!%p364_p10)
}
  0x1a   :  { %s368_s8 = scalar_lea.vmem %s17_s27, 128  ;;  %p373_p12 = scmp.lt.s32.totalorder %s17_s27, %s17_s27 }
  0x1b   :  { %p369_p11 = scmp.ne.s32.totalorder %s17_s27, %s368_s8  ;;  %p374_p13 = scmp.lt.s32.totalorder %s368_s8, %s368_s8 }
  0x1d   :  { %p375_p0 = por %p374_p13, %p373_p12 }
  0x1f   :  { %p376_p1 = pnand %p375_p0, %p369_p11 }
  0x21   :  { %379 = shalt.err (!%p376_p1)
}
  0x22   :  { %s434_s1 = smov 64   ;;  %s435_s9 = smov 4  }
  0x23   :  { %22 = dma.hbm_to_vmem [thread:$0]  %s513_s0, 128, %s17_s27, [#allocation4], %s434_s1, %s434_s1, %s435_s9  }
  0x24   :  { %s436_s12 = smov [#allocation8]   ;;  %s380_s16 = scalar_lea.hbm %s515_s2, 32 }
  0x25   :  { %s41_s13 = sshll.u32 %s436_s12, 4  ;;  %p381_p2 = scmp.ne.s32.totalorder %s515_s2, %s380_s16  ;;  %s42_s13 = int_to_ptr.vmem [resolvable:$true] %s41_s13 }
  0x26   :  { %p384_p3 = scmp.lt.u32.totalorder %s380_s16, %s515_s2 }
  0x28   :  { %p386_p4 = pnand %p384_p3, %p381_p2 }
  0x2a   :  { %389 = shalt.err (!%p386_p4)
}
  0x2b   :  { %s390_s21 = scalar_lea.vmem %s42_s13, 32  ;;  %p395_p6 = scmp.lt.s32.totalorder %s42_s13, %s42_s13 }
  0x2c   :  { %p391_p5 = scmp.ne.s32.totalorder %s42_s13, %s390_s21  ;;  %p396_p7 = scmp.lt.s32.totalorder %s390_s21, %s390_s21 }
  0x2e   :  { %p397_p8 = por %p396_p7, %p395_p6 }
  0x30   :  { %p398_p9 = pnand %p397_p8, %p391_p5 }
  0x32   :  { %401 = shalt.err (!%p398_p9)
}
  0x33   :  { %44 = dma.hbm_to_vmem [thread:$0]  %s515_s2, 32, %s42_s13, [#allocation7]  }
  0x34   :  { %424 = dma.done.wait [#allocation4], 128  }
  0x35   :  { %425 = vsyncadd [#allocation4], 4294967168 }
  0x36   :  { %426 = dma.done.wait [#allocation7], 2080  }
  0x37   :  { %427 = vsyncadd [#allocation7], 4294965216  ;;  %v437_v0 = vmov 0   ;;  %v311_v1 = vld [vmem:[#allocation6 + $0x4] ss:$8 sps:$4 sm:$0xff]   ;;  %v335_v17 = vld [vmem:[#allocation3] sm:$0xff]   ;;  %v231_v18 = vlaneseq }
  0x38   :  { %203 = vmatprep.mubr.bf16.mxu0 %v437_v0  ;;  %v313_v2 = vld [vmem:[#allocation6] ss:$8 sps:$4 sm:$0xff]   ;;  %171 = vmatprep.subr.bf16.mxu0 %v311_v1  ;;  %v314_v3 = vld [vmem:[#allocation6 + $0x14] ss:$8 sps:$4 sm:$0xff]   ;;  %v316_v4 = vld [vmem:[#allocation6 + $0x10] ss:$8 sps:$4 sm:$0xff]  }
  0x39   :  { %172 = vmatpush1.bf16.msra.mxu0 %v313_v2  ;;  %v317_v5 = vld [vmem:[#allocation6 + $0x24] ss:$8 sps:$4 sm:$0xff]   ;;  %v319_v6 = vld [vmem:[#allocation6 + $0x20] ss:$8 sps:$4 sm:$0xff]   ;;  %v320_v7 = vld [vmem:[#allocation6 + $0x34] ss:$8 sps:$4 sm:$0xff]  }
  0x3a   :  { %173 = vmatprep.subr.bf16.mxu0 %v314_v3  ;;  %v322_v8 = vld [vmem:[#allocation6 + $0x30] ss:$8 sps:$4 sm:$0xff]   ;;  %v323_v9 = vld [vmem:[#allocation6 + $0x44] ss:$8 sps:$4 sm:$0xff]   ;;  %v325_v10 = vld [vmem:[#allocation6 + $0x40] ss:$8 sps:$4 sm:$0xff]  }
  0x3b   :  { %v326_v11 = vld [vmem:[#allocation6 + $0x54] ss:$8 sps:$4 sm:$0xff]   ;;  %v328_v12 = vld [vmem:[#allocation6 + $0x50] ss:$8 sps:$4 sm:$0xff]   ;;  %v329_v13 = vld [vmem:[#allocation6 + $0x64] ss:$8 sps:$4 sm:$0xff]  }
  0x3c   :  { %v331_v14 = vld [vmem:[#allocation6 + $0x60] ss:$8 sps:$4 sm:$0xff]   ;;  %v332_v15 = vld [vmem:[#allocation6 + $0x74] ss:$8 sps:$4 sm:$0xff]   ;;  %v334_v16 = vld [vmem:[#allocation6 + $0x70] ss:$8 sps:$4 sm:$0xff]  }
  0x3d   :  { %174 = vmatpush1.bf16.msra.mxu0 %v316_v4  ;;  %v232_v19 = vshrl.u32 %v231_v18, 7  ;;  %v229_v21 = vld [vmem:[#allocation8] sm:$0x3]  ;;  %s438_s2 = smov [#allocation9]  }
  0x3e   :  { %175 = vmatprep.subr.bf16.mxu0 %v317_v5  ;;  %s268_s25 = sshll.u32 %s438_s2, 4  ;;  %s269_s25 = int_to_ptr.vmem [resolvable:$true] %s268_s25 }
  0x3f   :  { %v233_v20 = vsub.s32 0, %v232_v19  ;;  %v237_v22 = vsub.s32 1, %v232_v19  ;;  %s402_s26 = scalar_lea.vmem %s269_s25, 256  ;;  %p407_p11 = scmp.lt.s32.totalorder %s269_s25, %s269_s25 }
  0x40   :  { %p403_p10 = scmp.ne.s32.totalorder %s269_s25, %s402_s26  ;;  %p408_p12 = scmp.lt.s32.totalorder %s402_s26, %s402_s26 }
  0x41   :  { %176 = vmatpush1.bf16.msra.mxu0 %v319_v6  ;;  %v234_v23 = vrot.slane %v229_v21, %v233_v20  ;;  %v238_v24 = vrot.slane %v229_v21, %v237_v22 }
  0x42   :  { %177 = vmatprep.subr.bf16.mxu0 %v320_v7  ;;  %p409_p13 = por %p408_p12, %p407_p11 }
  0x44   :  { %p410_p0 = pnand %p409_p13, %p403_p10 }
  0x45   :  { %178 = vmatpush1.bf16.msra.mxu0 %v322_v8 }
  0x46   :  { %179 = vmatprep.subr.bf16.mxu0 %v323_v9 }
  0x49   :  { %180 = vmatpush1.bf16.msra.mxu0 %v325_v10 }
  0x4a   :  { %181 = vmatprep.subr.bf16.mxu0 %v326_v11 }
  0x4d   :  { %182 = vmatpush1.bf16.msra.mxu0 %v328_v12 }
  0x4e   :  { %183 = vmatprep.subr.bf16.mxu0 %v329_v13 }
  0x51   :  { %184 = vmatpush1.bf16.msra.mxu0 %v331_v14 }
  0x52   :  { %185 = vmatprep.subr.bf16.mxu0 %v332_v15 }
  0x55   :  { %186 = vmatpush1.bf16.msra.mxu0 %v334_v16 }
  0x58   :  { %204 = vmatmul.mubr.bf16.vlgmr.msra.gmra.mrb[0].mxu0 %v335_v17 }
 0x12b   :  { %v205_v25 = vpop.f32.mrb[0].mxu0 }
 0x12c   :  { %v241_v26 = vadd.f32 %v234_v23, %v205_v25  ;;  %v207_v27 = vpop.f32.mrb[1].mxu0 }
 0x12d   :  { %v242_v28 = vadd.f32 %v238_v24, %v207_v27  ;;  %v209_v29 = vpop.f32.mrb[2].mxu0 }
 0x12e   :  { %v245_v30 = vmax.f32 %v241_v26, 0.0  ;;  %v243_v31 = vadd.f32 %v234_v23, %v209_v29  ;;  %v211_v32 = vpop.f32.mrb[3].mxu0 }
 0x12f   :  { %v246_v33 = vmax.f32 %v242_v28, 0.0  ;;  %v244_v34 = vadd.f32 %v238_v24, %v211_v32 }
 0x130   :  { %v247_v35 = vmax.f32 %v243_v31, 0.0 }
 0x131   :  { %v300_v36 = vpack.c.bf16 %v246_v33, %v245_v30  ;;  %v248_v37 = vmax.f32 %v244_v34, 0.0 }
 0x133   :  { %261 = vst [vmem:[#allocation9] sm:$0xff] %v300_v36  ;;  %v301_v38 = vpack.c.bf16 %v248_v37, %v247_v35 }
 0x135   :  { %262 = vst [vmem:[#allocation9 + $0x8] sm:$0xff] %v301_v38 }
 0x136   :  { %413 = shalt.err (!%p410_p0)
}
 0x137   :  { %s414_s29 = scalar_lea.hbm %s516_s3, 256 }
 0x138   :  { %p415_p1 = scmp.ne.s32.totalorder %s516_s3, %s414_s29  ;;  %p418_p2 = scmp.lt.u32.totalorder %s414_s29, %s516_s3 }
 0x13a   :  { %p420_p3 = pnand %p418_p2, %p415_p1 }
 0x13c   :  { %423 = shalt.err (!%p420_p3)
}
 0x13d   :  { %274 = dma.vmem_to_hbm [thread:$0]  %s269_s25, 256, %s516_s3, [#allocation5], %s431_s22, %s431_s22, %s432_s23  }
 0x13e   :  { %428 = dma.done.wait [#allocation5], 256  }
 0x13f   :  { %429 = vsyncadd [#allocation5], 4294967040 }
 0x140   :  { %278 = vsyncpa [#allocation4], 1 }
 0x141   :  { %279 = vsyncpa [#allocation7], 1 }
 0x142   :  { %280 = vsyncpa [#allocation5], 1 }

// kernel: fwd.28
= control target key start
LH: loop header
LB: loop body
LE: loop exit
PB: predicated region body
PF: predicated region fallthrough
CT: control target
= control target key end

     0   :  { %11 = vsyncpa [#allocation4], 0  ;;  %s708_s0 = inlined_call_operand.hbm [shape: bf16[16,128], index: 0, kind: input, shape index: {}]   ;;  %s709_s1 = inlined_call_operand.hbm [shape: bf16[128,128], index: 1, kind: input, shape index: {}]   ;;  %s710_s2 = inlined_call_operand.hbm [shape: f32[1,128], index: 2, kind: input, shape index: {}]   ;;  %s711_s3 = inlined_call_operand.hbm [shape: bf16[16,128], index: 3, kind: input, shape index: {}]   ;;  %s712_s4 = inlined_call_operand.hbm [shape: f32[1,128], index: 4, kind: input, shape index: {}]   ;;  %s713_s5 = inlined_call_operand.hbm [shape: f32[1,128], index: 5, kind: input, shape index: {}]   ;;  %s714_s6 = inlined_call_operand.hbm [shape: bf16[16,128], index: 6, kind: output, shape index: {}]  }
   0x1   :  { %12 = vsyncpa [#allocation7], 0 }
   0x2   :  { %13 = vsyncpa [#allocation10], 0 }
   0x3   :  { %14 = vsyncpa [#allocation13], 0 }
   0x4   :  { %15 = vsyncpa [#allocation5], 0  ;;  %s559_s21 = smov [#allocation6]   ;;  %s560_s23 = smov [#allocation9]  }
   0x5   :  { %s33_s22 = sshll.u32 %s559_s21, 4  ;;  %s55_s24 = sshll.u32 %s560_s23, 4  ;;  %s34_s22 = int_to_ptr.vmem [resolvable:$true] %s33_s22  ;;  %s605_s24 = int_to_ptr.vmem [resolvable:$true] %s55_s24 }
   0x6   :  { %s395_s27 = scalar_lea.hbm %s709_s1, 1024 }
   0x7   :  { %p396_p0 = scmp.ne.s32.totalorder %s709_s1, %s395_s27  ;;  %p399_p1 = scmp.lt.u32.totalorder %s395_s27, %s709_s1 }
   0x9   :  { %p401_p2 = pnand %p399_p1, %p396_p0 }
   0xb   :  { %404 = shalt.err (!%p401_p2)
}
   0xc   :  { %s405_s8 = scalar_lea.vmem %s34_s22, 1024  ;;  %p410_p4 = scmp.lt.s32.totalorder %s34_s22, %s34_s22 }
   0xd   :  { %p406_p3 = scmp.ne.s32.totalorder %s34_s22, %s405_s8  ;;  %p411_p5 = scmp.lt.s32.totalorder %s405_s8, %s405_s8 }
   0xf   :  { %p412_p6 = por %p411_p5, %p410_p4 }
  0x11   :  { %p413_p7 = pnand %p412_p6, %p406_p3 }
  0x13   :  { %416 = shalt.err (!%p413_p7)
}
  0x14   :  { %s561_s9 = smov 64   ;;  %s562_s10 = smov 4  }
  0x15   :  { %39 = dma.hbm_to_vmem [thread:$0]  %s709_s1, 1024, %s34_s22, [#allocation7], %s561_s9, %s561_s9, %s562_s10  }
  0x16   :  { %s417_s15 = scalar_lea.hbm %s711_s3, 128 }
  0x17   :  { %p418_p8 = scmp.ne.s32.totalorder %s711_s3, %s417_s15  ;;  %p421_p9 = scmp.lt.u32.totalorder %s417_s15, %s711_s3 }
  0x19   :  { %p423_p10 = pnand %p421_p9, %p418_p8 }
  0x1b   :  { %426 = shalt.err (!%p423_p10)
}
  0x1c   :  { %s427_s20 = scalar_lea.vmem %s605_s24, 128  ;;  %p432_p12 = scmp.lt.s32.totalorder %s605_s24, %s605_s24 }
  0x1d   :  { %p428_p11 = scmp.ne.s32.totalorder %s605_s24, %s427_s20  ;;  %p433_p13 = scmp.lt.s32.totalorder %s427_s20, %s427_s20 }
  0x1f   :  { %p434_p0 = por %p433_p13, %p432_p12 }
  0x21   :  { %p435_p1 = pnand %p434_p0, %p428_p11 }
  0x23   :  { %438 = shalt.err (!%p435_p1)
}
  0x24   :  { %61 = dma.hbm_to_vmem [thread:$0]  %s711_s3, 128, %s605_s24, [#allocation10], %s561_s9, %s561_s9, %s562_s10  }
  0x25   :  { %s563_s22 = smov [#allocation3]   ;;  %s564_s25 = smov [#allocation8]  }
  0x26   :  { %s21_s23 = sshll.u32 %s563_s22, 4  ;;  %s46_s26 = sshll.u32 %s564_s25, 4  ;;  %s22_s23 = int_to_ptr.vmem [resolvable:$true] %s21_s23  ;;  %s47_s26 = int_to_ptr.vmem [resolvable:$true] %s46_s26 }
  0x27   :  { %s439_s29 = scalar_lea.hbm %s708_s0, 128 }
  0x28   :  { %p440_p2 = scmp.ne.s32.totalorder %s708_s0, %s439_s29  ;;  %p443_p3 = scmp.lt.u32.totalorder %s439_s29, %s708_s0 }
  0x2a   :  { %p445_p4 = pnand %p443_p3, %p440_p2 }
  0x2c   :  { %448 = shalt.err (!%p445_p4)
}
  0x2d   :  { %s449_s3 = scalar_lea.vmem %s22_s23, 128  ;;  %p454_p6 = scmp.lt.s32.totalorder %s22_s23, %s22_s23 }
  0x2e   :  { %p450_p5 = scmp.ne.s32.totalorder %s22_s23, %s449_s3  ;;  %p455_p7 = scmp.lt.s32.totalorder %s449_s3, %s449_s3 }
  0x30   :  { %p456_p8 = por %p455_p7, %p454_p6 }
  0x32   :  { %p457_p9 = pnand %p456_p8, %p450_p5 }
  0x34   :  { %460 = shalt.err (!%p457_p9)
}
  0x35   :  { %27 = dma.hbm_to_vmem [thread:$0]  %s708_s0, 128, %s22_s23, [#allocation4], %s561_s9, %s561_s9, %s562_s10  }
  0x36   :  { %s461_s15 = scalar_lea.hbm %s710_s2, 16 }
  0x37   :  { %p462_p10 = scmp.ne.s32.totalorder %s710_s2, %s461_s15  ;;  %p465_p11 = scmp.lt.u32.totalorder %s461_s15, %s710_s2 }
  0x39   :  { %p467_p12 = pnand %p465_p11, %p462_p10 }
  0x3b   :  { %470 = shalt.err (!%p467_p12)
}
  0x3c   :  { %s471_s20 = scalar_lea.vmem %s47_s26, 16  ;;  %s475_s1 = scalar_lea.vmem %s47_s26, 32 }
  0x3d   :  { %p472_p13 = scmp.ne.s32.totalorder %s47_s26, %s471_s20  ;;  %p476_p0 = scmp.lt.s32.totalorder %s47_s26, %s47_s26 }
  0x3e   :  { %p477_p1 = scmp.lt.s32.totalorder %s475_s1, %s471_s20 }
  0x40   :  { %p478_p2 = por %p477_p1, %p476_p0 }
  0x42   :  { %p479_p3 = pnand %p478_p2, %p472_p13 }
  0x44   :  { %482 = shalt.err (!%p479_p3)
}
  0x45   :  { %49 = dma.hbm_to_vmem [thread:$0]  %s710_s2, 16, %s47_s26, [#allocation7]  }
  0x46   :  { %s565_s22 = smov [#allocation11]   ;;  %s566_s25 = smov [#allocation12]  }
  0x47   :  { %s68_s23 = sshll.u32 %s565_s22, 4  ;;  %s78_s27 = sshll.u32 %s566_s25, 4  ;;  %s69_s23 = int_to_ptr.vmem [resolvable:$true] %s68_s23  ;;  %s79_s27 = int_to_ptr.vmem [resolvable:$true] %s78_s27 }
  0x48   :  { %s483_s30 = scalar_lea.hbm %s712_s4, 16 }
  0x49   :  { %p484_p4 = scmp.ne.s32.totalorder %s712_s4, %s483_s30  ;;  %p487_p5 = scmp.lt.u32.totalorder %s483_s30, %s712_s4 }
  0x4b   :  { %p489_p6 = pnand %p487_p5, %p484_p4 }
  0x4d   :  { %492 = shalt.err (!%p489_p6)
}
  0x4e   :  { %s493_s2 = scalar_lea.vmem %s69_s23, 16  ;;  %s497_s26 = scalar_lea.vmem %s69_s23, 32 }
  0x4f   :  { %p494_p7 = scmp.ne.s32.totalorder %s69_s23, %s493_s2  ;;  %p498_p8 = scmp.lt.s32.totalorder %s69_s23, %s69_s23 }
  0x50   :  { %p499_p9 = scmp.lt.s32.totalorder %s497_s26, %s493_s2 }
  0x52   :  { %p500_p10 = por %p499_p9, %p498_p8 }
  0x54   :  { %p501_p11 = pnand %p500_p10, %p494_p7 }
  0x56   :  { %504 = shalt.err (!%p501_p11)
}
  0x57   :  { %71 = dma.hbm_to_vmem [thread:$0]  %s712_s4, 16, %s69_s23, [#allocation10]  }
  0x58   :  { %s505_s15 = scalar_lea.hbm %s713_s5, 16 }
  0x59   :  { %p506_p12 = scmp.ne.s32.totalorder %s713_s5, %s505_s15  ;;  %p509_p13 = scmp.lt.u32.totalorder %s505_s15, %s713_s5 }
  0x5b   :  { %p511_p0 = pnand %p509_p13, %p506_p12 }
  0x5d   :  { %514 = shalt.err (!%p511_p0)
}
  0x5e   :  { %s515_s20 = scalar_lea.vmem %s79_s27, 16  ;;  %s519_s1 = scalar_lea.vmem %s79_s27, 32 }
  0x5f   :  { %p516_p1 = scmp.ne.s32.totalorder %s79_s27, %s515_s20  ;;  %p520_p2 = scmp.lt.s32.totalorder %s79_s27, %s79_s27 }
  0x60   :  { %p521_p3 = scmp.lt.s32.totalorder %s519_s1, %s515_s20 }
  0x62   :  { %p522_p4 = por %p521_p3, %p520_p2 }
  0x64   :  { %p523_p5 = pnand %p522_p4, %p516_p1 }
  0x66   :  { %526 = shalt.err (!%p523_p5)
}
  0x67   :  { %81 = dma.hbm_to_vmem [thread:$0]  %s713_s5, 16, %s79_s27, [#allocation13]  }
  0x68   :  { %549 = dma.done.wait [#allocation4], 128  }
  0x69   :  { %550 = vsyncadd [#allocation4], 4294967168 }
  0x6a   :  { %551 = dma.done.wait [#allocation7], 1040  }
  0x6b   :  { %552 = vsyncadd [#allocation7], 4294966256 }
  0x6c   :  { %553 = dma.done.wait [#allocation10], 144  }
  0x6d   :  { %554 = vsyncadd [#allocation10], 4294967152 }
  0x6e   :  { %555 = dma.done.wait [#allocation13], 16  }
  0x6f   :  { %556 = vsyncadd [#allocation13], 4294967280  ;;  %v567_v0 = vmov 0.0   ;;  %vm568_vm0 = vmmov 0   ;;  %v382_v1 = vld [vmem:[#allocation6] sm:$0xff]   ;;  %v383_v2 = vld [vmem:[#allocation6 + $0x8] sm:$0xff]  }
  0x70   :  { %351 = vmatprep.subr.bf16.mxu0 %v567_v0  ;;  %367 = vmatprep.mubr.msk.bf16.mxu0 %vm568_vm0, %v567_v0  ;;  %v384_v3 = vld [vmem:[#allocation6 + $0x10] sm:$0xff]   ;;  %v385_v4 = vld [vmem:[#allocation6 + $0x18] sm:$0xff]   ;;  %v386_v5 = vld [vmem:[#allocation6 + $0x20] sm:$0xff]   ;;  %s569_s5 = smov [#allocation14]  }
  0x71   :  { %352 = vmatpush3.bf16.msra.mxu0 %v382_v1  ;;  %v387_v6 = vld [vmem:[#allocation6 + $0x28] sm:$0xff]   ;;  %v388_v7 = vld [vmem:[#allocation6 + $0x30] sm:$0xff]   ;;  %v389_v8 = vld [vmem:[#allocation6 + $0x38] sm:$0xff]   ;;  %s302_s21 = sshll.u32 %s569_s5, 4  ;;  %s303_s21 = int_to_ptr.vmem [resolvable:$true] %s302_s21 }
  0x72   :  { %353 = vmatprep.subr.bf16.mxu0 %v567_v0  ;;  %v390_v9 = vld [vmem:[#allocation3] sm:$0xff]   ;;  %v334_v10 = vld [vmem:[#allocation9] sm:$0xff]   ;;  %v326_v11 = vld [vmem:[#allocation8] ss:$0 sm:$0xff]  ;;  %s527_s22 = scalar_lea.vmem %s303_s21, 128  ;;  %p532_p7 = scmp.lt.s32.totalorder %s303_s21, %s303_s21 }
  0x73   :  { %v335_v12 = vunpack.c.l.bf16 %v334_v10  ;;  %v336_v20 = vunpack.c.h.bf16 %v334_v10  ;;  %v327_v38 = vld [vmem:[#allocation11] ss:$0 sm:$0xff]  ;;  %v328_v42 = vld [vmem:[#allocation12] ss:$0 sm:$0xff]  ;;  %p528_p6 = scmp.ne.s32.totalorder %s303_s21, %s527_s22  ;;  %p533_p8 = scmp.lt.s32.totalorder %s527_s22, %s527_s22 }
  0x75   :  { %354 = vmatpush3.bf16.msra.mxu0 %v383_v2  ;;  %p534_p9 = por %p533_p8, %p532_p7 }
  0x76   :  { %355 = vmatprep.subr.bf16.mxu0 %v567_v0 }
  0x77   :  { %p535_p10 = pnand %p534_p9, %p528_p6 }
  0x79   :  { %356 = vmatpush3.bf16.msra.mxu0 %v384_v3 }
  0x7a   :  { %357 = vmatprep.subr.bf16.mxu0 %v567_v0 }
  0x7d   :  { %358 = vmatpush3.bf16.msra.mxu0 %v385_v4 }
  0x7e   :  { %359 = vmatprep.subr.bf16.mxu0 %v567_v0 }
  0x81   :  { %360 = vmatpush3.bf16.msra.mxu0 %v386_v5 }
  0x82   :  { %361 = vmatprep.subr.bf16.mxu0 %v567_v0 }
  0x85   :  { %362 = vmatpush3.bf16.msra.mxu0 %v387_v6 }
  0x86   :  { %363 = vmatprep.subr.bf16.mxu0 %v567_v0 }
  0x89   :  { %364 = vmatpush3.bf16.msra.mxu0 %v388_v7 }
  0x8a   :  { %365 = vmatprep.subr.bf16.mxu0 %v567_v0 }
  0x8d   :  { %366 = vmatpush3.bf16.msra.mxu0 %v389_v8 }
  0x90   :  { %368 = vmatmul.mubr.bf16.vlgmr.msra.gmra.mrb[0].mxu0 %v390_v9 }
 0x163   :  { %v215_v13 = vpop.f32.mrb[0].mxu0 }
 0x164   :  { %v238_v14 = vadd.f32 %v326_v11, %v215_v13  ;;  %v369_v15 = vpop.f32.mrb[1].mxu0 }
 0x165   :  { %v218_v16 = vpop.f32.mrb[2].mxu0 }
 0x166   :  { %v239_v17 = vadd.f32 %v326_v11, %v218_v16  ;;  %v370_v18 = vpop.f32.mrb[3].mxu0  ;;  %v244_v19 = vadd.f32 %v335_v12, %v238_v14 }
 0x168   :  { %246 = vadd.xlane.f32.xlu0 %v244_v19  ;;  %v245_v21 = vadd.f32 %v336_v20, %v239_v17 }
 0x16c   :  { %248 = vadd.xlane.f32.xlu0 %v245_v21 }
 0x1f5   :  { %v247_v22 = vpop.xlane.xlu0 %246 }
 0x1f6   :  { %v251_v23 = vmul.f32 0.0078125, %v247_v22 }
 0x1f8   :  { %v253_v24 = vsub.f32 %v244_v19, %v251_v23 }
 0x1f9   :  { %v249_v25 = vpop.xlane.xlu0 %248 }
 0x1fa   :  { %v252_v26 = vmul.f32 0.0078125, %v249_v25  ;;  %v255_v27 = vmul.f32 %v253_v24, %v253_v24 }
 0x1fc   :  { %v254_v28 = vsub.f32 %v245_v21, %v252_v26  ;;  %257 = vadd.xlane.f32.xlu1 %v255_v27 }
 0x1fe   :  { %v256_v29 = vmul.f32 %v254_v28, %v254_v28 }
 0x200   :  { %259 = vadd.xlane.f32.xlu1 %v256_v29 }
 0x289   :  { %v258_v30 = vpop.xlane.xlu1 %257 }
 0x28a   :  { %v261_v31 = vmul.f32 0.0078125, %v258_v30 }
 0x28c   :  { %v263_v32 = vadd.f32 1e-05, %v261_v31 }
 0x28d   :  { %v260_v33 = vpop.xlane.xlu1 %259 }
 0x28e   :  { %391 = vrsqrt.f32 %v263_v32  ;;  %v262_v34 = vmul.f32 0.0078125, %v260_v33 }
 0x290   :  { %v264_v35 = vadd.f32 1e-05, %v262_v34 }
 0x292   :  { %393 = vrsqrt.f32 %v264_v35 }
 0x298   :  { %v392_v36 = vpop.eup %391 }
 0x299   :  { %v267_v37 = vmul.f32 %v392_v36, %v253_v24 }
 0x29b   :  { %v276_v41 = vmul.f32 %v327_v38, %v267_v37 }
 0x29c   :  { %v394_v39 = vpop.eup %393 }
 0x29d   :  { %v268_v40 = vmul.f32 %v394_v39, %v254_v28  ;;  %v285_v44 = vadd.f32 %v328_v42, %v276_v41 }
 0x29f   :  { %v277_v43 = vmul.f32 %v327_v38, %v268_v40 }
 0x2a1   :  { %v286_v45 = vadd.f32 %v328_v42, %v277_v43 }
 0x2a3   :  { %v340_v46 = vpack.c.bf16 %v286_v45, %v285_v44 }
 0x2a5   :  { %341 = vst [vmem:[#allocation14] sm:$0xff] %v340_v46  }
 0x2a6   :  { %538 = shalt.err (!%p535_p10)
}
 0x2a7   :  { %s539_s27 = scalar_lea.hbm %s714_s6, 128 }
 0x2a8   :  { %p540_p11 = scmp.ne.s32.totalorder %s714_s6, %s539_s27  ;;  %p543_p12 = scmp.lt.u32.totalorder %s539_s27, %s714_s6 }
 0x2aa   :  { %p545_p13 = pnand %p543_p12, %p540_p11 }
 0x2ac   :  { %548 = shalt.err (!%p545_p13)
}
 0x2ad   :  { %308 = dma.vmem_to_hbm [thread:$0]  %s303_s21, 128, %s714_s6, [#allocation5], %s561_s9, %s561_s9, %s562_s10  }
 0x2ae   :  { %557 = dma.done.wait [#allocation5], 128  }
 0x2af   :  { %558 = vsyncadd [#allocation5], 4294967168 }
 0x2b0   :  { %312 = vsyncpa [#allocation4], 1 }
 0x2b1   :  { %313 = vsyncpa [#allocation7], 1 }
 0x2b2   :  { %314 = vsyncpa [#allocation10], 1 }
 0x2b3   :  { %315 = vsyncpa [#allocation13], 1 }
 0x2b4   :  { %316 = vsyncpa [#allocation5], 1 }

// kernel: fwd.22
= control target key start
LH: loop header
LB: loop body
LE: loop exit
PB: predicated region body
PF: predicated region fallthrough
CT: control target
= control target key end

     0   :  { %11 = vsyncpa [#allocation4], 0  ;;  %s778_s0 = inlined_call_operand.hbm [shape: bf16[16,256], index: 0, kind: input, shape index: {}]   ;;  %s779_s1 = inlined_call_operand.hbm [shape: bf16[256,128], index: 1, kind: input, shape index: {}]   ;;  %s780_s2 = inlined_call_operand.hbm [shape: f32[1,128], index: 2, kind: input, shape index: {}]   ;;  %s781_s3 = inlined_call_operand.hbm [shape: bf16[16,128], index: 3, kind: input, shape index: {}]   ;;  %s782_s4 = inlined_call_operand.hbm [shape: f32[1,128], index: 4, kind: input, shape index: {}]   ;;  %s783_s5 = inlined_call_operand.hbm [shape: f32[1,128], index: 5, kind: input, shape index: {}]   ;;  %s784_s6 = inlined_call_operand.hbm [shape: bf16[16,128], index: 6, kind: output, shape index: {}]  }
   0x1   :  { %12 = vsyncpa [#allocation7], 0 }
   0x2   :  { %13 = vsyncpa [#allocation10], 0 }
   0x3   :  { %14 = vsyncpa [#allocation13], 0 }
   0x4   :  { %15 = vsyncpa [#allocation5], 0  ;;  %s639_s21 = smov [#allocation6]   ;;  %s475_s25 = scalar_lea.hbm %s779_s1, 2048 }
   0x5   :  { %s33_s22 = sshll.u32 %s639_s21, 4  ;;  %p476_p0 = scmp.ne.s32.totalorder %s779_s1, %s475_s25  ;;  %s34_s22 = int_to_ptr.vmem [resolvable:$true] %s33_s22 }
   0x6   :  { %p479_p1 = scmp.lt.u32.totalorder %s475_s25, %s779_s1 }
   0x8   :  { %p481_p2 = pnand %p479_p1, %p476_p0 }
   0xa   :  { %484 = shalt.err (!%p481_p2)
}
   0xb   :  { %s485_s30 = scalar_lea.vmem %s34_s22, 2048  ;;  %p490_p4 = scmp.lt.s32.totalorder %s34_s22, %s34_s22 }
   0xc   :  { %p486_p3 = scmp.ne.s32.totalorder %s34_s22, %s485_s30  ;;  %p491_p5 = scmp.lt.s32.totalorder %s485_s30, %s485_s30 }
   0xe   :  { %p492_p6 = por %p491_p5, %p490_p4 }
  0x10   :  { %p493_p7 = pnand %p492_p6, %p486_p3 }
  0x12   :  { %496 = shalt.err (!%p493_p7)
}
  0x13   :  { %s640_s7 = smov 64   ;;  %s641_s8 = smov 4  }
  0x14   :  { %39 = dma.hbm_to_vmem [thread:$0]  %s779_s1, 2048, %s34_s22, [#allocation7], %s640_s7, %s640_s7, %s641_s8  }
  0x15   :  { %s642_s11 = smov [#allocation9]   ;;  %s643_s13 = smov [#allocation3]  }
  0x16   :  { %s55_s12 = sshll.u32 %s642_s11, 4  ;;  %s21_s14 = sshll.u32 %s643_s13, 4  ;;  %s56_s12 = int_to_ptr.vmem [resolvable:$true] %s55_s12  ;;  %s22_s14 = int_to_ptr.vmem [resolvable:$true] %s21_s14 }
  0x17   :  { %s497_s17 = scalar_lea.hbm %s781_s3, 128 }
  0x18   :  { %p498_p8 = scmp.ne.s32.totalorder %s781_s3, %s497_s17  ;;  %p501_p9 = scmp.lt.u32.totalorder %s497_s17, %s781_s3 }
  0x1a   :  { %p503_p10 = pnand %p501_p9, %p498_p8 }
  0x1c   :  { %506 = shalt.err (!%p503_p10)
}
  0x1d   :  { %s507_s1 = scalar_lea.vmem %s56_s12, 128  ;;  %p512_p12 = scmp.lt.s32.totalorder %s56_s12, %s56_s12 }
  0x1e   :  { %p508_p11 = scmp.ne.s32.totalorder %s56_s12, %s507_s1  ;;  %p513_p13 = scmp.lt.s32.totalorder %s507_s1, %s507_s1 }
  0x20   :  { %p514_p0 = por %p513_p13, %p512_p12 }
  0x22   :  { %p515_p1 = pnand %p514_p0, %p508_p11 }
  0x24   :  { %518 = shalt.err (!%p515_p1)
}
  0x25   :  { %61 = dma.hbm_to_vmem [thread:$0]  %s781_s3, 128, %s56_s12, [#allocation10], %s640_s7, %s640_s7, %s641_s8  }
  0x26   :  { %s519_s26 = scalar_lea.hbm %s778_s0, 256 }
  0x27   :  { %p520_p2 = scmp.ne.s32.totalorder %s778_s0, %s519_s26  ;;  %p523_p3 = scmp.lt.u32.totalorder %s519_s26, %s778_s0 }
  0x29   :  { %p525_p4 = pnand %p523_p3, %p520_p2 }
  0x2b   :  { %528 = shalt.err (!%p525_p4)
}
  0x2c   :  { %s529_s9 = scalar_lea.vmem %s22_s14, 256  ;;  %p534_p6 = scmp.lt.s32.totalorder %s22_s14, %s22_s14 }
  0x2d   :  { %p530_p5 = scmp.ne.s32.totalorder %s22_s14, %s529_s9  ;;  %p535_p7 = scmp.lt.s32.totalorder %s529_s9, %s529_s9 }
  0x2f   :  { %p536_p8 = por %p535_p7, %p534_p6 }
  0x31   :  { %p537_p9 = pnand %p536_p8, %p530_p5 }
  0x33   :  { %540 = shalt.err (!%p537_p9)
}
  0x34   :  { %s644_s3 = smov 128   ;;  %s645_s10 = smov 8  }
  0x35   :  { %27 = dma.hbm_to_vmem [thread:$0]  %s778_s0, 256, %s22_s14, [#allocation4], %s644_s3, %s644_s3, %s645_s10  }
  0x36   :  { %s646_s13 = smov [#allocation8]   ;;  %s647_s16 = smov [#allocation11]  }
  0x37   :  { %s46_s15 = sshll.u32 %s646_s13, 4  ;;  %s68_s17 = sshll.u32 %s647_s16, 4  ;;  %s47_s15 = int_to_ptr.vmem [resolvable:$true] %s46_s15  ;;  %s69_s17 = int_to_ptr.vmem [resolvable:$true] %s68_s17 }
  0x38   :  { %s541_s20 = scalar_lea.hbm %s780_s2, 16 }
  0x39   :  { %p542_p10 = scmp.ne.s32.totalorder %s780_s2, %s541_s20  ;;  %p545_p11 = scmp.lt.u32.totalorder %s541_s20, %s780_s2 }
  0x3b   :  { %p547_p12 = pnand %p545_p11, %p542_p10 }
  0x3d   :  { %550 = shalt.err (!%p547_p12)
}
  0x3e   :  { %s551_s0 = scalar_lea.vmem %s47_s15, 16  ;;  %s555_s14 = scalar_lea.vmem %s47_s15, 32 }
  0x3f   :  { %p552_p13 = scmp.ne.s32.totalorder %s47_s15, %s551_s0  ;;  %p556_p0 = scmp.lt.s32.totalorder %s47_s15, %s47_s15 }
  0x40   :  { %p557_p1 = scmp.lt.s32.totalorder %s555_s14, %s551_s0 }
  0x42   :  { %p558_p2 = por %p557_p1, %p556_p0 }
  0x44   :  { %p559_p3 = pnand %p558_p2, %p552_p13 }
  0x46   :  { %562 = shalt.err (!%p559_p3)
}
  0x47   :  { %49 = dma.hbm_to_vmem [thread:$0]  %s780_s2, 16, %s47_s15, [#allocation7]  }
  0x48   :  { %s563_s28 = scalar_lea.hbm %s782_s4, 16 }
  0x49   :  { %p564_p4 = scmp.ne.s32.totalorder %s782_s4, %s563_s28  ;;  %p567_p5 = scmp.lt.u32.totalorder %s563_s28, %s782_s4 }
  0x4b   :  { %p569_p6 = pnand %p567_p5, %p564_p4 }
  0x4d   :  { %572 = shalt.err (!%p569_p6)
}
  0x4e   :  { %s573_s10 = scalar_lea.vmem %s69_s17, 16  ;;  %s577_s11 = scalar_lea.vmem %s69_s17, 32 }
  0x4f   :  { %p574_p7 = scmp.ne.s32.totalorder %s69_s17, %s573_s10  ;;  %p578_p8 = scmp.lt.s32.totalorder %s69_s17, %s69_s17 }
  0x50   :  { %p579_p9 = scmp.lt.s32.totalorder %s577_s11, %s573_s10 }
  0x52   :  { %p580_p10 = por %p579_p9, %p578_p8 }
  0x54   :  { %p581_p11 = pnand %p580_p10, %p574_p7 }
  0x56   :  { %584 = shalt.err (!%p581_p11)
}
  0x57   :  { %71 = dma.hbm_to_vmem [thread:$0]  %s782_s4, 16, %s69_s17, [#allocation10]  }
  0x58   :  { %s648_s13 = smov [#allocation12]   ;;  %s585_s19 = scalar_lea.hbm %s783_s5, 16 }
  0x59   :  { %s78_s15 = sshll.u32 %s648_s13, 4  ;;  %p586_p12 = scmp.ne.s32.totalorder %s783_s5, %s585_s19  ;;  %s79_s15 = int_to_ptr.vmem [resolvable:$true] %s78_s15 }
  0x5a   :  { %p589_p13 = scmp.lt.u32.totalorder %s585_s19, %s783_s5 }
  0x5c   :  { %p591_p0 = pnand %p589_p13, %p586_p12 }
  0x5e   :  { %594 = shalt.err (!%p591_p0)
}
  0x5f   :  { %s595_s23 = scalar_lea.vmem %s79_s15, 16  ;;  %s599_s4 = scalar_lea.vmem %s79_s15, 32 }
  0x60   :  { %p596_p1 = scmp.ne.s32.totalorder %s79_s15, %s595_s23  ;;  %p600_p2 = scmp.lt.s32.totalorder %s79_s15, %s79_s15 }
  0x61   :  { %p601_p3 = scmp.lt.s32.totalorder %s599_s4, %s595_s23 }
  0x63   :  { %p602_p4 = por %p601_p3, %p600_p2 }
  0x65   :  { %p603_p5 = pnand %p602_p4, %p596_p1 }
  0x67   :  { %606 = shalt.err (!%p603_p5)
}
  0x68   :  { %81 = dma.hbm_to_vmem [thread:$0]  %s783_s5, 16, %s79_s15, [#allocation13]  }
  0x69   :  { %629 = dma.done.wait [#allocation4], 256  }
  0x6a   :  { %630 = vsyncadd [#allocation4], 4294967040 }
  0x6b   :  { %631 = dma.done.wait [#allocation7], 2064  }
  0x6c   :  { %632 = vsyncadd [#allocation7], 4294965232 }
  0x6d   :  { %633 = dma.done.wait [#allocation10], 144  }
  0x6e   :  { %634 = vsyncadd [#allocation10], 4294967152 }
  0x6f   :  { %635 = dma.done.wait [#allocation13], 16  }
  0x70   :  { %636 = vsyncadd [#allocation13], 4294967280  ;;  %v452_v0 = vld [vmem:[#allocation6 + $0x40] sm:$0xff]   ;;  %v454_v2 = vld [vmem:[#allocation6 + $0x48] sm:$0xff]   ;;  %s649_s5 = smov [#allocation14]  }
  0x71   :  { %v453_v1 = vld [vmem:[#allocation6] sm:$0xff]   ;;  %419 = vmatprep.subr.bf16.mxu0 %v452_v0  ;;  %v455_v3 = vld [vmem:[#allocation6 + $0x8] sm:$0xff]   ;;  %v456_v4 = vld [vmem:[#allocation6 + $0x50] sm:$0xff]   ;;  %s370_s14 = sshll.u32 %s649_s5, 4  ;;  %s371_s14 = int_to_ptr.vmem [resolvable:$true] %s370_s14 }
  0x72   :  { %420 = vmatpush3.bf16.msra.mxu0 %v453_v1  ;;  %v457_v5 = vld [vmem:[#allocation6 + $0x10] sm:$0xff]   ;;  %v458_v6 = vld [vmem:[#allocation6 + $0x58] sm:$0xff]   ;;  %v460_v8 = vld [vmem:[#allocation6 + $0x60] sm:$0xff]   ;;  %s607_s24 = scalar_lea.vmem %s371_s14, 128  ;;  %p612_p7 = scmp.lt.s32.totalorder %s371_s14, %s371_s14 }
  0x73   :  { %421 = vmatprep.subr.bf16.mxu0 %v454_v2  ;;  %v459_v7 = vld [vmem:[#allocation6 + $0x18] sm:$0xff]   ;;  %v461_v9 = vld [vmem:[#allocation6 + $0x20] sm:$0xff]   ;;  %v462_v10 = vld [vmem:[#allocation6 + $0x68] sm:$0xff]   ;;  %p608_p6 = scmp.ne.s32.totalorder %s371_s14, %s607_s24  ;;  %p613_p8 = scmp.lt.s32.totalorder %s607_s24, %s607_s24 }
  0x74   :  { %v470_v11 = vld [vmem:[#allocation3 + $0x4] ss:$8 sps:$4 sm:$0xff]   ;;  %v463_v12 = vld [vmem:[#allocation6 + $0x28] sm:$0xff]   ;;  %v468_v17 = vld [vmem:[#allocation3] ss:$8 sps:$4 sm:$0xff]  }
  0x75   :  { %281 = vmatprep.mubr.bf16.mxu0 %v470_v11  ;;  %v464_v13 = vld [vmem:[#allocation6 + $0x70] sm:$0xff]   ;;  %v466_v15 = vld [vmem:[#allocation6 + $0x78] sm:$0xff]   ;;  %v411_v18 = vld [vmem:[#allocation9] sm:$0xff]   ;;  %p614_p9 = por %p613_p8, %p612_p7 }
  0x76   :  { %422 = vmatpush3.bf16.msra.mxu0 %v455_v3  ;;  %v465_v14 = vld [vmem:[#allocation6 + $0x30] sm:$0xff]   ;;  %v467_v16 = vld [vmem:[#allocation6 + $0x38] sm:$0xff]   ;;  %v403_v21 = vld [vmem:[#allocation8] ss:$0 sm:$0xff]  ;;  %v412_v24 = vunpack.c.l.bf16 %v411_v18  ;;  %v413_v30 = vunpack.c.h.bf16 %v411_v18 }
  0x77   :  { %423 = vmatprep.subr.bf16.mxu0 %v456_v4  ;;  %v404_v48 = vld [vmem:[#allocation11] ss:$0 sm:$0xff]  ;;  %v405_v52 = vld [vmem:[#allocation12] ss:$0 sm:$0xff]  ;;  %p615_p10 = pnand %p614_p9, %p608_p6 }
  0x7a   :  { %424 = vmatpush3.bf16.msra.mxu0 %v457_v5 }
  0x7b   :  { %425 = vmatprep.subr.bf16.mxu0 %v458_v6 }
  0x7e   :  { %426 = vmatpush3.bf16.msra.mxu0 %v459_v7 }
  0x7f   :  { %427 = vmatprep.subr.bf16.mxu0 %v460_v8 }
  0x82   :  { %428 = vmatpush3.bf16.msra.mxu0 %v461_v9 }
  0x83   :  { %429 = vmatprep.subr.bf16.mxu0 %v462_v10 }
  0x86   :  { %430 = vmatpush3.bf16.msra.mxu0 %v463_v12 }
  0x87   :  { %431 = vmatprep.subr.bf16.mxu0 %v464_v13 }
  0x8a   :  { %432 = vmatpush3.bf16.msra.mxu0 %v465_v14 }
  0x8b   :  { %433 = vmatprep.subr.bf16.mxu0 %v466_v15 }
  0x8e   :  { %434 = vmatpush3.bf16.msra.mxu0 %v467_v16 }
  0x91   :  { %282 = vmatmul.mubr.bf16.vlgmr.msra.gmra.mrb[0].mxu0 %v468_v17 }
 0x164   :  { %v435_v19 = vpop.f32.mrb[0].mxu0 }
 0x165   :  { %v436_v20 = vpop.f32.mrb[1].mxu0 }
 0x166   :  { %v437_v22 = vadd.f32 %v436_v20, %v435_v19  ;;  %v438_v23 = vpop.f32.mrb[2].mxu0 }
 0x167   :  { %v439_v25 = vpop.f32.mrb[3].mxu0 }
 0x168   :  { %v306_v26 = vadd.f32 %v437_v22, %v403_v21  ;;  %v440_v27 = vadd.f32 %v439_v25, %v438_v23 }
 0x16a   :  { %v307_v28 = vadd.f32 %v440_v27, %v403_v21  ;;  %v312_v29 = vadd.f32 %v412_v24, %v306_v26 }
 0x16c   :  { %314 = vadd.xlane.f32.xlu0 %v312_v29  ;;  %v313_v31 = vadd.f32 %v413_v30, %v307_v28 }
 0x170   :  { %316 = vadd.xlane.f32.xlu0 %v313_v31 }
 0x1f9   :  { %v315_v32 = vpop.xlane.xlu0 %314 }
 0x1fa   :  { %v319_v33 = vmul.f32 0.0078125, %v315_v32 }
 0x1fc   :  { %v321_v34 = vsub.f32 %v312_v29, %v319_v33 }
 0x1fd   :  { %v317_v35 = vpop.xlane.xlu0 %316 }
 0x1fe   :  { %v320_v36 = vmul.f32 0.0078125, %v317_v35  ;;  %v323_v37 = vmul.f32 %v321_v34, %v321_v34 }
 0x200   :  { %v322_v38 = vsub.f32 %v313_v31, %v320_v36  ;;  %325 = vadd.xlane.f32.xlu1 %v323_v37 }
 0x202   :  { %v324_v39 = vmul.f32 %v322_v38, %v322_v38 }
 0x204   :  { %327 = vadd.xlane.f32.xlu1 %v324_v39 }
 0x28d   :  { %v326_v40 = vpop.xlane.xlu1 %325 }
 0x28e   :  { %v329_v41 = vmul.f32 0.0078125, %v326_v40 }
 0x290   :  { %v331_v42 = vadd.f32 1e-05, %v329_v41 }
 0x291   :  { %v328_v43 = vpop.xlane.xlu1 %327 }
 0x292   :  { %471 = vrsqrt.f32 %v331_v42  ;;  %v330_v44 = vmul.f32 0.0078125, %v328_v43 }
 0x294   :  { %v332_v45 = vadd.f32 1e-05, %v330_v44 }
 0x296   :  { %473 = vrsqrt.f32 %v332_v45 }
 0x29c   :  { %v472_v46 = vpop.eup %471 }
 0x29d   :  { %v335_v47 = vmul.f32 %v472_v46, %v321_v34 }
 0x29f   :  { %v344_v51 = vmul.f32 %v404_v48, %v335_v47 }
 0x2a0   :  { %v474_v49 = vpop.eup %473 }
 0x2a1   :  { %v336_v50 = vmul.f32 %v474_v49, %v322_v38  ;;  %v353_v54 = vadd.f32 %v405_v52, %v344_v51 }
 0x2a3   :  { %v345_v53 = vmul.f32 %v404_v48, %v336_v50 }
 0x2a5   :  { %v354_v55 = vadd.f32 %v405_v52, %v345_v53 }
 0x2a7   :  { %v417_v56 = vpack.c.bf16 %v354_v55, %v353_v54 }
 0x2a9   :  { %418 = vst [vmem:[#allocation14] sm:$0xff] %v417_v56  }
 0x2aa   :  { %618 = shalt.err (!%p615_p10)
}
 0x2ab   :  { %s619_s27 = scalar_lea.hbm %s784_s6, 128 }
 0x2ac   :  { %p620_p11 = scmp.ne.s32.totalorder %s784_s6, %s619_s27  ;;  %p623_p12 = scmp.lt.u32.totalorder %s619_s27, %s784_s6 }
 0x2ae   :  { %p625_p13 = pnand %p623_p12, %p620_p11 }
 0x2b0   :  { %628 = shalt.err (!%p625_p13)
}
 0x2b1   :  { %376 = dma.vmem_to_hbm [thread:$0]  %s371_s14, 128, %s784_s6, [#allocation5], %s640_s7, %s640_s7, %s641_s8  }
 0x2b2   :  { %637 = dma.done.wait [#allocation5], 128  }
 0x2b3   :  { %638 = vsyncadd [#allocation5], 4294967168 }
 0x2b4   :  { %380 = vsyncpa [#allocation4], 1 }
 0x2b5   :  { %381 = vsyncpa [#allocation7], 1 }
 0x2b6   :  { %382 = vsyncpa [#allocation10], 1 }
 0x2b7   :  { %383 = vsyncpa [#allocation13], 1 }
 0x2b8   :  { %384 = vsyncpa [#allocation5], 1 }

// kernel: fwd.23
= control target key start
LH: loop header
LB: loop body
LE: loop exit
PB: predicated region body
PF: predicated region fallthrough
CT: control target
= control target key end

     0   :  { %9 = vsyncpa [#allocation5], 0  ;;  %s1360_s0 = inlined_call_operand.hbm [shape: bf16[2,8,128], index: 0, kind: input, shape index: {}]   ;;  %s1361_s1 = inlined_call_operand.hbm [shape: bf16[128,256], index: 1, kind: input, shape index: {}]   ;;  %s1362_s2 = inlined_call_operand.hbm [shape: f32[1,256], index: 2, kind: input, shape index: {}]   ;;  %s1363_s3 = inlined_call_operand.hbm [shape: f32[7,128], index: 3, kind: input, shape index: {}]   ;;  %s1364_s4 = inlined_call_operand.hbm [shape: bf16[2,8,128], index: 4, kind: output, shape index: {}]  }
   0x1   :  { %11 = vsyncpa [#allocation5 + $0x1], 0 }
   0x2   :  { %12 = vsyncpa [#allocation8], 0 }
   0x3   :  { %13 = vsyncpa [#allocation11], 0 }
   0x4   :  { %14 = vsyncpa [#allocation6], 0 }
   0x5   :  { %16 = vsyncpa [#allocation6 + $0x1], 0  ;;  %s1077_s15 = smov 0   ;;  %s1079_s16 = smov 0  }
   0x6   :  { %s1081_s17 = smov 0   ;;  %s1083_s18 = smov 0  }
   0x7   :  { %s1085_s19 = smov 0   ;;  %s1087_s20 = smov 0  }
   0x8 LB: > { %s676_s21 = sadd.s32 4294967295, %s1041_s20   ;;  %s677_s22 = sadd.s32 4294967294, %s1041_s20   ;;  %s1041_s20 = sphi %s1087_s20, %s22_s20   ;;  %s1037_s19 = sphi %s1085_s19, %s1391_s19   ;;  %s1033_s18 = sphi %s1083_s18, %s1390_s18   ;;  %s1029_s17 = sphi %s1081_s17, %s1389_s17   ;;  %s1025_s16 = sphi %s1079_s16, %s1388_s16   ;;  %s1021_s15 = sphi %s1077_s15, %s1387_s15  }
   0x9   : > { %p56_p0 = scmp.ne.s32.totalorder %s1025_s16, %s1021_s15  ;;  %p1111_p1 = scmp.eq.s32.totalorder %s676_s21, 0 }
   0xa   : > { %p1115_p2 = scmp.eq.s32.totalorder %s676_s21, 1  ;;  %p154_p3 = scmp.eq.s32.totalorder %s677_s22, 1 }
   0xb   : > { %s1370_s23 = scalar_select %p1111_p1, 1, 0 }
   0xc   : > { %s1371_s24 = scalar_select %p1115_p2, 1, 0 }
   0xd   : > { %p1121_p4 = por %p1111_p1, %p56_p0  ;;  %p678_p5 = scmp.ge.s32.totalorder %s1041_s20, 1 }
   0xe   : > { %p1126_p6 = por %p154_p3, %p56_p0  ;;  %p161_p7 = scmp.lt.s32.totalorder %s1041_s20, 3 }
   0xf   : > { %s1372_s25 = scalar_select %p1121_p4, 1, 0 }
  0x10   : > { %s1373_s26 = scalar_select %p1126_p6, 1, 0 }
  0x11   : > { %p1131_p8 = pnand %p678_p5, %p161_p7  ;;  %s1043_s28 = smov [#allocation7]  }
  0x12   : > { %1374 = sst [smem:[#allocation17_spill]] %s1373_s26  ;;  %s177_s29 = sshll.u32 %s1043_s28, 4  ;;  %s1135_s29 = int_to_ptr.vmem [resolvable:$true] %s177_s29 }
  0x13   : > { %s1375_s27 = scalar_select %p1131_p8, 1, 0 }
  0x14   : > { %p728_p9 = pneg %p1131_p8  ;;  %s1044_s5 = smov [#allocation9]  }
  0x15   : > { %s191_s6 = sshll.u32 %s1044_s5, 4  ;;  %s1045_s7 = smov [#allocation10]   ;;  %s1146_s6 = int_to_ptr.vmem [resolvable:$true] %s191_s6 }
  0x16   : > { %p1142_p11 = pnand %p728_p9, %p1111_p1  ;;  %s1148_s8 = sshll.u32 %s1045_s7, 4  ;;  %s203_s8 = int_to_ptr.vmem [resolvable:$true] %s1148_s8 }
  0x17   : > { %s837_s11 = scalar_lea.hbm %s1361_s1, 2048 }
  0x18   : > { %p838_p12 = scmp.ne.s32.totalorder %s1361_s1, %s837_s11  ;;  %p1158_p13 = pneg %p1142_p11 }
  0x19   : > { %p844_p5 = scmp.lt.u32.totalorder %s837_s11, %s1361_s1 }
  0x1a   : > { %p840_p0 = pnand %p1158_p13, %p838_p12 }
  0x1c   : > { %p841_p3 = pneg %p840_p0 }
  0x1e   : > { %p846_p7 = pnand %p844_p5, %p841_p3 }
  0x20   : > { %849 = shalt.err (!%p846_p7)
}
  0x21   : > { %s850_s28 = scalar_lea.vmem %s1135_s29, 2048  ;;  %p858_p1 = scmp.lt.s32.totalorder %s1135_s29, %s1135_s29 }
  0x22   : > { %p851_p9 = scmp.ne.s32.totalorder %s1135_s29, %s850_s28  ;;  %p859_p4 = scmp.lt.s32.totalorder %s850_s28, %s850_s28 }
  0x24   : > { %p853_p10 = pnand %p851_p9, %p1158_p13  ;;  %p860_p12 = por %p859_p4, %p858_p1 }
  0x26   : > { %p854_p6 = pneg %p853_p10 }
  0x28   : > { %p861_p0 = pnand %p860_p12, %p854_p6 }
  0x2a   : > { %864 = shalt.err (!%p861_p0)
}
  0x2b   : > { %s1046_s5 = smov 128   ;;  %s1047_s7 = smov 8  }
  0x2c   : > { %731 = dma.hbm_to_vmem [thread:$0]  (!%p1142_p11), %s1361_s1, 2048, %s1135_s29, [#allocation8], %s1046_s5, %s1046_s5, %s1047_s7  }
  0x2d   : > { %s865_s13 = scalar_lea.hbm %s1362_s2, 32 }
  0x2e   : > { %p866_p1 = scmp.ne.s32.totalorder %s1362_s2, %s865_s13  ;;  %p872_p10 = scmp.lt.u32.totalorder %s865_s13, %s1362_s2 }
  0x30   : > { %p868_p4 = pnand %p866_p1, %p1158_p13 }
  0x32   : > { %p869_p6 = pneg %p868_p4 }
  0x34   : > { %p874_p3 = pnand %p872_p10, %p869_p6 }
  0x36   : > { %877 = shalt.err (!%p874_p3)
}
  0x37   : > { %s878_s29 = scalar_lea.vmem %s1146_s6, 32  ;;  %p886_p12 = scmp.lt.s32.totalorder %s1146_s6, %s1146_s6 }
  0x38   : > { %p879_p5 = scmp.ne.s32.totalorder %s1146_s6, %s878_s29  ;;  %p887_p0 = scmp.lt.s32.totalorder %s878_s29, %s878_s29 }
  0x3a   : > { %p881_p7 = pnand %p879_p5, %p1158_p13  ;;  %p888_p1 = por %p887_p0, %p886_p12 }
  0x3c   : > { %p882_p9 = pneg %p881_p7 }
  0x3e   : > { %p889_p4 = pnand %p888_p1, %p882_p9 }
  0x40   : > { %892 = shalt.err (!%p889_p4)
}
  0x41   : > { %734 = dma.hbm_to_vmem [thread:$0]  (!%p1142_p11), %s1362_s2, 32, %s1146_s6, [#allocation8]  }
  0x42   : > { %s893_s10 = scalar_lea.hbm %s1363_s3, 128 }
  0x43   : > { %p894_p6 = scmp.ne.s32.totalorder %s1363_s3, %s893_s10  ;;  %p900_p5 = scmp.lt.u32.totalorder %s893_s10, %s1363_s3 }
  0x45   : > { %p896_p10 = pnand %p894_p6, %p1158_p13 }
  0x47   : > { %p897_p3 = pneg %p896_p10 }
  0x49   : > { %p902_p7 = pnand %p900_p5, %p897_p3 }
  0x4b   : > { %905 = shalt.err (!%p902_p7)
}
  0x4c   : > { %s906_s22 = scalar_lea.vmem %s203_s8, 128  ;;  %p914_p1 = scmp.lt.s32.totalorder %s203_s8, %s203_s8 }
  0x4d   : > { %p907_p9 = scmp.ne.s32.totalorder %s203_s8, %s906_s22  ;;  %p915_p4 = scmp.lt.s32.totalorder %s906_s22, %s906_s22 }
  0x4f   : > { %p909_p12 = pnand %p907_p9, %p1158_p13  ;;  %p916_p8 = por %p915_p4, %p914_p1 }
  0x51   : > { %p910_p0 = pneg %p909_p12 }
  0x53   : > { %p917_p2 = pnand %p916_p8, %p910_p0 }
  0x55   : > { %920 = shalt.err (!%p917_p2)
}
  0x56   : > { %737 = dma.hbm_to_vmem [thread:$0]  (!%p1142_p11), %s1363_s3, 128, %s203_s8, [#allocation11]  }
  0x57   : > { %s43_s14 = sadd.s32 1, %s1029_s17  ;;  %s34_s29 = sadd.s32 1, %s1037_s19 }
  0x58   : > { %p50_p2 = scmp.ne.s32.totalorder %s1029_s17, %s1025_s16  ;;  %p36_p8 = scmp.ge.s32.totalorder %s34_s29, 2 }
  0x59   : > { %p51_p13 = scmp.eq.s32.totalorder %s1041_s20, 0  ;;  %p1378_p6 = scmp.ne.s32.totalorder %s1371_s24, 0 }
  0x5a   : > { %p749_p3 = scmp.lt.s32.totalorder %s1041_s20, 2  ;;  %s1393_s29 = smov (%p36_p8, %s34_s29), 0 }
  0x5b   : > { %p1228_p10 = por %p1378_p6, %p50_p2  ;;  %p52_p5 = por %p51_p13, %p50_p2 }
  0x5c   : > { %s213_s26 = sand.u32 1, %s1029_s17   ;;  %s38_s5 = ssub.s32 %s1037_s19, %s1393_s29 }
  0x5d   : > { %p41_p7 = scmp.eq.s32.totalorder %s38_s5, 0  ;;  %s683_s8 = sshll.u32 %s213_s26, 2 }
  0x5e   : > { %s684_s7 = sshll.u32 %s1037_s19, 6  ;;  %s217_s12 = scalar_lea.vmem [#allocation4], %s683_s8 }
  0x5f   : > { %s1240_s9 = scalar_select %p41_p7, %s1029_s17, %s43_s14  }
  0x60   : > { %s1245_s24 = scalar_lea.hbm %s1360_s0, %s684_s7  ;;  %s225_s13 = sshll.u32 %s217_s12, 4  ;;  %s1247_s13 = int_to_ptr.vmem [resolvable:$true] %s225_s13 }
  0x61   : > { %p1251_p11 = pnand %p749_p3, %p52_p5  ;;  %s214_s22 = scalar_lea.sflag [#allocation5], %s213_s26 }
  0x62   : > { %s921_s6 = scalar_lea.hbm %s1245_s24, 64  ;;  %s926_s5 = scalar_lea.hbm %s1360_s0, 128 }
  0x63   : > { %p922_p9 = scmp.ne.s32.totalorder %s1245_s24, %s921_s6  ;;  %p923_p12 = pneg %p1251_p11 }
  0x64   : > { %p927_p4 = scmp.lt.u32.totalorder %s1245_s24, %s1360_s0  ;;  %p928_p2 = scmp.lt.u32.totalorder %s926_s5, %s921_s6 }
  0x65   : > { %p924_p0 = pnand %p923_p12, %p922_p9  ;;  %p930_p13 = scmp.lt.u32.totalorder %s921_s6, %s1245_s24 }
  0x66   : > { %p929_p8 = por %p928_p2, %p927_p4 }
  0x67   : > { %p925_p1 = pneg %p924_p0 }
  0x68   : > { %p931_p6 = por %p930_p13, %p929_p8 }
  0x6a   : > { %p932_p3 = pnand %p931_p6, %p925_p1 }
  0x6c   : > { %935 = shalt.err (!%p932_p3)
}
  0x6d   : > { %s936_s26 = scalar_lea.vmem %s1247_s13, 64  ;;  %s1048_s10 = smov [#allocation4]  }
  0x6e   : > { %p937_p5 = scmp.ne.s32.totalorder %s1247_s13, %s936_s26  ;;  %s941_s11 = sshll.u32 %s1048_s10, 4  ;;  %s942_s11 = int_to_ptr.vmem [resolvable:$false] %s941_s11 }
  0x6f   : > { %s943_s12 = scalar_lea.vmem %s942_s11, 128  ;;  %p944_p0 = scmp.lt.s32.totalorder %s1247_s13, %s942_s11 }
  0x70   : > { %p939_p7 = pnand %p937_p5, %p923_p12  ;;  %p945_p4 = scmp.lt.s32.totalorder %s943_s12, %s936_s26 }
  0x72   : > { %p940_p9 = pneg %p939_p7  ;;  %p946_p2 = por %p945_p4, %p944_p0 }
  0x74   : > { %p947_p8 = pnand %p946_p2, %p940_p9 }
  0x76   : > { %950 = shalt.err (!%p947_p8)
}
  0x77   : > { %741 = dma.hbm_to_vmem [thread:$0]  (!%p1251_p11), %s1245_s24, 64, %s1247_s13, %s214_s22  }
  0x78   : > { %p1381_p1 = scmp.ne.s32.totalorder %s1375_s27, 0 }
  0x79   : > { %s1283_s6 = sand.u32 (!%p1381_p1), 1, %s1025_s16   ;;  %p1382_p12 = scmp.ne.s32.totalorder (!%p1381_p1), %s1372_s25, 0 }
  0x7a   : > { %234 = sbr.rel (%p1381_p1) target bundleno = 452 (0x1c4), region = 36  ;;  %s686_s28 = sshll.u32 (!%p1381_p1), %s1283_s6, 2 }
  0x7b   : > { %s237_s14 = scalar_lea.sflag (!%p1381_p1), [#allocation5], %s1283_s6  ;;  %s1289_s5 = scalar_lea.vmem (!%p1381_p1), [#allocation4], %s686_s28 }
  0x81   : > { %1004 = dma.done.wait (%p1382_p12), %s237_s14, 64  }
  0x82   : > { %1006 = vsyncadd (%p1382_p12), %s237_s14, 4294967232  ;;  %p1383_p11 = scmp.ne.s32.totalorder %s1370_s23, 0 }
  0x84   : > { %1008 = dma.done.wait (%p1383_p11), [#allocation8], 2080  }
  0x85   : > { %1010 = vsyncadd (%p1383_p11), [#allocation8], 4294965216 }
  0x86   : > { %1012 = dma.done.wait (%p1383_p11), [#allocation11], 128  }
  0x87   : > { %1014 = vsyncadd (%p1383_p11), [#allocation11], 4294967168  ;;  %v1049_v0 = vmov 0   ;;  %v809_v1 = vld [vmem:[#allocation7 + $0x4] ss:$8 sps:$4 sm:$0xff]   ;;  %v1050_v18 = vmov 0.0   ;;  %v436_v19 = vlaneseq }
  0x88   : > { %416 = vmatprep.mubr.bf16.mxu0 %v1049_v0  ;;  %v811_v2 = vld [vmem:[#allocation7] ss:$8 sps:$4 sm:$0xff]   ;;  %384 = vmatprep.subr.bf16.mxu0 %v809_v1  ;;  %v812_v3 = vld [vmem:[#allocation7 + $0x14] ss:$8 sps:$4 sm:$0xff]   ;;  %v814_v4 = vld [vmem:[#allocation7 + $0x10] ss:$8 sps:$4 sm:$0xff]  }
  0x89   : > { %385 = vmatpush1.bf16.msra.mxu0 %v811_v2  ;;  %v815_v5 = vld [vmem:[#allocation7 + $0x24] ss:$8 sps:$4 sm:$0xff]   ;;  %v817_v6 = vld [vmem:[#allocation7 + $0x20] ss:$8 sps:$4 sm:$0xff]   ;;  %v818_v7 = vld [vmem:[#allocation7 + $0x34] ss:$8 sps:$4 sm:$0xff]  }
  0x8a   : > { %386 = vmatprep.subr.bf16.mxu0 %v812_v3  ;;  %v820_v8 = vld [vmem:[#allocation7 + $0x30] ss:$8 sps:$4 sm:$0xff]   ;;  %v821_v9 = vld [vmem:[#allocation7 + $0x44] ss:$8 sps:$4 sm:$0xff]   ;;  %v823_v10 = vld [vmem:[#allocation7 + $0x40] ss:$8 sps:$4 sm:$0xff]  }
  0x8b   : > { %v824_v11 = vld [vmem:[#allocation7 + $0x54] ss:$8 sps:$4 sm:$0xff]   ;;  %v826_v12 = vld [vmem:[#allocation7 + $0x50] ss:$8 sps:$4 sm:$0xff]   ;;  %v827_v13 = vld [vmem:[#allocation7 + $0x64] ss:$8 sps:$4 sm:$0xff]  }
  0x8c   : > { %v829_v14 = vld [vmem:[#allocation7 + $0x60] ss:$8 sps:$4 sm:$0xff]   ;;  %v830_v15 = vld [vmem:[#allocation7 + $0x74] ss:$8 sps:$4 sm:$0xff]   ;;  %v832_v16 = vld [vmem:[#allocation7 + $0x70] ss:$8 sps:$4 sm:$0xff]  }
  0x8d   : > { %387 = vmatpush1.bf16.msra.mxu0 %v814_v4  ;;  %v287_v17 = vld [vmem:[%s1289_s5] sm:$0xf]  ;;  %455 = vst [vmem:[#allocation3] sm:$0xff] %v1050_v18  ;;  %456 = vst [vmem:[#allocation3 + $0x8] sm:$0xff] %v1050_v18  ;;  %v437_v20 = vshrl.u32 %v436_v19, 7  ;;  %vm474_vm0 = vcmask 1046528  }
  0x8e   : > { %388 = vmatprep.subr.bf16.mxu0 %v815_v5  ;;  %v434_v22 = vld [vmem:[#allocation9] sm:$0x3]  ;;  %v460_v38 = vld [vmem:[#allocation10] sm:$0x7f]  ;;  %vm488_vm1 = vcmask 1045504   ;;  %vm502_vm2 = vcmask 1044480  }
  0x8f   : > { %v442_v21 = vsub.s32 1, %v437_v20  ;;  %v438_v32 = vsub.s32 0, %v437_v20  ;;  %v482_v37 = vsub.s32 2, %v437_v20  ;;  %v496_v39 = vsub.s32 3, %v437_v20  ;;  %s709_s23 = sshll.u32 %s1033_s18, 6  ;;  %s276_s25 = scalar_lea.vmem [#allocation12], %s686_s28 }
  0x90   : > { %v510_v40 = vsub.s32 4, %v437_v20  ;;  %v524_v41 = vsub.s32 5, %v437_v20  ;;  %v538_v44 = vsub.s32 6, %v437_v20  ;;  %vm516_vm3 = vcmask 1043456   ;;  %s566_s27 = sshll.u32 %s276_s25, 4  ;;  %s1311_s21 = scalar_lea.hbm %s1364_s4, %s709_s23  ;;  %s1313_s27 = int_to_ptr.vmem [resolvable:$true] %s566_s27 }
  0x91   : > { %389 = vmatpush1.bf16.msra.mxu0 %v817_v6  ;;  %v443_v23 = vrot.slane %v434_v22, %v442_v21  ;;  %v439_v33 = vrot.slane %v434_v22, %v438_v32  ;;  %v469_v42 = vrot.slane %v460_v38, %v442_v21  ;;  %v483_v43 = vrot.slane %v460_v38, %v482_v37  ;;  %s553_s22 = scalar_lea.sflag [#allocation6], %s1283_s6  ;;  %s951_s8 = scalar_lea.vmem %s1313_s27, 64 }
  0x92   : > { %390 = vmatprep.subr.bf16.mxu0 %v818_v7  ;;  %v497_v45 = vrot.slane %v460_v38, %v496_v39  ;;  %v511_v46 = vrot.slane %v460_v38, %v510_v40  ;;  %v464_v47 = vrot.slane %v460_v38, %v438_v32  ;;  %v525_v50 = vrot.slane %v460_v38, %v524_v41  ;;  %p952_p13 = scmp.ne.s32.totalorder %s1313_s27, %s951_s8  ;;  %s1051_s18 = smov [#allocation12]  }
  0x93   : > { %v539_v54 = vrot.slane %v460_v38, %v538_v44  ;;  %vm530_vm4 = vcmask 1042432   ;;  %vm544_vm5 = vcmask 1041408   ;;  %s955_s7 = sshll.u32 %s1051_s18, 4  ;;  %s956_s7 = int_to_ptr.vmem [resolvable:$false] %s955_s7 }
  0x94   : > { %p953_p6 = pnand %p952_p13, %p1228_p10  ;;  %s957_s26 = scalar_lea.vmem %s956_s7, 128 }
  0x95   : > { %391 = vmatpush1.bf16.msra.mxu0 %v820_v8  ;;  %p958_p5 = scmp.lt.s32.totalorder %s1313_s27, %s956_s7  ;;  %p959_p7 = scmp.lt.s32.totalorder %s957_s26, %s951_s8 }
  0x96   : > { %392 = vmatprep.subr.bf16.mxu0 %v821_v9  ;;  %p954_p3 = pneg %p953_p6 }
  0x97   : > { %p960_p9 = por %p959_p7, %p958_p5 }
  0x99   : > { %393 = vmatpush1.bf16.msra.mxu0 %v823_v10  ;;  %p961_p0 = pnand %p960_p9, %p954_p3 }
  0x9a   : > { %394 = vmatprep.subr.bf16.mxu0 %v824_v11 }
  0x9d   : > { %395 = vmatpush1.bf16.msra.mxu0 %v826_v12 }
  0x9e   : > { %396 = vmatprep.subr.bf16.mxu0 %v827_v13 }
  0xa1   : > { %397 = vmatpush1.bf16.msra.mxu0 %v829_v14 }
  0xa2   : > { %398 = vmatprep.subr.bf16.mxu0 %v830_v15 }
  0xa5   : > { %399 = vmatpush1.bf16.msra.mxu0 %v832_v16 }
  0xa8   : > { %417 = vmatmul.mubr.bf16.vlgmr.msra.gmra.mrb[0].mxu0 %v287_v17 }
 0x17b   : > { %v418_v24 = vpop.f32.mrb[0].mxu0 }
 0x17c   : > { %v420_v25 = vpop.f32.mrb[1].mxu0  ;;  %v446_v34 = vadd.f32 %v439_v33, %v418_v24 }
 0x17d   : > { %v447_v26 = vadd.f32 %v443_v23, %v420_v25  ;;  %v422_v27 = vpop.f32.mrb[2].mxu0 }
 0x17e   : > { %v423_v28 = vpop.f32.mrb[3].mxu0 }
 0x17f   : > { %v707_v29 = vmul.f32 -1.442695, %v447_v26 }
 0x181   : > { %833 = vpow2.f32 %v707_v29 }
 0x18b   : > { %v834_v30 = vpop.eup %833 }
 0x18c   : > { %v451_v31 = vadd.f32 1.0, %v834_v30 }
 0x18e   : > { %835 = vrcp.f32 %v451_v31 }
 0x198   : > { %v836_v35 = vpop.eup %835 }
 0x199   : > { %v454_v36 = vmul.f32 %v836_v35, %v446_v34 }
 0x19b   : > { %457 = vst [vmem:[#allocation3 + $0x3] sm:$0xff] %v454_v36 }
 0x1a2   : > { %v458_v48 = vld [vmem:[#allocation3] sm:$0xff]  ;;  %v459_v49 = vld [vmem:[#allocation3 + $0x8] sm:$0xff] }
 0x1a3   : > { %v470_v51 = vmul.f32 %v469_v42, %v458_v48  ;;  %v471_v52 = vmul.f32 %v469_v42, %v459_v49  ;;  %v484_v53 = vmul.f32 %v483_v43, %v458_v48  ;;  %v485_v55 = vmul.f32 %v483_v43, %v459_v49 }
 0x1a4   : > { %v498_v56 = vmul.f32 %v497_v45, %v458_v48  ;;  %v499_v57 = vmul.f32 %v497_v45, %v459_v49  ;;  %v512_v58 = vmul.f32 %v511_v46, %v458_v48  ;;  %v513_v62 = vmul.f32 %v511_v46, %v459_v49 }
 0x1a5   : > { %v475_v59 = vrot.slane %v470_v51, 1  ;;  %v476_v60 = vrot.slane %v471_v52, 1  ;;  %v489_v61 = vrot.slane %v484_v53, 2  ;;  %v465_v63 = vmul.f32 %v464_v47, %v458_v48 }
 0x1a6   : > { %v490_v0 = vrot.slane %v485_v55, 2  ;;  %v503_v1 = vrot.slane %v498_v56, 3  ;;  %v504_v3 = vrot.slane %v499_v57, 3  ;;  %v526_v4 = vmul.f32 %v525_v50, %v458_v48 }
 0x1a7   : > { %v477_v2 = vsel %vm474_vm0, %v475_v59, %v476_v60  ;;  %v527_v5 = vmul.f32 %v525_v50, %v459_v49  ;;  %v517_v7 = vrot.slane %v512_v58, 4  ;;  %v518_v9 = vrot.slane %v513_v62, 4 }
 0x1a8   : > { %v479_v6 = vadd.f32 %v477_v2, %v465_v63  ;;  %v491_v8 = vsel %vm488_vm1, %v489_v61, %v490_v0  ;;  %v540_v10 = vmul.f32 %v539_v54, %v458_v48  ;;  %v541_v11 = vmul.f32 %v539_v54, %v459_v49 }
 0x1a9   : > { %v505_v13 = vsel %vm502_vm2, %v503_v1, %v504_v3  ;;  %v531_v14 = vrot.slane %v526_v4, 5  ;;  %v532_v15 = vrot.slane %v527_v5, 5  ;;  %v519_v17 = vsel %vm516_vm3, %v517_v7, %v518_v9 }
 0x1aa   : > { %v493_v12 = vadd.f32 %v491_v8, %v479_v6  ;;  %v545_v18 = vrot.slane %v540_v10, 6  ;;  %v546_v19 = vrot.slane %v541_v11, 6 }
 0x1ab   : > { %v533_v21 = vsel %vm530_vm4, %v531_v14, %v532_v15 }
 0x1ac   : > { %v507_v16 = vadd.f32 %v505_v13, %v493_v12  ;;  %v547_v23 = vsel %vm544_vm5, %v545_v18, %v546_v19 }
 0x1ae   : > { %v521_v20 = vadd.f32 %v519_v17, %v507_v16 }
 0x1b0   : > { %v535_v22 = vadd.f32 %v533_v21, %v521_v20 }
 0x1b2   : > { %v549_v24 = vadd.f32 %v547_v23, %v535_v22 }
 0x1b4   : > { %v550_v25 = vpack.c.bf16 %v549_v24, %v549_v24 }
 0x1b6   : > { %551 = vst [vmem:[%s276_s25] sm:$0xf] %v550_v25 }
 0x1b7   : > { %964 = shalt.err (!%p961_p0)
}
 0x1b8   : > { %s965_s10 = scalar_lea.hbm %s1311_s21, 64  ;;  %s969_s6 = scalar_lea.hbm %s1364_s4, 128 }
 0x1b9   : > { %p966_p4 = scmp.ne.s32.totalorder %s1311_s21, %s965_s10  ;;  %p970_p1 = scmp.lt.u32.totalorder %s1311_s21, %s1364_s4 }
 0x1ba   : > { %p971_p12 = scmp.lt.u32.totalorder %s969_s6, %s965_s10  ;;  %p973_p13 = scmp.lt.u32.totalorder %s965_s10, %s1311_s21 }
 0x1bb   : > { %p967_p2 = pnand %p966_p4, %p1228_p10 }
 0x1bc   : > { %p972_p11 = por %p971_p12, %p970_p1 }
 0x1bd   : > { %p968_p8 = pneg %p967_p2 }
 0x1be   : > { %p974_p6 = por %p973_p13, %p972_p11 }
 0x1c0   : > { %p975_p3 = pnand %p974_p6, %p968_p8 }
 0x1c2   : > { %978 = shalt.err (!%p975_p3)
}
 0x1c3   : > { %726 = dma.vmem_to_hbm [thread:$0]  (%p1228_p10), %s1313_s27, 64, %s1311_s21, %s553_s22  }
 0x1c4 PF: > { %s1384_s5 = sld [smem:[#allocation17_spill]]  ;;  %s578_s23 = sand.u32 1, %s1021_s15  }
 0x1c5   : > { %p1386_p7 = scmp.ge.s32.totalorder %s1041_s20, 2  ;;  %s579_s25 = scalar_lea.sflag [#allocation6], %s578_s23 }
 0x1ca   : > { %p1385_p5 = scmp.ne.s32.totalorder %s1384_s5, 0 }
 0x1cc   : > { %p743_p9 = pnand %p1386_p7, %p1385_p5 }
 0x1ce   : > { %1016 = dma.done.wait (!%p743_p9), %s579_s25, 64  }
 0x1cf   : > { %1018 = vsyncadd (!%p743_p9), %s579_s25, 4294967232  ;;  %s22_s20 = sadd.s32 1, %s1041_s20   ;;  %s1387_s15 = smov %s1025_s16 }
 0x1d0   : > { %p19_p0 = scmp.ge.s32.totalorder %s22_s20, 4   ;;  %s1388_s16 = smov %s1029_s17 }
 0x1d1   : > { %s1389_s17 = smov %s1240_s9  ;;  %s1390_s18 = smov %s1037_s19 }
 0x1d2   : > { %s1391_s19 = smov %s1393_s29  ;;  %21 = sbr.rel (!%p19_p0) target bundleno = 8 (0x8), region = 102 }
 0x1d9   :  { %584 = vsyncpa [#allocation5], 1 }
 0x1da   :  { %586 = vsyncpa [#allocation5 + $0x1], 1 }
 0x1db   :  { %587 = vsyncpa [#allocation8], 1 }
 0x1dc   :  { %588 = vsyncpa [#allocation11], 1 }
 0x1dd   :  { %589 = vsyncpa [#allocation6], 1 }
 0x1de   :  { %591 = vsyncpa [#allocation6 + $0x1], 1 }

// kernel: fwd.32
= control target key start
LH: loop header
LB: loop body
LE: loop exit
PB: predicated region body
PF: predicated region fallthrough
CT: control target
= control target key end

     0   :  { %9 = vsyncpa [#allocation5], 0  ;;  %s1360_s0 = inlined_call_operand.hbm [shape: bf16[2,8,128], index: 0, kind: input, shape index: {}]   ;;  %s1361_s1 = inlined_call_operand.hbm [shape: bf16[128,256], index: 1, kind: input, shape index: {}]   ;;  %s1362_s2 = inlined_call_operand.hbm [shape: f32[1,256], index: 2, kind: input, shape index: {}]   ;;  %s1363_s3 = inlined_call_operand.hbm [shape: f32[7,128], index: 3, kind: input, shape index: {}]   ;;  %s1364_s4 = inlined_call_operand.hbm [shape: bf16[2,8,128], index: 4, kind: output, shape index: {}]  }
   0x1   :  { %11 = vsyncpa [#allocation5 + $0x1], 0 }
   0x2   :  { %12 = vsyncpa [#allocation8], 0 }
   0x3   :  { %13 = vsyncpa [#allocation11], 0 }
   0x4   :  { %14 = vsyncpa [#allocation6], 0 }
   0x5   :  { %16 = vsyncpa [#allocation6 + $0x1], 0  ;;  %s1077_s15 = smov 0   ;;  %s1079_s16 = smov 0  }
   0x6   :  { %s1081_s17 = smov 0   ;;  %s1083_s18 = smov 0  }
   0x7   :  { %s1085_s19 = smov 0   ;;  %s1087_s20 = smov 0  }
   0x8 LB: > { %s676_s21 = sadd.s32 4294967295, %s1041_s20   ;;  %s677_s22 = sadd.s32 4294967294, %s1041_s20   ;;  %s1041_s20 = sphi %s1087_s20, %s22_s20   ;;  %s1037_s19 = sphi %s1085_s19, %s1391_s19   ;;  %s1033_s18 = sphi %s1083_s18, %s1390_s18   ;;  %s1029_s17 = sphi %s1081_s17, %s1389_s17   ;;  %s1025_s16 = sphi %s1079_s16, %s1388_s16   ;;  %s1021_s15 = sphi %s1077_s15, %s1387_s15  }
   0x9   : > { %p56_p0 = scmp.ne.s32.totalorder %s1025_s16, %s1021_s15  ;;  %p1111_p1 = scmp.eq.s32.totalorder %s676_s21, 0 }
   0xa   : > { %p1115_p2 = scmp.eq.s32.totalorder %s676_s21, 1  ;;  %p154_p3 = scmp.eq.s32.totalorder %s677_s22, 1 }
   0xb   : > { %s1370_s23 = scalar_select %p1111_p1, 1, 0 }
   0xc   : > { %s1371_s24 = scalar_select %p1115_p2, 1, 0 }
   0xd   : > { %p1121_p4 = por %p1111_p1, %p56_p0  ;;  %p678_p5 = scmp.ge.s32.totalorder %s1041_s20, 1 }
   0xe   : > { %p1126_p6 = por %p154_p3, %p56_p0  ;;  %p161_p7 = scmp.lt.s32.totalorder %s1041_s20, 3 }
   0xf   : > { %s1372_s25 = scalar_select %p1121_p4, 1, 0 }
  0x10   : > { %s1373_s26 = scalar_select %p1126_p6, 1, 0 }
  0x11   : > { %p1131_p8 = pnand %p678_p5, %p161_p7  ;;  %s1043_s28 = smov [#allocation7]  }
  0x12   : > { %1374 = sst [smem:[#allocation17_spill]] %s1373_s26  ;;  %s177_s29 = sshll.u32 %s1043_s28, 4  ;;  %s1135_s29 = int_to_ptr.vmem [resolvable:$true] %s177_s29 }
  0x13   : > { %s1375_s27 = scalar_select %p1131_p8, 1, 0 }
  0x14   : > { %p728_p9 = pneg %p1131_p8  ;;  %s1044_s5 = smov [#allocation9]  }
  0x15   : > { %s191_s6 = sshll.u32 %s1044_s5, 4  ;;  %s1045_s7 = smov [#allocation10]   ;;  %s1146_s6 = int_to_ptr.vmem [resolvable:$true] %s191_s6 }
  0x16   : > { %p1142_p11 = pnand %p728_p9, %p1111_p1  ;;  %s1148_s8 = sshll.u32 %s1045_s7, 4  ;;  %s203_s8 = int_to_ptr.vmem [resolvable:$true] %s1148_s8 }
  0x17   : > { %s837_s11 = scalar_lea.hbm %s1361_s1, 2048 }
  0x18   : > { %p838_p12 = scmp.ne.s32.totalorder %s1361_s1, %s837_s11  ;;  %p1158_p13 = pneg %p1142_p11 }
  0x19   : > { %p844_p5 = scmp.lt.u32.totalorder %s837_s11, %s1361_s1 }
  0x1a   : > { %p840_p0 = pnand %p1158_p13, %p838_p12 }
  0x1c   : > { %p841_p3 = pneg %p840_p0 }
  0x1e   : > { %p846_p7 = pnand %p844_p5, %p841_p3 }
  0x20   : > { %849 = shalt.err (!%p846_p7)
}
  0x21   : > { %s850_s28 = scalar_lea.vmem %s1135_s29, 2048  ;;  %p858_p1 = scmp.lt.s32.totalorder %s1135_s29, %s1135_s29 }
  0x22   : > { %p851_p9 = scmp.ne.s32.totalorder %s1135_s29, %s850_s28  ;;  %p859_p4 = scmp.lt.s32.totalorder %s850_s28, %s850_s28 }
  0x24   : > { %p853_p10 = pnand %p851_p9, %p1158_p13  ;;  %p860_p12 = por %p859_p4, %p858_p1 }
  0x26   : > { %p854_p6 = pneg %p853_p10 }
  0x28   : > { %p861_p0 = pnand %p860_p12, %p854_p6 }
  0x2a   : > { %864 = shalt.err (!%p861_p0)
}
  0x2b   : > { %s1046_s5 = smov 128   ;;  %s1047_s7 = smov 8  }
  0x2c   : > { %731 = dma.hbm_to_vmem [thread:$0]  (!%p1142_p11), %s1361_s1, 2048, %s1135_s29, [#allocation8], %s1046_s5, %s1046_s5, %s1047_s7  }
  0x2d   : > { %s865_s13 = scalar_lea.hbm %s1362_s2, 32 }
  0x2e   : > { %p866_p1 = scmp.ne.s32.totalorder %s1362_s2, %s865_s13  ;;  %p872_p10 = scmp.lt.u32.totalorder %s865_s13, %s1362_s2 }
  0x30   : > { %p868_p4 = pnand %p866_p1, %p1158_p13 }
  0x32   : > { %p869_p6 = pneg %p868_p4 }
  0x34   : > { %p874_p3 = pnand %p872_p10, %p869_p6 }
  0x36   : > { %877 = shalt.err (!%p874_p3)
}
  0x37   : > { %s878_s29 = scalar_lea.vmem %s1146_s6, 32  ;;  %p886_p12 = scmp.lt.s32.totalorder %s1146_s6, %s1146_s6 }
  0x38   : > { %p879_p5 = scmp.ne.s32.totalorder %s1146_s6, %s878_s29  ;;  %p887_p0 = scmp.lt.s32.totalorder %s878_s29, %s878_s29 }
  0x3a   : > { %p881_p7 = pnand %p879_p5, %p1158_p13  ;;  %p888_p1 = por %p887_p0, %p886_p12 }
  0x3c   : > { %p882_p9 = pneg %p881_p7 }
  0x3e   : > { %p889_p4 = pnand %p888_p1, %p882_p9 }
  0x40   : > { %892 = shalt.err (!%p889_p4)
}
  0x41   : > { %734 = dma.hbm_to_vmem [thread:$0]  (!%p1142_p11), %s1362_s2, 32, %s1146_s6, [#allocation8]  }
  0x42   : > { %s893_s10 = scalar_lea.hbm %s1363_s3, 128 }
  0x43   : > { %p894_p6 = scmp.ne.s32.totalorder %s1363_s3, %s893_s10  ;;  %p900_p5 = scmp.lt.u32.totalorder %s893_s10, %s1363_s3 }
  0x45   : > { %p896_p10 = pnand %p894_p6, %p1158_p13 }
  0x47   : > { %p897_p3 = pneg %p896_p10 }
  0x49   : > { %p902_p7 = pnand %p900_p5, %p897_p3 }
  0x4b   : > { %905 = shalt.err (!%p902_p7)
}
  0x4c   : > { %s906_s22 = scalar_lea.vmem %s203_s8, 128  ;;  %p914_p1 = scmp.lt.s32.totalorder %s203_s8, %s203_s8 }
  0x4d   : > { %p907_p9 = scmp.ne.s32.totalorder %s203_s8, %s906_s22  ;;  %p915_p4 = scmp.lt.s32.totalorder %s906_s22, %s906_s22 }
  0x4f   : > { %p909_p12 = pnand %p907_p9, %p1158_p13  ;;  %p916_p8 = por %p915_p4, %p914_p1 }
  0x51   : > { %p910_p0 = pneg %p909_p12 }
  0x53   : > { %p917_p2 = pnand %p916_p8, %p910_p0 }
  0x55   : > { %920 = shalt.err (!%p917_p2)
}
  0x56   : > { %737 = dma.hbm_to_vmem [thread:$0]  (!%p1142_p11), %s1363_s3, 128, %s203_s8, [#allocation11]  }
  0x57   : > { %s43_s14 = sadd.s32 1, %s1029_s17  ;;  %s34_s29 = sadd.s32 1, %s1037_s19 }
  0x58   : > { %p50_p2 = scmp.ne.s32.totalorder %s1029_s17, %s1025_s16  ;;  %p36_p8 = scmp.ge.s32.totalorder %s34_s29, 2 }
  0x59   : > { %p51_p13 = scmp.eq.s32.totalorder %s1041_s20, 0  ;;  %p1378_p6 = scmp.ne.s32.totalorder %s1371_s24, 0 }
  0x5a   : > { %p749_p3 = scmp.lt.s32.totalorder %s1041_s20, 2  ;;  %s1393_s29 = smov (%p36_p8, %s34_s29), 0 }
  0x5b   : > { %p1228_p10 = por %p1378_p6, %p50_p2  ;;  %p52_p5 = por %p51_p13, %p50_p2 }
  0x5c   : > { %s213_s26 = sand.u32 1, %s1029_s17   ;;  %s38_s5 = ssub.s32 %s1037_s19, %s1393_s29 }
  0x5d   : > { %p41_p7 = scmp.eq.s32.totalorder %s38_s5, 0  ;;  %s683_s8 = sshll.u32 %s213_s26, 2 }
  0x5e   : > { %s684_s7 = sshll.u32 %s1037_s19, 6  ;;  %s217_s12 = scalar_lea.vmem [#allocation4], %s683_s8 }
  0x5f   : > { %s1240_s9 = scalar_select %p41_p7, %s1029_s17, %s43_s14  }
  0x60   : > { %s1245_s24 = scalar_lea.hbm %s1360_s0, %s684_s7  ;;  %s225_s13 = sshll.u32 %s217_s12, 4  ;;  %s1247_s13 = int_to_ptr.vmem [resolvable:$true] %s225_s13 }
  0x61   : > { %p1251_p11 = pnand %p749_p3, %p52_p5  ;;  %s214_s22 = scalar_lea.sflag [#allocation5], %s213_s26 }
  0x62   : > { %s921_s6 = scalar_lea.hbm %s1245_s24, 64  ;;  %s926_s5 = scalar_lea.hbm %s1360_s0, 128 }
  0x63   : > { %p922_p9 = scmp.ne.s32.totalorder %s1245_s24, %s921_s6  ;;  %p923_p12 = pneg %p1251_p11 }
  0x64   : > { %p927_p4 = scmp.lt.u32.totalorder %s1245_s24, %s1360_s0  ;;  %p928_p2 = scmp.lt.u32.totalorder %s926_s5, %s921_s6 }
  0x65   : > { %p924_p0 = pnand %p923_p12, %p922_p9  ;;  %p930_p13 = scmp.lt.u32.totalorder %s921_s6, %s1245_s24 }
  0x66   : > { %p929_p8 = por %p928_p2, %p927_p4 }
  0x67   : > { %p925_p1 = pneg %p924_p0 }
  0x68   : > { %p931_p6 = por %p930_p13, %p929_p8 }
  0x6a   : > { %p932_p3 = pnand %p931_p6, %p925_p1 }
  0x6c   : > { %935 = shalt.err (!%p932_p3)
}
  0x6d   : > { %s936_s26 = scalar_lea.vmem %s1247_s13, 64  ;;  %s1048_s10 = smov [#allocation4]  }
  0x6e   : > { %p937_p5 = scmp.ne.s32.totalorder %s1247_s13, %s936_s26  ;;  %s941_s11 = sshll.u32 %s1048_s10, 4  ;;  %s942_s11 = int_to_ptr.vmem [resolvable:$false] %s941_s11 }
  0x6f   : > { %s943_s12 = scalar_lea.vmem %s942_s11, 128  ;;  %p944_p0 = scmp.lt.s32.totalorder %s1247_s13, %s942_s11 }
  0x70   : > { %p939_p7 = pnand %p937_p5, %p923_p12  ;;  %p945_p4 = scmp.lt.s32.totalorder %s943_s12, %s936_s26 }
  0x72   : > { %p940_p9 = pneg %p939_p7  ;;  %p946_p2 = por %p945_p4, %p944_p0 }
  0x74   : > { %p947_p8 = pnand %p946_p2, %p940_p9 }
  0x76   : > { %950 = shalt.err (!%p947_p8)
}
  0x77   : > { %741 = dma.hbm_to_vmem [thread:$0]  (!%p1251_p11), %s1245_s24, 64, %s1247_s13, %s214_s22  }
  0x78   : > { %p1381_p1 = scmp.ne.s32.totalorder %s1375_s27, 0 }
  0x79   : > { %s1283_s6 = sand.u32 (!%p1381_p1), 1, %s1025_s16   ;;  %p1382_p12 = scmp.ne.s32.totalorder (!%p1381_p1), %s1372_s25, 0 }
  0x7a   : > { %234 = sbr.rel (%p1381_p1) target bundleno = 452 (0x1c4), region = 36  ;;  %s686_s28 = sshll.u32 (!%p1381_p1), %s1283_s6, 2 }
  0x7b   : > { %s237_s14 = scalar_lea.sflag (!%p1381_p1), [#allocation5], %s1283_s6  ;;  %s1289_s5 = scalar_lea.vmem (!%p1381_p1), [#allocation4], %s686_s28 }
  0x81   : > { %1004 = dma.done.wait (%p1382_p12), %s237_s14, 64  }
  0x82   : > { %1006 = vsyncadd (%p1382_p12), %s237_s14, 4294967232  ;;  %p1383_p11 = scmp.ne.s32.totalorder %s1370_s23, 0 }
  0x84   : > { %1008 = dma.done.wait (%p1383_p11), [#allocation8], 2080  }
  0x85   : > { %1010 = vsyncadd (%p1383_p11), [#allocation8], 4294965216 }
  0x86   : > { %1012 = dma.done.wait (%p1383_p11), [#allocation11], 128  }
  0x87   : > { %1014 = vsyncadd (%p1383_p11), [#allocation11], 4294967168  ;;  %v1049_v0 = vmov 0   ;;  %v809_v1 = vld [vmem:[#allocation7 + $0x4] ss:$8 sps:$4 sm:$0xff]   ;;  %v1050_v18 = vmov 0.0   ;;  %v436_v19 = vlaneseq }
  0x88   : > { %416 = vmatprep.mubr.bf16.mxu0 %v1049_v0  ;;  %v811_v2 = vld [vmem:[#allocation7] ss:$8 sps:$4 sm:$0xff]   ;;  %384 = vmatprep.subr.bf16.mxu0 %v809_v1  ;;  %v812_v3 = vld [vmem:[#allocation7 + $0x14] ss:$8 sps:$4 sm:$0xff]   ;;  %v814_v4 = vld [vmem:[#allocation7 + $0x10] ss:$8 sps:$4 sm:$0xff]  }
  0x89   : > { %385 = vmatpush1.bf16.msra.mxu0 %v811_v2  ;;  %v815_v5 = vld [vmem:[#allocation7 + $0x24] ss:$8 sps:$4 sm:$0xff]   ;;  %v817_v6 = vld [vmem:[#allocation7 + $0x20] ss:$8 sps:$4 sm:$0xff]   ;;  %v818_v7 = vld [vmem:[#allocation7 + $0x34] ss:$8 sps:$4 sm:$0xff]  }
  0x8a   : > { %386 = vmatprep.subr.bf16.mxu0 %v812_v3  ;;  %v820_v8 = vld [vmem:[#allocation7 + $0x30] ss:$8 sps:$4 sm:$0xff]   ;;  %v821_v9 = vld [vmem:[#allocation7 + $0x44] ss:$8 sps:$4 sm:$0xff]   ;;  %v823_v10 = vld [vmem:[#allocation7 + $0x40] ss:$8 sps:$4 sm:$0xff]  }
  0x8b   : > { %v824_v11 = vld [vmem:[#allocation7 + $0x54] ss:$8 sps:$4 sm:$0xff]   ;;  %v826_v12 = vld [vmem:[#allocation7 + $0x50] ss:$8 sps:$4 sm:$0xff]   ;;  %v827_v13 = vld [vmem:[#allocation7 + $0x64] ss:$8 sps:$4 sm:$0xff]  }
  0x8c   : > { %v829_v14 = vld [vmem:[#allocation7 + $0x60] ss:$8 sps:$4 sm:$0xff]   ;;  %v830_v15 = vld [vmem:[#allocation7 + $0x74] ss:$8 sps:$4 sm:$0xff]   ;;  %v832_v16 = vld [vmem:[#allocation7 + $0x70] ss:$8 sps:$4 sm:$0xff]  }
  0x8d   : > { %387 = vmatpush1.bf16.msra.mxu0 %v814_v4  ;;  %v287_v17 = vld [vmem:[%s1289_s5] sm:$0xf]  ;;  %455 = vst [vmem:[#allocation3] sm:$0xff] %v1050_v18  ;;  %456 = vst [vmem:[#allocation3 + $0x8] sm:$0xff] %v1050_v18  ;;  %v437_v20 = vshrl.u32 %v436_v19, 7  ;;  %vm474_vm0 = vcmask 1046528  }
  0x8e   : > { %388 = vmatprep.subr.bf16.mxu0 %v815_v5  ;;  %v434_v22 = vld [vmem:[#allocation9] sm:$0x3]  ;;  %v460_v38 = vld [vmem:[#allocation10] sm:$0x7f]  ;;  %vm488_vm1 = vcmask 1045504   ;;  %vm502_vm2 = vcmask 1044480  }
  0x8f   : > { %v442_v21 = vsub.s32 1, %v437_v20  ;;  %v438_v32 = vsub.s32 0, %v437_v20  ;;  %v482_v37 = vsub.s32 2, %v437_v20  ;;  %v496_v39 = vsub.s32 3, %v437_v20  ;;  %s709_s23 = sshll.u32 %s1033_s18, 6  ;;  %s276_s25 = scalar_lea.vmem [#allocation12], %s686_s28 }
  0x90   : > { %v510_v40 = vsub.s32 4, %v437_v20  ;;  %v524_v41 = vsub.s32 5, %v437_v20  ;;  %v538_v44 = vsub.s32 6, %v437_v20  ;;  %vm516_vm3 = vcmask 1043456   ;;  %s566_s27 = sshll.u32 %s276_s25, 4  ;;  %s1311_s21 = scalar_lea.hbm %s1364_s4, %s709_s23  ;;  %s1313_s27 = int_to_ptr.vmem [resolvable:$true] %s566_s27 }
  0x91   : > { %389 = vmatpush1.bf16.msra.mxu0 %v817_v6  ;;  %v443_v23 = vrot.slane %v434_v22, %v442_v21  ;;  %v439_v33 = vrot.slane %v434_v22, %v438_v32  ;;  %v469_v42 = vrot.slane %v460_v38, %v442_v21  ;;  %v483_v43 = vrot.slane %v460_v38, %v482_v37  ;;  %s553_s22 = scalar_lea.sflag [#allocation6], %s1283_s6  ;;  %s951_s8 = scalar_lea.vmem %s1313_s27, 64 }
  0x92   : > { %390 = vmatprep.subr.bf16.mxu0 %v818_v7  ;;  %v497_v45 = vrot.slane %v460_v38, %v496_v39  ;;  %v511_v46 = vrot.slane %v460_v38, %v510_v40  ;;  %v464_v47 = vrot.slane %v460_v38, %v438_v32  ;;  %v525_v50 = vrot.slane %v460_v38, %v524_v41  ;;  %p952_p13 = scmp.ne.s32.totalorder %s1313_s27, %s951_s8  ;;  %s1051_s18 = smov [#allocation12]  }
  0x93   : > { %v539_v54 = vrot.slane %v460_v38, %v538_v44  ;;  %vm530_vm4 = vcmask 1042432   ;;  %vm544_vm5 = vcmask 1041408   ;;  %s955_s7 = sshll.u32 %s1051_s18, 4  ;;  %s956_s7 = int_to_ptr.vmem [resolvable:$false] %s955_s7 }
  0x94   : > { %p953_p6 = pnand %p952_p13, %p1228_p10  ;;  %s957_s26 = scalar_lea.vmem %s956_s7, 128 }
  0x95   : > { %391 = vmatpush1.bf16.msra.mxu0 %v820_v8  ;;  %p958_p5 = scmp.lt.s32.totalorder %s1313_s27, %s956_s7  ;;  %p959_p7 = scmp.lt.s32.totalorder %s957_s26, %s951_s8 }
  0x96   : > { %392 = vmatprep.subr.bf16.mxu0 %v821_v9  ;;  %p954_p3 = pneg %p953_p6 }
  0x97   : > { %p960_p9 = por %p959_p7, %p958_p5 }
  0x99   : > { %393 = vmatpush1.bf16.msra.mxu0 %v823_v10  ;;  %p961_p0 = pnand %p960_p9, %p954_p3 }
  0x9a   : > { %394 = vmatprep.subr.bf16.mxu0 %v824_v11 }
  0x9d   : > { %395 = vmatpush1.bf16.msra.mxu0 %v826_v12 }
  0x9e   : > { %396 = vmatprep.subr.bf16.mxu0 %v827_v13 }
  0xa1   : > { %397 = vmatpush1.bf16.msra.mxu0 %v829_v14 }
  0xa2   : > { %398 = vmatprep.subr.bf16.mxu0 %v830_v15 }
  0xa5   : > { %399 = vmatpush1.bf16.msra.mxu0 %v832_v16 }
  0xa8   : > { %417 = vmatmul.mubr.bf16.vlgmr.msra.gmra.mrb[0].mxu0 %v287_v17 }
 0x17b   : > { %v418_v24 = vpop.f32.mrb[0].mxu0 }
 0x17c   : > { %v420_v25 = vpop.f32.mrb[1].mxu0  ;;  %v446_v34 = vadd.f32 %v439_v33, %v418_v24 }
 0x17d   : > { %v447_v26 = vadd.f32 %v443_v23, %v420_v25  ;;  %v422_v27 = vpop.f32.mrb[2].mxu0 }
 0x17e   : > { %v423_v28 = vpop.f32.mrb[3].mxu0 }
 0x17f   : > { %v707_v29 = vmul.f32 -1.442695, %v447_v26 }
 0x181   : > { %833 = vpow2.f32 %v707_v29 }
 0x18b   : > { %v834_v30 = vpop.eup %833 }
 0x18c   : > { %v451_v31 = vadd.f32 1.0, %v834_v30 }
 0x18e   : > { %835 = vrcp.f32 %v451_v31 }
 0x198   : > { %v836_v35 = vpop.eup %835 }
 0x199   : > { %v454_v36 = vmul.f32 %v836_v35, %v446_v34 }
 0x19b   : > { %457 = vst [vmem:[#allocation3 + $0x6] sm:$0xff] %v454_v36 }
 0x1a2   : > { %v458_v48 = vld [vmem:[#allocation3] sm:$0xff]  ;;  %v459_v49 = vld [vmem:[#allocation3 + $0x8] sm:$0xff] }
 0x1a3   : > { %v470_v51 = vmul.f32 %v469_v42, %v458_v48  ;;  %v471_v52 = vmul.f32 %v469_v42, %v459_v49  ;;  %v484_v53 = vmul.f32 %v483_v43, %v458_v48  ;;  %v485_v55 = vmul.f32 %v483_v43, %v459_v49 }
 0x1a4   : > { %v498_v56 = vmul.f32 %v497_v45, %v458_v48  ;;  %v499_v57 = vmul.f32 %v497_v45, %v459_v49  ;;  %v512_v58 = vmul.f32 %v511_v46, %v458_v48  ;;  %v513_v62 = vmul.f32 %v511_v46, %v459_v49 }
 0x1a5   : > { %v475_v59 = vrot.slane %v470_v51, 1  ;;  %v476_v60 = vrot.slane %v471_v52, 1  ;;  %v489_v61 = vrot.slane %v484_v53, 2  ;;  %v465_v63 = vmul.f32 %v464_v47, %v458_v48 }
 0x1a6   : > { %v490_v0 = vrot.slane %v485_v55, 2  ;;  %v503_v1 = vrot.slane %v498_v56, 3  ;;  %v504_v3 = vrot.slane %v499_v57, 3  ;;  %v526_v4 = vmul.f32 %v525_v50, %v458_v48 }
 0x1a7   : > { %v477_v2 = vsel %vm474_vm0, %v475_v59, %v476_v60  ;;  %v527_v5 = vmul.f32 %v525_v50, %v459_v49  ;;  %v517_v7 = vrot.slane %v512_v58, 4  ;;  %v518_v9 = vrot.slane %v513_v62, 4 }
 0x1a8   : > { %v479_v6 = vadd.f32 %v477_v2, %v465_v63  ;;  %v491_v8 = vsel %vm488_vm1, %v489_v61, %v490_v0  ;;  %v540_v10 = vmul.f32 %v539_v54, %v458_v48  ;;  %v541_v11 = vmul.f32 %v539_v54, %v459_v49 }
 0x1a9   : > { %v505_v13 = vsel %vm502_vm2, %v503_v1, %v504_v3  ;;  %v531_v14 = vrot.slane %v526_v4, 5  ;;  %v532_v15 = vrot.slane %v527_v5, 5  ;;  %v519_v17 = vsel %vm516_vm3, %v517_v7, %v518_v9 }
 0x1aa   : > { %v493_v12 = vadd.f32 %v491_v8, %v479_v6  ;;  %v545_v18 = vrot.slane %v540_v10, 6  ;;  %v546_v19 = vrot.slane %v541_v11, 6 }
 0x1ab   : > { %v533_v21 = vsel %vm530_vm4, %v531_v14, %v532_v15 }
 0x1ac   : > { %v507_v16 = vadd.f32 %v505_v13, %v493_v12  ;;  %v547_v23 = vsel %vm544_vm5, %v545_v18, %v546_v19 }
 0x1ae   : > { %v521_v20 = vadd.f32 %v519_v17, %v507_v16 }
 0x1b0   : > { %v535_v22 = vadd.f32 %v533_v21, %v521_v20 }
 0x1b2   : > { %v549_v24 = vadd.f32 %v547_v23, %v535_v22 }
 0x1b4   : > { %v550_v25 = vpack.c.bf16 %v549_v24, %v549_v24 }
 0x1b6   : > { %551 = vst [vmem:[%s276_s25] sm:$0xf] %v550_v25 }
 0x1b7   : > { %964 = shalt.err (!%p961_p0)
}
 0x1b8   : > { %s965_s10 = scalar_lea.hbm %s1311_s21, 64  ;;  %s969_s6 = scalar_lea.hbm %s1364_s4, 128 }
 0x1b9   : > { %p966_p4 = scmp.ne.s32.totalorder %s1311_s21, %s965_s10  ;;  %p970_p1 = scmp.lt.u32.totalorder %s1311_s21, %s1364_s4 }
 0x1ba   : > { %p971_p12 = scmp.lt.u32.totalorder %s969_s6, %s965_s10  ;;  %p973_p13 = scmp.lt.u32.totalorder %s965_s10, %s1311_s21 }
 0x1bb   : > { %p967_p2 = pnand %p966_p4, %p1228_p10 }
 0x1bc   : > { %p972_p11 = por %p971_p12, %p970_p1 }
 0x1bd   : > { %p968_p8 = pneg %p967_p2 }
 0x1be   : > { %p974_p6 = por %p973_p13, %p972_p11 }
 0x1c0   : > { %p975_p3 = pnand %p974_p6, %p968_p8 }
 0x1c2   : > { %978 = shalt.err (!%p975_p3)
}
 0x1c3   : > { %726 = dma.vmem_to_hbm [thread:$0]  (%p1228_p10), %s1313_s27, 64, %s1311_s21, %s553_s22  }
 0x1c4 PF: > { %s1384_s5 = sld [smem:[#allocation17_spill]]  ;;  %s578_s23 = sand.u32 1, %s1021_s15  }
 0x1c5   : > { %p1386_p7 = scmp.ge.s32.totalorder %s1041_s20, 2  ;;  %s579_s25 = scalar_lea.sflag [#allocation6], %s578_s23 }
 0x1ca   : > { %p1385_p5 = scmp.ne.s32.totalorder %s1384_s5, 0 }
 0x1cc   : > { %p743_p9 = pnand %p1386_p7, %p1385_p5 }
 0x1ce   : > { %1016 = dma.done.wait (!%p743_p9), %s579_s25, 64  }
 0x1cf   : > { %1018 = vsyncadd (!%p743_p9), %s579_s25, 4294967232  ;;  %s22_s20 = sadd.s32 1, %s1041_s20   ;;  %s1387_s15 = smov %s1025_s16 }
 0x1d0   : > { %p19_p0 = scmp.ge.s32.totalorder %s22_s20, 4   ;;  %s1388_s16 = smov %s1029_s17 }
 0x1d1   : > { %s1389_s17 = smov %s1240_s9  ;;  %s1390_s18 = smov %s1037_s19 }
 0x1d2   : > { %s1391_s19 = smov %s1393_s29  ;;  %21 = sbr.rel (!%p19_p0) target bundleno = 8 (0x8), region = 102 }
 0x1d9   :  { %584 = vsyncpa [#allocation5], 1 }
 0x1da   :  { %586 = vsyncpa [#allocation5 + $0x1], 1 }
 0x1db   :  { %587 = vsyncpa [#allocation8], 1 }
 0x1dc   :  { %588 = vsyncpa [#allocation11], 1 }
 0x1dd   :  { %589 = vsyncpa [#allocation6], 1 }
 0x1de   :  { %591 = vsyncpa [#allocation6 + $0x1], 1 }

// kernel: fwd.29
= control target key start
LH: loop header
LB: loop body
LE: loop exit
PB: predicated region body
PF: predicated region fallthrough
CT: control target
= control target key end

     0   :  { %s3974_s0 = inlined_call_operand.hbm [shape: bf16[2,8,128], index: 0, kind: input, shape index: {}]   ;;  %s3975_s1 = inlined_call_operand.hbm [shape: bf16[2,8,128], index: 1, kind: input, shape index: {}]   ;;  %s3976_s2 = inlined_call_operand.hbm [shape: bf16[128,128], index: 2, kind: input, shape index: {}]   ;;  %s3977_s3 = inlined_call_operand.hbm [shape: f32[1,128], index: 3, kind: input, shape index: {}]   ;;  %s3978_s4 = inlined_call_operand.hbm [shape: bf16[128,128], index: 4, kind: input, shape index: {}]   ;;  %s3979_s5 = inlined_call_operand.hbm [shape: f32[1,128], index: 5, kind: input, shape index: {}]   ;;  %s3980_s6 = inlined_call_operand.hbm [shape: bf16[128,128], index: 6, kind: input, shape index: {}]   ;;  %s3981_s7 = inlined_call_operand.hbm [shape: f32[1,128], index: 7, kind: input, shape index: {}]   ;;  %s3982_s8 = inlined_call_operand.hbm [shape: bf16[128,128], index: 8, kind: input, shape index: {}]   ;;  %s3983_s9 = inlined_call_operand.hbm [shape: f32[1,128], index: 9, kind: input, shape index: {}]   ;;  %s3984_s10 = inlined_call_operand.hbm [shape: f32[1,128], index: 10, kind: input, shape index: {}]   ;;  %s3985_s11 = inlined_call_operand.hbm [shape: f32[1,128], index: 11, kind: input, shape index: {}]   ;;  %s3986_s12 = inlined_call_operand.hbm [shape: bf16[2,8,128], index: 12, kind: output, shape index: {}]  }
   0x1   :  { %3997 = sst [smem:[#allocation34_spill]] %s3974_s0 }
   0x2   :  { %3998 = sst [smem:[#allocation35_spill]] %s3975_s1 }
   0x3   :  { %3999 = sst [smem:[#allocation36_spill]] %s3976_s2 }
   0x4   :  { %4000 = sst [smem:[#allocation37_spill]] %s3977_s3 }
   0x5   :  { %4001 = sst [smem:[#allocation38_spill]] %s3978_s4 }
   0x6   :  { %4002 = sst [smem:[#allocation39_spill]] %s3979_s5 }
   0x7   :  { %4003 = sst [smem:[#allocation40_spill]] %s3980_s6 }
   0x8   :  { %4004 = sst [smem:[#allocation41_spill]] %s3981_s7 }
   0x9   :  { %4005 = sst [smem:[#allocation42_spill]] %s3982_s8 }
   0xa   :  { %4006 = sst [smem:[#allocation43_spill]] %s3986_s12 }
   0xb   :  { %17 = vsyncpa [#allocation4], 0 }
   0xc   :  { %19 = vsyncpa [#allocation4 + $0x1], 0 }
   0xd   :  { %20 = vsyncpa [#allocation7], 0 }
   0xe   :  { %22 = vsyncpa [#allocation7 + $0x1], 0 }
   0xf   :  { %23 = vsyncpa [#allocation10], 0 }
  0x10   :  { %24 = vsyncpa [#allocation13], 0 }
  0x11   :  { %25 = vsyncpa [#allocation16], 0 }
  0x12   :  { %26 = vsyncpa [#allocation19], 0 }
  0x13   :  { %27 = vsyncpa [#allocation22], 0 }
  0x14   :  { %28 = vsyncpa [#allocation5], 0 }
  0x15   :  { %30 = vsyncpa [#allocation5 + $0x1], 0  ;;  %s3304_s21 = smov 0   ;;  %s3306_s22 = smov 0  }
  0x16   :  { %s3308_s23 = smov 0   ;;  %s3310_s24 = smov 0  }
  0x17 LB: > { %s3215_s25 = smov [#allocation8]   ;;  %s3325_s27 = sadd.s32 4294967295, %s3213_s24   ;;  %s3213_s24 = sphi %s3310_s24, %s4049_s24   ;;  %s3209_s23 = sphi %s3308_s23, %s4048_s23   ;;  %s3205_s22 = sphi %s3306_s22, %s4047_s22   ;;  %s3201_s21 = sphi %s3304_s21, %s4046_s21  }
  0x18   : > { %s341_s26 = sshll.u32 %s3215_s25, 4  ;;  %p2218_p0 = scmp.ge.s32.totalorder %s3213_s24, 1  ;;  %s3330_s26 = int_to_ptr.vmem [resolvable:$true] %s341_s26 }
  0x19   : > { %p3993_p1 = scmp.eq.s32.totalorder %s3325_s27, 0  ;;  %p329_p2 = scmp.lt.s32.totalorder %s3213_s24, 3 }
  0x1a   : > { %s3216_s29 = smov [#allocation9]   ;;  %s3217_s14 = smov [#allocation12]  }
  0x1b   : > { %p3332_p3 = pnand %p2218_p0, %p329_p2  ;;  %s355_s30 = sshll.u32 %s3216_s29, 4  ;;  %s3345_s30 = int_to_ptr.vmem [resolvable:$true] %s355_s30 }
  0x1c   : > { %s379_s15 = sshll.u32 %s3217_s14, 4  ;;  %s4010_s2 = sld [smem:[#allocation36_spill]]  ;;  %s3347_s15 = int_to_ptr.vmem [resolvable:$true] %s379_s15 }
  0x1d   : > { %s4007_s28 = scalar_select %p3332_p3, 1, 0 }
  0x1e   : > { %p2596_p5 = pneg %p3332_p3 }
  0x1f   : > { %4008 = sst [smem:[#allocation33_spill]] %s4007_s28 }
  0x20   : > { %p3341_p6 = pnand %p2596_p5, %p3993_p1 }
  0x22   : > { %s2779_s18 = scalar_lea.hbm %s4010_s2, 1024  ;;  %p3357_p8 = pneg %p3341_p6 }
  0x23   : > { %p2780_p7 = scmp.ne.s32.totalorder %s4010_s2, %s2779_s18  ;;  %p2786_p11 = scmp.lt.u32.totalorder %s2779_s18, %s4010_s2 }
  0x25   : > { %p2782_p9 = pnand %p3357_p8, %p2780_p7 }
  0x27   : > { %p2783_p10 = pneg %p2782_p9 }
  0x29   : > { %p2788_p12 = pnand %p2786_p11, %p2783_p10 }
  0x2b   : > { %2791 = shalt.err (!%p2788_p12)
}
  0x2c   : > { %s2792_s16 = scalar_lea.vmem %s3330_s26, 1024  ;;  %p2800_p5 = scmp.lt.s32.totalorder %s3330_s26, %s3330_s26 }
  0x2d   : > { %p2793_p13 = scmp.ne.s32.totalorder %s3330_s26, %s2792_s16  ;;  %p2801_p4 = scmp.lt.s32.totalorder %s2792_s16, %s2792_s16 }
  0x2f   : > { %p2795_p0 = pnand %p2793_p13, %p3357_p8  ;;  %p2802_p7 = por %p2801_p4, %p2800_p5 }
  0x31   : > { %p2796_p2 = pneg %p2795_p0 }
  0x33   : > { %p2803_p9 = pnand %p2802_p7, %p2796_p2 }
  0x35   : > { %2806 = shalt.err (!%p2803_p9)
}
  0x36   : > { %s3991_s17 = smov 64   ;;  %s3219_s18 = smov 4  }
  0x37   : > { %2599 = dma.hbm_to_vmem [thread:$0]  (!%p3341_p6), %s4010_s2, 1024, %s3330_s26, [#allocation7], %s3991_s17, %s3991_s17, %s3219_s18  }
  0x38   : > { %s4012_s3 = sld [smem:[#allocation37_spill]] }
  0x3e   : > { %s2807_s16 = scalar_lea.hbm %s4012_s3, 16 }
  0x3f   : > { %p2808_p4 = scmp.ne.s32.totalorder %s4012_s3, %s2807_s16  ;;  %p2814_p12 = scmp.lt.u32.totalorder %s2807_s16, %s4012_s3 }
  0x41   : > { %p2810_p10 = pnand %p2808_p4, %p3357_p8 }
  0x43   : > { %p2811_p11 = pneg %p2810_p10 }
  0x45   : > { %p2816_p13 = pnand %p2814_p12, %p2811_p11 }
  0x47   : > { %2819 = shalt.err (!%p2816_p13)
}
  0x48   : > { %s2820_s26 = scalar_lea.vmem %s3345_s30, 16  ;;  %s2827_s12 = scalar_lea.vmem %s3345_s30, 32 }
  0x49   : > { %p2821_p0 = scmp.ne.s32.totalorder %s3345_s30, %s2820_s26  ;;  %p2828_p7 = scmp.lt.s32.totalorder %s3345_s30, %s3345_s30 }
  0x4a   : > { %p2829_p9 = scmp.lt.s32.totalorder %s2827_s12, %s2820_s26 }
  0x4b   : > { %p2823_p2 = pnand %p2821_p0, %p3357_p8 }
  0x4c   : > { %p2830_p4 = por %p2829_p9, %p2828_p7 }
  0x4d   : > { %p2824_p5 = pneg %p2823_p2 }
  0x4f   : > { %p2831_p10 = pnand %p2830_p4, %p2824_p5 }
  0x51   : > { %2834 = shalt.err (!%p2831_p10)
}
  0x52   : > { %2602 = dma.hbm_to_vmem [thread:$0]  (!%p3341_p6), %s4012_s3, 16, %s3345_s30, [#allocation10]  }
  0x53   : > { %s4013_s5 = sld [smem:[#allocation39_spill]] }
  0x59   : > { %s2835_s20 = scalar_lea.hbm %s4013_s5, 16 }
  0x5a   : > { %p2836_p11 = scmp.ne.s32.totalorder %s4013_s5, %s2835_s20  ;;  %p2842_p0 = scmp.lt.u32.totalorder %s2835_s20, %s4013_s5 }
  0x5c   : > { %p2838_p12 = pnand %p2836_p11, %p3357_p8 }
  0x5e   : > { %p2839_p13 = pneg %p2838_p12 }
  0x60   : > { %p2844_p2 = pnand %p2842_p0, %p2839_p13 }
  0x62   : > { %2847 = shalt.err (!%p2844_p2)
}
  0x63   : > { %s2848_s30 = scalar_lea.vmem %s3347_s15, 16  ;;  %s2855_s12 = scalar_lea.vmem %s3347_s15, 32 }
  0x64   : > { %p2849_p5 = scmp.ne.s32.totalorder %s3347_s15, %s2848_s30  ;;  %p2856_p4 = scmp.lt.s32.totalorder %s3347_s15, %s3347_s15 }
  0x65   : > { %p2857_p10 = scmp.lt.s32.totalorder %s2855_s12, %s2848_s30 }
  0x66   : > { %p2851_p7 = pnand %p2849_p5, %p3357_p8 }
  0x67   : > { %p2858_p11 = por %p2857_p10, %p2856_p4 }
  0x68   : > { %p2852_p9 = pneg %p2851_p7 }
  0x6a   : > { %p2859_p12 = pnand %p2858_p11, %p2852_p9 }
  0x6c   : > { %2862 = shalt.err (!%p2859_p12)
}
  0x6d   : > { %2608 = dma.hbm_to_vmem [thread:$0]  (!%p3341_p6), %s4013_s5, 16, %s3347_s15, [#allocation13]  }
  0x6e   : > { %s3220_s28 = smov [#allocation15]   ;;  %s3221_s20 = smov [#allocation18]  }
  0x6f   : > { %s403_s19 = sshll.u32 %s3220_s28, 4  ;;  %s427_s29 = sshll.u32 %s3221_s20, 4  ;;  %s404_s19 = int_to_ptr.vmem [resolvable:$true] %s403_s19  ;;  %s428_s29 = int_to_ptr.vmem [resolvable:$true] %s427_s29 }
  0x70   : > { %s4014_s7 = sld [smem:[#allocation41_spill]] }
  0x76   : > { %s2863_s26 = scalar_lea.hbm %s4014_s7, 16 }
  0x77   : > { %p2864_p13 = scmp.ne.s32.totalorder %s4014_s7, %s2863_s26  ;;  %p2870_p5 = scmp.lt.u32.totalorder %s2863_s26, %s4014_s7 }
  0x79   : > { %p2866_p0 = pnand %p2864_p13, %p3357_p8 }
  0x7b   : > { %p2867_p2 = pneg %p2866_p0 }
  0x7d   : > { %p2872_p7 = pnand %p2870_p5, %p2867_p2 }
  0x7f   : > { %2875 = shalt.err (!%p2872_p7)
}
  0x80   : > { %s2876_s15 = scalar_lea.vmem %s404_s19, 16  ;;  %s2883_s1 = scalar_lea.vmem %s404_s19, 32 }
  0x81   : > { %p2877_p9 = scmp.ne.s32.totalorder %s404_s19, %s2876_s15  ;;  %p2884_p11 = scmp.lt.s32.totalorder %s404_s19, %s404_s19 }
  0x82   : > { %p2885_p12 = scmp.lt.s32.totalorder %s2883_s1, %s2876_s15 }
  0x83   : > { %p2879_p4 = pnand %p2877_p9, %p3357_p8 }
  0x84   : > { %p2886_p1 = por %p2885_p12, %p2884_p11 }
  0x85   : > { %p2880_p10 = pneg %p2879_p4 }
  0x87   : > { %p2887_p3 = pnand %p2886_p1, %p2880_p10 }
  0x89   : > { %2890 = shalt.err (!%p2887_p3)
}
  0x8a   : > { %2614 = dma.hbm_to_vmem [thread:$0]  (!%p3341_p6), %s4014_s7, 16, %s404_s19, [#allocation16]  }
  0x8b   : > { %s2891_s16 = scalar_lea.hbm %s3983_s9, 16 }
  0x8c   : > { %p2892_p13 = scmp.ne.s32.totalorder %s3983_s9, %s2891_s16  ;;  %p2898_p3 = scmp.lt.u32.totalorder %s2891_s16, %s3983_s9 }
  0x8e   : > { %p2894_p0 = pnand %p2892_p13, %p3357_p8 }
  0x90   : > { %p2895_p1 = pneg %p2894_p0 }
  0x92   : > { %p2900_p2 = pnand %p2898_p3, %p2895_p1 }
  0x94   : > { %2903 = shalt.err (!%p2900_p2)
}
  0x95   : > { %s2904_s15 = scalar_lea.vmem %s428_s29, 16  ;;  %s2911_s19 = scalar_lea.vmem %s428_s29, 32 }
  0x96   : > { %p2905_p5 = scmp.ne.s32.totalorder %s428_s29, %s2904_s15  ;;  %p2912_p4 = scmp.lt.s32.totalorder %s428_s29, %s428_s29 }
  0x97   : > { %p2913_p10 = scmp.lt.s32.totalorder %s2911_s19, %s2904_s15 }
  0x98   : > { %p2907_p7 = pnand %p2905_p5, %p3357_p8 }
  0x99   : > { %p2914_p11 = por %p2913_p10, %p2912_p4 }
  0x9a   : > { %p2908_p9 = pneg %p2907_p7 }
  0x9c   : > { %p2915_p12 = pnand %p2914_p11, %p2908_p9 }
  0x9e   : > { %2918 = shalt.err (!%p2915_p12)
}
  0x9f   : > { %2620 = dma.hbm_to_vmem [thread:$0]  (!%p3341_p6), %s3983_s9, 16, %s428_s29, [#allocation19]  }
  0xa0   : > { %s3222_s20 = smov [#allocation11]   ;;  %s3223_s14 = smov [#allocation14]  }
  0xa1   : > { %s365_s17 = sshll.u32 %s3222_s20, 4  ;;  %s389_s16 = sshll.u32 %s3223_s14, 4  ;;  %s366_s17 = int_to_ptr.vmem [resolvable:$true] %s365_s17  ;;  %s390_s16 = int_to_ptr.vmem [resolvable:$true] %s389_s16 }
  0xa2   : > { %s4015_s4 = sld [smem:[#allocation38_spill]] }
  0xa8   : > { %s2919_s12 = scalar_lea.hbm %s4015_s4, 1024 }
  0xa9   : > { %p2920_p13 = scmp.ne.s32.totalorder %s4015_s4, %s2919_s12  ;;  %p2926_p3 = scmp.lt.u32.totalorder %s2919_s12, %s4015_s4 }
  0xab   : > { %p2922_p0 = pnand %p2920_p13, %p3357_p8 }
  0xad   : > { %p2923_p1 = pneg %p2922_p0 }
  0xaf   : > { %p2928_p2 = pnand %p2926_p3, %p2923_p1 }
  0xb1   : > { %2931 = shalt.err (!%p2928_p2)
}
  0xb2   : > { %s2932_s29 = scalar_lea.vmem %s366_s17, 1024  ;;  %p2940_p4 = scmp.lt.s32.totalorder %s366_s17, %s366_s17 }
  0xb3   : > { %p2933_p5 = scmp.ne.s32.totalorder %s366_s17, %s2932_s29  ;;  %p2941_p10 = scmp.lt.s32.totalorder %s2932_s29, %s2932_s29 }
  0xb5   : > { %p2935_p7 = pnand %p2933_p5, %p3357_p8  ;;  %p2942_p11 = por %p2941_p10, %p2940_p4 }
  0xb7   : > { %p2936_p9 = pneg %p2935_p7 }
  0xb9   : > { %p2943_p12 = pnand %p2942_p11, %p2936_p9 }
  0xbb   : > { %2946 = shalt.err (!%p2943_p12)
}
  0xbc   : > { %s4016_s28 = smov 64   ;;  %s4017_s6 = sld [smem:[#allocation40_spill]] }
  0xbd   : > { %2605 = dma.hbm_to_vmem [thread:$0]  (!%p3341_p6), %s4015_s4, 1024, %s366_s17, [#allocation10], %s4016_s28, %s4016_s28, %s3219_s18  }
  0xc2   : > { %s2947_s12 = scalar_lea.hbm %s4017_s6, 1024 }
  0xc3   : > { %p2948_p13 = scmp.ne.s32.totalorder %s4017_s6, %s2947_s12  ;;  %p2954_p3 = scmp.lt.u32.totalorder %s2947_s12, %s4017_s6 }
  0xc5   : > { %p2950_p0 = pnand %p2948_p13, %p3357_p8 }
  0xc7   : > { %p2951_p1 = pneg %p2950_p0 }
  0xc9   : > { %p2956_p2 = pnand %p2954_p3, %p2951_p1 }
  0xcb   : > { %2959 = shalt.err (!%p2956_p2)
}
  0xcc   : > { %s2960_s29 = scalar_lea.vmem %s390_s16, 1024  ;;  %p2968_p4 = scmp.lt.s32.totalorder %s390_s16, %s390_s16 }
  0xcd   : > { %p2961_p5 = scmp.ne.s32.totalorder %s390_s16, %s2960_s29  ;;  %p2969_p10 = scmp.lt.s32.totalorder %s2960_s29, %s2960_s29 }
  0xcf   : > { %p2963_p7 = pnand %p2961_p5, %p3357_p8  ;;  %p2970_p11 = por %p2969_p10, %p2968_p4 }
  0xd1   : > { %p2964_p9 = pneg %p2963_p7 }
  0xd3   : > { %p2971_p12 = pnand %p2970_p11, %p2964_p9 }
  0xd5   : > { %2974 = shalt.err (!%p2971_p12)
}
  0xd6   : > { %2611 = dma.hbm_to_vmem [thread:$0]  (!%p3341_p6), %s4017_s6, 1024, %s390_s16, [#allocation13], %s4016_s28, %s4016_s28, %s3219_s18  }
  0xd7   : > { %s3224_s14 = smov [#allocation17]   ;;  %s3225_s30 = smov [#allocation20]  }
  0xd8   : > { %s413_s26 = sshll.u32 %s3224_s14, 4  ;;  %s438_s12 = sshll.u32 %s3225_s30, 4  ;;  %s414_s26 = int_to_ptr.vmem [resolvable:$true] %s413_s26  ;;  %s439_s12 = int_to_ptr.vmem [resolvable:$true] %s438_s12 }
  0xd9   : > { %s4018_s8 = sld [smem:[#allocation42_spill]] }
  0xdf   : > { %s2975_s19 = scalar_lea.hbm %s4018_s8, 1024 }
  0xe0   : > { %p2976_p13 = scmp.ne.s32.totalorder %s4018_s8, %s2975_s19  ;;  %p2982_p3 = scmp.lt.u32.totalorder %s2975_s19, %s4018_s8 }
  0xe2   : > { %p2978_p0 = pnand %p2976_p13, %p3357_p8 }
  0xe4   : > { %p2979_p1 = pneg %p2978_p0 }
  0xe6   : > { %p2984_p2 = pnand %p2982_p3, %p2979_p1 }
  0xe8   : > { %2987 = shalt.err (!%p2984_p2)
}
  0xe9   : > { %s2988_s16 = scalar_lea.vmem %s414_s26, 1024  ;;  %p2996_p4 = scmp.lt.s32.totalorder %s414_s26, %s414_s26 }
  0xea   : > { %p2989_p5 = scmp.ne.s32.totalorder %s414_s26, %s2988_s16  ;;  %p2997_p10 = scmp.lt.s32.totalorder %s2988_s16, %s2988_s16 }
  0xec   : > { %p2991_p7 = pnand %p2989_p5, %p3357_p8  ;;  %p2998_p11 = por %p2997_p10, %p2996_p4 }
  0xee   : > { %p2992_p9 = pneg %p2991_p7 }
  0xf0   : > { %p2999_p12 = pnand %p2998_p11, %p2992_p9 }
  0xf2   : > { %3002 = shalt.err (!%p2999_p12)
}
  0xf3   : > { %2617 = dma.hbm_to_vmem [thread:$0]  (!%p3341_p6), %s4018_s8, 1024, %s414_s26, [#allocation16], %s4016_s28, %s4016_s28, %s3219_s18  }
  0xf4   : > { %s3003_s0 = scalar_lea.hbm %s3984_s10, 16 }
  0xf5   : > { %p3004_p13 = scmp.ne.s32.totalorder %s3984_s10, %s3003_s0  ;;  %p3010_p3 = scmp.lt.u32.totalorder %s3003_s0, %s3984_s10 }
  0xf7   : > { %p3006_p0 = pnand %p3004_p13, %p3357_p8 }
  0xf9   : > { %p3007_p1 = pneg %p3006_p0 }
  0xfb   : > { %p3012_p2 = pnand %p3010_p3, %p3007_p1 }
  0xfd   : > { %3015 = shalt.err (!%p3012_p2)
}
  0xfe   : > { %s3016_s17 = scalar_lea.vmem %s439_s12, 16  ;;  %s3023_s18 = scalar_lea.vmem %s439_s12, 32 }
  0xff   : > { %p3017_p5 = scmp.ne.s32.totalorder %s439_s12, %s3016_s17  ;;  %p3024_p4 = scmp.lt.s32.totalorder %s439_s12, %s439_s12 }
 0x100   : > { %p3025_p10 = scmp.lt.s32.totalorder %s3023_s18, %s3016_s17 }
 0x101   : > { %p3019_p7 = pnand %p3017_p5, %p3357_p8 }
 0x102   : > { %p3026_p11 = por %p3025_p10, %p3024_p4 }
 0x103   : > { %p3020_p9 = pneg %p3019_p7 }
 0x105   : > { %p3027_p12 = pnand %p3026_p11, %p3020_p9 }
 0x107   : > { %3030 = shalt.err (!%p3027_p12)
}
 0x108   : > { %2623 = dma.hbm_to_vmem [thread:$0]  (!%p3341_p6), %s3984_s10, 16, %s439_s12, [#allocation19]  }
 0x109   : > { %s3226_s16 = smov [#allocation21]   ;;  %s3031_s30 = scalar_lea.hbm %s3985_s11, 16 }
 0x10a   : > { %s449_s2 = sshll.u32 %s3226_s16, 4  ;;  %p3032_p13 = scmp.ne.s32.totalorder %s3985_s11, %s3031_s30  ;;  %s450_s2 = int_to_ptr.vmem [resolvable:$true] %s449_s2 }
 0x10b   : > { %p3038_p3 = scmp.lt.u32.totalorder %s3031_s30, %s3985_s11 }
 0x10c   : > { %p3034_p0 = pnand %p3032_p13, %p3357_p8 }
 0x10e   : > { %p3035_p1 = pneg %p3034_p0 }
 0x110   : > { %p3040_p2 = pnand %p3038_p3, %p3035_p1 }
 0x112   : > { %3043 = shalt.err (!%p3040_p2)
}
 0x113   : > { %s3044_s12 = scalar_lea.vmem %s450_s2, 16  ;;  %s3051_s29 = scalar_lea.vmem %s450_s2, 32 }
 0x114   : > { %p3045_p5 = scmp.ne.s32.totalorder %s450_s2, %s3044_s12  ;;  %p3052_p4 = scmp.lt.s32.totalorder %s450_s2, %s450_s2 }
 0x115   : > { %p3053_p10 = scmp.lt.s32.totalorder %s3051_s29, %s3044_s12 }
 0x116   : > { %p3047_p7 = pnand %p3045_p5, %p3357_p8 }
 0x117   : > { %p3054_p11 = por %p3053_p10, %p3052_p4 }
 0x118   : > { %p3048_p9 = pneg %p3047_p7 }
 0x11a   : > { %p3055_p12 = pnand %p3054_p11, %p3048_p9 }
 0x11c   : > { %3058 = shalt.err (!%p3055_p12)
}
 0x11d   : > { %2626 = dma.hbm_to_vmem [thread:$0]  (!%p3341_p6), %s3985_s11, 16, %s450_s2, [#allocation22]  }
 0x11e   : > { %s2217_s25 = sadd.s32 4294967294, %s3213_s24   ;;  %s3566_s13 = sadd.s32 1, %s3213_s24  }
 0x11f   : > { %s40_s28 = ssub.s32 %s3213_s24, %s3566_s13  ;;  %s43_s26 = sadd.s32 1, %s3209_s23 }
 0x120   : > { %p41_p8 = scmp.eq.s32.totalorder %s40_s28, 0  ;;  %p50_p13 = scmp.ne.s32.totalorder %s3209_s23, %s3205_s22 }
 0x121   : > { %p51_p0 = scmp.eq.s32.totalorder %s3213_s24, 0  ;;  %p56_p1 = scmp.ne.s32.totalorder %s3205_s22, %s3201_s21 }
 0x122   : > { %s3577_s16 = scalar_select %p41_p8, %s3209_s23, %s43_s26  }
 0x123   : > { %p3579_p3 = por %p51_p0, %p50_p13  ;;  %p4020_p2 = scmp.eq.s32.totalorder %s3325_s27, 0 }
 0x124   : > { %p316_p5 = scmp.eq.s32.totalorder %s3325_s27, 1  ;;  %p322_p7 = scmp.eq.s32.totalorder %s2217_s25, 1 }
 0x125   : > { %p3585_p6 = por %p4020_p2, %p56_p1  ;;  %p2648_p9 = scmp.lt.s32.totalorder %s3213_s24, 2 }
 0x126   : > { %s460_s14 = sand.u32 1, %s3209_s23   ;;  %p3592_p4 = por %p316_p5, %p50_p13 }
 0x127   : > { %s4021_s2 = scalar_select %p3585_p6, 1, 0 }
 0x128   : > { %s4022_s30 = scalar_select %p3592_p4, 1, 0 }
 0x129   : > { %p3596_p10 = por %p322_p7, %p56_p1  ;;  %s3600_s15 = sshll.u32 %s460_s14, 2 }
 0x12a   : > { %s2231_s19 = sshll.u32 %s3213_s24, 6  ;;  %s4024_s29 = sld [smem:[#allocation34_spill]] }
 0x12b   : > { %s4023_s0 = scalar_select %p3596_p10, 1, 0 }
 0x12c   : > { %s464_s18 = scalar_lea.vmem [#allocation3], %s3600_s15  ;;  %p3613_p11 = pnand %p2648_p9, %p3579_p3 }
 0x12d   : > { %s471_s25 = sshll.u32 %s464_s18, 4  ;;  %s4026_s4 = sld [smem:[#allocation35_spill]]  ;;  %s3609_s25 = int_to_ptr.vmem [resolvable:$true] %s471_s25 }
 0x12e   : > { %s478_s12 = sand.u32 1, %s3213_s24   ;;  %s461_s5 = scalar_lea.sflag [#allocation4], %s460_s14 }
 0x12f   : > { %p3061_p8 = pneg %p3613_p11 }
 0x130   : > { %s3606_s17 = scalar_lea.hbm %s4024_s29, %s2231_s19  ;;  %s3064_s7 = scalar_lea.hbm %s4024_s29, 128 }
 0x131   : > { %s3059_s6 = scalar_lea.hbm %s3606_s17, 64  ;;  %p3065_p1 = scmp.lt.u32.totalorder %s3606_s17, %s4024_s29 }
 0x132   : > { %p3060_p12 = scmp.ne.s32.totalorder %s3606_s17, %s3059_s6  ;;  %p3066_p3 = scmp.lt.u32.totalorder %s3064_s7, %s3059_s6 }
 0x133   : > { %s3620_s1 = scalar_lea.hbm %s4026_s4, %s2231_s19  ;;  %p3068_p5 = scmp.lt.u32.totalorder %s3059_s6, %s3606_s17 }
 0x134   : > { %p3062_p13 = pnand %p3061_p8, %p3060_p12  ;;  %p3067_p2 = por %p3066_p3, %p3065_p1 }
 0x136   : > { %p3063_p0 = pneg %p3062_p13  ;;  %p3069_p7 = por %p3068_p5, %p3067_p2 }
 0x138   : > { %p3070_p9 = pnand %p3069_p7, %p3063_p0 }
 0x13a   : > { %3073 = shalt.err (!%p3070_p9)
}
 0x13b   : > { %s3074_s14 = scalar_lea.vmem %s3609_s25, 64  ;;  %s3227_s19 = smov [#allocation3]  }
 0x13c   : > { %p3075_p12 = scmp.ne.s32.totalorder %s3609_s25, %s3074_s14  ;;  %s3079_s26 = sshll.u32 %s3227_s19, 4  ;;  %s3080_s26 = int_to_ptr.vmem [resolvable:$false] %s3079_s26 }
 0x13d   : > { %s3081_s8 = scalar_lea.vmem %s3080_s26, 128  ;;  %p3082_p4 = scmp.lt.s32.totalorder %s3609_s25, %s3080_s26 }
 0x13e   : > { %p3077_p13 = pnand %p3075_p12, %p3061_p8  ;;  %p3083_p1 = scmp.lt.s32.totalorder %s3081_s8, %s3074_s14 }
 0x140   : > { %p3078_p10 = pneg %p3077_p13  ;;  %p3084_p3 = por %p3083_p1, %p3082_p4 }
 0x142   : > { %p3085_p2 = pnand %p3084_p3, %p3078_p10 }
 0x144   : > { %3088 = shalt.err (!%p3085_p2)
}
 0x145   : > { %2630 = dma.hbm_to_vmem [thread:$0]  (!%p3613_p11), %s3606_s17, 64, %s3609_s25, %s461_s5  }
 0x146   : > { %s482_s6 = scalar_lea.vmem [#allocation6], %s3600_s15  ;;  %s479_s20 = scalar_lea.sflag [#allocation7], %s478_s12 }
 0x147   : > { %s489_s7 = sshll.u32 %s482_s6, 4  ;;  %s3089_s18 = scalar_lea.hbm %s3620_s1, 64  ;;  %s490_s7 = int_to_ptr.vmem [resolvable:$true] %s489_s7 }
 0x148   : > { %p3090_p4 = scmp.ne.s32.totalorder %s3620_s1, %s3089_s18  ;;  %s3094_s19 = scalar_lea.hbm %s4026_s4, 128 }
 0x149   : > { %p3095_p5 = scmp.lt.u32.totalorder %s3620_s1, %s4026_s4  ;;  %p3096_p7 = scmp.lt.u32.totalorder %s3094_s19, %s3089_s18 }
 0x14a   : > { %p3092_p10 = pnand %p3090_p4, %p3061_p8  ;;  %p3098_p12 = scmp.lt.u32.totalorder %s3089_s18, %s3620_s1 }
 0x14b   : > { %p3097_p9 = por %p3096_p7, %p3095_p5 }
 0x14c   : > { %p3093_p0 = pneg %p3092_p10 }
 0x14d   : > { %p3099_p13 = por %p3098_p12, %p3097_p9 }
 0x14f   : > { %p3100_p1 = pnand %p3099_p13, %p3093_p0 }
 0x151   : > { %3103 = shalt.err (!%p3100_p1)
}
 0x152   : > { %s3104_s5 = scalar_lea.vmem %s490_s7, 64  ;;  %s3228_s15 = smov [#allocation6]  }
 0x153   : > { %p3105_p3 = scmp.ne.s32.totalorder %s490_s7, %s3104_s5  ;;  %s3109_s17 = sshll.u32 %s3228_s15, 4  ;;  %s3110_s17 = int_to_ptr.vmem [resolvable:$false] %s3109_s17 }
 0x154   : > { %s3111_s25 = scalar_lea.vmem %s3110_s17, 128  ;;  %p3112_p10 = scmp.lt.s32.totalorder %s490_s7, %s3110_s17 }
 0x155   : > { %p3107_p2 = pnand %p3105_p3, %p3061_p8  ;;  %p3113_p6 = scmp.lt.s32.totalorder %s3111_s25, %s3104_s5 }
 0x157   : > { %p3108_p4 = pneg %p3107_p2  ;;  %p3114_p5 = por %p3113_p6, %p3112_p10 }
 0x159   : > { %p3115_p7 = pnand %p3114_p5, %p3108_p4 }
 0x15b   : > { %3118 = shalt.err (!%p3115_p7)
}
 0x15c   : > { %2633 = dma.hbm_to_vmem [thread:$0]  (!%p3613_p11), %s3620_s1, 64, %s490_s7, %s479_s20  }
 0x15d   : > { %s4027_s12 = sld [smem:[#allocation33_spill]] }
 0x163   : > { %p4028_p0 = scmp.ne.s32.totalorder %s4027_s12, 0 }
 0x164   : > { %s3673_s6 = sand.u32 (!%p4028_p0), 1, %s3205_s22   ;;  %p4029_p6 = scmp.ne.s32.totalorder (!%p4028_p0), %s4021_s2, 0 }
 0x165   : > { %498 = sbr.rel (%p4028_p0) target bundleno = 3706 (0xe7a), region = 68  ;;  %s3676_s18 = sshll.u32 (!%p4028_p0), %s3673_s6, 2 }
 0x166   : > { %s501_s3 = scalar_lea.sflag (!%p4028_p0), [#allocation4], %s3673_s6  ;;  %s504_s14 = scalar_lea.vmem (!%p4028_p0), [#allocation3], %s3676_s18 }
 0x16c   : > { %3164 = dma.done.wait (%p4029_p6), %s501_s3, 64  }
 0x16d   : > { %3166 = vsyncadd (%p4029_p6), %s501_s3, 4294967232  ;;  %s509_s28 = sand.u32 1, %s3325_s27   ;;  %s513_s7 = scalar_lea.vmem [#allocation6], %s3676_s18 }
 0x16e   : > { %s510_s1 = scalar_lea.sflag [#allocation7], %s509_s28 }
 0x16f   : > { %3168 = dma.done.wait (%p4029_p6), %s510_s1, 64  }
 0x170   : > { %3170 = vsyncadd (%p4029_p6), %s510_s1, 4294967232  ;;  %p4030_p11 = scmp.eq.s32.totalorder %s3325_s27, 0 }
 0x172   : > { %3172 = dma.done.wait (%p4030_p11), [#allocation7], 1024   ;;  %p4031_p8 = pmov %p4030_p11 }
 0x174   : > { %3174 = vsyncadd (%p4031_p8), [#allocation7], 4294966272  ;;  %p4032_p9 = pmov %p4031_p8 }
 0x175   : > { %p4033_p12 = pmov %p4031_p8 }
 0x176   : > { %3176 = dma.done.wait (%p4032_p9), [#allocation10], 1040  }
 0x177   : > { %3178 = vsyncadd (%p4033_p12), [#allocation10], 4294966256  ;;  %p4034_p13 = pmov %p4031_p8 }
 0x178   : > { %p4035_p1 = pmov %p4031_p8 }
 0x179   : > { %3180 = dma.done.wait (%p4034_p13), [#allocation13], 1040  }
 0x17a   : > { %3182 = vsyncadd (%p4035_p1), [#allocation13], 4294966256  ;;  %p4036_p3 = pmov %p4035_p1 }
 0x17b   : > { %p4037_p2 = pmov %p4035_p1 }
 0x17c   : > { %3184 = dma.done.wait (%p4036_p3), [#allocation16], 1040  }
 0x17d   : > { %3186 = vsyncadd (%p4037_p2), [#allocation16], 4294966256  ;;  %p4038_p4 = pmov %p4035_p1 }
 0x17e   : > { %p4039_p10 = pmov %p4035_p1 }
 0x17f   : > { %3188 = dma.done.wait (%p4038_p4), [#allocation19], 32  }
 0x180   : > { %3190 = vsyncadd (%p4039_p10), [#allocation19], 4294967264  ;;  %p4040_p5 = pmov %p4035_p1 }
 0x181   : > { %p4041_p7 = pmov %p4035_p1 }
 0x182   : > { %3192 = dma.done.wait (%p4040_p5), [#allocation22], 16  }
 0x183   : > { %3194 = vsyncadd (%p4041_p7), [#allocation22], 4294967280  ;;  %v3229_v0 = vmov 0.0   ;;  %vm3230_vm0 = vmmov 0   ;;  %v2713_v1 = vld [vmem:[#allocation11] sm:$0xff]   ;;  %v2714_v2 = vld [vmem:[#allocation11 + $0x8] sm:$0xff]  }
 0x184   : > { %2394 = vmatprep.subr.bf16.mxu1 %v3229_v0  ;;  %2374 = vmatprep.subr.bf16.mxu0 %v3229_v0  ;;  %v2715_v3 = vld [vmem:[#allocation8] sm:$0xff]   ;;  %v2717_v4 = vld [vmem:[#allocation8 + $0x8] sm:$0xff]   ;;  %v2716_v5 = vld [vmem:[#allocation11 + $0x10] sm:$0xff]   ;;  %vm938_vm1 = vcmask 130048   ;;  %s3231_s2 = smov 112   ;;  %vm986_vm2 = vcmask 64512  }
 0x185   : > { %2410 = vmatprep.mubr.msk.bf16.mxu1 %vm3230_vm0, %v3229_v0  ;;  %2390 = vmatprep.mubr.msk.bf16.mxu0 %vm3230_vm0, %v3229_v0  ;;  %v2719_v6 = vld [vmem:[#allocation8 + $0x10] sm:$0xff]   ;;  %v2718_v7 = vld [vmem:[#allocation11 + $0x18] sm:$0xff]   ;;  %v2720_v9 = vld [vmem:[#allocation11 + $0x20] sm:$0xff]   ;;  %vm1002_vm3 = vcmask 1043456   ;;  %s3232_s20 = smov 96   ;;  %s3233_s19 = smov 64  }
 0x186   : > { %2395 = vmatpush3.bf16.msra.mxu1 %v2713_v1  ;;  %2375 = vmatpush3.bf16.msra.mxu0 %v2715_v3  ;;  %v2721_v8 = vld [vmem:[#allocation8 + $0x18] sm:$0xff]   ;;  %v2722_v10 = vld [vmem:[#allocation11 + $0x28] sm:$0xff]   ;;  %v2723_v11 = vld [vmem:[#allocation8 + $0x20] sm:$0xff]   ;;  %s3234_s26 = smov 16   ;;  %s3235_s8 = smov 80   ;;  %vm1165_vm4 = vcmask 261248  }
 0x187   : > { %2396 = vmatprep.subr.bf16.mxu1 %v3229_v0  ;;  %2376 = vmatprep.subr.bf16.mxu0 %v3229_v0  ;;  %v2725_v12 = vld [vmem:[#allocation8 + $0x28] sm:$0xff]   ;;  %v2724_v13 = vld [vmem:[#allocation11 + $0x30] sm:$0xff]   ;;  %v2726_v15 = vld [vmem:[#allocation11 + $0x38] sm:$0xff]   ;;  %s3236_s5 = smov 48   ;;  %s3237_s15 = smov 32   ;;  %vm1282_vm5 = vcmask 392448  }
 0x188   : > { %v2727_v14 = vld [vmem:[#allocation8 + $0x30] sm:$0xff]   ;;  %v2728_v16 = vld [vmem:[#allocation8 + $0x38] sm:$0xff]   ;;  %v2257_v19 = vld [vmem:[#allocation12] ss:$0 sm:$0xff]  ;;  %vm1399_vm6 = vcmask 523648   ;;  %vm1516_vm7 = vcmask 654848  }
 0x189   : > { %v601_v17 = vld [vmem:[%s513_s7] sm:$0xf]  ;;  %v600_v18 = vld [vmem:[%s504_s14] sm:$0xf]  ;;  %v2248_v21 = vld [vmem:[#allocation9] ss:$0 sm:$0xff] }
 0x18a   : > { %2397 = vmatpush3.bf16.msra.mxu1 %v2714_v2  ;;  %2377 = vmatpush3.bf16.msra.mxu0 %v2717_v4  ;;  %v2729_v34 = vld [vmem:[#allocation14] sm:$0xff]   ;;  %v2730_v35 = vld [vmem:[#allocation14 + $0x8] sm:$0xff]   ;;  %v2731_v36 = vld [vmem:[#allocation14 + $0x10] sm:$0xff]   ;;  %vm1633_vm8 = vcmask 786048   ;;  %vm1750_vm9 = vcmask 917248   ;;  %vm1867_vm10 = vcmask 1048448  }
 0x18b   : > { %2398 = vmatprep.subr.bf16.mxu1 %v3229_v0  ;;  %2378 = vmatprep.subr.bf16.mxu0 %v3229_v0  ;;  %v2732_v37 = vld [vmem:[#allocation14 + $0x18] sm:$0xff]   ;;  %v2733_v38 = vld [vmem:[#allocation14 + $0x20] sm:$0xff]   ;;  %v2734_v39 = vld [vmem:[#allocation14 + $0x28] sm:$0xff]   ;;  %s2303_s17 = sshll.u32 %s3325_s27, 6  ;;  %s598_s25 = scalar_lea.vmem [#allocation23], %s3676_s18 }
 0x18c   : > { %v2735_v40 = vld [vmem:[#allocation14 + $0x30] sm:$0xff]   ;;  %v2736_v41 = vld [vmem:[#allocation14 + $0x38] sm:$0xff]   ;;  %v2266_v57 = vld [vmem:[#allocation15] ss:$0 sm:$0xff]  ;;  %s2029_s12 = sshll.u32 %s598_s25, 4  ;;  %s4042_s28 = sld [smem:[#allocation43_spill]]  ;;  %s3932_s12 = int_to_ptr.vmem [resolvable:$true] %s2029_s12 }
 0x18d   : > { %s2016_s7 = scalar_lea.sflag [#allocation5], %s3673_s6  ;;  %p4043_p6 = scmp.ne.s32.totalorder %s4022_s30, 0 }
 0x18e   : > { %2399 = vmatpush3.bf16.msra.mxu1 %v2716_v5  ;;  %2379 = vmatpush3.bf16.msra.mxu0 %v2719_v6  ;;  %s3238_s27 = smov [#allocation23]  }
 0x18f   : > { %2400 = vmatprep.subr.bf16.mxu1 %v3229_v0  ;;  %2380 = vmatprep.subr.bf16.mxu0 %v3229_v0  ;;  %s3123_s18 = sshll.u32 %s3238_s27, 4  ;;  %s3124_s18 = int_to_ptr.vmem [resolvable:$false] %s3123_s18 }
 0x190   : > { %p3126_p9 = scmp.lt.s32.totalorder %s3932_s12, %s3124_s18 }
 0x192   : > { %2401 = vmatpush3.bf16.msra.mxu1 %v2718_v7  ;;  %2381 = vmatpush3.bf16.msra.mxu0 %v2721_v8  ;;  %s3930_s1 = scalar_lea.hbm %s4042_s28, %s2303_s17 }
 0x193   : > { %2402 = vmatprep.subr.bf16.mxu1 %v3229_v0  ;;  %2382 = vmatprep.subr.bf16.mxu0 %v3229_v0 }
 0x196   : > { %2403 = vmatpush3.bf16.msra.mxu1 %v2720_v9  ;;  %2383 = vmatpush3.bf16.msra.mxu0 %v2723_v11 }
 0x197   : > { %2404 = vmatprep.subr.bf16.mxu1 %v3229_v0  ;;  %2384 = vmatprep.subr.bf16.mxu0 %v3229_v0 }
 0x19a   : > { %2405 = vmatpush3.bf16.msra.mxu1 %v2722_v10  ;;  %2385 = vmatpush3.bf16.msra.mxu0 %v2725_v12 }
 0x19b   : > { %2406 = vmatprep.subr.bf16.mxu1 %v3229_v0  ;;  %2386 = vmatprep.subr.bf16.mxu0 %v3229_v0 }
 0x19e   : > { %2407 = vmatpush3.bf16.msra.mxu1 %v2724_v13  ;;  %2387 = vmatpush3.bf16.msra.mxu0 %v2727_v14 }
 0x19f   : > { %2408 = vmatprep.subr.bf16.mxu1 %v3229_v0  ;;  %2388 = vmatprep.subr.bf16.mxu0 %v3229_v0 }
 0x1a2   : > { %2409 = vmatpush3.bf16.msra.mxu1 %v2726_v15  ;;  %2389 = vmatpush3.bf16.msra.mxu0 %v2728_v16 }
 0x1a3   : > { %2434 = vmatprep.subr.bf16.mxu1 %v3229_v0  ;;  %2414 = vmatprep.subr.bf16.mxu0 %v3229_v0 }
 0x1a5   : > { %2411 = vmatmul.mubr.bf16.vlgmr.msra.gmra.mrb[0].mxu1 %v601_v17  ;;  %2391 = vmatmul.mubr.bf16.vlgmr.msra.gmra.mrb[0].mxu0 %v600_v18 }
 0x1a6   : > { %2436 = vmatprep.mubr.msk.bf16.mxu1 %vm3230_vm0, %v3229_v0  ;;  %2430 = vmatprep.mubr.msk.bf16.mxu0 %vm3230_vm0, %v3229_v0 }
 0x1a7   : > { %2415 = vmatpush3.bf16.msra.mxu0 %v2729_v34 }
 0x1a8   : > { %2416 = vmatprep.subr.bf16.mxu0 %v3229_v0 }
 0x1ab   : > { %2417 = vmatpush3.bf16.msra.mxu0 %v2730_v35 }
 0x1ac   : > { %2418 = vmatprep.subr.bf16.mxu0 %v3229_v0 }
 0x1af   : > { %2419 = vmatpush3.bf16.msra.mxu0 %v2731_v36 }
 0x1b0   : > { %2420 = vmatprep.subr.bf16.mxu0 %v3229_v0 }
 0x1b3   : > { %2421 = vmatpush3.bf16.msra.mxu0 %v2732_v37 }
 0x1b4   : > { %2422 = vmatprep.subr.bf16.mxu0 %v3229_v0 }
 0x1b7   : > { %2423 = vmatpush3.bf16.msra.mxu0 %v2733_v38 }
 0x1b8   : > { %2424 = vmatprep.subr.bf16.mxu0 %v3229_v0 }
 0x1bb   : > { %2425 = vmatpush3.bf16.msra.mxu0 %v2734_v39 }
 0x1bc   : > { %2426 = vmatprep.subr.bf16.mxu0 %v3229_v0 }
 0x1bf   : > { %2427 = vmatpush3.bf16.msra.mxu0 %v2735_v40 }
 0x1c0   : > { %2428 = vmatprep.subr.bf16.mxu0 %v3229_v0 }
 0x1c3   : > { %2429 = vmatpush3.bf16.msra.mxu0 %v2736_v41 }
 0x1c4   : > { %2482 = vmatprep.subr.bf16.mxu0 %v3229_v0 }
 0x1c6   : > { %2431 = vmatmul.mubr.bf16.vlgmr.msra.gmra.mrb[4].mxu0 %v601_v17 }
 0x1c7   : > { %2484 = vmatprep.mubr.msk.bf16.mxu0 %vm3230_vm0, %v3229_v0 }
 0x278   : > { %v818_v20 = vpop.f32.mrb[0].mxu1  ;;  %v707_v25 = vpop.f32.mrb[0].mxu0 }
 0x279   : > { %v819_v22 = vadd.f32 %v2257_v19, %v818_v20  ;;  %v2412_v23 = vpop.f32.mrb[1].mxu1  ;;  %v708_v28 = vadd.f32 %v2248_v21, %v707_v25  ;;  %v2392_v29 = vpop.f32.mrb[1].mxu0 }
 0x27a   : > { %v821_v24 = vpop.f32.mrb[2].mxu1  ;;  %v710_v30 = vpop.f32.mrb[2].mxu0 }
 0x27b   : > { %v3744_v26 = vpack.c.bf16 %v819_v22, %v819_v22  ;;  %v2413_v27 = vpop.f32.mrb[3].mxu1  ;;  %v3748_v31 = vpack.c.bf16 %v708_v28, %v708_v28  ;;  %v2393_v33 = vpop.f32.mrb[3].mxu0 }
 0x27d   : > { %1051 = vrot.lane.b32.xlu1 %v3744_v26, %s3231_s2  ;;  %v943_v32 = vsel %vm938_vm1, %v3744_v26, 0 }
 0x27e   : > { %2435 = vmatpush3.bf16.xpose.msra.mxu1 %v943_v32 }
 0x27f   : > { %2440 = vmatprep.subr.bf16.mxu1 %v3229_v0 }
 0x281   : > { %1048 = vrot.lane.b32.xlu1 %v3748_v31, %s3231_s2 }
 0x285   : > { %2437 = vmatmul.mubr.msk.bf16.vlgmr.msra.gmra.mrb[4].mxu1 %vm938_vm1, %v3748_v31 }
 0x286   : > { %2442 = vmatprep.mubr.msk.bf16.mxu1 %vm3230_vm0, %v3229_v0 }
 0x299   : > { %v929_v48 = vpop.f32.mrb[4].mxu0 }
 0x29a   : > { %v2432_v49 = vpop.f32.mrb[5].mxu0  ;;  %v930_v58 = vadd.f32 %v2266_v57, %v929_v48 }
 0x29b   : > { %v932_v50 = vpop.f32.mrb[6].mxu0 }
 0x29c   : > { %v2433_v51 = vpop.f32.mrb[7].mxu0  ;;  %v3771_v59 = vpack.c.bf16 %v930_v58, %v930_v58 }
 0x29e   : > { %v1004_v60 = vsel %vm1002_vm3, %v3771_v59, 0 }
 0x29f   : > { %2441 = vmatpush3.bf16.msra.mxu1 %v1004_v60 }
 0x2a0   : > { %2446 = vmatprep.subr.bf16.mxu1 %v3229_v0 }
 0x2ef   : > { %v1052_v1 = vpop.permute.xlu1 %1051 }
 0x2f0   : > { %v1057_v3 = vsel %vm938_vm1, %v1052_v1, 0 }
 0x2f3   : > { %v1049_v4 = vpop.permute.xlu1 %1048 }
 0x358   : > { %v979_v42 = vpop.f32.mrb[4].mxu1 }
 0x359   : > { %v985_v43 = vmul.f32 0.25, %v979_v42  ;;  %v2438_v44 = vpop.f32.mrb[5].mxu1 }
 0x35a   : > { %v982_v45 = vpop.f32.mrb[6].mxu1 }
 0x35b   : > { %v2439_v46 = vpop.f32.mrb[7].mxu1  ;;  %v987_v47 = vsel %vm986_vm2, %v985_v43, -inf }
 0x35c   : > { %988 = vmax.xlane.f32.xlu0 %v987_v47 }
 0x3e9   : > { %v989_v52 = vpop.xlane.xlu0 %988 }
 0x3ea   : > { %v990_v53 = vsub.f32 %v985_v43, %v989_v52 }
 0x3ec   : > { %v991_v54 = vmul.f32 1.442695, %v990_v53 }
 0x3ee   : > { %2745 = vpow2.f32 %v991_v54 }
 0x3f8   : > { %v2746_v55 = vpop.eup %2745 }
 0x3f9   : > { %v993_v56 = vsel %vm986_vm2, %v2746_v55, 0.0 }
 0x3fa   : > { %994 = vadd.xlane.f32.xlu0 %v993_v56 }
 0x487   : > { %v995_v61 = vpop.xlane.xlu0 %994 }
 0x488   : > { %2747 = vrcp.f32 %v995_v61 }
 0x492   : > { %v2748_v62 = vpop.eup %2747 }
 0x493   : > { %v997_v63 = vmul.f32 %v2748_v62, %v2746_v55 }
 0x495   : > { %v998_v2 = vpack.c.bf16 %v997_v63, %v997_v63 }
 0x497   : > { %2443 = vmatmul.mubr.msk.bf16.vlgmr.msra.gmra.mrb[8].mxu1 %vm986_vm2, %v998_v2 }
 0x498   : > { %2447 = vmatpush3.bf16.xpose.msra.mxu1 %v1057_v3  ;;  %2448 = vmatprep.mubr.msk.bf16.mxu1 %vm3230_vm0, %v3229_v0 }
 0x499   : > { %2452 = vmatprep.subr.bf16.mxu1 %v3229_v0 }
 0x49f   : > { %2449 = vmatmul.mubr.msk.bf16.vlgmr.msra.gmra.mrb[12].mxu1 %vm938_vm1, %v1049_v4 }
 0x4a0   : > { %2454 = vmatprep.mubr.msk.bf16.mxu1 %vm3230_vm0, %v3229_v0 }
 0x56a   : > { %v1040_v5 = vpop.f32.mrb[8].mxu1 }
 0x56b   : > { %1046 = vst.msk [vmem:[#allocation2] sm:$0xff] %vm938_vm1, %v1040_v5  ;;  %v2444_v6 = vpop.f32.mrb[9].mxu1 }
 0x56c   : > { %v1043_v7 = vpop.f32.mrb[10].mxu1 }
 0x56d   : > { %v2445_v8 = vpop.f32.mrb[11].mxu1 }
 0x572   : > { %v1093_v9 = vpop.f32.mrb[12].mxu1 }
 0x573   : > { %v1099_v10 = vmul.f32 0.25, %v1093_v9  ;;  %v2450_v11 = vpop.f32.mrb[13].mxu1 }
 0x574   : > { %v1096_v12 = vpop.f32.mrb[14].mxu1 }
 0x575   : > { %v2451_v13 = vpop.f32.mrb[15].mxu1  ;;  %v1100_v14 = vsel %vm986_vm2, %v1099_v10, -inf }
 0x576   : > { %1101 = vmax.xlane.f32.xlu0 %v1100_v14 }
 0x58c   : > { %1113 = vrot.lane.b32.xlu0 %v3771_v59, %s3231_s2 }
 0x590   : > { %1169 = vrot.lane.b32.xlu0 %v3744_v26, %s3232_s20 }
 0x594   : > { %1167 = vrot.lane.b32.xlu0 %v3748_v31, %s3232_s20 }
 0x603   : > { %v1102_v15 = vpop.xlane.xlu0 %1101 }
 0x604   : > { %v1103_v16 = vsub.f32 %v1099_v10, %v1102_v15 }
 0x606   : > { %v1104_v17 = vmul.f32 1.442695, %v1103_v16 }
 0x607   : > { %v1114_v18 = vpop.permute.xlu0 %1113 }
 0x608   : > { %2749 = vpow2.f32 %v1104_v17  ;;  %v1119_v19 = vsel %vm1002_vm3, %v1114_v18, 0 }
 0x609   : > { %2453 = vmatpush3.bf16.msra.mxu1 %v1119_v19 }
 0x60a   : > { %2458 = vmatprep.subr.bf16.mxu1 %v3229_v0 }
 0x60b   : > { %v1170_v25 = vpop.permute.xlu0 %1169 }
 0x60c   : > { %v1175_v28 = vsel %vm938_vm1, %v1170_v25, 0 }
 0x60f   : > { %v1168_v30 = vpop.permute.xlu0 %1167 }
 0x612   : > { %v2750_v20 = vpop.eup %2749 }
 0x613   : > { %v1106_v21 = vsel %vm986_vm2, %v2750_v20, 0.0 }
 0x614   : > { %1107 = vadd.xlane.f32.xlu1 %v1106_v21 }
 0x625   : > { %1230 = vrot.lane.b32.xlu1 %v3771_v59, %s3232_s20 }
 0x6a1   : > { %v1108_v22 = vpop.xlane.xlu1 %1107 }
 0x6a2   : > { %2751 = vrcp.f32 %v1108_v22 }
 0x6a5   : > { %v1231_v29 = vpop.permute.xlu1 %1230 }
 0x6a6   : > { %v1236_v32 = vsel %vm1002_vm3, %v1231_v29, 0 }
 0x6ac   : > { %v2752_v23 = vpop.eup %2751 }
 0x6ad   : > { %v1110_v24 = vmul.f32 %v2752_v23, %v2750_v20 }
 0x6af   : > { %v1111_v27 = vpack.c.bf16 %v1110_v24, %v1110_v24 }
 0x6b1   : > { %2455 = vmatmul.mubr.msk.bf16.vlgmr.msra.gmra.mrb[16].mxu1 %vm986_vm2, %v1111_v27 }
 0x6b2   : > { %2459 = vmatpush3.bf16.xpose.msra.mxu1 %v1175_v28  ;;  %2460 = vmatprep.mubr.msk.bf16.mxu1 %vm3230_vm0, %v3229_v0 }
 0x6b3   : > { %2464 = vmatprep.subr.bf16.mxu1 %v3229_v0 }
 0x6b9   : > { %2461 = vmatmul.mubr.msk.bf16.vlgmr.msra.gmra.mrb[20].mxu1 %vm938_vm1, %v1168_v30 }
 0x6ba   : > { %2465 = vmatpush3.bf16.msra.mxu1 %v1236_v32  ;;  %2466 = vmatprep.mubr.msk.bf16.mxu1 %vm3230_vm0, %v3229_v0 }
 0x6bb   : > { %2470 = vmatprep.subr.bf16.mxu1 %v3229_v0 }
 0x784   : > { %v3807_v33 = vpop.f32.mrb[16].mxu1 }
 0x785   : > { %v2456_v34 = vpop.f32.mrb[17].mxu1 }
 0x786   : > { %v1158_v35 = vpop.f32.mrb[18].mxu1 }
 0x787   : > { %v2457_v36 = vpop.f32.mrb[19].mxu1 }
 0x78c   : > { %v1211_v37 = vpop.f32.mrb[20].mxu1 }
 0x78d   : > { %v1217_v38 = vmul.f32 0.25, %v1211_v37  ;;  %v2462_v39 = vpop.f32.mrb[21].mxu1 }
 0x78e   : > { %v1214_v40 = vpop.f32.mrb[22].mxu1 }
 0x78f   : > { %v2463_v41 = vpop.f32.mrb[23].mxu1  ;;  %v1218_v42 = vsel %vm986_vm2, %v1217_v38, -inf }
 0x790   : > { %1219 = vmax.xlane.f32.xlu0 %v1218_v42 }
 0x7a6   : > { %1403 = vrot.lane.b32.xlu0 %v3744_v26, %s3233_s19 }
 0x7aa   : > { %1752 = vrot.lane.b32.xlu0 %v3748_v31, %s3234_s26 }
 0x81d   : > { %v1220_v43 = vpop.xlane.xlu0 %1219 }
 0x81e   : > { %v1221_v44 = vsub.f32 %v1217_v38, %v1220_v43 }
 0x820   : > { %v1222_v45 = vmul.f32 1.442695, %v1221_v44 }
 0x821   : > { %v1404_v46 = vpop.permute.xlu0 %1403 }
 0x822   : > { %2753 = vpow2.f32 %v1222_v45  ;;  %v1409_v47 = vsel %vm938_vm1, %v1404_v46, 0 }
 0x823   : > { %2483 = vmatpush3.bf16.xpose.msra.mxu0 %v1409_v47 }
 0x824   : > { %2494 = vmatprep.subr.bf16.mxu0 %v3229_v0 }
 0x825   : > { %v1753_v2 = vpop.permute.xlu0 %1752 }
 0x82c   : > { %v2754_v48 = vpop.eup %2753 }
 0x82d   : > { %v1224_v49 = vsel %vm986_vm2, %v2754_v48, 0.0 }
 0x82e   : > { %1225 = vadd.xlane.f32.xlu1 %v1224_v49 }
 0x83f   : > { %1286 = vrot.lane.b32.xlu1 %v3744_v26, %s3235_s8 }
 0x843   : > { %1284 = vrot.lane.b32.xlu1 %v3748_v31, %s3235_s8 }
 0x847   : > { %1401 = vrot.lane.b32.xlu1 %v3748_v31, %s3233_s19 }
 0x84b   : > { %1520 = vrot.lane.b32.xlu1 %v3744_v26, %s3236_s5 }
 0x84f   : > { %1518 = vrot.lane.b32.xlu1 %v3748_v31, %s3236_s5 }
 0x853   : > { %1637 = vrot.lane.b32.xlu1 %v3744_v26, %s3237_s15 }
 0x857   : > { %1635 = vrot.lane.b32.xlu1 %v3748_v31, %s3237_s15 }
 0x85b   : > { %1754 = vrot.lane.b32.xlu1 %v3744_v26, %s3234_s26 }
 0x8bb   : > { %v1226_v50 = vpop.xlane.xlu1 %1225 }
 0x8bc   : > { %2755 = vrcp.f32 %v1226_v50 }
 0x8bf   : > { %v1287_v51 = vpop.permute.xlu1 %1286 }
 0x8c0   : > { %v1292_v57 = vsel %vm938_vm1, %v1287_v51, 0 }
 0x8c3   : > { %v1285_v52 = vpop.permute.xlu1 %1284 }
 0x8c6   : > { %v2756_v53 = vpop.eup %2755 }
 0x8c7   : > { %v1228_v54 = vmul.f32 %v2756_v53, %v2754_v48  ;;  %v1402_v55 = vpop.permute.xlu1 %1401 }
 0x8c8   : > { %2485 = vmatmul.mubr.msk.bf16.vlgmr.msra.gmra.mrb[8].mxu0 %vm938_vm1, %v1402_v55 }
 0x8c9   : > { %v1229_v56 = vpack.c.bf16 %v1228_v54, %v1228_v54  ;;  %2496 = vmatprep.mubr.msk.bf16.mxu0 %vm3230_vm0, %v3229_v0 }
 0x8cb   : > { %2467 = vmatmul.mubr.msk.bf16.vlgmr.msra.gmra.mrb[24].mxu1 %vm986_vm2, %v1229_v56  ;;  %v1521_v31 = vpop.permute.xlu1 %1520 }
 0x8cc   : > { %2471 = vmatpush3.bf16.xpose.msra.mxu1 %v1292_v57  ;;  %v1526_v26 = vsel %vm938_vm1, %v1521_v31, 0  ;;  %2472 = vmatprep.mubr.msk.bf16.mxu1 %vm3230_vm0, %v3229_v0 }
 0x8cd   : > { %2495 = vmatpush3.bf16.xpose.msra.mxu0 %v1526_v26  ;;  %2476 = vmatprep.subr.bf16.mxu1 %v3229_v0 }
 0x8ce   : > { %2506 = vmatprep.subr.bf16.mxu0 %v3229_v0 }
 0x8cf   : > { %v1519_v58 = vpop.permute.xlu1 %1518 }
 0x8d3   : > { %2473 = vmatmul.mubr.msk.bf16.vlgmr.msra.gmra.mrb[28].mxu1 %vm938_vm1, %v1285_v52  ;;  %v1638_v60 = vpop.permute.xlu1 %1637 }
 0x8d4   : > { %v1643_v61 = vsel %vm938_vm1, %v1638_v60, 0  ;;  %2497 = vmatmul.mubr.msk.bf16.vlgmr.msra.gmra.mrb[12].mxu0 %vm938_vm1, %v1519_v58  ;;  %2478 = vmatprep.mubr.msk.bf16.mxu1 %vm3230_vm0, %v3229_v0 }
 0x8d5   : > { %2507 = vmatpush3.bf16.xpose.msra.mxu0 %v1643_v61  ;;  %2508 = vmatprep.mubr.msk.bf16.mxu0 %vm3230_vm0, %v3229_v0 }
 0x8d6   : > { %2518 = vmatprep.subr.bf16.mxu0 %v3229_v0 }
 0x8d7   : > { %v1636_v62 = vpop.permute.xlu1 %1635 }
 0x8db   : > { %v1755_v63 = vpop.permute.xlu1 %1754 }
 0x8dc   : > { %v1760_v1 = vsel %vm938_vm1, %v1755_v63, 0  ;;  %2509 = vmatmul.mubr.msk.bf16.vlgmr.msra.gmra.mrb[16].mxu0 %vm938_vm1, %v1636_v62 }
 0x8dd   : > { %2519 = vmatpush3.bf16.xpose.msra.mxu0 %v1760_v1  ;;  %2520 = vmatprep.mubr.msk.bf16.mxu0 %vm3230_vm0, %v3229_v0 }
 0x8de   : > { %2530 = vmatprep.subr.bf16.mxu0 %v3229_v0 }
 0x8e4   : > { %2521 = vmatmul.mubr.msk.bf16.vlgmr.msra.gmra.mrb[20].mxu0 %vm938_vm1, %v1753_v2 }
 0x8e5   : > { %2546 = vmatprep.mubr.msk.bf16.mxu0 %vm3230_vm0, %v3229_v0 }
 0x99b   : > { %v1445_v3 = vpop.f32.mrb[8].mxu0 }
 0x99c   : > { %v1451_v4 = vmul.f32 0.25, %v1445_v3  ;;  %v2486_v5 = vpop.f32.mrb[9].mxu0 }
 0x99d   : > { %v1448_v6 = vpop.f32.mrb[10].mxu0 }
 0x99e   : > { %v3859_v7 = vpop.f32.mrb[24].mxu1  ;;  %v2487_v8 = vpop.f32.mrb[11].mxu0  ;;  %v1452_v9 = vsel %vm986_vm2, %v1451_v4, -inf }
 0x99f   : > { %v2468_v10 = vpop.f32.mrb[25].mxu1  ;;  %1453 = vmax.xlane.f32.xlu0 %v1452_v9 }
 0x9a0   : > { %v1275_v11 = vpop.f32.mrb[26].mxu1 }
 0x9a1   : > { %v2469_v12 = vpop.f32.mrb[27].mxu1 }
 0x9a6   : > { %v1328_v13 = vpop.f32.mrb[28].mxu1 }
 0x9a7   : > { %v1334_v14 = vmul.f32 0.25, %v1328_v13  ;;  %v2474_v15 = vpop.f32.mrb[29].mxu1  ;;  %v1562_v16 = vpop.f32.mrb[12].mxu0 }
 0x9a8   : > { %v1568_v17 = vmul.f32 0.25, %v1562_v16  ;;  %v1331_v18 = vpop.f32.mrb[30].mxu1  ;;  %v2498_v19 = vpop.f32.mrb[13].mxu0 }
 0x9a9   : > { %v2475_v20 = vpop.f32.mrb[31].mxu1  ;;  %v1565_v21 = vpop.f32.mrb[14].mxu0  ;;  %v1335_v22 = vsel %vm986_vm2, %v1334_v14, -inf }
 0x9aa   : > { %1336 = vmax.xlane.f32.xlu1 %v1335_v22  ;;  %v2499_v23 = vpop.f32.mrb[15].mxu0  ;;  %v1569_v24 = vsel %vm986_vm2, %v1568_v17, -inf }
 0x9ab   : > { %1570 = vmax.xlane.f32.xlu0 %v1569_v24 }
 0x9af   : > { %v1679_v25 = vpop.f32.mrb[16].mxu0 }
 0x9b0   : > { %v1685_v27 = vmul.f32 0.25, %v1679_v25  ;;  %v2510_v28 = vpop.f32.mrb[17].mxu0 }
 0x9b1   : > { %v1682_v29 = vpop.f32.mrb[18].mxu0 }
 0x9b2   : > { %v2511_v30 = vpop.f32.mrb[19].mxu0  ;;  %v1686_v32 = vsel %vm986_vm2, %v1685_v27, -inf }
 0x9b3   : > { %1687 = vmax.xlane.f32.xlu1 %v1686_v32 }
 0x9b7   : > { %v1796_v34 = vpop.f32.mrb[20].mxu0 }
 0x9b8   : > { %v1802_v35 = vmul.f32 0.25, %v1796_v34  ;;  %v2522_v36 = vpop.f32.mrb[21].mxu0  ;;  %v2737_v34 = vld [vmem:[#allocation17] sm:$0xff]  }
 0x9b9   : > { %v1799_v37 = vpop.f32.mrb[22].mxu0  ;;  %2531 = vmatpush3.bf16.msra.mxu0 %v2737_v34 }
 0x9ba   : > { %v2523_v38 = vpop.f32.mrb[23].mxu0  ;;  %v1803_v39 = vsel %vm986_vm2, %v1802_v35, -inf  ;;  %2532 = vmatprep.subr.bf16.mxu0 %v3229_v0 }
 0x9bb   : > { %1804 = vmax.xlane.f32.xlu0 %v1803_v39 }
 0xa2c   : > { %v1454_v40 = vpop.xlane.xlu0 %1453 }
 0xa2d   : > { %v1455_v41 = vsub.f32 %v1451_v4, %v1454_v40  ;;  %v2739_v40 = vld [vmem:[#allocation17 + $0x10] sm:$0xff]  }
 0xa2f   : > { %v1456_v42 = vmul.f32 1.442695, %v1455_v41  ;;  %v2740_v41 = vld [vmem:[#allocation17 + $0x18] sm:$0xff]  }
 0xa31   : > { %2757 = vpow2.f32 %v1456_v42 }
 0xa37   : > { %v1337_v43 = vpop.xlane.xlu1 %1336 }
 0xa38   : > { %v1338_v44 = vsub.f32 %v1334_v14, %v1337_v43  ;;  %v1571_v45 = vpop.xlane.xlu0 %1570 }
 0xa39   : > { %v1572_v46 = vsub.f32 %v1568_v17, %v1571_v45 }
 0xa3a   : > { %v1339_v48 = vmul.f32 1.442695, %v1338_v44 }
 0xa3b   : > { %v2758_v47 = vpop.eup %2757  ;;  %v1573_v49 = vmul.f32 1.442695, %v1572_v46  ;;  %v2741_v46 = vld [vmem:[#allocation17 + $0x20] sm:$0xff]  }
 0xa3c   : > { %v1458_v50 = vsel %vm986_vm2, %v2758_v47, 0.0 }
 0xa3d   : > { %2759 = vpow2.f32 %v1573_v49  ;;  %1459 = vadd.xlane.f32.xlu0 %v1458_v50 }
 0xa3e   : > { %2761 = vpow2.f32 %v1339_v48 }
 0xa40   : > { %v1688_v51 = vpop.xlane.xlu1 %1687 }
 0xa41   : > { %v1689_v52 = vsub.f32 %v1685_v27, %v1688_v51 }
 0xa43   : > { %v1690_v53 = vmul.f32 1.442695, %v1689_v52  ;;  %v2743_v52 = vld [vmem:[#allocation17 + $0x30] sm:$0xff]  }
 0xa45   : > { %2763 = vpow2.f32 %v1690_v53  ;;  %v2744_v53 = vld [vmem:[#allocation17 + $0x38] sm:$0xff]  }
 0xa47   : > { %v2760_v54 = vpop.eup %2759 }
 0xa48   : > { %v1805_v55 = vpop.xlane.xlu0 %1804  ;;  %v1575_v56 = vsel %vm986_vm2, %v2760_v54, 0.0  ;;  %v2762_v57 = vpop.eup %2761 }
 0xa49   : > { %v1806_v31 = vsub.f32 %v1802_v35, %v1805_v55  ;;  %1576 = vadd.xlane.f32.xlu1 %v1575_v56  ;;  %v1341_v58 = vsel %vm986_vm2, %v2762_v57, 0.0  ;;  %v2738_v35 = vld [vmem:[#allocation17 + $0x8] sm:$0xff]  }
 0xa4a   : > { %2533 = vmatpush3.bf16.msra.mxu0 %v2738_v35 }
 0xa4b   : > { %v1807_v26 = vmul.f32 1.442695, %v1806_v31  ;;  %2534 = vmatprep.subr.bf16.mxu0 %v3229_v0 }
 0xa4d   : > { %2765 = vpow2.f32 %v1807_v26  ;;  %1342 = vadd.xlane.f32.xlu1 %v1341_v58 }
 0xa4e   : > { %2535 = vmatpush3.bf16.msra.mxu0 %v2739_v40 }
 0xa4f   : > { %v2764_v60 = vpop.eup %2763  ;;  %2536 = vmatprep.subr.bf16.mxu0 %v3229_v0 }
 0xa50   : > { %v1692_v61 = vsel %vm986_vm2, %v2764_v60, 0.0 }
 0xa51   : > { %1693 = vadd.xlane.f32.xlu0 %v1692_v61 }
 0xa52   : > { %2537 = vmatpush3.bf16.msra.mxu0 %v2740_v41 }
 0xa53   : > { %2538 = vmatprep.subr.bf16.mxu0 %v3229_v0 }
 0xa56   : > { %2539 = vmatpush3.bf16.msra.mxu0 %v2741_v46 }
 0xa57   : > { %v3870_v62 = vpop.eup %2765  ;;  %2540 = vmatprep.subr.bf16.mxu0 %v3229_v0 }
 0xa58   : > { %v1809_v63 = vsel %vm986_vm2, %v3870_v62, 0.0 }
 0xa59   : > { %1810 = vadd.xlane.f32.xlu0 %v1809_v63 }
 0xa5e   : > { %1347 = vrot.lane.b32.xlu1 %v3771_v59, %s3235_s8 }
 0xa62   : > { %1581 = vrot.lane.b32.xlu1 %v3771_v59, %s3236_s5 }
 0xa66   : > { %1698 = vrot.lane.b32.xlu1 %v3771_v59, %s3237_s15 }
 0xa6a   : > { %1815 = vrot.lane.b32.xlu1 %v3771_v59, %s3234_s26 }
 0xa6e   : > { %1279 = vrot.lane.b32.xlu1 %v3859_v7, %s3237_s15 }
 0xa6f   : > { %1464 = vrot.lane.b32.xlu0 %v3771_v59, %s3233_s19 }
 0xa73   : > { %1162 = vrot.lane.b32.xlu0 %v3807_v33, %s3234_s26 }
 0xaca   : > { %v1460_v3 = vpop.xlane.xlu0 %1459 }
 0xad6   : > { %v1577_v1 = vpop.xlane.xlu1 %1576 }
 0xada   : > { %v1343_v2 = vpop.xlane.xlu1 %1342 }
 0xadb   : > { %2767 = vrcp.f32 %v1343_v2 }
 0xadc   : > { %2769 = vrcp.f32 %v1460_v3 }
 0xadd   : > { %2771 = vrcp.f32 %v1577_v1 }
 0xade   : > { %v1348_v4 = vpop.permute.xlu1 %1347  ;;  %v1694_v6 = vpop.xlane.xlu0 %1693 }
 0xadf   : > { %v1353_v5 = vsel %vm1002_vm3, %v1348_v4, 0  ;;  %2773 = vrcp.f32 %v1694_v6  ;;  %v1982_v4 = vld [vmem:[%s504_s14] sm:$0xf] }
 0xae0   : > { %2477 = vmatpush3.bf16.msra.mxu1 %v1353_v5  ;;  %v2291_v5 = vld [vmem:[#allocation18] ss:$0 sm:$0xff]  ;;  %v1983_v6 = vunpack.c.l.bf16 %v1982_v4 }
 0xae1   : > { %2488 = vmatprep.subr.bf16.mxu1 %v3229_v0 }
 0xae2   : > { %v1582_v8 = vpop.permute.xlu1 %1581 }
 0xae3   : > { %v1587_v20 = vsel %vm1002_vm3, %v1582_v8, 0 }
 0xae5   : > { %v2768_v7 = vpop.eup %2767 }
 0xae6   : > { %v1345_v9 = vmul.f32 %v2768_v7, %v2762_v57  ;;  %v1699_v10 = vpop.permute.xlu1 %1698  ;;  %v1811_v59 = vpop.xlane.xlu0 %1810 }
 0xae7   : > { %v2770_v33 = vpop.eup %2769  ;;  %2775 = vrcp.f32 %v1811_v59  ;;  %v1704_v24 = vsel %vm1002_vm3, %v1699_v10, 0 }
 0xae8   : > { %v1346_v11 = vpack.c.bf16 %v1345_v9, %v1345_v9  ;;  %v1462_v15 = vmul.f32 %v2770_v33, %v2758_v47  ;;  %v2772_v19 = vpop.eup %2771  ;;  %v2742_v47 = vld [vmem:[#allocation17 + $0x28] sm:$0xff]  }
 0xae9   : > { %v1579_v21 = vmul.f32 %v2772_v19, %v2760_v54  ;;  %v2774_v23 = vpop.eup %2773  ;;  %2541 = vmatpush3.bf16.msra.mxu0 %v2742_v47  ;;  %v2300_v19 = vld [vmem:[#allocation20] ss:$0 sm:$0xff] }
 0xaea   : > { %2479 = vmatmul.mubr.msk.bf16.vlgmr.msra.gmra.mrb[32].mxu1 %vm986_vm2, %v1346_v11  ;;  %v1816_v12 = vpop.permute.xlu1 %1815  ;;  %v1465_v13 = vpop.permute.xlu0 %1464  ;;  %v1463_v18 = vpack.c.bf16 %v1462_v15, %v1462_v15  ;;  %v1696_v25 = vmul.f32 %v2774_v23, %v2764_v60  ;;  %2542 = vmatprep.subr.bf16.mxu0 %v3229_v0 }
 0xaeb   : > { %v1470_v14 = vsel %vm1002_vm3, %v1465_v13, 0  ;;  %2490 = vmatprep.mubr.msk.bf16.mxu1 %vm3230_vm0, %v3229_v0  ;;  %v1580_v22 = vpack.c.bf16 %v1579_v21, %v1579_v21  ;;  %v1821_v29 = vsel %vm1002_vm3, %v1816_v12, 0  ;;  %v2301_v21 = vld [vmem:[#allocation21] ss:$0 sm:$0xff] }
 0xaec   : > { %2489 = vmatpush3.bf16.msra.mxu1 %v1470_v14  ;;  %v1697_v27 = vpack.c.bf16 %v1696_v25, %v1696_v25 }
 0xaed   : > { %2500 = vmatprep.subr.bf16.mxu1 %v3229_v0  ;;  %2543 = vmatpush3.bf16.msra.mxu0 %v2743_v52 }
 0xaee   : > { %v1280_v16 = vpop.permute.xlu1 %1279  ;;  %v1163_v17 = vpop.permute.xlu0 %1162  ;;  %2544 = vmatprep.subr.bf16.mxu0 %v3229_v0 }
 0xaef   : > { %1166 = vst.msk [vmem:[#allocation2] sm:$0xff] %vm1165_vm4, %v1163_v17 }
 0xaf0   : > { %1283 = vst.msk [vmem:[#allocation2] sm:$0xff] %vm1282_vm5, %v1280_v16 }
 0xaf1   : > { %v2776_v28 = vpop.eup %2775  ;;  %2545 = vmatpush3.bf16.msra.mxu0 %v2744_v53 }
 0xaf2   : > { %2491 = vmatmul.mubr.msk.bf16.vlgmr.msra.gmra.mrb[36].mxu1 %vm986_vm2, %v1463_v18  ;;  %v1813_v30 = vmul.f32 %v2776_v28, %v3870_v62 }
 0xaf3   : > { %2501 = vmatpush3.bf16.msra.mxu1 %v1587_v20  ;;  %2502 = vmatprep.mubr.msk.bf16.mxu1 %vm3230_vm0, %v3229_v0 }
 0xaf4   : > { %2512 = vmatprep.subr.bf16.mxu1 %v3229_v0  ;;  %v1814_v32 = vpack.c.bf16 %v1813_v30, %v1813_v30 }
 0xafa   : > { %2503 = vmatmul.mubr.msk.bf16.vlgmr.msra.gmra.mrb[40].mxu1 %vm986_vm2, %v1580_v22 }
 0xafb   : > { %2513 = vmatpush3.bf16.msra.mxu1 %v1704_v24  ;;  %2514 = vmatprep.mubr.msk.bf16.mxu1 %vm3230_vm0, %v3229_v0 }
 0xafc   : > { %2524 = vmatprep.subr.bf16.mxu1 %v3229_v0 }
 0xb02   : > { %2515 = vmatmul.mubr.msk.bf16.vlgmr.msra.gmra.mrb[44].mxu1 %vm986_vm2, %v1697_v27 }
 0xb03   : > { %2525 = vmatpush3.bf16.msra.mxu1 %v1821_v29  ;;  %2526 = vmatprep.mubr.msk.bf16.mxu1 %vm3230_vm0, %v3229_v0 }
 0xb0a   : > { %2527 = vmatmul.mubr.msk.bf16.vlgmr.msra.gmra.mrb[48].mxu1 %vm986_vm2, %v1814_v32 }
 0xbbd   : > { %v1389_v36 = vpop.f32.mrb[32].mxu1 }
 0xbbe   : > { %v2480_v37 = vpop.f32.mrb[33].mxu1  ;;  %1396 = vrot.lane.b32.xlu0 %v1389_v36, %s3236_s5 }
 0xbbf   : > { %v1392_v38 = vpop.f32.mrb[34].mxu1 }
 0xbc0   : > { %v2481_v39 = vpop.f32.mrb[35].mxu1 }
 0xbc5   : > { %v1506_v42 = vpop.f32.mrb[36].mxu1 }
 0xbc6   : > { %1513 = vrot.lane.b32.xlu1 %v1506_v42, %s3233_s19  ;;  %v2492_v43 = vpop.f32.mrb[37].mxu1 }
 0xbc7   : > { %v1509_v44 = vpop.f32.mrb[38].mxu1 }
 0xbc8   : > { %v2493_v45 = vpop.f32.mrb[39].mxu1 }
 0xbcd   : > { %v1623_v48 = vpop.f32.mrb[40].mxu1 }
 0xbce   : > { %1630 = vrot.lane.b32.xlu0 %v1623_v48, %s3235_s8  ;;  %v2504_v49 = vpop.f32.mrb[41].mxu1 }
 0xbcf   : > { %v1626_v50 = vpop.f32.mrb[42].mxu1 }
 0xbd0   : > { %v2505_v51 = vpop.f32.mrb[43].mxu1 }
 0xbd5   : > { %v1740_v54 = vpop.f32.mrb[44].mxu1 }
 0xbd6   : > { %1747 = vrot.lane.b32.xlu1 %v1740_v54, %s3232_s20  ;;  %v2516_v55 = vpop.f32.mrb[45].mxu1  ;;  %s3125_s20 = scalar_lea.vmem %s3124_s18, 128 }
 0xbd7   : > { %v1743_v56 = vpop.f32.mrb[46].mxu1 }
 0xbd8   : > { %v2517_v57 = vpop.f32.mrb[47].mxu1 }
 0xbdd   : > { %v1857_v31 = vpop.f32.mrb[48].mxu1 }
 0xbde   : > { %1864 = vrot.lane.b32.xlu0 %v1857_v31, %s3231_s2  ;;  %v2528_v26 = vpop.f32.mrb[49].mxu1  ;;  %s3119_s2 = scalar_lea.vmem %s3932_s12, 64 }
 0xbdf   : > { %v1860_v58 = vpop.f32.mrb[50].mxu1  ;;  %p3120_p0 = scmp.ne.s32.totalorder %s3932_s12, %s3119_s2  ;;  %p3127_p12 = scmp.lt.s32.totalorder %s3125_s20, %s3119_s2 }
 0xbe0   : > { %v2529_v60 = vpop.f32.mrb[51].mxu1 }
 0xbe1   : > { %p3121_p11 = pnand %p3120_p0, %p4043_p6  ;;  %p3128_p13 = por %p3127_p12, %p3126_p9 }
 0xbe3   : > { %p3122_p8 = pneg %p3121_p11 }
 0xbe5   : > { %p3129_p1 = pnand %p3128_p13, %p3122_p8 }
 0xc30   : > { %v1397_v61 = vpop.permute.xlu0 %1396 }
 0xc31   : > { %1400 = vst.msk [vmem:[#allocation2] sm:$0xff] %vm1399_vm6, %v1397_v61 }
 0xc38   : > { %v1514_v62 = vpop.permute.xlu1 %1513 }
 0xc39   : > { %1517 = vst.msk [vmem:[#allocation2] sm:$0xff] %vm1516_vm7, %v1514_v62 }
 0xc40   : > { %v1631_v0 = vpop.permute.xlu0 %1630 }
 0xc41   : > { %1634 = vst.msk [vmem:[#allocation2] sm:$0xff] %vm1633_vm8, %v1631_v0 }
 0xc48   : > { %v1748_v63 = vpop.permute.xlu1 %1747 }
 0xc49   : > { %1751 = vst.msk [vmem:[#allocation2] sm:$0xff] %vm1750_vm9, %v1748_v63 }
 0xc50   : > { %v1865_v1 = vpop.permute.xlu0 %1864 }
 0xc51   : > { %1868 = vst.msk [vmem:[#allocation2] sm:$0xff] %vm1867_vm10, %v1865_v1 }
 0xc58   : > { %v1869_v2 = vld [vmem:[#allocation2] sm:$0xff] }
 0xc59   : > { %v1870_v3 = vpack.c.bf16 %v1869_v2, %v1869_v2 }
 0xc5b   : > { %2547 = vmatmul.mubr.bf16.vlgmr.msra.gmra.mrb[24].mxu0 %v1870_v3 }
 0xd2e   : > { %v1976_v8 = vpop.f32.mrb[24].mxu0 }
 0xd2f   : > { %v1977_v7 = vadd.f32 %v2291_v5, %v1976_v8  ;;  %v2548_v9 = vpop.f32.mrb[25].mxu0 }
 0xd30   : > { %v1979_v10 = vpop.f32.mrb[26].mxu0 }
 0xd31   : > { %v2549_v59 = vpop.f32.mrb[27].mxu0  ;;  %v1984_v11 = vadd.f32 %v1983_v6, %v1977_v7 }
 0xd33   : > { %1985 = vadd.xlane.f32.xlu1 %v1984_v11 }
 0xdc0   : > { %v1986_v33 = vpop.xlane.xlu1 %1985 }
 0xdc1   : > { %v1988_v12 = vmul.f32 0.0078125, %v1986_v33 }
 0xdc3   : > { %v1989_v13 = vsub.f32 %v1984_v11, %v1988_v12 }
 0xdc5   : > { %v1990_v14 = vmul.f32 %v1989_v13, %v1989_v13 }
 0xdc7   : > { %1991 = vadd.xlane.f32.xlu0 %v1990_v14 }
 0xe54   : > { %v1992_v15 = vpop.xlane.xlu0 %1991 }
 0xe55   : > { %v1993_v16 = vmul.f32 0.0078125, %v1992_v15 }
 0xe57   : > { %v1994_v17 = vadd.f32 1e-05, %v1993_v16 }
 0xe59   : > { %2777 = vrsqrt.f32 %v1994_v17 }
 0xe63   : > { %v2778_v18 = vpop.eup %2777 }
 0xe64   : > { %v1996_v20 = vmul.f32 %v2778_v18, %v1989_v13 }
 0xe66   : > { %v2004_v22 = vmul.f32 %v2300_v19, %v1996_v20 }
 0xe68   : > { %v2012_v23 = vadd.f32 %v2301_v21, %v2004_v22 }
 0xe6a   : > { %v2013_v24 = vpack.c.bf16 %v2012_v23, %v2012_v23 }
 0xe6c   : > { %2014 = vst [vmem:[%s598_s25] sm:$0xf] %v2013_v24 }
 0xe6d   : > { %3132 = shalt.err (!%p3129_p1)
}
 0xe6e   : > { %s3133_s6 = scalar_lea.hbm %s3930_s1, 64  ;;  %s3137_s8 = scalar_lea.hbm %s4042_s28, 128 }
 0xe6f   : > { %p3134_p3 = scmp.ne.s32.totalorder %s3930_s1, %s3133_s6  ;;  %p3138_p10 = scmp.lt.u32.totalorder %s3930_s1, %s4042_s28 }
 0xe70   : > { %p3139_p5 = scmp.lt.u32.totalorder %s3137_s8, %s3133_s6  ;;  %p3141_p0 = scmp.lt.u32.totalorder %s3133_s6, %s3930_s1 }
 0xe71   : > { %p3135_p2 = pnand %p3134_p3, %p4043_p6 }
 0xe72   : > { %p3140_p7 = por %p3139_p5, %p3138_p10 }
 0xe73   : > { %p3136_p4 = pneg %p3135_p2 }
 0xe74   : > { %p3142_p11 = por %p3141_p0, %p3140_p7 }
 0xe76   : > { %p3143_p8 = pnand %p3142_p11, %p3136_p4 }
 0xe78   : > { %3146 = shalt.err (!%p3143_p8)
}
 0xe79   : > { %2594 = dma.vmem_to_hbm [thread:$0]  (%p4043_p6), %s3932_s12, 64, %s3930_s1, %s2016_s7  }
 0xe7a PF: > { %s2041_s17 = sand.u32 1, %s3201_s21   ;;  %p4044_p9 = scmp.ne.s32.totalorder %s4023_s0, 0 }
 0xe7b   : > { %p4045_p12 = scmp.ge.s32.totalorder %s3213_s24, 2  ;;  %s2042_s25 = scalar_lea.sflag [#allocation5], %s2041_s17 }
 0xe7d   : > { %p2635_p13 = pnand %p4045_p12, %p4044_p9 }
 0xe7f   : > { %3196 = dma.done.wait (!%p2635_p13), %s2042_s25, 64  }
 0xe80   : > { %3198 = vsyncadd (!%p2635_p13), %s2042_s25, 4294967232  ;;  %p33_p1 = scmp.ge.s32.totalorder %s3566_s13, 4   ;;  %s4046_s21 = smov %s3205_s22 }
 0xe81   : > { %s4047_s22 = smov %s3209_s23  ;;  %s4048_s23 = smov %s3577_s16 }
 0xe82   : > { %s4049_s24 = smov %s3566_s13  ;;  %35 = sbr.rel (!%p33_p1) target bundleno = 23 (0x17), region = 166 }
 0xe89   :  { %2047 = vsyncpa [#allocation4], 1 }
 0xe8a   :  { %2049 = vsyncpa [#allocation4 + $0x1], 1 }
 0xe8b   :  { %2050 = vsyncpa [#allocation7], 1 }
 0xe8c   :  { %2052 = vsyncpa [#allocation7 + $0x1], 1 }
 0xe8d   :  { %2053 = vsyncpa [#allocation10], 1 }
 0xe8e   :  { %2054 = vsyncpa [#allocation13], 1 }
 0xe8f   :  { %2055 = vsyncpa [#allocation16], 1 }
 0xe90   :  { %2056 = vsyncpa [#allocation19], 1 }
 0xe91   :  { %2057 = vsyncpa [#allocation22], 1 }
 0xe92   :  { %2058 = vsyncpa [#allocation5], 1 }
 0xe93   :  { %2060 = vsyncpa [#allocation5 + $0x1], 1 }

// kernel: fwd.37
= control target key start
LH: loop header
LB: loop body
LE: loop exit
PB: predicated region body
PF: predicated region fallthrough
CT: control target
= control target key end

     0   :  { %8 = vsyncpa [#allocation4], 0  ;;  %s710_s0 = inlined_call_operand.hbm [shape: bf16[16,128], index: 0, kind: input, shape index: {}]   ;;  %s711_s1 = inlined_call_operand.hbm [shape: bf16[128,512], index: 1, kind: input, shape index: {}]   ;;  %s712_s2 = inlined_call_operand.hbm [shape: f32[1,512], index: 2, kind: input, shape index: {}]   ;;  %s713_s3 = inlined_call_operand.hbm [shape: f32[16,512], index: 3, kind: output, shape index: {}]  }
   0x1   :  { %9 = vsyncpa [#allocation7], 0 }
   0x2   :  { %10 = vsyncpa [#allocation5], 0  ;;  %s631_s12 = smov [#allocation6]   ;;  %s537_s16 = scalar_lea.hbm %s711_s1, 4096 }
   0x3   :  { %s28_s13 = sshll.u32 %s631_s12, 4  ;;  %p538_p0 = scmp.ne.s32.totalorder %s711_s1, %s537_s16  ;;  %s29_s13 = int_to_ptr.vmem [resolvable:$true] %s28_s13 }
   0x4   :  { %p541_p1 = scmp.lt.u32.totalorder %s537_s16, %s711_s1 }
   0x6   :  { %p543_p2 = pnand %p541_p1, %p538_p0 }
   0x8   :  { %546 = shalt.err (!%p543_p2)
}
   0x9   :  { %s547_s21 = scalar_lea.vmem %s29_s13, 4096  ;;  %p552_p4 = scmp.lt.s32.totalorder %s29_s13, %s29_s13 }
   0xa   :  { %p548_p3 = scmp.ne.s32.totalorder %s29_s13, %s547_s21  ;;  %p553_p5 = scmp.lt.s32.totalorder %s547_s21, %s547_s21 }
   0xc   :  { %p554_p6 = por %p553_p5, %p552_p4 }
   0xe   :  { %p555_p7 = pnand %p554_p6, %p548_p3 }
  0x10   :  { %558 = shalt.err (!%p555_p7)
}
  0x11   :  { %s632_s22 = smov 256   ;;  %s633_s23 = smov 16  }
  0x12   :  { %34 = dma.hbm_to_vmem [thread:$0]  %s711_s1, 4096, %s29_s13, [#allocation7], %s632_s22, %s632_s22, %s633_s23  }
  0x13   :  { %s634_s26 = smov [#allocation3]   ;;  %s559_s30 = scalar_lea.hbm %s710_s0, 128 }
  0x14   :  { %s16_s27 = sshll.u32 %s634_s26, 4  ;;  %p560_p8 = scmp.ne.s32.totalorder %s710_s0, %s559_s30  ;;  %s17_s27 = int_to_ptr.vmem [resolvable:$true] %s16_s27 }
  0x15   :  { %p563_p9 = scmp.lt.u32.totalorder %s559_s30, %s710_s0 }
  0x17   :  { %p565_p10 = pnand %p563_p9, %p560_p8 }
  0x19   :  { %568 = shalt.err (!%p565_p10)
}
  0x1a   :  { %s569_s8 = scalar_lea.vmem %s17_s27, 128  ;;  %p574_p12 = scmp.lt.s32.totalorder %s17_s27, %s17_s27 }
  0x1b   :  { %p570_p11 = scmp.ne.s32.totalorder %s17_s27, %s569_s8  ;;  %p575_p13 = scmp.lt.s32.totalorder %s569_s8, %s569_s8 }
  0x1d   :  { %p576_p0 = por %p575_p13, %p574_p12 }
  0x1f   :  { %p577_p1 = pnand %p576_p0, %p570_p11 }
  0x21   :  { %580 = shalt.err (!%p577_p1)
}
  0x22   :  { %s635_s1 = smov 64   ;;  %s636_s9 = smov 4  }
  0x23   :  { %22 = dma.hbm_to_vmem [thread:$0]  %s710_s0, 128, %s17_s27, [#allocation4], %s635_s1, %s635_s1, %s636_s9  }
  0x24   :  { %s637_s12 = smov [#allocation8]   ;;  %s581_s16 = scalar_lea.hbm %s712_s2, 64 }
  0x25   :  { %s41_s13 = sshll.u32 %s637_s12, 4  ;;  %p582_p2 = scmp.ne.s32.totalorder %s712_s2, %s581_s16  ;;  %s42_s13 = int_to_ptr.vmem [resolvable:$true] %s41_s13 }
  0x26   :  { %p585_p3 = scmp.lt.u32.totalorder %s581_s16, %s712_s2 }
  0x28   :  { %p587_p4 = pnand %p585_p3, %p582_p2 }
  0x2a   :  { %590 = shalt.err (!%p587_p4)
}
  0x2b   :  { %s591_s21 = scalar_lea.vmem %s42_s13, 64  ;;  %p596_p6 = scmp.lt.s32.totalorder %s42_s13, %s42_s13 }
  0x2c   :  { %p592_p5 = scmp.ne.s32.totalorder %s42_s13, %s591_s21  ;;  %p597_p7 = scmp.lt.s32.totalorder %s591_s21, %s591_s21 }
  0x2e   :  { %p598_p8 = por %p597_p7, %p596_p6 }
  0x30   :  { %p599_p9 = pnand %p598_p8, %p592_p5 }
  0x32   :  { %602 = shalt.err (!%p599_p9)
}
  0x33   :  { %44 = dma.hbm_to_vmem [thread:$0]  %s712_s2, 64, %s42_s13, [#allocation7]  }
  0x34   :  { %625 = dma.done.wait [#allocation4], 128  }
  0x35   :  { %626 = vsyncadd [#allocation4], 4294967168 }
  0x36   :  { %627 = dma.done.wait [#allocation7], 4160  }
  0x37   :  { %628 = vsyncadd [#allocation7], 4294963136  ;;  %v638_v0 = vmov 0   ;;  %v488_v1 = vld [vmem:[#allocation6 + $0x4] ss:$16 sps:$4 sm:$0xff]   ;;  %v536_v33 = vld [vmem:[#allocation3] sm:$0xff]   ;;  %v390_v34 = vlaneseq }
  0x38   :  { %307 = vmatprep.mubr.bf16.mxu0 %v638_v0  ;;  %350 = vmatprep.mubr.bf16.mxu1 %v638_v0  ;;  %v490_v2 = vld [vmem:[#allocation6 + $0xc] ss:$16 sps:$4 sm:$0xff]   ;;  %v492_v3 = vld [vmem:[#allocation6] ss:$16 sps:$4 sm:$0xff]   ;;  %v493_v4 = vld [vmem:[#allocation6 + $0x8] ss:$16 sps:$4 sm:$0xff]  }
  0x39   :  { %275 = vmatprep.subr.bf16.mxu0 %v488_v1  ;;  %318 = vmatprep.subr.bf16.mxu1 %v490_v2  ;;  %v494_v5 = vld [vmem:[#allocation6 + $0x24] ss:$16 sps:$4 sm:$0xff]   ;;  %v496_v6 = vld [vmem:[#allocation6 + $0x2c] ss:$16 sps:$4 sm:$0xff]   ;;  %v498_v7 = vld [vmem:[#allocation6 + $0x20] ss:$16 sps:$4 sm:$0xff]  }
  0x3a   :  { %276 = vmatpush1.bf16.msra.mxu0 %v492_v3  ;;  %319 = vmatpush1.bf16.msra.mxu1 %v493_v4  ;;  %v499_v8 = vld [vmem:[#allocation6 + $0x28] ss:$16 sps:$4 sm:$0xff]   ;;  %v500_v9 = vld [vmem:[#allocation6 + $0x44] ss:$16 sps:$4 sm:$0xff]   ;;  %v502_v10 = vld [vmem:[#allocation6 + $0x4c] ss:$16 sps:$4 sm:$0xff]  }
  0x3b   :  { %277 = vmatprep.subr.bf16.mxu0 %v494_v5  ;;  %320 = vmatprep.subr.bf16.mxu1 %v496_v6  ;;  %v504_v11 = vld [vmem:[#allocation6 + $0x40] ss:$16 sps:$4 sm:$0xff]   ;;  %v505_v12 = vld [vmem:[#allocation6 + $0x48] ss:$16 sps:$4 sm:$0xff]   ;;  %v506_v13 = vld [vmem:[#allocation6 + $0x64] ss:$16 sps:$4 sm:$0xff]  }
  0x3c   :  { %v508_v14 = vld [vmem:[#allocation6 + $0x6c] ss:$16 sps:$4 sm:$0xff]   ;;  %v510_v15 = vld [vmem:[#allocation6 + $0x60] ss:$16 sps:$4 sm:$0xff]   ;;  %v511_v16 = vld [vmem:[#allocation6 + $0x68] ss:$16 sps:$4 sm:$0xff]  }
  0x3d   :  { %v512_v17 = vld [vmem:[#allocation6 + $0x84] ss:$16 sps:$4 sm:$0xff]   ;;  %v514_v18 = vld [vmem:[#allocation6 + $0x8c] ss:$16 sps:$4 sm:$0xff]   ;;  %v516_v19 = vld [vmem:[#allocation6 + $0x80] ss:$16 sps:$4 sm:$0xff]  }
  0x3e   :  { %278 = vmatpush1.bf16.msra.mxu0 %v498_v7  ;;  %321 = vmatpush1.bf16.msra.mxu1 %v499_v8  ;;  %v517_v20 = vld [vmem:[#allocation6 + $0x88] ss:$16 sps:$4 sm:$0xff]   ;;  %v518_v21 = vld [vmem:[#allocation6 + $0xa4] ss:$16 sps:$4 sm:$0xff]   ;;  %v520_v22 = vld [vmem:[#allocation6 + $0xac] ss:$16 sps:$4 sm:$0xff]  }
  0x3f   :  { %279 = vmatprep.subr.bf16.mxu0 %v500_v9  ;;  %322 = vmatprep.subr.bf16.mxu1 %v502_v10  ;;  %v522_v23 = vld [vmem:[#allocation6 + $0xa0] ss:$16 sps:$4 sm:$0xff]   ;;  %v523_v24 = vld [vmem:[#allocation6 + $0xa8] ss:$16 sps:$4 sm:$0xff]   ;;  %v524_v25 = vld [vmem:[#allocation6 + $0xc4] ss:$16 sps:$4 sm:$0xff]  }
  0x40   :  { %v526_v26 = vld [vmem:[#allocation6 + $0xcc] ss:$16 sps:$4 sm:$0xff]   ;;  %v528_v27 = vld [vmem:[#allocation6 + $0xc0] ss:$16 sps:$4 sm:$0xff]   ;;  %v529_v28 = vld [vmem:[#allocation6 + $0xc8] ss:$16 sps:$4 sm:$0xff]  }
  0x41   :  { %v530_v29 = vld [vmem:[#allocation6 + $0xe4] ss:$16 sps:$4 sm:$0xff]   ;;  %v532_v30 = vld [vmem:[#allocation6 + $0xec] ss:$16 sps:$4 sm:$0xff]   ;;  %v534_v31 = vld [vmem:[#allocation6 + $0xe0] ss:$16 sps:$4 sm:$0xff]  }
  0x42   :  { %280 = vmatpush1.bf16.msra.mxu0 %v504_v11  ;;  %323 = vmatpush1.bf16.msra.mxu1 %v505_v12  ;;  %v535_v32 = vld [vmem:[#allocation6 + $0xe8] ss:$16 sps:$4 sm:$0xff]   ;;  %v391_v35 = vshrl.u32 %v390_v34, 7  ;;  %v388_v38 = vld [vmem:[#allocation8] sm:$0xf]  ;;  %s639_s2 = smov [#allocation9]  }
  0x43   :  { %281 = vmatprep.subr.bf16.mxu0 %v506_v13  ;;  %324 = vmatprep.subr.bf16.mxu1 %v508_v14  ;;  %s431_s23 = sshll.u32 %s639_s2, 4  ;;  %s432_s23 = int_to_ptr.vmem [resolvable:$true] %s431_s23 }
  0x44   :  { %v392_v36 = vsub.s32 0, %v391_v35  ;;  %v400_v37 = vsub.s32 2, %v391_v35  ;;  %v396_v39 = vsub.s32 1, %v391_v35  ;;  %v404_v40 = vsub.s32 3, %v391_v35  ;;  %s603_s24 = scalar_lea.vmem %s432_s23, 1024  ;;  %p608_p11 = scmp.lt.s32.totalorder %s432_s23, %s432_s23 }
  0x45   :  { %p604_p10 = scmp.ne.s32.totalorder %s432_s23, %s603_s24  ;;  %p609_p12 = scmp.lt.s32.totalorder %s603_s24, %s603_s24 }
  0x46   :  { %282 = vmatpush1.bf16.msra.mxu0 %v510_v15  ;;  %325 = vmatpush1.bf16.msra.mxu1 %v511_v16  ;;  %v393_v41 = vrot.slane %v388_v38, %v392_v36  ;;  %v401_v42 = vrot.slane %v388_v38, %v400_v37  ;;  %v397_v43 = vrot.slane %v388_v38, %v396_v39 }
  0x47   :  { %283 = vmatprep.subr.bf16.mxu0 %v512_v17  ;;  %326 = vmatprep.subr.bf16.mxu1 %v514_v18  ;;  %v405_v44 = vrot.slane %v388_v38, %v404_v40  ;;  %p610_p13 = por %p609_p12, %p608_p11 }
  0x49   :  { %p611_p0 = pnand %p610_p13, %p604_p10 }
  0x4a   :  { %284 = vmatpush1.bf16.msra.mxu0 %v516_v19  ;;  %327 = vmatpush1.bf16.msra.mxu1 %v517_v20 }
  0x4b   :  { %285 = vmatprep.subr.bf16.mxu0 %v518_v21  ;;  %328 = vmatprep.subr.bf16.mxu1 %v520_v22 }
  0x4e   :  { %286 = vmatpush1.bf16.msra.mxu0 %v522_v23  ;;  %329 = vmatpush1.bf16.msra.mxu1 %v523_v24 }
  0x4f   :  { %287 = vmatprep.subr.bf16.mxu0 %v524_v25  ;;  %330 = vmatprep.subr.bf16.mxu1 %v526_v26 }
  0x52   :  { %288 = vmatpush1.bf16.msra.mxu0 %v528_v27  ;;  %331 = vmatpush1.bf16.msra.mxu1 %v529_v28 }
  0x53   :  { %289 = vmatprep.subr.bf16.mxu0 %v530_v29  ;;  %332 = vmatprep.subr.bf16.mxu1 %v532_v30 }
  0x56   :  { %290 = vmatpush1.bf16.msra.mxu0 %v534_v31  ;;  %333 = vmatpush1.bf16.msra.mxu1 %v535_v32 }
  0x59   :  { %308 = vmatmul.mubr.bf16.vlgmr.msra.gmra.mrb[0].mxu0 %v536_v33  ;;  %351 = vmatmul.mubr.bf16.vlgmr.msra.gmra.mrb[0].mxu1 %v536_v33 }
 0x12c   :  { %v309_v45 = vpop.f32.mrb[0].mxu0  ;;  %v352_v46 = vpop.f32.mrb[0].mxu1 }
 0x12d   :  { %v410_v47 = vadd.f32 %v393_v41, %v309_v45  ;;  %v412_v48 = vadd.f32 %v401_v42, %v352_v46  ;;  %v311_v49 = vpop.f32.mrb[1].mxu0  ;;  %v354_v50 = vpop.f32.mrb[1].mxu1 }
 0x12e   :  { %v411_v51 = vadd.f32 %v397_v43, %v311_v49  ;;  %v413_v52 = vadd.f32 %v405_v44, %v354_v50  ;;  %v313_v53 = vpop.f32.mrb[2].mxu0  ;;  %v356_v54 = vpop.f32.mrb[2].mxu1 }
 0x12f   :  { %418 = vst [vmem:[#allocation9] sm:$0xff] %v410_v47  ;;  %420 = vst [vmem:[#allocation9 + $0x10] sm:$0xff] %v412_v48  ;;  %v414_v55 = vadd.f32 %v393_v41, %v313_v53  ;;  %v416_v56 = vadd.f32 %v401_v42, %v356_v54  ;;  %v315_v57 = vpop.f32.mrb[3].mxu0  ;;  %v358_v58 = vpop.f32.mrb[3].mxu1 }
 0x130   :  { %419 = vst [vmem:[#allocation9 + $0x8] sm:$0xff] %v411_v51  ;;  %421 = vst [vmem:[#allocation9 + $0x18] sm:$0xff] %v413_v52  ;;  %v415_v59 = vadd.f32 %v397_v43, %v315_v57  ;;  %v417_v60 = vadd.f32 %v405_v44, %v358_v58 }
 0x131   :  { %422 = vst [vmem:[#allocation9 + $0x20] sm:$0xff] %v414_v55  ;;  %424 = vst [vmem:[#allocation9 + $0x30] sm:$0xff] %v416_v56 }
 0x132   :  { %423 = vst [vmem:[#allocation9 + $0x28] sm:$0xff] %v415_v59  ;;  %425 = vst [vmem:[#allocation9 + $0x38] sm:$0xff] %v417_v60 }
 0x133   :  { %614 = shalt.err (!%p611_p0)
}
 0x134   :  { %s615_s27 = scalar_lea.hbm %s713_s3, 1024 }
 0x135   :  { %p616_p1 = scmp.ne.s32.totalorder %s713_s3, %s615_s27  ;;  %p619_p2 = scmp.lt.u32.totalorder %s615_s27, %s713_s3 }
 0x137   :  { %p621_p3 = pnand %p619_p2, %p616_p1 }
 0x139   :  { %624 = shalt.err (!%p621_p3)
}
 0x13a   :  { %s640_s5 = smov 512   ;;  %s641_s6 = smov 32  }
 0x13b   :  { %437 = dma.vmem_to_hbm [thread:$0]  %s432_s23, 1024, %s713_s3, [#allocation5], %s640_s5, %s640_s5, %s641_s6  }
 0x13c   :  { %629 = dma.done.wait [#allocation5], 1024  }
 0x13d   :  { %630 = vsyncadd [#allocation5], 4294966272 }
 0x13e   :  { %441 = vsyncpa [#allocation4], 1 }
 0x13f   :  { %442 = vsyncpa [#allocation7], 1 }
 0x140   :  { %443 = vsyncpa [#allocation5], 1 }

</bundles_post_ra>
